<compile_context>
chip_gen: v7x
topology: tpu7x:2x2x1
jax: 0.10.0
libtpu: 0.0.40
codegen_flags: <defaults>
</compile_context>

<pallas_src>
import functools
import math

import jax
import jax.numpy as jnp
from jax.experimental import pallas as pl
from jax.experimental.pallas import tpu as pltpu

NC = 3
NDF = 64 * 2  # 128
BN_EPS = 1e-5
LRELU_SLOPE = 0.2


def _round_up(x, m):
    return (x + m - 1) // m * m


# --------------------------------------------------------------------------
# Fused conv matmul kernel: bf16 operands, f32 accumulate, optional activation
# epilogue, optional per-tile BN partial statistics.
# --------------------------------------------------------------------------
def _conv_mm_kernel(a_ref, b_ref, *rest, act, slope, emit_stats):
    if emit_stats:
        o_ref, stats_ref, acc_ref = rest
    else:
        o_ref, acc_ref = rest

    @pl.when(pl.program_id(2) == 0)
    def _():
        acc_ref[...] = jnp.zeros_like(acc_ref)

    acc_ref[...] += jnp.dot(a_ref[...], b_ref[...],
                            preferred_element_type=jnp.float32)

    @pl.when(pl.program_id(2) == pl.num_programs(2) - 1)
    def _():
        y = acc_ref[...]
        if emit_stats:
            ps = jnp.sum(y, axis=0, keepdims=True)        # (1, tn)
            pq = jnp.sum(y * y, axis=0, keepdims=True)    # (1, tn)
            stats_ref[...] = jnp.concatenate([ps, pq], axis=0).reshape(
                stats_ref.shape)
        if act == "lrelu":
            y = jnp.where(y >= 0.0, y, slope * y)
        elif act == "sigmoid":
            y = 1.0 / (1.0 + jnp.exp(-y))
        o_ref[...] = y.astype(o_ref.dtype)


def fused_conv_matmul(a, b, *, act="none", emit_stats=False,
                      out_dtype=jnp.bfloat16, tm=256, tn=256, tk=1024):
    """C = act(A @ B) with optional per-tile channel sum/sum-sq statistics."""
    M, K = a.shape
    K2, N = b.shape
    assert K == K2

    # ---- tile selection, adapted to the layer shape (minimal padding) ----
    tm = min(tm, _round_up(M, 8))          # tiny-M layers: tm = 8, not 128/256
    Mp = _round_up(M, tm)
    Np = _round_up(N, 128)
    tn = min(tn, Np)
    if Np % tn:
        tn = 128
    if K < 128:
        Kp, tk = K, K                      # conv1: single full-K (=48) block
    else:
        Kp = _round_up(K, 128)
        tk = math.gcd(Kp, tk)              # largest multiple of 128 <= tk dividing Kp

    a = a.astype(jnp.bfloat16)
    b = b.astype(jnp.bfloat16)
    if (Mp, Kp) != (M, K):
        a = jnp.pad(a, ((0, Mp - M), (0, Kp - K)))
    if (Kp, Np) != (K, N):
        b = jnp.pad(b, ((0, Kp - K), (0, Np - N)))

    grid = (Mp // tm, Np // tn, Kp // tk)

    out_shapes = [jax.ShapeDtypeStruct((Mp, Np), out_dtype)]
    out_specs = [pl.BlockSpec((tm, tn), lambda i, j, k: (i, j))]
    if emit_stats:
        out_shapes.append(jax.ShapeDtypeStruct((grid[0], 2, Np), jnp.float32))
        out_specs.append(pl.BlockSpec((1, 2, tn), lambda i, j, k: (i, 0, j)))

    res = pl.pallas_call(
        functools.partial(_conv_mm_kernel, act=act, slope=LRELU_SLOPE,
                          emit_stats=emit_stats),
        out_shape=tuple(out_shapes),
        grid_spec=pltpu.PrefetchScalarGridSpec(
            num_scalar_prefetch=0,
            grid=grid,
            in_specs=[pl.BlockSpec((tm, tk), lambda i, j, k: (i, k)),
                      pl.BlockSpec((tk, tn), lambda i, j, k: (k, j))],
            out_specs=tuple(out_specs),
            scratch_shapes=[pltpu.VMEM((tm, tn), jnp.float32)]),
        compiler_params=pltpu.CompilerParams(
            dimension_semantics=("parallel", "parallel", "arbitrary"),
            vmem_limit_bytes=32 * 1024 * 1024),
    )(a, b)

    out = res[0]
    if (Mp, Np) != (M, N):
        out = out[:M, :N]
    if emit_stats:
        stats = res[1]
        if Np != N:
            stats = stats[:, :, :N]
        return out, stats
    return out


# --------------------------------------------------------------------------
# Tiled element-wise kernel: y = act(x * scale + shift)  (per-channel affine)
# --------------------------------------------------------------------------
def _affine_act_kernel(x_ref, s_ref, t_ref, o_ref, *, act, slope):
    y = x_ref[...].astype(jnp.float32) * s_ref[...] + t_ref[...]
    if act == "lrelu":
        y = jnp.where(y >= 0.0, y, slope * y)
    elif act == "sigmoid":
        y = 1.0 / (1.0 + jnp.exp(-y))
    o_ref[...] = y.astype(o_ref.dtype)


def pallas_affine_act(x2d, scale, shift, act="lrelu",
                      out_dtype=jnp.bfloat16, bm=1024):
    M, C = x2d.shape
    bm = min(bm, _round_up(M, 8))
    Mp = _round_up(M, bm)
    if Mp != M:
        x2d = jnp.pad(x2d, ((0, Mp - M), (0, 0)))
    scale = jnp.asarray(scale, jnp.float32).reshape(1, C)
    shift = jnp.asarray(shift, jnp.float32).reshape(1, C)
    out = pl.pallas_call(
        functools.partial(_affine_act_kernel, act=act, slope=LRELU_SLOPE),
        out_shape=jax.ShapeDtypeStruct((Mp, C), out_dtype),
        grid_spec=pltpu.PrefetchScalarGridSpec(
            num_scalar_prefetch=0,
            grid=(Mp // bm,),
            in_specs=[pl.BlockSpec((bm, C), lambda i: (i, 0)),
                      pl.BlockSpec((1, C), lambda i: (0, 0)),
                      pl.BlockSpec((1, C), lambda i: (0, 0))],
            out_specs=pl.BlockSpec((bm, C), lambda i: (i, 0))),
        compiler_params=pltpu.CompilerParams(
            dimension_semantics=("parallel",)),
    )(x2d, scale, shift)
    return out[:M] if Mp != M else out


# --------------------------------------------------------------------------
# JAX glue: nearest resize, im2col, ceil-mode maxpool
# --------------------------------------------------------------------------
def nearest_resize_to_64(x_nhwc):
    N, H, W, C = x_nhwc.shape
    hi = jnp.clip(jnp.floor(jnp.arange(64) * (H / 64.0)).astype(jnp.int32), 0, H - 1)
    wi = jnp.clip(jnp.floor(jnp.arange(64) * (W / 64.0)).astype(jnp.int32), 0, W - 1)
    return x_nhwc[:, hi][:, :, wi]


def im2col(x_nhwc, kh, kw, stride, pad):
    # TODO(synk): the 16x-duplicated patch tensor is still materialized in HBM;
    # a direct-read Pallas conv BlockSpec would remove this stream.
    N, H, W, C = x_nhwc.shape
    xp = jnp.pad(x_nhwc, ((0, 0), (pad, pad), (pad, pad), (0, 0)))
    OH = (H + 2 * pad - kh) // stride + 1
    OW = (W + 2 * pad - kw) // stride + 1
    cols = []
    for i in range(kh):
        for j in range(kw):
            cols.append(xp[:, i:i + stride * (OH - 1) + 1:stride,
                           j:j + stride * (OW - 1) + 1:stride, :])
    patches = jnp.stack(cols, axis=3)              # (N, OH, OW, kh*kw, C)
    return patches.reshape(N * OH * OW, kh * kw * C), (N, OH, OW)


def conv2d_pallas(x_nhwc, w_oihw, stride, pad, *, act="none",
                  emit_stats=False, out_dtype=jnp.bfloat16):
    Cout, Cin, kh, kw = w_oihw.shape
    cols, (N, OH, OW) = im2col(x_nhwc, kh, kw, stride, pad)
    wmat = jnp.transpose(w_oihw, (2, 3, 1, 0)).reshape(kh * kw * Cin, Cout)
    res = fused_conv_matmul(cols, wmat, act=act, emit_stats=emit_stats,
                            out_dtype=out_dtype)
    if emit_stats:
        y, stats = res
        return y.reshape(N, OH, OW, Cout), stats
    return res.reshape(N, OH, OW, Cout)


def maxpool_3x3_s2_ceil(x_nhwc):
    # PyTorch MaxPool2d(kernel_size=3, stride=2, ceil_mode=True); -inf padding
    # on the high side reproduces the partially-covered last window.
    neg_inf = jnp.array(-jnp.inf, dtype=x_nhwc.dtype)
    return jax.lax.reduce_window(
        x_nhwc, neg_inf, jax.lax.max,
        window_dimensions=(1, 3, 3, 1),
        window_strides=(1, 2, 2, 1),
        padding=((0, 0), (0, 1), (0, 1), (0, 0)))


# --------------------------------------------------------------------------
# Model: parameter init + forward
# --------------------------------------------------------------------------
def init_params(key):
    ks = jax.random.split(key, 5)

    def w(k, cout, cin, kh, kw):
        return jax.random.normal(k, (cout, cin, kh, kw), jnp.float32) * 0.02

    return {
        "w1": w(ks[0], NDF, NC, 4, 4),
        "w2": w(ks[1], NDF * 2, NDF, 4, 4),
        "g2": jnp.ones((NDF * 2,), jnp.float32), "b2": jnp.zeros((NDF * 2,), jnp.float32),
        "w3": w(ks[2], NDF * 4, NDF * 2, 4, 4),
        "g3": jnp.ones((NDF * 4,), jnp.float32), "b3": jnp.zeros((NDF * 4,), jnp.float32),
        "w4": w(ks[3], NDF * 8, NDF * 4, 4, 4),
        "g4": jnp.ones((NDF * 8,), jnp.float32), "b4": jnp.zeros((NDF * 8,), jnp.float32),
        "w5": w(ks[4], 1, NDF * 8, 2, 2),
    }


def _bn_lrelu(y_nhwc, stats, gamma, beta):
    # stats: (num_m_tiles, 2, C) partial [sum, sum_sq] emitted by the conv epilogue.
    N, OH, OW, C = y_nhwc.shape
    m = N * OH * OW
    ssum = jnp.sum(stats[:, 0, :], axis=0)
    ssq = jnp.sum(stats[:, 1, :], axis=0)
    mean = ssum / m
    var = jnp.maximum(ssq / m - mean * mean, 0.0)   # clamp: fp cancellation guard
    scale = gamma / jnp.sqrt(var + BN_EPS)
    shift = beta - mean * scale
    out = pallas_affine_act(y_nhwc.reshape(-1, C), scale, shift,
                            act="lrelu", out_dtype=jnp.bfloat16)
    return out.reshape(N, OH, OW, C)


def dddd_discriminator_forward(x_nchw, params):
    # TODO(synk): self.ctr toggling in the torch forward is stateful bookkeeping
    # with no effect on the output; not reproduced.
    # TODO(synk): BatchNorm uses train-mode batch statistics (fresh torch module);
    # running-stat updates are not modelled.
    x = jnp.transpose(x_nchw, (0, 2, 3, 1)).astype(jnp.bfloat16)  # NCHW -> NHWC
    x = nearest_resize_to_64(x)                                   # (N,64,64,3)

    # ---- main0 ----
    y = conv2d_pallas(x, params["w1"], 2, 1, act="lrelu")         # (N,32,32,128)

    y, st = conv2d_pallas(y, params["w2"], 2, 1, emit_stats=True) # (N,16,16,256)
    y = _bn_lrelu(y, st, params["g2"], params["b2"])

    y, st = conv2d_pallas(y, params["w3"], 2, 1, emit_stats=True) # (N,8,8,512)
    y = _bn_lrelu(y, st, params["g3"], params["b3"])

    # ---- main1 ----
    y = maxpool_3x3_s2_ceil(y)                                    # (N,4,4,512)
    y, st = conv2d_pallas(y, params["w4"], 2, 1, emit_stats=True) # (N,2,2,1024)
    y = _bn_lrelu(y, st, params["g4"], params["b4"])

    # TODO(synk): conv5 could be folded into conv4's epilogue to avoid a second
    # tiny-M matmul; kept separate for clarity.
    y = conv2d_pallas(y, params["w5"], 1, 0, act="sigmoid",
                      out_dtype=jnp.float32)                      # (N,1,1,1)
    return y.reshape(-1)                                          # (N,)


if __name__ == "__main__":
    key = jax.random.PRNGKey(0)
    pkey, xkey = jax.random.split(key)
    params = init_params(pkey)
    # Small NCHW input, consistent with the module (nc=3); resized to 64x64 inside.
    x = jax.random.normal(xkey, (2, NC, 16, 16), jnp.float32)

    fwd = jax.jit(lambda xx: dddd_discriminator_forward(xx, params))
    out = fwd(x)
    jax.block_until_ready(out)
    assert out.shape == (2,)
    assert bool(jnp.all(jnp.isfinite(out)))
    print("KERNEL_OK")
</pallas_src>

<mosaic_0001>
module attributes {stable_mosaic.version = 11 : i64} {
  func.func @_conv_mm_kernel(%arg0: i32, %arg1: i32, %arg2: i32, %arg3: memref<256x48xbf16, #tpu.memory_space<vmem>>, %arg4: memref<48x128xbf16, #tpu.memory_space<vmem>>, %arg5: memref<256x128xbf16, #tpu.memory_space<vmem>>, %arg6: memref<256x128xf32, #tpu.memory_space<vmem>>) attributes {dimension_semantics = [#tpu.dimension_semantics<parallel>, #tpu.dimension_semantics<parallel>, #tpu.dimension_semantics<arbitrary>], iteration_bounds = array<i64: 8, 1, 1>, scalar_prefetch = 0 : i64, scratch_operands = 1 : i64, tpu.core_type = #tpu.core_type<tc>, window_params = [{transform_indices = @transform_0, window_bounds = array<i64: 256, 48>}, {transform_indices = @transform_1, window_bounds = array<i64: 48, 128>}, {transform_indices = @transform_2, window_bounds = array<i64: 256, 128>}]} {
    %c0_i32 = arith.constant 0 : i32
    %0 = arith.cmpi eq, %arg2, %c0_i32 : i32
    %1 = arith.extui %0 : i1 to i32
    %c0_i32_0 = arith.constant 0 : i32
    %2 = arith.cmpi ne, %1, %c0_i32_0 : i32
    scf.if %2 {
      %cst_10 = arith.constant 0.000000e+00 : f32
      %12 = vector.broadcast %cst_10 : f32 to vector<256x128xf32>
      %c0_11 = arith.constant 0 : index
      %c0_12 = arith.constant 0 : index
      %13 = vector.load %arg6[%c0_11, %c0_12] : memref<256x128xf32, #tpu.memory_space<vmem>>, vector<256x128xf32>
      tpu.vector_store %arg6[%c0_11, %c0_12], %12 {strides = array<i32>} : memref<256x128xf32, #tpu.memory_space<vmem>>, vector<256x128xf32>,
    } else {
    }
    %c0 = arith.constant 0 : index
    %c0_1 = arith.constant 0 : index
    %3 = vector.load %arg6[%c0, %c0_1] : memref<256x128xf32, #tpu.memory_space<vmem>>, vector<256x128xf32>
    %c0_2 = arith.constant 0 : index
    %c0_3 = arith.constant 0 : index
    %4 = vector.load %arg3[%c0_2, %c0_3] : memref<256x48xbf16, #tpu.memory_space<vmem>>, vector<256x48xbf16>
    %c0_4 = arith.constant 0 : index
    %c0_5 = arith.constant 0 : index
    %5 = vector.load %arg4[%c0_4, %c0_5] : memref<48x128xbf16, #tpu.memory_space<vmem>>, vector<48x128xbf16>
    %cst = arith.constant dense<0.000000e+00> : vector<256x128xf32>
    %6 = tpu.matmul %4, %5, %cst {dimension_numbers = #tpu.dot_dimension_numbers<[1], [0], [0], [1], [0, 0, 1, 1], [], []>} : vector<256x48xbf16>, vector<48x128xbf16>, vector<256x128xf32> -> vector<256x128xf32>
    %7 = arith.addf %3, %6 : vector<256x128xf32>
    %c0_6 = arith.constant 0 : index
    %c0_7 = arith.constant 0 : index
    %8 = vector.load %arg6[%c0_6, %c0_7] : memref<256x128xf32, #tpu.memory_space<vmem>>, vector<256x128xf32>
    tpu.vector_store %arg6[%c0_6, %c0_7], %7 {strides = array<i32>} : memref<256x128xf32, #tpu.memory_space<vmem>>, vector<256x128xf32>,
    %c0_i32_8 = arith.constant 0 : i32
    %9 = arith.cmpi eq, %arg2, %c0_i32_8 : i32
    %10 = arith.extui %9 : i1 to i32
    %c0_i32_9 = arith.constant 0 : i32
    %11 = arith.cmpi ne, %10, %c0_i32_9 : i32
    scf.if %11 {
      %c0_10 = arith.constant 0 : index
      %c0_11 = arith.constant 0 : index
      %12 = vector.load %arg6[%c0_10, %c0_11] : memref<256x128xf32, #tpu.memory_space<vmem>>, vector<256x128xf32>
      %cst_12 = arith.constant 0.000000e+00 : f32
      %13 = vector.broadcast %cst_12 : f32 to vector<256x128xf32>
      %14 = arith.cmpf oge, %12, %13 : vector<256x128xf32>
      %cst_13 = arith.constant 2.000000e-01 : f32
      %15 = vector.broadcast %cst_13 : f32 to vector<256x128xf32>
      %16 = arith.mulf %15, %12 : vector<256x128xf32>
      %17 = arith.select %14, %12, %16 : vector<256x128xi1>, vector<256x128xf32>
      %18 = arith.truncf %17 : vector<256x128xf32> to vector<256x128xbf16>
      %c0_14 = arith.constant 0 : index
      %c0_15 = arith.constant 0 : index
      %19 = vector.load %arg5[%c0_14, %c0_15] : memref<256x128xbf16, #tpu.memory_space<vmem>>, vector<256x128xbf16>
      tpu.vector_store %arg5[%c0_14, %c0_15], %18 {strides = array<i32>} : memref<256x128xbf16, #tpu.memory_space<vmem>>, vector<256x128xbf16>,
    } else {
    }
    return
  }
  func.func @transform_0(%arg0: i32, %arg1: i32, %arg2: i32) -> (i32, i32) {
    %c0_i32 = arith.constant 0 : i32
    return %arg0, %arg2 : i32, i32
  }
  func.func @transform_1(%arg0: i32, %arg1: i32, %arg2: i32) -> (i32, i32) {
    %c0_i32 = arith.constant 0 : i32
    return %arg2, %arg1 : i32, i32
  }
  func.func @transform_2(%arg0: i32, %arg1: i32, %arg2: i32) -> (i32, i32) {
    %c0_i32 = arith.constant 0 : i32
    return %arg0, %arg1 : i32, i32
  }
}

module attributes {stable_mosaic.version = 11 : i64} {
  func.func @_conv_mm_kernel(%arg0: i32, %arg1: i32, %arg2: i32, %arg3: memref<256x1024xbf16, #tpu.memory_space<vmem>>, %arg4: memref<1024x256xbf16, #tpu.memory_space<vmem>>, %arg5: memref<256x256xbf16, #tpu.memory_space<vmem>>, %arg6: memref<1x2x256xf32, #tpu.memory_space<vmem>>, %arg7: memref<256x256xf32, #tpu.memory_space<vmem>>) attributes {dimension_semantics = [#tpu.dimension_semantics<parallel>, #tpu.dimension_semantics<parallel>, #tpu.dimension_semantics<arbitrary>], iteration_bounds = array<i64: 2, 1, 2>, scalar_prefetch = 0 : i64, scratch_operands = 1 : i64, tpu.core_type = #tpu.core_type<tc>, window_params = [{transform_indices = @transform_0, window_bounds = array<i64: 256, 1024>}, {transform_indices = @transform_1, window_bounds = array<i64: 1024, 256>}, {transform_indices = @transform_2, window_bounds = array<i64: 256, 256>}, {transform_indices = @transform_3, window_bounds = array<i64: 1, 2, 256>}]} {
    %c0_i32 = arith.constant 0 : i32
    %0 = arith.cmpi eq, %arg2, %c0_i32 : i32
    %1 = arith.extui %0 : i1 to i32
    %c0_i32_0 = arith.constant 0 : i32
    %2 = arith.cmpi ne, %1, %c0_i32_0 : i32
    scf.if %2 {
      %cst_9 = arith.constant 0.000000e+00 : f32
      %12 = vector.broadcast %cst_9 : f32 to vector<256x256xf32>
      %c0_10 = arith.constant 0 : index
      %c0_11 = arith.constant 0 : index
      %13 = vector.load %arg7[%c0_10, %c0_11] : memref<256x256xf32, #tpu.memory_space<vmem>>, vector<256x256xf32>
      tpu.vector_store %arg7[%c0_10, %c0_11], %12 {strides = array<i32>} : memref<256x256xf32, #tpu.memory_space<vmem>>, vector<256x256xf32>,
    } else {
    }
    %c0 = arith.constant 0 : index
    %c0_1 = arith.constant 0 : index
    %3 = vector.load %arg7[%c0, %c0_1] : memref<256x256xf32, #tpu.memory_space<vmem>>, vector<256x256xf32>
    %c0_2 = arith.constant 0 : index
    %c0_3 = arith.constant 0 : index
    %4 = vector.load %arg3[%c0_2, %c0_3] : memref<256x1024xbf16, #tpu.memory_space<vmem>>, vector<256x1024xbf16>
    %c0_4 = arith.constant 0 : index
    %c0_5 = arith.constant 0 : index
    %5 = vector.load %arg4[%c0_4, %c0_5] : memref<1024x256xbf16, #tpu.memory_space<vmem>>, vector<1024x256xbf16>
    %cst = arith.constant dense<0.000000e+00> : vector<256x256xf32>
    %6 = tpu.matmul %4, %5, %cst {dimension_numbers = #tpu.dot_dimension_numbers<[1], [0], [0], [1], [0, 0, 1, 1], [], []>} : vector<256x1024xbf16>, vector<1024x256xbf16>, vector<256x256xf32> -> vector<256x256xf32>
    %7 = arith.addf %3, %6 : vector<256x256xf32>
    %c0_6 = arith.constant 0 : index
    %c0_7 = arith.constant 0 : index
    %8 = vector.load %arg7[%c0_6, %c0_7] : memref<256x256xf32, #tpu.memory_space<vmem>>, vector<256x256xf32>
    tpu.vector_store %arg7[%c0_6, %c0_7], %7 {strides = array<i32>} : memref<256x256xf32, #tpu.memory_space<vmem>>, vector<256x256xf32>,
    %c1_i32 = arith.constant 1 : i32
    %9 = arith.cmpi eq, %arg2, %c1_i32 : i32
    %10 = arith.extui %9 : i1 to i32
    %c0_i32_8 = arith.constant 0 : i32
    %11 = arith.cmpi ne, %10, %c0_i32_8 : i32
    scf.if %11 {
      %c0_9 = arith.constant 0 : index
      %c0_10 = arith.constant 0 : index
      %12 = vector.load %arg7[%c0_9, %c0_10] : memref<256x256xf32, #tpu.memory_space<vmem>>, vector<256x256xf32>
      %cst_11 = arith.constant dense<0.000000e+00> : vector<256xf32>
      %13 = vector.multi_reduction <add>, %12, %cst_11 [0] : vector<256x256xf32> to vector<256xf32>
      %14 = vector.shape_cast %13 : vector<256xf32> to vector<1x256xf32>
      %15 = arith.mulf %12, %12 : vector<256x256xf32>
      %cst_12 = arith.constant dense<0.000000e+00> : vector<256xf32>
      %16 = vector.multi_reduction <add>, %15, %cst_12 [0] : vector<256x256xf32> to vector<256xf32>
      %17 = vector.shape_cast %16 : vector<256xf32> to vector<1x256xf32>
      %18 = tpu.concatenate %14, %17 in 0 : vector<1x256xf32>, vector<1x256xf32> -> vector<2x256xf32>
      %19 = vector.shape_cast %18 : vector<2x256xf32> to vector<1x2x256xf32>
      %c0_13 = arith.constant 0 : index
      %c0_14 = arith.constant 0 : index
      %c0_15 = arith.constant 0 : index
      %20 = vector.load %arg6[%c0_13, %c0_14, %c0_15] : memref<1x2x256xf32, #tpu.memory_space<vmem>>, vector<1x2x256xf32>
      tpu.vector_store %arg6[%c0_13, %c0_14, %c0_15], %19 {strides = array<i32>} : memref<1x2x256xf32, #tpu.memory_space<vmem>>, vector<1x2x256xf32>,
      %21 = arith.truncf %12 : vector<256x256xf32> to vector<256x256xbf16>
      %c0_16 = arith.constant 0 : index
      %c0_17 = arith.constant 0 : index
      %22 = vector.load %arg5[%c0_16, %c0_17] : memref<256x256xbf16, #tpu.memory_space<vmem>>, vector<256x256xbf16>
      tpu.vector_store %arg5[%c0_16, %c0_17], %21 {strides = array<i32>} : memref<256x256xbf16, #tpu.memory_space<vmem>>, vector<256x256xbf16>,
    } else {
    }
    return
  }
  func.func @transform_0(%arg0: i32, %arg1: i32, %arg2: i32) -> (i32, i32) {
    %c0_i32 = arith.constant 0 : i32
    return %arg0, %arg2 : i32, i32
  }
  func.func @transform_1(%arg0: i32, %arg1: i32, %arg2: i32) -> (i32, i32) {
    %c0_i32 = arith.constant 0 : i32
    return %arg2, %arg1 : i32, i32
  }
  func.func @transform_2(%arg0: i32, %arg1: i32, %arg2: i32) -> (i32, i32) {
    %c0_i32 = arith.constant 0 : i32
    return %arg0, %arg1 : i32, i32
  }
  func.func @transform_3(%arg0: i32, %arg1: i32, %arg2: i32) -> (i32, i32, i32) {
    %c0_i32 = arith.constant 0 : i32
    %c0_i32_0 = arith.constant 0 : i32
    return %arg0, %c0_i32, %arg1 : i32, i32, i32
  }
}

module attributes {stable_mosaic.version = 11 : i64} {
  func.func @_affine_act_kernel(%arg0: i32, %arg1: memref<512x256xbf16, #tpu.memory_space<vmem>>, %arg2: memref<1x256xf32, #tpu.memory_space<vmem>>, %arg3: memref<1x256xf32, #tpu.memory_space<vmem>>, %arg4: memref<512x256xbf16, #tpu.memory_space<vmem>>) attributes {dimension_semantics = [#tpu.dimension_semantics<parallel>], iteration_bounds = array<i64: 1>, scalar_prefetch = 0 : i64, scratch_operands = 0 : i64, tpu.core_type = #tpu.core_type<tc>, window_params = [{transform_indices = @transform_0, window_bounds = array<i64: 512, 256>}, {pipeline_mode = #tpu.pipeline_mode<synchronous>, transform_indices = @transform_1, window_bounds = array<i64: 1, 256>}, {pipeline_mode = #tpu.pipeline_mode<synchronous>, transform_indices = @transform_2, window_bounds = array<i64: 1, 256>}, {transform_indices = @transform_3, window_bounds = array<i64: 512, 256>}]} {
    %c0 = arith.constant 0 : index
    %c0_0 = arith.constant 0 : index
    %0 = vector.load %arg1[%c0, %c0_0] : memref<512x256xbf16, #tpu.memory_space<vmem>>, vector<512x256xbf16>
    %1 = arith.extf %0 : vector<512x256xbf16> to vector<512x256xf32>
    %c0_1 = arith.constant 0 : index
    %c0_2 = arith.constant 0 : index
    %2 = vector.load %arg2[%c0_1, %c0_2] : memref<1x256xf32, #tpu.memory_space<vmem>>, vector<1x256xf32>
    %3 = vector.broadcast %2 : vector<1x256xf32> to vector<512x256xf32>
    %4 = arith.mulf %1, %3 : vector<512x256xf32>
    %c0_3 = arith.constant 0 : index
    %c0_4 = arith.constant 0 : index
    %5 = vector.load %arg3[%c0_3, %c0_4] : memref<1x256xf32, #tpu.memory_space<vmem>>, vector<1x256xf32>
    %6 = vector.broadcast %5 : vector<1x256xf32> to vector<512x256xf32>
    %7 = arith.addf %4, %6 : vector<512x256xf32>
    %cst = arith.constant 0.000000e+00 : f32
    %8 = vector.broadcast %cst : f32 to vector<512x256xf32>
    %9 = arith.cmpf oge, %7, %8 : vector<512x256xf32>
    %cst_5 = arith.constant 2.000000e-01 : f32
    %10 = vector.broadcast %cst_5 : f32 to vector<512x256xf32>
    %11 = arith.mulf %10, %7 : vector<512x256xf32>
    %12 = arith.select %9, %7, %11 : vector<512x256xi1>, vector<512x256xf32>
    %13 = arith.truncf %12 : vector<512x256xf32> to vector<512x256xbf16>
    %c0_6 = arith.constant 0 : index
    %c0_7 = arith.constant 0 : index
    %14 = vector.load %arg4[%c0_6, %c0_7] : memref<512x256xbf16, #tpu.memory_space<vmem>>, vector<512x256xbf16>
    tpu.vector_store %arg4[%c0_6, %c0_7], %13 {strides = array<i32>} : memref<512x256xbf16, #tpu.memory_space<vmem>>, vector<512x256xbf16>,
    return
  }
  func.func @transform_0(%arg0: i32) -> (i32, i32) {
    %c0_i32 = arith.constant 0 : i32
    %c0_i32_0 = arith.constant 0 : i32
    return %arg0, %c0_i32 : i32, i32
  }
  func.func @transform_1(%arg0: i32) -> (i32, i32) {
    %c0_i32 = arith.constant 0 : i32
    %c0_i32_0 = arith.constant 0 : i32
    %c0_i32_1 = arith.constant 0 : i32
    return %c0_i32, %c0_i32_0 : i32, i32
  }
  func.func @transform_2(%arg0: i32) -> (i32, i32) {
    %c0_i32 = arith.constant 0 : i32
    %c0_i32_0 = arith.constant 0 : i32
    %c0_i32_1 = arith.constant 0 : i32
    return %c0_i32, %c0_i32_0 : i32, i32
  }
  func.func @transform_3(%arg0: i32) -> (i32, i32) {
    %c0_i32 = arith.constant 0 : i32
    %c0_i32_0 = arith.constant 0 : i32
    return %arg0, %c0_i32 : i32, i32
  }
}

module attributes {stable_mosaic.version = 11 : i64} {
  func.func @_conv_mm_kernel(%arg0: i32, %arg1: i32, %arg2: i32, %arg3: memref<128x1024xbf16, #tpu.memory_space<vmem>>, %arg4: memref<1024x256xbf16, #tpu.memory_space<vmem>>, %arg5: memref<128x256xbf16, #tpu.memory_space<vmem>>, %arg6: memref<1x2x256xf32, #tpu.memory_space<vmem>>, %arg7: memref<128x256xf32, #tpu.memory_space<vmem>>) attributes {dimension_semantics = [#tpu.dimension_semantics<parallel>, #tpu.dimension_semantics<parallel>, #tpu.dimension_semantics<arbitrary>], iteration_bounds = array<i64: 1, 2, 4>, scalar_prefetch = 0 : i64, scratch_operands = 1 : i64, tpu.core_type = #tpu.core_type<tc>, window_params = [{transform_indices = @transform_0, window_bounds = array<i64: 128, 1024>}, {transform_indices = @transform_1, window_bounds = array<i64: 1024, 256>}, {transform_indices = @transform_2, window_bounds = array<i64: 128, 256>}, {transform_indices = @transform_3, window_bounds = array<i64: 1, 2, 256>}]} {
    %c0_i32 = arith.constant 0 : i32
    %0 = arith.cmpi eq, %arg2, %c0_i32 : i32
    %1 = arith.extui %0 : i1 to i32
    %c0_i32_0 = arith.constant 0 : i32
    %2 = arith.cmpi ne, %1, %c0_i32_0 : i32
    scf.if %2 {
      %cst_9 = arith.constant 0.000000e+00 : f32
      %12 = vector.broadcast %cst_9 : f32 to vector<128x256xf32>
      %c0_10 = arith.constant 0 : index
      %c0_11 = arith.constant 0 : index
      %13 = vector.load %arg7[%c0_10, %c0_11] : memref<128x256xf32, #tpu.memory_space<vmem>>, vector<128x256xf32>
      tpu.vector_store %arg7[%c0_10, %c0_11], %12 {strides = array<i32>} : memref<128x256xf32, #tpu.memory_space<vmem>>, vector<128x256xf32>,
    } else {
    }
    %c0 = arith.constant 0 : index
    %c0_1 = arith.constant 0 : index
    %3 = vector.load %arg7[%c0, %c0_1] : memref<128x256xf32, #tpu.memory_space<vmem>>, vector<128x256xf32>
    %c0_2 = arith.constant 0 : index
    %c0_3 = arith.constant 0 : index
    %4 = vector.load %arg3[%c0_2, %c0_3] : memref<128x1024xbf16, #tpu.memory_space<vmem>>, vector<128x1024xbf16>
    %c0_4 = arith.constant 0 : index
    %c0_5 = arith.constant 0 : index
    %5 = vector.load %arg4[%c0_4, %c0_5] : memref<1024x256xbf16, #tpu.memory_space<vmem>>, vector<1024x256xbf16>
    %cst = arith.constant dense<0.000000e+00> : vector<128x256xf32>
    %6 = tpu.matmul %4, %5, %cst {dimension_numbers = #tpu.dot_dimension_numbers<[1], [0], [0], [1], [0, 0, 1, 1], [], []>} : vector<128x1024xbf16>, vector<1024x256xbf16>, vector<128x256xf32> -> vector<128x256xf32>
    %7 = arith.addf %3, %6 : vector<128x256xf32>
    %c0_6 = arith.constant 0 : index
    %c0_7 = arith.constant 0 : index
    %8 = vector.load %arg7[%c0_6, %c0_7] : memref<128x256xf32, #tpu.memory_space<vmem>>, vector<128x256xf32>
    tpu.vector_store %arg7[%c0_6, %c0_7], %7 {strides = array<i32>} : memref<128x256xf32, #tpu.memory_space<vmem>>, vector<128x256xf32>,
    %c3_i32 = arith.constant 3 : i32
    %9 = arith.cmpi eq, %arg2, %c3_i32 : i32
    %10 = arith.extui %9 : i1 to i32
    %c0_i32_8 = arith.constant 0 : i32
    %11 = arith.cmpi ne, %10, %c0_i32_8 : i32
    scf.if %11 {
      %c0_9 = arith.constant 0 : index
      %c0_10 = arith.constant 0 : index
      %12 = vector.load %arg7[%c0_9, %c0_10] : memref<128x256xf32, #tpu.memory_space<vmem>>, vector<128x256xf32>
      %cst_11 = arith.constant dense<0.000000e+00> : vector<256xf32>
      %13 = vector.multi_reduction <add>, %12, %cst_11 [0] : vector<128x256xf32> to vector<256xf32>
      %14 = vector.shape_cast %13 : vector<256xf32> to vector<1x256xf32>
      %15 = arith.mulf %12, %12 : vector<128x256xf32>
      %cst_12 = arith.constant dense<0.000000e+00> : vector<256xf32>
      %16 = vector.multi_reduction <add>, %15, %cst_12 [0] : vector<128x256xf32> to vector<256xf32>
      %17 = vector.shape_cast %16 : vector<256xf32> to vector<1x256xf32>
      %18 = tpu.concatenate %14, %17 in 0 : vector<1x256xf32>, vector<1x256xf32> -> vector<2x256xf32>
      %19 = vector.shape_cast %18 : vector<2x256xf32> to vector<1x2x256xf32>
      %c0_13 = arith.constant 0 : index
      %c0_14 = arith.constant 0 : index
      %c0_15 = arith.constant 0 : index
      %20 = vector.load %arg6[%c0_13, %c0_14, %c0_15] : memref<1x2x256xf32, #tpu.memory_space<vmem>>, vector<1x2x256xf32>
      tpu.vector_store %arg6[%c0_13, %c0_14, %c0_15], %19 {strides = array<i32>} : memref<1x2x256xf32, #tpu.memory_space<vmem>>, vector<1x2x256xf32>,
      %21 = arith.truncf %12 : vector<128x256xf32> to vector<128x256xbf16>
      %c0_16 = arith.constant 0 : index
      %c0_17 = arith.constant 0 : index
      %22 = vector.load %arg5[%c0_16, %c0_17] : memref<128x256xbf16, #tpu.memory_space<vmem>>, vector<128x256xbf16>
      tpu.vector_store %arg5[%c0_16, %c0_17], %21 {strides = array<i32>} : memref<128x256xbf16, #tpu.memory_space<vmem>>, vector<128x256xbf16>,
    } else {
    }
    return
  }
  func.func @transform_0(%arg0: i32, %arg1: i32, %arg2: i32) -> (i32, i32) {
    %c0_i32 = arith.constant 0 : i32
    return %arg0, %arg2 : i32, i32
  }
  func.func @transform_1(%arg0: i32, %arg1: i32, %arg2: i32) -> (i32, i32) {
    %c0_i32 = arith.constant 0 : i32
    return %arg2, %arg1 : i32, i32
  }
  func.func @transform_2(%arg0: i32, %arg1: i32, %arg2: i32) -> (i32, i32) {
    %c0_i32 = arith.constant 0 : i32
    return %arg0, %arg1 : i32, i32
  }
  func.func @transform_3(%arg0: i32, %arg1: i32, %arg2: i32) -> (i32, i32, i32) {
    %c0_i32 = arith.constant 0 : i32
    %c0_i32_0 = arith.constant 0 : i32
    return %arg0, %c0_i32, %arg1 : i32, i32, i32
  }
}

module attributes {stable_mosaic.version = 11 : i64} {
  func.func @_affine_act_kernel(%arg0: i32, %arg1: memref<128x512xbf16, #tpu.memory_space<vmem>>, %arg2: memref<1x512xf32, #tpu.memory_space<vmem>>, %arg3: memref<1x512xf32, #tpu.memory_space<vmem>>, %arg4: memref<128x512xbf16, #tpu.memory_space<vmem>>) attributes {dimension_semantics = [#tpu.dimension_semantics<parallel>], iteration_bounds = array<i64: 1>, scalar_prefetch = 0 : i64, scratch_operands = 0 : i64, tpu.core_type = #tpu.core_type<tc>, window_params = [{transform_indices = @transform_0, window_bounds = array<i64: 128, 512>}, {pipeline_mode = #tpu.pipeline_mode<synchronous>, transform_indices = @transform_1, window_bounds = array<i64: 1, 512>}, {pipeline_mode = #tpu.pipeline_mode<synchronous>, transform_indices = @transform_2, window_bounds = array<i64: 1, 512>}, {transform_indices = @transform_3, window_bounds = array<i64: 128, 512>}]} {
    %c0 = arith.constant 0 : index
    %c0_0 = arith.constant 0 : index
    %0 = vector.load %arg1[%c0, %c0_0] : memref<128x512xbf16, #tpu.memory_space<vmem>>, vector<128x512xbf16>
    %1 = arith.extf %0 : vector<128x512xbf16> to vector<128x512xf32>
    %c0_1 = arith.constant 0 : index
    %c0_2 = arith.constant 0 : index
    %2 = vector.load %arg2[%c0_1, %c0_2] : memref<1x512xf32, #tpu.memory_space<vmem>>, vector<1x512xf32>
    %3 = vector.broadcast %2 : vector<1x512xf32> to vector<128x512xf32>
    %4 = arith.mulf %1, %3 : vector<128x512xf32>
    %c0_3 = arith.constant 0 : index
    %c0_4 = arith.constant 0 : index
    %5 = vector.load %arg3[%c0_3, %c0_4] : memref<1x512xf32, #tpu.memory_space<vmem>>, vector<1x512xf32>
    %6 = vector.broadcast %5 : vector<1x512xf32> to vector<128x512xf32>
    %7 = arith.addf %4, %6 : vector<128x512xf32>
    %cst = arith.constant 0.000000e+00 : f32
    %8 = vector.broadcast %cst : f32 to vector<128x512xf32>
    %9 = arith.cmpf oge, %7, %8 : vector<128x512xf32>
    %cst_5 = arith.constant 2.000000e-01 : f32
    %10 = vector.broadcast %cst_5 : f32 to vector<128x512xf32>
    %11 = arith.mulf %10, %7 : vector<128x512xf32>
    %12 = arith.select %9, %7, %11 : vector<128x512xi1>, vector<128x512xf32>
    %13 = arith.truncf %12 : vector<128x512xf32> to vector<128x512xbf16>
    %c0_6 = arith.constant 0 : index
    %c0_7 = arith.constant 0 : index
    %14 = vector.load %arg4[%c0_6, %c0_7] : memref<128x512xbf16, #tpu.memory_space<vmem>>, vector<128x512xbf16>
    tpu.vector_store %arg4[%c0_6, %c0_7], %13 {strides = array<i32>} : memref<128x512xbf16, #tpu.memory_space<vmem>>, vector<128x512xbf16>,
    return
  }
  func.func @transform_0(%arg0: i32) -> (i32, i32) {
    %c0_i32 = arith.constant 0 : i32
    %c0_i32_0 = arith.constant 0 : i32
    return %arg0, %c0_i32 : i32, i32
  }
  func.func @transform_1(%arg0: i32) -> (i32, i32) {
    %c0_i32 = arith.constant 0 : i32
    %c0_i32_0 = arith.constant 0 : i32
    %c0_i32_1 = arith.constant 0 : i32
    return %c0_i32, %c0_i32_0 : i32, i32
  }
  func.func @transform_2(%arg0: i32) -> (i32, i32) {
    %c0_i32 = arith.constant 0 : i32
    %c0_i32_0 = arith.constant 0 : i32
    %c0_i32_1 = arith.constant 0 : i32
    return %c0_i32, %c0_i32_0 : i32, i32
  }
  func.func @transform_3(%arg0: i32) -> (i32, i32) {
    %c0_i32 = arith.constant 0 : i32
    %c0_i32_0 = arith.constant 0 : i32
    return %arg0, %c0_i32 : i32, i32
  }
}

module attributes {stable_mosaic.version = 11 : i64} {
  func.func @_conv_mm_kernel(%arg0: i32, %arg1: i32, %arg2: i32, %arg3: memref<8x1024xbf16, #tpu.memory_space<vmem>>, %arg4: memref<1024x256xbf16, #tpu.memory_space<vmem>>, %arg5: memref<8x256xbf16, #tpu.memory_space<vmem>>, %arg6: memref<1x2x256xf32, #tpu.memory_space<vmem>>, %arg7: memref<8x256xf32, #tpu.memory_space<vmem>>) attributes {dimension_semantics = [#tpu.dimension_semantics<parallel>, #tpu.dimension_semantics<parallel>, #tpu.dimension_semantics<arbitrary>], iteration_bounds = array<i64: 1, 4, 8>, scalar_prefetch = 0 : i64, scratch_operands = 1 : i64, tpu.core_type = #tpu.core_type<tc>, window_params = [{transform_indices = @transform_0, window_bounds = array<i64: 8, 1024>}, {transform_indices = @transform_1, window_bounds = array<i64: 1024, 256>}, {transform_indices = @transform_2, window_bounds = array<i64: 8, 256>}, {transform_indices = @transform_3, window_bounds = array<i64: 1, 2, 256>}]} {
    %c0_i32 = arith.constant 0 : i32
    %0 = arith.cmpi eq, %arg2, %c0_i32 : i32
    %1 = arith.extui %0 : i1 to i32
    %c0_i32_0 = arith.constant 0 : i32
    %2 = arith.cmpi ne, %1, %c0_i32_0 : i32
    scf.if %2 {
      %cst_9 = arith.constant 0.000000e+00 : f32
      %12 = vector.broadcast %cst_9 : f32 to vector<8x256xf32>
      %c0_10 = arith.constant 0 : index
      %c0_11 = arith.constant 0 : index
      %13 = vector.load %arg7[%c0_10, %c0_11] : memref<8x256xf32, #tpu.memory_space<vmem>>, vector<8x256xf32>
      tpu.vector_store %arg7[%c0_10, %c0_11], %12 {strides = array<i32>} : memref<8x256xf32, #tpu.memory_space<vmem>>, vector<8x256xf32>,
    } else {
    }
    %c0 = arith.constant 0 : index
    %c0_1 = arith.constant 0 : index
    %3 = vector.load %arg7[%c0, %c0_1] : memref<8x256xf32, #tpu.memory_space<vmem>>, vector<8x256xf32>
    %c0_2 = arith.constant 0 : index
    %c0_3 = arith.constant 0 : index
    %4 = vector.load %arg3[%c0_2, %c0_3] : memref<8x1024xbf16, #tpu.memory_space<vmem>>, vector<8x1024xbf16>
    %c0_4 = arith.constant 0 : index
    %c0_5 = arith.constant 0 : index
    %5 = vector.load %arg4[%c0_4, %c0_5] : memref<1024x256xbf16, #tpu.memory_space<vmem>>, vector<1024x256xbf16>
    %cst = arith.constant dense<0.000000e+00> : vector<8x256xf32>
    %6 = tpu.matmul %4, %5, %cst {dimension_numbers = #tpu.dot_dimension_numbers<[1], [0], [0], [1], [0, 0, 1, 1], [], []>} : vector<8x1024xbf16>, vector<1024x256xbf16>, vector<8x256xf32> -> vector<8x256xf32>
    %7 = arith.addf %3, %6 : vector<8x256xf32>
    %c0_6 = arith.constant 0 : index
    %c0_7 = arith.constant 0 : index
    %8 = vector.load %arg7[%c0_6, %c0_7] : memref<8x256xf32, #tpu.memory_space<vmem>>, vector<8x256xf32>
    tpu.vector_store %arg7[%c0_6, %c0_7], %7 {strides = array<i32>} : memref<8x256xf32, #tpu.memory_space<vmem>>, vector<8x256xf32>,
    %c7_i32 = arith.constant 7 : i32
    %9 = arith.cmpi eq, %arg2, %c7_i32 : i32
    %10 = arith.extui %9 : i1 to i32
    %c0_i32_8 = arith.constant 0 : i32
    %11 = arith.cmpi ne, %10, %c0_i32_8 : i32
    scf.if %11 {
      %c0_9 = arith.constant 0 : index
      %c0_10 = arith.constant 0 : index
      %12 = vector.load %arg7[%c0_9, %c0_10] : memref<8x256xf32, #tpu.memory_space<vmem>>, vector<8x256xf32>
      %cst_11 = arith.constant dense<0.000000e+00> : vector<256xf32>
      %13 = vector.multi_reduction <add>, %12, %cst_11 [0] : vector<8x256xf32> to vector<256xf32>
      %14 = vector.shape_cast %13 : vector<256xf32> to vector<1x256xf32>
      %15 = arith.mulf %12, %12 : vector<8x256xf32>
      %cst_12 = arith.constant dense<0.000000e+00> : vector<256xf32>
      %16 = vector.multi_reduction <add>, %15, %cst_12 [0] : vector<8x256xf32> to vector<256xf32>
      %17 = vector.shape_cast %16 : vector<256xf32> to vector<1x256xf32>
      %18 = tpu.concatenate %14, %17 in 0 : vector<1x256xf32>, vector<1x256xf32> -> vector<2x256xf32>
      %19 = vector.shape_cast %18 : vector<2x256xf32> to vector<1x2x256xf32>
      %c0_13 = arith.constant 0 : index
      %c0_14 = arith.constant 0 : index
      %c0_15 = arith.constant 0 : index
      %20 = vector.load %arg6[%c0_13, %c0_14, %c0_15] : memref<1x2x256xf32, #tpu.memory_space<vmem>>, vector<1x2x256xf32>
      tpu.vector_store %arg6[%c0_13, %c0_14, %c0_15], %19 {strides = array<i32>} : memref<1x2x256xf32, #tpu.memory_space<vmem>>, vector<1x2x256xf32>,
      %21 = arith.truncf %12 : vector<8x256xf32> to vector<8x256xbf16>
      %c0_16 = arith.constant 0 : index
      %c0_17 = arith.constant 0 : index
      %22 = vector.load %arg5[%c0_16, %c0_17] : memref<8x256xbf16, #tpu.memory_space<vmem>>, vector<8x256xbf16>
      tpu.vector_store %arg5[%c0_16, %c0_17], %21 {strides = array<i32>} : memref<8x256xbf16, #tpu.memory_space<vmem>>, vector<8x256xbf16>,
    } else {
    }
    return
  }
  func.func @transform_0(%arg0: i32, %arg1: i32, %arg2: i32) -> (i32, i32) {
    %c0_i32 = arith.constant 0 : i32
    return %arg0, %arg2 : i32, i32
  }
  func.func @transform_1(%arg0: i32, %arg1: i32, %arg2: i32) -> (i32, i32) {
    %c0_i32 = arith.constant 0 : i32
    return %arg2, %arg1 : i32, i32
  }
  func.func @transform_2(%arg0: i32, %arg1: i32, %arg2: i32) -> (i32, i32) {
    %c0_i32 = arith.constant 0 : i32
    return %arg0, %arg1 : i32, i32
  }
  func.func @transform_3(%arg0: i32, %arg1: i32, %arg2: i32) -> (i32, i32, i32) {
    %c0_i32 = arith.constant 0 : i32
    %c0_i32_0 = arith.constant 0 : i32
    return %arg0, %c0_i32, %arg1 : i32, i32, i32
  }
}

module attributes {stable_mosaic.version = 11 : i64} {
  func.func @_affine_act_kernel(%arg0: i32, %arg1: memref<8x1024xbf16, #tpu.memory_space<vmem>>, %arg2: memref<1x1024xf32, #tpu.memory_space<vmem>>, %arg3: memref<1x1024xf32, #tpu.memory_space<vmem>>, %arg4: memref<8x1024xbf16, #tpu.memory_space<vmem>>) attributes {dimension_semantics = [#tpu.dimension_semantics<parallel>], iteration_bounds = array<i64: 1>, scalar_prefetch = 0 : i64, scratch_operands = 0 : i64, tpu.core_type = #tpu.core_type<tc>, window_params = [{transform_indices = @transform_0, window_bounds = array<i64: 8, 1024>}, {pipeline_mode = #tpu.pipeline_mode<synchronous>, transform_indices = @transform_1, window_bounds = array<i64: 1, 1024>}, {pipeline_mode = #tpu.pipeline_mode<synchronous>, transform_indices = @transform_2, window_bounds = array<i64: 1, 1024>}, {transform_indices = @transform_3, window_bounds = array<i64: 8, 1024>}]} {
    %c0 = arith.constant 0 : index
    %c0_0 = arith.constant 0 : index
    %0 = vector.load %arg1[%c0, %c0_0] : memref<8x1024xbf16, #tpu.memory_space<vmem>>, vector<8x1024xbf16>
    %1 = arith.extf %0 : vector<8x1024xbf16> to vector<8x1024xf32>
    %c0_1 = arith.constant 0 : index
    %c0_2 = arith.constant 0 : index
    %2 = vector.load %arg2[%c0_1, %c0_2] : memref<1x1024xf32, #tpu.memory_space<vmem>>, vector<1x1024xf32>
    %3 = vector.broadcast %2 : vector<1x1024xf32> to vector<8x1024xf32>
    %4 = arith.mulf %1, %3 : vector<8x1024xf32>
    %c0_3 = arith.constant 0 : index
    %c0_4 = arith.constant 0 : index
    %5 = vector.load %arg3[%c0_3, %c0_4] : memref<1x1024xf32, #tpu.memory_space<vmem>>, vector<1x1024xf32>
    %6 = vector.broadcast %5 : vector<1x1024xf32> to vector<8x1024xf32>
    %7 = arith.addf %4, %6 : vector<8x1024xf32>
    %cst = arith.constant 0.000000e+00 : f32
    %8 = vector.broadcast %cst : f32 to vector<8x1024xf32>
    %9 = arith.cmpf oge, %7, %8 : vector<8x1024xf32>
    %cst_5 = arith.constant 2.000000e-01 : f32
    %10 = vector.broadcast %cst_5 : f32 to vector<8x1024xf32>
    %11 = arith.mulf %10, %7 : vector<8x1024xf32>
    %12 = arith.select %9, %7, %11 : vector<8x1024xi1>, vector<8x1024xf32>
    %13 = arith.truncf %12 : vector<8x1024xf32> to vector<8x1024xbf16>
    %c0_6 = arith.constant 0 : index
    %c0_7 = arith.constant 0 : index
    %14 = vector.load %arg4[%c0_6, %c0_7] : memref<8x1024xbf16, #tpu.memory_space<vmem>>, vector<8x1024xbf16>
    tpu.vector_store %arg4[%c0_6, %c0_7], %13 {strides = array<i32>} : memref<8x1024xbf16, #tpu.memory_space<vmem>>, vector<8x1024xbf16>,
    return
  }
  func.func @transform_0(%arg0: i32) -> (i32, i32) {
    %c0_i32 = arith.constant 0 : i32
    %c0_i32_0 = arith.constant 0 : i32
    return %arg0, %c0_i32 : i32, i32
  }
  func.func @transform_1(%arg0: i32) -> (i32, i32) {
    %c0_i32 = arith.constant 0 : i32
    %c0_i32_0 = arith.constant 0 : i32
    %c0_i32_1 = arith.constant 0 : i32
    return %c0_i32, %c0_i32_0 : i32, i32
  }
  func.func @transform_2(%arg0: i32) -> (i32, i32) {
    %c0_i32 = arith.constant 0 : i32
    %c0_i32_0 = arith.constant 0 : i32
    %c0_i32_1 = arith.constant 0 : i32
    return %c0_i32, %c0_i32_0 : i32, i32
  }
  func.func @transform_3(%arg0: i32) -> (i32, i32) {
    %c0_i32 = arith.constant 0 : i32
    %c0_i32_0 = arith.constant 0 : i32
    return %arg0, %c0_i32 : i32, i32
  }
}

module attributes {stable_mosaic.version = 11 : i64} {
  func.func @_conv_mm_kernel(%arg0: i32, %arg1: i32, %arg2: i32, %arg3: memref<8x1024xbf16, #tpu.memory_space<vmem>>, %arg4: memref<1024x128xbf16, #tpu.memory_space<vmem>>, %arg5: memref<8x128xf32, #tpu.memory_space<vmem>>, %arg6: memref<8x128xf32, #tpu.memory_space<vmem>>) attributes {dimension_semantics = [#tpu.dimension_semantics<parallel>, #tpu.dimension_semantics<parallel>, #tpu.dimension_semantics<arbitrary>], iteration_bounds = array<i64: 1, 1, 4>, scalar_prefetch = 0 : i64, scratch_operands = 1 : i64, tpu.core_type = #tpu.core_type<tc>, window_params = [{transform_indices = @transform_0, window_bounds = array<i64: 8, 1024>}, {transform_indices = @transform_1, window_bounds = array<i64: 1024, 128>}, {transform_indices = @transform_2, window_bounds = array<i64: 8, 128>}]} {
    %c0_i32 = arith.constant 0 : i32
    %0 = arith.cmpi eq, %arg2, %c0_i32 : i32
    %1 = arith.extui %0 : i1 to i32
    %c0_i32_0 = arith.constant 0 : i32
    %2 = arith.cmpi ne, %1, %c0_i32_0 : i32
    scf.if %2 {
      %cst_9 = arith.constant 0.000000e+00 : f32
      %12 = vector.broadcast %cst_9 : f32 to vector<8x128xf32>
      %c0_10 = arith.constant 0 : index
      %c0_11 = arith.constant 0 : index
      %13 = vector.load %arg6[%c0_10, %c0_11] : memref<8x128xf32, #tpu.memory_space<vmem>>, vector<8x128xf32>
      tpu.vector_store %arg6[%c0_10, %c0_11], %12 {strides = array<i32>} : memref<8x128xf32, #tpu.memory_space<vmem>>, vector<8x128xf32>,
    } else {
    }
    %c0 = arith.constant 0 : index
    %c0_1 = arith.constant 0 : index
    %3 = vector.load %arg6[%c0, %c0_1] : memref<8x128xf32, #tpu.memory_space<vmem>>, vector<8x128xf32>
    %c0_2 = arith.constant 0 : index
    %c0_3 = arith.constant 0 : index
    %4 = vector.load %arg3[%c0_2, %c0_3] : memref<8x1024xbf16, #tpu.memory_space<vmem>>, vector<8x1024xbf16>
    %c0_4 = arith.constant 0 : index
    %c0_5 = arith.constant 0 : index
    %5 = vector.load %arg4[%c0_4, %c0_5] : memref<1024x128xbf16, #tpu.memory_space<vmem>>, vector<1024x128xbf16>
    %cst = arith.constant dense<0.000000e+00> : vector<8x128xf32>
    %6 = tpu.matmul %4, %5, %cst {dimension_numbers = #tpu.dot_dimension_numbers<[1], [0], [0], [1], [0, 0, 1, 1], [], []>} : vector<8x1024xbf16>, vector<1024x128xbf16>, vector<8x128xf32> -> vector<8x128xf32>
    %7 = arith.addf %3, %6 : vector<8x128xf32>
    %c0_6 = arith.constant 0 : index
    %c0_7 = arith.constant 0 : index
    %8 = vector.load %arg6[%c0_6, %c0_7] : memref<8x128xf32, #tpu.memory_space<vmem>>, vector<8x128xf32>
    tpu.vector_store %arg6[%c0_6, %c0_7], %7 {strides = array<i32>} : memref<8x128xf32, #tpu.memory_space<vmem>>, vector<8x128xf32>,
    %c3_i32 = arith.constant 3 : i32
    %9 = arith.cmpi eq, %arg2, %c3_i32 : i32
    %10 = arith.extui %9 : i1 to i32
    %c0_i32_8 = arith.constant 0 : i32
    %11 = arith.cmpi ne, %10, %c0_i32_8 : i32
    scf.if %11 {
      %c0_9 = arith.constant 0 : index
      %c0_10 = arith.constant 0 : index
      %12 = vector.load %arg6[%c0_9, %c0_10] : memref<8x128xf32, #tpu.memory_space<vmem>>, vector<8x128xf32>
      %cst_11 = arith.constant 0.000000e+00 : f32
      %13 = vector.broadcast %cst_11 : f32 to vector<8x128xf32>
      %14 = arith.subf %13, %12 : vector<8x128xf32>
      %15 = math.exp %14 : vector<8x128xf32>
      %cst_12 = arith.constant 1.000000e+00 : f32
      %16 = vector.broadcast %cst_12 : f32 to vector<8x128xf32>
      %17 = arith.addf %16, %15 : vector<8x128xf32>
      %cst_13 = arith.constant 1.000000e+00 : f32
      %18 = vector.broadcast %cst_13 : f32 to vector<8x128xf32>
      %19 = arith.divf %18, %17 : vector<8x128xf32>
      %c0_14 = arith.constant 0 : index
      %c0_15 = arith.constant 0 : index
      %20 = vector.load %arg5[%c0_14, %c0_15] : memref<8x128xf32, #tpu.memory_space<vmem>>, vector<8x128xf32>
      tpu.vector_store %arg5[%c0_14, %c0_15], %19 {strides = array<i32>} : memref<8x128xf32, #tpu.memory_space<vmem>>, vector<8x128xf32>,
    } else {
    }
    return
  }
  func.func @transform_0(%arg0: i32, %arg1: i32, %arg2: i32) -> (i32, i32) {
    %c0_i32 = arith.constant 0 : i32
    return %arg0, %arg2 : i32, i32
  }
  func.func @transform_1(%arg0: i32, %arg1: i32, %arg2: i32) -> (i32, i32) {
    %c0_i32 = arith.constant 0 : i32
    return %arg2, %arg1 : i32, i32
  }
  func.func @transform_2(%arg0: i32, %arg1: i32, %arg2: i32) -> (i32, i32) {
    %c0_i32 = arith.constant 0 : i32
    return %arg0, %arg1 : i32, i32
  }
}

</mosaic_0001>

<bundles_post_ra>
// kernel: _lambda_.8
= control target key start
LH: loop header
LB: loop body
LE: loop exit
PB: predicated region body
PF: predicated region fallthrough
CT: control target
= control target key end

     0   :  { %s1438_s9 = smov 0   ;;  %s1440_s10 = smov 0   ;;  %s1542_s0 = inlined_call_operand.vmem [shape: bf16[2048,48], index: 0, kind: input, shape index: {}]   ;;  %s1543_s1 = inlined_call_operand.vmem [shape: bf16[48,128], index: 1, kind: input, shape index: {}]   ;;  %s1544_s2 = inlined_call_operand.vmem [shape: bf16[2048,128], index: 2, kind: output, shape index: {}]  }
   0x1   :  { %s1442_s11 = smov 0  }
   0x2 LB: > { %s31_s12 = sadd.s32 1, %s1417_s10  ;;  %p1092_p0 = scmp.ge.s32.totalorder %s1421_s11, 1  ;;  %s1421_s11 = sphi %s1442_s11, %s12_s11   ;;  %s1417_s10 = sphi %s1440_s10, %s1546_s10   ;;  %s1413_s9 = sphi %s1438_s9, %s1545_s9  }
   0x3   : > { %p33_p1 = scmp.ge.s32.totalorder %s31_s12, 8  ;;  %p155_p2 = scmp.lt.s32.totalorder %s1421_s11, 9 }
   0x5   : > { %s1548_s12 = smov (%p33_p1, %s31_s12), 0  ;;  %p156_p3 = pnand %p1092_p0, %p155_p2 }
   0x6   : > { %v1380_v0 = vld [vmem:[%s1543_s1] sm:$0xff] (!%p156_p3)   ;;  %s1093_s15 = sshll.u32 (!%p156_p3), %s1413_s9, 5  ;;  %v1381_v1 = vld [vmem:[%s1543_s1 + $0x8] sm:$0xff] (!%p156_p3)   ;;  %v1382_v2 = vld [vmem:[%s1543_s1 + $0x10] sm:$0xff] (!%p156_p3)   ;;  %vm423_vm0 = vcmask (!%p156_p3), 392192  }
   0x7   : > { %159 = sbr.rel (%p156_p3) target bundleno = 266 (0x10a), region = 28  ;;  %p192_p4 = scmp.lt.s32.totalorder (!%p156_p3), %s1093_s15, 255  ;;  %1312 = vmatprep.subr.bf16.mxu0 (!%p156_p3), %v1380_v0  ;;  %1350 = vmatprep.subr.bf16.mxu1 (!%p156_p3), %v1380_v0 }
   0x8   : > { %1313 = vmatpush3.bf16.msra.mxu0 (!%p156_p3), %v1380_v0  ;;  %1353 = vmatpush3.bf16.msra.mxu1 (!%p156_p3), %v1380_v0 }
   0x9   : > { %1314 = vmatprep.subr.bf16.mxu0 (!%p156_p3), %v1381_v1  ;;  %1351 = vmatprep.subr.bf16.mxu1 (!%p156_p3), %v1381_v1 }
   0xc   : > { %1315 = vmatpush3.bf16.msra.mxu0 (!%p156_p3), %v1381_v1  ;;  %1354 = vmatpush3.bf16.msra.mxu1 (!%p156_p3), %v1381_v1 }
   0xd   : > { %1316 = vmatprep.subr.bf16.mxu0 (!%p156_p3), %v1382_v2  ;;  %1352 = vmatprep.subr.bf16.mxu1 (!%p156_p3), %v1382_v2 }
   0xe   : > { %s1550_s15 = smov (!%p192_p4, %s1093_s15), 255 }
   0xf   : > { %s1094_s20 = sshll.u32 %s1550_s15, 2 }
  0x10   : > { %s1473_s23 = scalar_lea.vmem %s1542_s0, %s1094_s20  ;;  %1317 = vmatpush3.bf16.msra.mxu0 %v1382_v2  ;;  %1355 = vmatpush3.bf16.msra.mxu1 %v1382_v2  ;;  %s1512_s26 = scalar_lea.vmem %s1544_s2, %s1094_s20 }
  0x11   : > { %v1383_v3 = vld [vmem:[%s1473_s23] sm:$0xff]   ;;  %v1385_v5 = vld [vmem:[%s1473_s23 + $0x8] sm:$0xff]   ;;  %v1387_v7 = vld [vmem:[%s1473_s23 + $0x10] sm:$0xff]  }
  0x12   : > { %v1384_v4 = vld [vmem:[%s1473_s23 + $0x40] sm:$0xff]   ;;  %1318 = vmatprep.mubr.msk.bf16.mxu0 %vm423_vm0, %v1383_v3  ;;  %v1386_v6 = vld [vmem:[%s1473_s23 + $0x48] sm:$0xff]   ;;  %v1388_v8 = vld [vmem:[%s1473_s23 + $0x50] sm:$0xff]  }
  0x13   : > { %1334 = vmatprep.mubr.msk.bf16.mxu1 %vm423_vm0, %v1384_v4  ;;  %1319 = vmatmul.mubr.msk.bf16.vlgmr.msra.gmra.mrb[0].mxu0 %vm423_vm0, %v1385_v5  ;;  %v1389_v9 = vld [vmem:[%s1473_s23 + $0x18] sm:$0xff]   ;;  %v1391_v11 = vld [vmem:[%s1473_s23 + $0x20] sm:$0xff]   ;;  %v1393_v13 = vld [vmem:[%s1473_s23 + $0x28] sm:$0xff]  }
  0x14   : > { %1335 = vmatmul.mubr.msk.bf16.vlgmr.msra.gmra.mrb[0].mxu1 %vm423_vm0, %v1386_v6  ;;  %1322 = vmatprep.mubr.msk.bf16.mxu0 %vm423_vm0, %v1387_v7  ;;  %v1390_v10 = vld [vmem:[%s1473_s23 + $0x58] sm:$0xff]   ;;  %v1392_v12 = vld [vmem:[%s1473_s23 + $0x60] sm:$0xff]   ;;  %v1394_v14 = vld [vmem:[%s1473_s23 + $0x68] sm:$0xff]  }
  0x15   : > { %1338 = vmatprep.mubr.msk.bf16.mxu1 %vm423_vm0, %v1388_v8  ;;  %v1395_v15 = vld [vmem:[%s1473_s23 + $0x30] sm:$0xff]   ;;  %v1397_v17 = vld [vmem:[%s1473_s23 + $0x38] sm:$0xff]  }
  0x16   : > { %v1396_v16 = vld [vmem:[%s1473_s23 + $0x70] sm:$0xff]   ;;  %v1398_v18 = vld [vmem:[%s1473_s23 + $0x78] sm:$0xff]  }
  0x1b   : > { %1323 = vmatmul.mubr.msk.bf16.gmra.mrb[4].mxu0 %vm423_vm0, %v1389_v9 }
  0x1c   : > { %1339 = vmatmul.mubr.msk.bf16.gmra.mrb[4].mxu1 %vm423_vm0, %v1390_v10  ;;  %1326 = vmatprep.mubr.msk.bf16.mxu0 %vm423_vm0, %v1391_v11 }
  0x1d   : > { %1342 = vmatprep.mubr.msk.bf16.mxu1 %vm423_vm0, %v1392_v12 }
  0x23   : > { %1327 = vmatmul.mubr.msk.bf16.gmra.mrb[8].mxu0 %vm423_vm0, %v1393_v13 }
  0x24   : > { %1343 = vmatmul.mubr.msk.bf16.gmra.mrb[8].mxu1 %vm423_vm0, %v1394_v14  ;;  %1330 = vmatprep.mubr.msk.bf16.mxu0 %vm423_vm0, %v1395_v15 }
  0x25   : > { %1346 = vmatprep.mubr.msk.bf16.mxu1 %vm423_vm0, %v1396_v16 }
  0x2b   : > { %1331 = vmatmul.mubr.msk.bf16.gmra.mrb[12].mxu0 %vm423_vm0, %v1397_v17 }
  0x2c   : > { %1347 = vmatmul.mubr.msk.bf16.gmra.mrb[12].mxu1 %vm423_vm0, %v1398_v18 }
  0xe6   : > { %v1320_v19 = vpop.f32.mrb[0].mxu0 }
  0xe7   : > { %v1336_v20 = vpop.f32.mrb[0].mxu1  ;;  %vm734_vm1 = vcmp.ge.f32.partialorder %v1320_v19, 0.0  ;;  %v766_v21 = vmul.f32 0.2, %v1320_v19  ;;  %v506_v23 = vpop.f32.mrb[1].mxu0 }
  0xe8   : > { %v782_v22 = vmul.f32 0.2, %v1336_v20  ;;  %vm750_vm2 = vcmp.ge.f32.partialorder %v1336_v20, 0.0  ;;  %v570_v24 = vpop.f32.mrb[1].mxu1  ;;  %v764_v25 = vmul.f32 0.2, %v506_v23 }
  0xe9   : > { %v1321_v26 = vpop.f32.mrb[2].mxu0  ;;  %v1337_v27 = vpop.f32.mrb[2].mxu1  ;;  %v798_v28 = vsel %vm734_vm1, %v1320_v19, %v766_v21  ;;  %v780_v29 = vmul.f32 0.2, %v570_v24  ;;  %vm732_vm4 = vcmp.ge.f32.partialorder %v506_v23, 0.0  ;;  %vm748_vm6 = vcmp.ge.f32.partialorder %v570_v24, 0.0 }
  0xea   : > { %vm735_vm3 = vcmp.ge.f32.partialorder %v1321_v26, 0.0  ;;  %v767_v30 = vmul.f32 0.2, %v1321_v26  ;;  %v814_v31 = vsel %vm750_vm2, %v1336_v20, %v782_v22  ;;  %vm751_vm5 = vcmp.ge.f32.partialorder %v1337_v27, 0.0  ;;  %v509_v33 = vpop.f32.mrb[3].mxu0  ;;  %v573_v34 = vpop.f32.mrb[3].mxu1 }
  0xeb   : > { %v783_v32 = vmul.f32 0.2, %v1337_v27  ;;  %vm733_vm7 = vcmp.ge.f32.partialorder %v509_v33, 0.0  ;;  %v765_v36 = vmul.f32 0.2, %v509_v33  ;;  %vm749_vm8 = vcmp.ge.f32.partialorder %v573_v34, 0.0 }
  0xec   : > { %v799_v35 = vsel %vm735_vm3, %v1321_v26, %v767_v30  ;;  %v781_v39 = vmul.f32 0.2, %v573_v34  ;;  %v796_v40 = vsel %vm732_vm4, %v506_v23, %v764_v25  ;;  %v812_v45 = vsel %vm748_vm6, %v570_v24, %v780_v29 }
  0xed   : > { %v1206_v37 = vpack.c.bf16 %v799_v35, %v798_v28  ;;  %v815_v38 = vsel %vm751_vm5, %v1337_v27, %v783_v32  ;;  %v797_v42 = vsel %vm733_vm7, %v509_v33, %v765_v36 }
  0xee   : > { %v1246_v41 = vpack.c.bf16 %v815_v38, %v814_v31  ;;  %v1324_v43 = vpop.f32.mrb[4].mxu0  ;;  %v1201_v46 = vpack.c.bf16 %v797_v42, %v796_v40  ;;  %v813_v47 = vsel %vm749_vm8, %v573_v34, %v781_v39 }
  0xef   : > { %v1340_v44 = vpop.f32.mrb[4].mxu1  ;;  %1278 = vst [vmem:[%s1512_s26 + $0x8] sm:$0xff] %v1206_v37   ;;  %v770_v48 = vmul.f32 0.2, %v1324_v43  ;;  %v522_v49 = vpop.f32.mrb[5].mxu0  ;;  %v1241_v51 = vpack.c.bf16 %v813_v47, %v812_v45  ;;  %vm738_vm9 = vcmp.ge.f32.partialorder %v1324_v43, 0.0 }
  0xf0   : > { %v586_v50 = vpop.f32.mrb[5].mxu1  ;;  %1286 = vst [vmem:[%s1512_s26 + $0x48] sm:$0xff] %v1246_v41   ;;  %v786_v52 = vmul.f32 0.2, %v1340_v44  ;;  %v1325_v53 = vpop.f32.mrb[6].mxu0  ;;  %1202 = vst [vmem:[%s1512_s26] sm:$0xff] %v1201_v46   ;;  %vm754_vm10 = vcmp.ge.f32.partialorder %v1340_v44, 0.0 }
  0xf1   : > { %v1341_v54 = vpop.f32.mrb[6].mxu1  ;;  %v768_v55 = vmul.f32 0.2, %v522_v49  ;;  %v784_v56 = vmul.f32 0.2, %v586_v50  ;;  %v525_v57 = vpop.f32.mrb[7].mxu0  ;;  %v802_v60 = vsel %vm738_vm9, %v1324_v43, %v770_v48 }
  0xf2   : > { %1285 = vst [vmem:[%s1512_s26 + $0x40] sm:$0xff] %v1241_v51   ;;  %vm736_vm11 = vcmp.ge.f32.partialorder %v522_v49, 0.0  ;;  %vm739_vm12 = vcmp.ge.f32.partialorder %v1325_v53, 0.0  ;;  %v771_v58 = vmul.f32 0.2, %v1325_v53  ;;  %vm755_vm13 = vcmp.ge.f32.partialorder %v1341_v54, 0.0 }
  0xf3   : > { %v589_v59 = vpop.f32.mrb[7].mxu1  ;;  %vm752_vm14 = vcmp.ge.f32.partialorder %v586_v50, 0.0  ;;  %v787_v61 = vmul.f32 0.2, %v1341_v54  ;;  %vm737_vm15 = vcmp.ge.f32.partialorder %v525_v57, 0.0  ;;  %v818_v1 = vsel %vm754_vm10, %v1340_v44, %v786_v52 }
  0xf4   : > { %v803_v62 = vsel %vm739_vm12, %v1325_v53, %v771_v58  ;;  %v769_v63 = vmul.f32 0.2, %v525_v57  ;;  %vm753_vm0 = vcmp.ge.f32.partialorder %v589_v59, 0.0  ;;  %v785_v0 = vmul.f32 0.2, %v589_v59 }
  0xf5   : > { %v800_v2 = vsel %vm736_vm11, %v522_v49, %v768_v55  ;;  %v1216_v3 = vpack.c.bf16 %v803_v62, %v802_v60  ;;  %v819_v4 = vsel %vm755_vm13, %v1341_v54, %v787_v61  ;;  %v816_v5 = vsel %vm752_vm14, %v586_v50, %v784_v56 }
  0xf6   : > { %v1256_v6 = vpack.c.bf16 %v819_v4, %v818_v1  ;;  %v801_v7 = vsel %vm737_vm15, %v525_v57, %v769_v63  ;;  %v817_v8 = vsel %vm753_vm0, %v589_v59, %v785_v0  ;;  %v1328_v9 = vpop.f32.mrb[8].mxu0 }
  0xf7   : > { %v1344_v10 = vpop.f32.mrb[8].mxu1  ;;  %1280 = vst [vmem:[%s1512_s26 + $0x18] sm:$0xff] %v1216_v3   ;;  %v1211_v11 = vpack.c.bf16 %v801_v7, %v800_v2  ;;  %v1251_v12 = vpack.c.bf16 %v817_v8, %v816_v5  ;;  %vm742_vm1 = vcmp.ge.f32.partialorder %v1328_v9, 0.0  ;;  %v774_v13 = vmul.f32 0.2, %v1328_v9  ;;  %v538_v14 = vpop.f32.mrb[9].mxu0 }
  0xf8   : > { %v602_v15 = vpop.f32.mrb[9].mxu1  ;;  %1288 = vst [vmem:[%s1512_s26 + $0x58] sm:$0xff] %v1256_v6   ;;  %vm758_vm2 = vcmp.ge.f32.partialorder %v1344_v10, 0.0  ;;  %v790_v16 = vmul.f32 0.2, %v1344_v10  ;;  %v1329_v19 = vpop.f32.mrb[10].mxu0 }
  0xf9   : > { %1279 = vst [vmem:[%s1512_s26 + $0x10] sm:$0xff] %v1211_v11   ;;  %1287 = vst [vmem:[%s1512_s26 + $0x50] sm:$0xff] %v1251_v12   ;;  %v772_v17 = vmul.f32 0.2, %v538_v14  ;;  %v788_v18 = vmul.f32 0.2, %v602_v15  ;;  %v806_v21 = vsel %vm742_vm1, %v1328_v9, %v774_v13 }
  0xfa   : > { %v1345_v20 = vpop.f32.mrb[10].mxu1  ;;  %vm740_vm3 = vcmp.ge.f32.partialorder %v538_v14, 0.0  ;;  %vm743_vm4 = vcmp.ge.f32.partialorder %v1329_v19, 0.0  ;;  %v775_v22 = vmul.f32 0.2, %v1329_v19  ;;  %v541_v23 = vpop.f32.mrb[11].mxu0  ;;  %v822_v29 = vsel %vm758_vm2, %v1344_v10, %v790_v16 }
  0xfb   : > { %v605_v24 = vpop.f32.mrb[11].mxu1  ;;  %vm756_vm5 = vcmp.ge.f32.partialorder %v602_v15, 0.0  ;;  %vm759_vm6 = vcmp.ge.f32.partialorder %v1345_v20, 0.0  ;;  %v791_v25 = vmul.f32 0.2, %v1345_v20  ;;  %vm741_vm7 = vcmp.ge.f32.partialorder %v541_v23, 0.0 }
  0xfc   : > { %v807_v26 = vsel %vm743_vm4, %v1329_v19, %v775_v22  ;;  %v773_v27 = vmul.f32 0.2, %v541_v23  ;;  %vm757_vm8 = vcmp.ge.f32.partialorder %v605_v24, 0.0  ;;  %v789_v28 = vmul.f32 0.2, %v605_v24 }
  0xfd   : > { %v804_v30 = vsel %vm740_vm3, %v538_v14, %v772_v17  ;;  %v1226_v31 = vpack.c.bf16 %v807_v26, %v806_v21  ;;  %v823_v32 = vsel %vm759_vm6, %v1345_v20, %v791_v25  ;;  %v820_v33 = vsel %vm756_vm5, %v602_v15, %v788_v18 }
  0xfe   : > { %v1266_v34 = vpack.c.bf16 %v823_v32, %v822_v29  ;;  %v805_v35 = vsel %vm741_vm7, %v541_v23, %v773_v27  ;;  %v821_v36 = vsel %vm757_vm8, %v605_v24, %v789_v28  ;;  %v1332_v37 = vpop.f32.mrb[12].mxu0 }
  0xff   : > { %v1348_v38 = vpop.f32.mrb[12].mxu1  ;;  %1282 = vst [vmem:[%s1512_s26 + $0x28] sm:$0xff] %v1226_v31   ;;  %v1221_v39 = vpack.c.bf16 %v805_v35, %v804_v30  ;;  %v1261_v40 = vpack.c.bf16 %v821_v36, %v820_v33  ;;  %vm746_vm9 = vcmp.ge.f32.partialorder %v1332_v37, 0.0  ;;  %v778_v41 = vmul.f32 0.2, %v1332_v37  ;;  %v554_v42 = vpop.f32.mrb[13].mxu0 }
 0x100   : > { %v618_v43 = vpop.f32.mrb[13].mxu1  ;;  %1290 = vst [vmem:[%s1512_s26 + $0x68] sm:$0xff] %v1266_v34   ;;  %vm762_vm10 = vcmp.ge.f32.partialorder %v1348_v38, 0.0  ;;  %v794_v44 = vmul.f32 0.2, %v1348_v38  ;;  %v1333_v47 = vpop.f32.mrb[14].mxu0 }
 0x101   : > { %1281 = vst [vmem:[%s1512_s26 + $0x20] sm:$0xff] %v1221_v39   ;;  %1289 = vst [vmem:[%s1512_s26 + $0x60] sm:$0xff] %v1261_v40   ;;  %v776_v45 = vmul.f32 0.2, %v554_v42  ;;  %v792_v46 = vmul.f32 0.2, %v618_v43  ;;  %v810_v49 = vsel %vm746_vm9, %v1332_v37, %v778_v41 }
 0x102   : > { %v1349_v48 = vpop.f32.mrb[14].mxu1  ;;  %vm744_vm11 = vcmp.ge.f32.partialorder %v554_v42, 0.0  ;;  %vm747_vm12 = vcmp.ge.f32.partialorder %v1333_v47, 0.0  ;;  %v779_v50 = vmul.f32 0.2, %v1333_v47  ;;  %v557_v51 = vpop.f32.mrb[15].mxu0  ;;  %v826_v57 = vsel %vm762_vm10, %v1348_v38, %v794_v44 }
 0x103   : > { %v621_v52 = vpop.f32.mrb[15].mxu1  ;;  %vm760_vm13 = vcmp.ge.f32.partialorder %v618_v43, 0.0  ;;  %vm763_vm14 = vcmp.ge.f32.partialorder %v1349_v48, 0.0  ;;  %v795_v53 = vmul.f32 0.2, %v1349_v48  ;;  %vm745_vm15 = vcmp.ge.f32.partialorder %v557_v51, 0.0 }
 0x104   : > { %v811_v54 = vsel %vm747_vm12, %v1333_v47, %v779_v50  ;;  %v777_v55 = vmul.f32 0.2, %v557_v51  ;;  %vm761_vm0 = vcmp.ge.f32.partialorder %v621_v52, 0.0  ;;  %v793_v56 = vmul.f32 0.2, %v621_v52 }
 0x105   : > { %v808_v58 = vsel %vm744_vm11, %v554_v42, %v776_v45  ;;  %v1236_v59 = vpack.c.bf16 %v811_v54, %v810_v49  ;;  %v827_v60 = vsel %vm763_vm14, %v1349_v48, %v795_v53  ;;  %v824_v61 = vsel %vm760_vm13, %v618_v43, %v792_v46 }
 0x106   : > { %v1276_v62 = vpack.c.bf16 %v827_v60, %v826_v57  ;;  %v809_v63 = vsel %vm745_vm15, %v557_v51, %v777_v55  ;;  %v825_v0 = vsel %vm761_vm0, %v621_v52, %v793_v56 }
 0x107   : > { %1284 = vst [vmem:[%s1512_s26 + $0x38] sm:$0xff] %v1236_v59   ;;  %v1231_v1 = vpack.c.bf16 %v809_v63, %v808_v58  ;;  %v1271_v2 = vpack.c.bf16 %v825_v0, %v824_v61 }
 0x108   : > { %1292 = vst [vmem:[%s1512_s26 + $0x78] sm:$0xff] %v1276_v62  }
 0x109   : > { %1283 = vst [vmem:[%s1512_s26 + $0x30] sm:$0xff] %v1231_v1   ;;  %1291 = vst [vmem:[%s1512_s26 + $0x70] sm:$0xff] %v1271_v2  }
 0x10a PF: > { %s12_s11 = sadd.s32 1, %s1421_s11   ;;  %s1545_s9 = smov %s1417_s10 }
 0x10b   : > { %p9_p5 = scmp.ge.s32.totalorder %s12_s11, 10   ;;  %s1546_s10 = smov %s1548_s12 }
 0x10d   :  { %11 = sbr.rel (!%p9_p5) target bundleno = 2 (0x2), region = 69 }

// kernel: _lambda_.9
= control target key start
LH: loop header
LB: loop body
LE: loop exit
PB: predicated region body
PF: predicated region fallthrough
CT: control target
= control target key end

     0   :  { %s4670_s12 = smov 0   ;;  %s4672_s13 = smov 0   ;;  %s5834_s0 = inlined_call_operand.vmem [shape: bf16[512,2048], index: 0, kind: input, shape index: {}]   ;;  %s5835_s1 = inlined_call_operand.vmem [shape: bf16[2048,256], index: 1, kind: input, shape index: {}]   ;;  %s5836_s2 = inlined_call_operand.vmem [shape: bf16[512,256], index: 2, kind: output, shape index: {0}]   ;;  %s5837_s3 = inlined_call_operand.vmem [shape: f32[2,2,256], index: 3, kind: output, shape index: {1}]  }
   0x1   :  { %s4674_s14 = smov 0   ;;  %s4676_s15 = smov 0  }
   0x2   :  { %s4678_s16 = smov 0   ;;  %s4680_s17 = smov 0  }
   0x3   :  { %s4682_s18 = smov 0  }
   0x4 LB: > { %s26_s19 = sadd.s32 1, %s4639_s16  ;;  %s33_s20 = sadd.s32 1, %s4643_s17  ;;  %s4647_s18 = sphi %s4682_s18, %s14_s18   ;;  %s4643_s17 = sphi %s4680_s17, %s5843_s17   ;;  %s4639_s16 = sphi %s4678_s16, %s5842_s16   ;;  %s4635_s15 = sphi %s4676_s15, %s5841_s15   ;;  %s4631_s14 = sphi %s4674_s14, %s5840_s14   ;;  %s4627_s13 = sphi %s4672_s13, %s5839_s13   ;;  %s4623_s12 = sphi %s4670_s12, %s5838_s12  }
   0x5   : > { %p27_p0 = scmp.ge.s32.totalorder %s26_s19, 2  ;;  %p49_p1 = scmp.ne.s32.totalorder %s4627_s13, %s4623_s12 }
   0x6   : > { %p50_p2 = scmp.eq.s32.totalorder %s4647_s18, 0  ;;  %s42_s24 = sadd.s32 1, %s4627_s13 }
   0x7   : > { %s5845_s19 = smov (%p27_p0, %s26_s19), 0  ;;  %s5847_s20 = smov (!%p27_p0, %s33_s20), %s4643_s17 }
   0x8   : > { %p51_p3 = por %p50_p2, %p49_p1  ;;  %p35_p4 = scmp.ge.s32.totalorder %s5847_s20, 2 }
   0x9   : > { %s38_s21 = ssub.s32 %s4639_s16, %s5845_s19  ;;  %p3807_p6 = scmp.ge.s32.totalorder %s4647_s18, 4 }
   0xa   : > { %s5849_s20 = smov (%p35_p4, %s5847_s20), 0 }
   0xb   : > { %s37_s22 = ssub.s32 %s4643_s17, %s5849_s20  ;;  %159 = sbr.rel (%p3807_p6) target bundleno = 89 (0x59), region = 16 }
   0xc   : > { %s39_s23 = sor.u32 %s38_s21, %s37_s22 }
   0xd   : > { %p40_p5 = scmp.eq.s32.totalorder %s39_s23, 0 }
   0xf   : > { %s4721_s25 = scalar_select %p40_p5, %s4627_s13, %s42_s24  }
  0x12   : > { %162 = sbr.rel (!%p51_p3) target bundleno = 89 (0x59), region = 20  ;;  %s164_s26 = sand.u32 (%p51_p3), 1, %s4627_s13  }
  0x13   : > { %s3810_s27 = sshll.u32 (%p51_p3), %s4639_s16, 3  ;;  %s3808_s28 = sshll.u32 (%p51_p3), %s164_s26, 10 }
  0x14   : > { %s4116_s29 = sshll.u32 (%p51_p3), %s4643_s17, 9  ;;  %s4735_s8 = scalar_lea.vmem (%p51_p3), [#allocation3], %s3808_s28 }
  0x15   : > { %s170_s30 = sadd.s32 (%p51_p3), %s4116_s29, %s3810_s27 }
  0x16   : > { %s3812_s4 = sshll.u32 (%p51_p3), %s170_s30, 2 }
  0x17   : > { %s4730_s7 = scalar_lea.vmem (%p51_p3), %s5834_s0, %s3812_s4 }
  0x18   : > { %v185_v0 = vld [vmem:[%s4730_s7] sm:$0xff] (%p51_p3)  ;;  %v187_v1 = vld [vmem:[%s4730_s7 + $0x8] sm:$0xff] (%p51_p3)  ;;  %v189_v2 = vld [vmem:[%s4730_s7 + $0x10] sm:$0xff] (%p51_p3) }
  0x19   : > { %186 = vst [vmem:[%s4735_s8] sm:$0xff] %v185_v0  ;;  %188 = vst [vmem:[%s4735_s8 + $0x8] sm:$0xff] %v187_v1  ;;  %v191_v3 = vld [vmem:[%s4730_s7 + $0x18] sm:$0xff]  ;;  %v193_v4 = vld [vmem:[%s4730_s7 + $0x40] sm:$0xff] }
  0x1a   : > { %190 = vst [vmem:[%s4735_s8 + $0x10] sm:$0xff] %v189_v2  ;;  %v195_v5 = vld [vmem:[%s4730_s7 + $0x48] sm:$0xff]  ;;  %192 = vst [vmem:[%s4735_s8 + $0x18] sm:$0xff] %v191_v3  ;;  %v197_v6 = vld [vmem:[%s4730_s7 + $0x50] sm:$0xff] }
  0x1b   : > { %194 = vst [vmem:[%s4735_s8 + $0x20] sm:$0xff] %v193_v4  ;;  %196 = vst [vmem:[%s4735_s8 + $0x28] sm:$0xff] %v195_v5  ;;  %v199_v7 = vld [vmem:[%s4730_s7 + $0x58] sm:$0xff]  ;;  %v201_v8 = vld [vmem:[%s4730_s7 + $0x80] sm:$0xff] }
  0x1c   : > { %198 = vst [vmem:[%s4735_s8 + $0x30] sm:$0xff] %v197_v6  ;;  %200 = vst [vmem:[%s4735_s8 + $0x38] sm:$0xff] %v199_v7  ;;  %v203_v9 = vld [vmem:[%s4730_s7 + $0x88] sm:$0xff]  ;;  %v205_v10 = vld [vmem:[%s4730_s7 + $0x90] sm:$0xff] }
  0x1d   : > { %202 = vst [vmem:[%s4735_s8 + $0x40] sm:$0xff] %v201_v8  ;;  %v207_v11 = vld [vmem:[%s4730_s7 + $0x98] sm:$0xff]  ;;  %204 = vst [vmem:[%s4735_s8 + $0x48] sm:$0xff] %v203_v9  ;;  %v209_v12 = vld [vmem:[%s4730_s7 + $0xc0] sm:$0xff] }
  0x1e   : > { %206 = vst [vmem:[%s4735_s8 + $0x50] sm:$0xff] %v205_v10  ;;  %208 = vst [vmem:[%s4735_s8 + $0x58] sm:$0xff] %v207_v11  ;;  %v211_v13 = vld [vmem:[%s4730_s7 + $0xc8] sm:$0xff]  ;;  %v213_v14 = vld [vmem:[%s4730_s7 + $0xd0] sm:$0xff] }
  0x1f   : > { %210 = vst [vmem:[%s4735_s8 + $0x60] sm:$0xff] %v209_v12  ;;  %212 = vst [vmem:[%s4735_s8 + $0x68] sm:$0xff] %v211_v13  ;;  %v215_v15 = vld [vmem:[%s4730_s7 + $0xd8] sm:$0xff]  ;;  %v217_v16 = vld [vmem:[%s4730_s7 + $0x100] sm:$0xff] }
  0x20   : > { %214 = vst [vmem:[%s4735_s8 + $0x70] sm:$0xff] %v213_v14  ;;  %v219_v17 = vld [vmem:[%s4730_s7 + $0x108] sm:$0xff]  ;;  %216 = vst [vmem:[%s4735_s8 + $0x78] sm:$0xff] %v215_v15  ;;  %v221_v18 = vld [vmem:[%s4730_s7 + $0x110] sm:$0xff] }
  0x21   : > { %218 = vst [vmem:[%s4735_s8 + $0x80] sm:$0xff] %v217_v16  ;;  %220 = vst [vmem:[%s4735_s8 + $0x88] sm:$0xff] %v219_v17  ;;  %v223_v19 = vld [vmem:[%s4730_s7 + $0x118] sm:$0xff]  ;;  %v225_v20 = vld [vmem:[%s4730_s7 + $0x140] sm:$0xff] }
  0x22   : > { %222 = vst [vmem:[%s4735_s8 + $0x90] sm:$0xff] %v221_v18  ;;  %224 = vst [vmem:[%s4735_s8 + $0x98] sm:$0xff] %v223_v19  ;;  %v227_v21 = vld [vmem:[%s4730_s7 + $0x148] sm:$0xff]  ;;  %v229_v22 = vld [vmem:[%s4730_s7 + $0x150] sm:$0xff] }
  0x23   : > { %226 = vst [vmem:[%s4735_s8 + $0xa0] sm:$0xff] %v225_v20  ;;  %v231_v23 = vld [vmem:[%s4730_s7 + $0x158] sm:$0xff]  ;;  %228 = vst [vmem:[%s4735_s8 + $0xa8] sm:$0xff] %v227_v21  ;;  %v233_v24 = vld [vmem:[%s4730_s7 + $0x180] sm:$0xff] }
  0x24   : > { %230 = vst [vmem:[%s4735_s8 + $0xb0] sm:$0xff] %v229_v22  ;;  %232 = vst [vmem:[%s4735_s8 + $0xb8] sm:$0xff] %v231_v23  ;;  %v235_v25 = vld [vmem:[%s4730_s7 + $0x188] sm:$0xff]  ;;  %v237_v26 = vld [vmem:[%s4730_s7 + $0x190] sm:$0xff] }
  0x25   : > { %234 = vst [vmem:[%s4735_s8 + $0xc0] sm:$0xff] %v233_v24  ;;  %236 = vst [vmem:[%s4735_s8 + $0xc8] sm:$0xff] %v235_v25  ;;  %v239_v27 = vld [vmem:[%s4730_s7 + $0x198] sm:$0xff]  ;;  %v241_v28 = vld [vmem:[%s4730_s7 + $0x1c0] sm:$0xff] }
  0x26   : > { %238 = vst [vmem:[%s4735_s8 + $0xd0] sm:$0xff] %v237_v26  ;;  %v243_v29 = vld [vmem:[%s4730_s7 + $0x1c8] sm:$0xff]  ;;  %240 = vst [vmem:[%s4735_s8 + $0xd8] sm:$0xff] %v239_v27  ;;  %v245_v30 = vld [vmem:[%s4730_s7 + $0x1d0] sm:$0xff] }
  0x27   : > { %242 = vst [vmem:[%s4735_s8 + $0xe0] sm:$0xff] %v241_v28  ;;  %244 = vst [vmem:[%s4735_s8 + $0xe8] sm:$0xff] %v243_v29  ;;  %v247_v31 = vld [vmem:[%s4730_s7 + $0x1d8] sm:$0xff]  ;;  %v249_v32 = vld [vmem:[%s4730_s7 + $0x200] sm:$0xff] }
  0x28   : > { %246 = vst [vmem:[%s4735_s8 + $0xf0] sm:$0xff] %v245_v30  ;;  %248 = vst [vmem:[%s4735_s8 + $0xf8] sm:$0xff] %v247_v31  ;;  %v251_v33 = vld [vmem:[%s4730_s7 + $0x208] sm:$0xff]  ;;  %v253_v34 = vld [vmem:[%s4730_s7 + $0x210] sm:$0xff] }
  0x29   : > { %250 = vst [vmem:[%s4735_s8 + $0x100] sm:$0xff] %v249_v32  ;;  %v255_v35 = vld [vmem:[%s4730_s7 + $0x218] sm:$0xff]  ;;  %252 = vst [vmem:[%s4735_s8 + $0x108] sm:$0xff] %v251_v33  ;;  %v257_v36 = vld [vmem:[%s4730_s7 + $0x240] sm:$0xff] }
  0x2a   : > { %254 = vst [vmem:[%s4735_s8 + $0x110] sm:$0xff] %v253_v34  ;;  %256 = vst [vmem:[%s4735_s8 + $0x118] sm:$0xff] %v255_v35  ;;  %v259_v37 = vld [vmem:[%s4730_s7 + $0x248] sm:$0xff]  ;;  %v261_v38 = vld [vmem:[%s4730_s7 + $0x250] sm:$0xff] }
  0x2b   : > { %258 = vst [vmem:[%s4735_s8 + $0x120] sm:$0xff] %v257_v36  ;;  %260 = vst [vmem:[%s4735_s8 + $0x128] sm:$0xff] %v259_v37  ;;  %v263_v39 = vld [vmem:[%s4730_s7 + $0x258] sm:$0xff]  ;;  %v265_v40 = vld [vmem:[%s4730_s7 + $0x280] sm:$0xff] }
  0x2c   : > { %262 = vst [vmem:[%s4735_s8 + $0x130] sm:$0xff] %v261_v38  ;;  %v267_v41 = vld [vmem:[%s4730_s7 + $0x288] sm:$0xff]  ;;  %264 = vst [vmem:[%s4735_s8 + $0x138] sm:$0xff] %v263_v39  ;;  %v269_v42 = vld [vmem:[%s4730_s7 + $0x290] sm:$0xff] }
  0x2d   : > { %266 = vst [vmem:[%s4735_s8 + $0x140] sm:$0xff] %v265_v40  ;;  %268 = vst [vmem:[%s4735_s8 + $0x148] sm:$0xff] %v267_v41  ;;  %v271_v43 = vld [vmem:[%s4730_s7 + $0x298] sm:$0xff]  ;;  %v273_v44 = vld [vmem:[%s4730_s7 + $0x2c0] sm:$0xff] }
  0x2e   : > { %270 = vst [vmem:[%s4735_s8 + $0x150] sm:$0xff] %v269_v42  ;;  %272 = vst [vmem:[%s4735_s8 + $0x158] sm:$0xff] %v271_v43  ;;  %v275_v45 = vld [vmem:[%s4730_s7 + $0x2c8] sm:$0xff]  ;;  %v277_v46 = vld [vmem:[%s4730_s7 + $0x2d0] sm:$0xff] }
  0x2f   : > { %274 = vst [vmem:[%s4735_s8 + $0x160] sm:$0xff] %v273_v44  ;;  %v279_v47 = vld [vmem:[%s4730_s7 + $0x2d8] sm:$0xff]  ;;  %276 = vst [vmem:[%s4735_s8 + $0x168] sm:$0xff] %v275_v45  ;;  %v281_v48 = vld [vmem:[%s4730_s7 + $0x300] sm:$0xff] }
  0x30   : > { %278 = vst [vmem:[%s4735_s8 + $0x170] sm:$0xff] %v277_v46  ;;  %280 = vst [vmem:[%s4735_s8 + $0x178] sm:$0xff] %v279_v47  ;;  %v283_v49 = vld [vmem:[%s4730_s7 + $0x308] sm:$0xff]  ;;  %v285_v50 = vld [vmem:[%s4730_s7 + $0x310] sm:$0xff] }
  0x31   : > { %282 = vst [vmem:[%s4735_s8 + $0x180] sm:$0xff] %v281_v48  ;;  %284 = vst [vmem:[%s4735_s8 + $0x188] sm:$0xff] %v283_v49  ;;  %v287_v51 = vld [vmem:[%s4730_s7 + $0x318] sm:$0xff]  ;;  %v289_v52 = vld [vmem:[%s4730_s7 + $0x340] sm:$0xff] }
  0x32   : > { %286 = vst [vmem:[%s4735_s8 + $0x190] sm:$0xff] %v285_v50  ;;  %v291_v53 = vld [vmem:[%s4730_s7 + $0x348] sm:$0xff]  ;;  %288 = vst [vmem:[%s4735_s8 + $0x198] sm:$0xff] %v287_v51  ;;  %v293_v54 = vld [vmem:[%s4730_s7 + $0x350] sm:$0xff] }
  0x33   : > { %290 = vst [vmem:[%s4735_s8 + $0x1a0] sm:$0xff] %v289_v52  ;;  %292 = vst [vmem:[%s4735_s8 + $0x1a8] sm:$0xff] %v291_v53  ;;  %v295_v55 = vld [vmem:[%s4730_s7 + $0x358] sm:$0xff]  ;;  %v297_v56 = vld [vmem:[%s4730_s7 + $0x380] sm:$0xff] }
  0x34   : > { %294 = vst [vmem:[%s4735_s8 + $0x1b0] sm:$0xff] %v293_v54  ;;  %296 = vst [vmem:[%s4735_s8 + $0x1b8] sm:$0xff] %v295_v55  ;;  %v299_v57 = vld [vmem:[%s4730_s7 + $0x388] sm:$0xff]  ;;  %v301_v58 = vld [vmem:[%s4730_s7 + $0x390] sm:$0xff] }
  0x35   : > { %298 = vst [vmem:[%s4735_s8 + $0x1c0] sm:$0xff] %v297_v56  ;;  %v303_v59 = vld [vmem:[%s4730_s7 + $0x398] sm:$0xff]  ;;  %300 = vst [vmem:[%s4735_s8 + $0x1c8] sm:$0xff] %v299_v57  ;;  %v305_v60 = vld [vmem:[%s4730_s7 + $0x3c0] sm:$0xff] }
  0x36   : > { %302 = vst [vmem:[%s4735_s8 + $0x1d0] sm:$0xff] %v301_v58  ;;  %304 = vst [vmem:[%s4735_s8 + $0x1d8] sm:$0xff] %v303_v59  ;;  %v307_v61 = vld [vmem:[%s4730_s7 + $0x3c8] sm:$0xff]  ;;  %v309_v62 = vld [vmem:[%s4730_s7 + $0x3d0] sm:$0xff] }
  0x37   : > { %306 = vst [vmem:[%s4735_s8 + $0x1e0] sm:$0xff] %v305_v60  ;;  %308 = vst [vmem:[%s4735_s8 + $0x1e8] sm:$0xff] %v307_v61  ;;  %v311_v63 = vld [vmem:[%s4730_s7 + $0x3d8] sm:$0xff]  ;;  %v313_v0 = vld [vmem:[%s4730_s7 + $0x400] sm:$0xff] }
  0x38   : > { %310 = vst [vmem:[%s4735_s8 + $0x1f0] sm:$0xff] %v309_v62  ;;  %v315_v1 = vld [vmem:[%s4730_s7 + $0x408] sm:$0xff]  ;;  %312 = vst [vmem:[%s4735_s8 + $0x1f8] sm:$0xff] %v311_v63  ;;  %v317_v2 = vld [vmem:[%s4730_s7 + $0x410] sm:$0xff] }
  0x39   : > { %314 = vst [vmem:[%s4735_s8 + $0x200] sm:$0xff] %v313_v0  ;;  %316 = vst [vmem:[%s4735_s8 + $0x208] sm:$0xff] %v315_v1  ;;  %v319_v3 = vld [vmem:[%s4730_s7 + $0x418] sm:$0xff]  ;;  %v321_v4 = vld [vmem:[%s4730_s7 + $0x440] sm:$0xff] }
  0x3a   : > { %318 = vst [vmem:[%s4735_s8 + $0x210] sm:$0xff] %v317_v2  ;;  %320 = vst [vmem:[%s4735_s8 + $0x218] sm:$0xff] %v319_v3  ;;  %v323_v5 = vld [vmem:[%s4730_s7 + $0x448] sm:$0xff]  ;;  %v325_v6 = vld [vmem:[%s4730_s7 + $0x450] sm:$0xff] }
  0x3b   : > { %322 = vst [vmem:[%s4735_s8 + $0x220] sm:$0xff] %v321_v4  ;;  %v327_v7 = vld [vmem:[%s4730_s7 + $0x458] sm:$0xff]  ;;  %324 = vst [vmem:[%s4735_s8 + $0x228] sm:$0xff] %v323_v5  ;;  %v329_v8 = vld [vmem:[%s4730_s7 + $0x480] sm:$0xff] }
  0x3c   : > { %326 = vst [vmem:[%s4735_s8 + $0x230] sm:$0xff] %v325_v6  ;;  %328 = vst [vmem:[%s4735_s8 + $0x238] sm:$0xff] %v327_v7  ;;  %v331_v9 = vld [vmem:[%s4730_s7 + $0x488] sm:$0xff]  ;;  %v333_v10 = vld [vmem:[%s4730_s7 + $0x490] sm:$0xff] }
  0x3d   : > { %330 = vst [vmem:[%s4735_s8 + $0x240] sm:$0xff] %v329_v8  ;;  %332 = vst [vmem:[%s4735_s8 + $0x248] sm:$0xff] %v331_v9  ;;  %v335_v11 = vld [vmem:[%s4730_s7 + $0x498] sm:$0xff]  ;;  %v337_v12 = vld [vmem:[%s4730_s7 + $0x4c0] sm:$0xff] }
  0x3e   : > { %334 = vst [vmem:[%s4735_s8 + $0x250] sm:$0xff] %v333_v10  ;;  %v339_v13 = vld [vmem:[%s4730_s7 + $0x4c8] sm:$0xff]  ;;  %336 = vst [vmem:[%s4735_s8 + $0x258] sm:$0xff] %v335_v11  ;;  %v341_v14 = vld [vmem:[%s4730_s7 + $0x4d0] sm:$0xff] }
  0x3f   : > { %338 = vst [vmem:[%s4735_s8 + $0x260] sm:$0xff] %v337_v12  ;;  %340 = vst [vmem:[%s4735_s8 + $0x268] sm:$0xff] %v339_v13  ;;  %v343_v15 = vld [vmem:[%s4730_s7 + $0x4d8] sm:$0xff]  ;;  %v345_v16 = vld [vmem:[%s4730_s7 + $0x500] sm:$0xff] }
  0x40   : > { %342 = vst [vmem:[%s4735_s8 + $0x270] sm:$0xff] %v341_v14  ;;  %344 = vst [vmem:[%s4735_s8 + $0x278] sm:$0xff] %v343_v15  ;;  %v347_v17 = vld [vmem:[%s4730_s7 + $0x508] sm:$0xff]  ;;  %v349_v18 = vld [vmem:[%s4730_s7 + $0x510] sm:$0xff] }
  0x41   : > { %346 = vst [vmem:[%s4735_s8 + $0x280] sm:$0xff] %v345_v16  ;;  %v351_v19 = vld [vmem:[%s4730_s7 + $0x518] sm:$0xff]  ;;  %348 = vst [vmem:[%s4735_s8 + $0x288] sm:$0xff] %v347_v17  ;;  %v353_v20 = vld [vmem:[%s4730_s7 + $0x540] sm:$0xff] }
  0x42   : > { %350 = vst [vmem:[%s4735_s8 + $0x290] sm:$0xff] %v349_v18  ;;  %352 = vst [vmem:[%s4735_s8 + $0x298] sm:$0xff] %v351_v19  ;;  %v355_v21 = vld [vmem:[%s4730_s7 + $0x548] sm:$0xff]  ;;  %v357_v22 = vld [vmem:[%s4730_s7 + $0x550] sm:$0xff] }
  0x43   : > { %354 = vst [vmem:[%s4735_s8 + $0x2a0] sm:$0xff] %v353_v20  ;;  %356 = vst [vmem:[%s4735_s8 + $0x2a8] sm:$0xff] %v355_v21  ;;  %v359_v23 = vld [vmem:[%s4730_s7 + $0x558] sm:$0xff]  ;;  %v361_v24 = vld [vmem:[%s4730_s7 + $0x580] sm:$0xff] }
  0x44   : > { %358 = vst [vmem:[%s4735_s8 + $0x2b0] sm:$0xff] %v357_v22  ;;  %v363_v25 = vld [vmem:[%s4730_s7 + $0x588] sm:$0xff]  ;;  %360 = vst [vmem:[%s4735_s8 + $0x2b8] sm:$0xff] %v359_v23  ;;  %v365_v26 = vld [vmem:[%s4730_s7 + $0x590] sm:$0xff] }
  0x45   : > { %362 = vst [vmem:[%s4735_s8 + $0x2c0] sm:$0xff] %v361_v24  ;;  %364 = vst [vmem:[%s4735_s8 + $0x2c8] sm:$0xff] %v363_v25  ;;  %v367_v27 = vld [vmem:[%s4730_s7 + $0x598] sm:$0xff]  ;;  %v369_v28 = vld [vmem:[%s4730_s7 + $0x5c0] sm:$0xff] }
  0x46   : > { %366 = vst [vmem:[%s4735_s8 + $0x2d0] sm:$0xff] %v365_v26  ;;  %368 = vst [vmem:[%s4735_s8 + $0x2d8] sm:$0xff] %v367_v27  ;;  %v371_v29 = vld [vmem:[%s4730_s7 + $0x5c8] sm:$0xff]  ;;  %v373_v30 = vld [vmem:[%s4730_s7 + $0x5d0] sm:$0xff] }
  0x47   : > { %370 = vst [vmem:[%s4735_s8 + $0x2e0] sm:$0xff] %v369_v28  ;;  %v375_v31 = vld [vmem:[%s4730_s7 + $0x5d8] sm:$0xff]  ;;  %372 = vst [vmem:[%s4735_s8 + $0x2e8] sm:$0xff] %v371_v29  ;;  %v377_v32 = vld [vmem:[%s4730_s7 + $0x600] sm:$0xff] }
  0x48   : > { %374 = vst [vmem:[%s4735_s8 + $0x2f0] sm:$0xff] %v373_v30  ;;  %376 = vst [vmem:[%s4735_s8 + $0x2f8] sm:$0xff] %v375_v31  ;;  %v379_v33 = vld [vmem:[%s4730_s7 + $0x608] sm:$0xff]  ;;  %v381_v34 = vld [vmem:[%s4730_s7 + $0x610] sm:$0xff] }
  0x49   : > { %378 = vst [vmem:[%s4735_s8 + $0x300] sm:$0xff] %v377_v32  ;;  %380 = vst [vmem:[%s4735_s8 + $0x308] sm:$0xff] %v379_v33  ;;  %v383_v35 = vld [vmem:[%s4730_s7 + $0x618] sm:$0xff]  ;;  %v385_v36 = vld [vmem:[%s4730_s7 + $0x640] sm:$0xff] }
  0x4a   : > { %382 = vst [vmem:[%s4735_s8 + $0x310] sm:$0xff] %v381_v34  ;;  %v387_v37 = vld [vmem:[%s4730_s7 + $0x648] sm:$0xff]  ;;  %384 = vst [vmem:[%s4735_s8 + $0x318] sm:$0xff] %v383_v35  ;;  %v389_v38 = vld [vmem:[%s4730_s7 + $0x650] sm:$0xff] }
  0x4b   : > { %386 = vst [vmem:[%s4735_s8 + $0x320] sm:$0xff] %v385_v36  ;;  %388 = vst [vmem:[%s4735_s8 + $0x328] sm:$0xff] %v387_v37  ;;  %v391_v39 = vld [vmem:[%s4730_s7 + $0x658] sm:$0xff]  ;;  %v393_v40 = vld [vmem:[%s4730_s7 + $0x680] sm:$0xff] }
  0x4c   : > { %390 = vst [vmem:[%s4735_s8 + $0x330] sm:$0xff] %v389_v38  ;;  %392 = vst [vmem:[%s4735_s8 + $0x338] sm:$0xff] %v391_v39  ;;  %v395_v41 = vld [vmem:[%s4730_s7 + $0x688] sm:$0xff]  ;;  %v397_v42 = vld [vmem:[%s4730_s7 + $0x690] sm:$0xff] }
  0x4d   : > { %394 = vst [vmem:[%s4735_s8 + $0x340] sm:$0xff] %v393_v40  ;;  %v399_v43 = vld [vmem:[%s4730_s7 + $0x698] sm:$0xff]  ;;  %396 = vst [vmem:[%s4735_s8 + $0x348] sm:$0xff] %v395_v41  ;;  %v401_v44 = vld [vmem:[%s4730_s7 + $0x6c0] sm:$0xff] }
  0x4e   : > { %398 = vst [vmem:[%s4735_s8 + $0x350] sm:$0xff] %v397_v42  ;;  %400 = vst [vmem:[%s4735_s8 + $0x358] sm:$0xff] %v399_v43  ;;  %v403_v45 = vld [vmem:[%s4730_s7 + $0x6c8] sm:$0xff]  ;;  %v405_v46 = vld [vmem:[%s4730_s7 + $0x6d0] sm:$0xff] }
  0x4f   : > { %402 = vst [vmem:[%s4735_s8 + $0x360] sm:$0xff] %v401_v44  ;;  %404 = vst [vmem:[%s4735_s8 + $0x368] sm:$0xff] %v403_v45  ;;  %v407_v47 = vld [vmem:[%s4730_s7 + $0x6d8] sm:$0xff]  ;;  %v409_v48 = vld [vmem:[%s4730_s7 + $0x700] sm:$0xff] }
  0x50   : > { %406 = vst [vmem:[%s4735_s8 + $0x370] sm:$0xff] %v405_v46  ;;  %v411_v49 = vld [vmem:[%s4730_s7 + $0x708] sm:$0xff]  ;;  %408 = vst [vmem:[%s4735_s8 + $0x378] sm:$0xff] %v407_v47  ;;  %v413_v50 = vld [vmem:[%s4730_s7 + $0x710] sm:$0xff] }
  0x51   : > { %410 = vst [vmem:[%s4735_s8 + $0x380] sm:$0xff] %v409_v48  ;;  %412 = vst [vmem:[%s4735_s8 + $0x388] sm:$0xff] %v411_v49  ;;  %v415_v51 = vld [vmem:[%s4730_s7 + $0x718] sm:$0xff]  ;;  %v417_v52 = vld [vmem:[%s4730_s7 + $0x740] sm:$0xff] }
  0x52   : > { %414 = vst [vmem:[%s4735_s8 + $0x390] sm:$0xff] %v413_v50  ;;  %416 = vst [vmem:[%s4735_s8 + $0x398] sm:$0xff] %v415_v51  ;;  %v419_v53 = vld [vmem:[%s4730_s7 + $0x748] sm:$0xff]  ;;  %v421_v54 = vld [vmem:[%s4730_s7 + $0x750] sm:$0xff] }
  0x53   : > { %418 = vst [vmem:[%s4735_s8 + $0x3a0] sm:$0xff] %v417_v52  ;;  %v423_v55 = vld [vmem:[%s4730_s7 + $0x758] sm:$0xff]  ;;  %420 = vst [vmem:[%s4735_s8 + $0x3a8] sm:$0xff] %v419_v53  ;;  %v425_v56 = vld [vmem:[%s4730_s7 + $0x780] sm:$0xff] }
  0x54   : > { %422 = vst [vmem:[%s4735_s8 + $0x3b0] sm:$0xff] %v421_v54  ;;  %424 = vst [vmem:[%s4735_s8 + $0x3b8] sm:$0xff] %v423_v55  ;;  %v427_v57 = vld [vmem:[%s4730_s7 + $0x788] sm:$0xff]  ;;  %v429_v58 = vld [vmem:[%s4730_s7 + $0x790] sm:$0xff] }
  0x55   : > { %426 = vst [vmem:[%s4735_s8 + $0x3c0] sm:$0xff] %v425_v56  ;;  %428 = vst [vmem:[%s4735_s8 + $0x3c8] sm:$0xff] %v427_v57  ;;  %v431_v59 = vld [vmem:[%s4730_s7 + $0x798] sm:$0xff]  ;;  %v433_v60 = vld [vmem:[%s4730_s7 + $0x7c0] sm:$0xff] }
  0x56   : > { %430 = vst [vmem:[%s4735_s8 + $0x3d0] sm:$0xff] %v429_v58  ;;  %v435_v61 = vld [vmem:[%s4730_s7 + $0x7c8] sm:$0xff]  ;;  %432 = vst [vmem:[%s4735_s8 + $0x3d8] sm:$0xff] %v431_v59  ;;  %v437_v62 = vld [vmem:[%s4730_s7 + $0x7d0] sm:$0xff] }
  0x57   : > { %434 = vst [vmem:[%s4735_s8 + $0x3e0] sm:$0xff] %v433_v60  ;;  %436 = vst [vmem:[%s4735_s8 + $0x3e8] sm:$0xff] %v435_v61  ;;  %v439_v63 = vld [vmem:[%s4730_s7 + $0x7d8] sm:$0xff] }
  0x58   : > { %438 = vst [vmem:[%s4735_s8 + $0x3f0] sm:$0xff] %v437_v62  ;;  %440 = vst [vmem:[%s4735_s8 + $0x3f8] sm:$0xff] %v439_v63 }
  0x59 PF: > { %p3813_p7 = scmp.ge.s32.totalorder %s4647_s18, 1  ;;  %p460_p8 = scmp.lt.s32.totalorder %s4647_s18, 5 }
  0x5b   : > { %p461_p9 = pnand %p3813_p7, %p460_p8 }
  0x5c   : > { %s467_s9 = sand.u32 (!%p461_p9), 1, %s4623_s12   ;;  %s3815_s10 = sshll.u32 (!%p461_p9), %s4631_s14, 7 }
  0x5d   : > { %464 = sbr.rel (%p461_p9) target bundleno = 747 (0x2eb), region = 47  ;;  %s3814_s11 = sshll.u32 (!%p461_p9), %s467_s9, 10 }
  0x5e   : > { %p518_p10 = scmp.lt.s32.totalorder (!%p461_p9), %s3815_s10, 255  ;;  %s3818_s21 = sshll.u32 (!%p461_p9), %s4635_s15, 5 }
  0x5f   : > { %p530_p11 = scmp.lt.s32.totalorder (!%p461_p9), %s3818_s21, 63  ;;  %p541_p12 = scmp.lt.s32.totalorder (!%p461_p9), %s4635_s15, 1 }
  0x60   : > { %s5012_s7 = scalar_lea.vmem (!%p461_p9), [#allocation3], %s3814_s11  ;;  %p3823_p13 = scmp.ne.s32.totalorder (!%p461_p9), %s4631_s14, 0 }
  0x64   : > { %s5851_s10 = smov (!%p518_p10, %s3815_s10), 255  ;;  %s5853_s21 = smov (!%p530_p11, %s3818_s21), 63 }
  0x65   : > { %s4117_s22 = sshll.u32 %s5851_s10, 3  ;;  %s5855_s15 = smov (!%p541_p12, %s4635_s15), 1  ;;  %v4649_v0 = vmov (!%p3823_p13), 0.0  }
  0x66   : > { %s4999_s26 = scalar_lea.vmem %s5835_s1, %s4117_s22  ;;  %s4118_s27 = sshll.u32 %s5853_s21, 3  ;;  %554 = vst [vmem:[#allocation2] sm:$0xff] (!%p3823_p13), %v4649_v0  ;;  %555 = vst [vmem:[#allocation2 + $0x8] sm:$0xff] (!%p3823_p13), %v4649_v0 }
  0x67   : > { %s5005_s12 = scalar_lea.vmem %s5836_s2, %s4118_s27  ;;  %s4119_s30 = sshll.u32 %s5855_s15, 2  ;;  %556 = vst [vmem:[#allocation2 + $0x10] sm:$0xff] (!%p3823_p13), %v4649_v0  ;;  %557 = vst [vmem:[#allocation2 + $0x18] sm:$0xff] (!%p3823_p13), %v4649_v0 }
  0x68   : > { %s5010_s6 = scalar_lea.vmem %s5837_s3, %s4119_s30  ;;  %553 = sbr.rel (%p3823_p13) target bundleno = 134 (0x86), region = 55  ;;  %558 = vst [vmem:[#allocation2 + $0x20] sm:$0xff] (!%p3823_p13), %v4649_v0  ;;  %559 = vst [vmem:[#allocation2 + $0x28] sm:$0xff] (!%p3823_p13), %v4649_v0 }
  0x69   : > { %560 = vst [vmem:[#allocation2 + $0x30] sm:$0xff] (!%p3823_p13), %v4649_v0  ;;  %561 = vst [vmem:[#allocation2 + $0x38] sm:$0xff] (!%p3823_p13), %v4649_v0 }
  0x6a   : > { %562 = vst [vmem:[#allocation2 + $0x40] sm:$0xff] (!%p3823_p13), %v4649_v0  ;;  %563 = vst [vmem:[#allocation2 + $0x48] sm:$0xff] (!%p3823_p13), %v4649_v0 }
  0x6b   : > { %564 = vst [vmem:[#allocation2 + $0x50] sm:$0xff] (!%p3823_p13), %v4649_v0  ;;  %565 = vst [vmem:[#allocation2 + $0x58] sm:$0xff] (!%p3823_p13), %v4649_v0 }
  0x6c   : > { %566 = vst [vmem:[#allocation2 + $0x60] sm:$0xff] (!%p3823_p13), %v4649_v0  ;;  %567 = vst [vmem:[#allocation2 + $0x68] sm:$0xff] (!%p3823_p13), %v4649_v0 }
  0x6d   : > { %568 = vst [vmem:[#allocation2 + $0x70] sm:$0xff] (!%p3823_p13), %v4649_v0  ;;  %569 = vst [vmem:[#allocation2 + $0x78] sm:$0xff] (!%p3823_p13), %v4649_v0 }
  0x6e   : > { %570 = vst [vmem:[#allocation2 + $0x80] sm:$0xff] (!%p3823_p13), %v4649_v0  ;;  %571 = vst [vmem:[#allocation2 + $0x88] sm:$0xff] (!%p3823_p13), %v4649_v0 }
  0x6f   : > { %572 = vst [vmem:[#allocation2 + $0x90] sm:$0xff] %v4649_v0  ;;  %573 = vst [vmem:[#allocation2 + $0x98] sm:$0xff] %v4649_v0 }
  0x70   : > { %574 = vst [vmem:[#allocation2 + $0xa0] sm:$0xff] %v4649_v0  ;;  %575 = vst [vmem:[#allocation2 + $0xa8] sm:$0xff] %v4649_v0 }
  0x71   : > { %576 = vst [vmem:[#allocation2 + $0xb0] sm:$0xff] %v4649_v0  ;;  %577 = vst [vmem:[#allocation2 + $0xb8] sm:$0xff] %v4649_v0 }
  0x72   : > { %578 = vst [vmem:[#allocation2 + $0xc0] sm:$0xff] %v4649_v0  ;;  %579 = vst [vmem:[#allocation2 + $0xc8] sm:$0xff] %v4649_v0 }
  0x73   : > { %580 = vst [vmem:[#allocation2 + $0xd0] sm:$0xff] %v4649_v0  ;;  %581 = vst [vmem:[#allocation2 + $0xd8] sm:$0xff] %v4649_v0 }
  0x74   : > { %582 = vst [vmem:[#allocation2 + $0xe0] sm:$0xff] %v4649_v0  ;;  %583 = vst [vmem:[#allocation2 + $0xe8] sm:$0xff] %v4649_v0 }
  0x75   : > { %584 = vst [vmem:[#allocation2 + $0xf0] sm:$0xff] %v4649_v0  ;;  %585 = vst [vmem:[#allocation2 + $0xf8] sm:$0xff] %v4649_v0 }
  0x76   : > { %586 = vst [vmem:[#allocation2 + $0x100] sm:$0xff] %v4649_v0  ;;  %587 = vst [vmem:[#allocation2 + $0x108] sm:$0xff] %v4649_v0 }
  0x77   : > { %588 = vst [vmem:[#allocation2 + $0x110] sm:$0xff] %v4649_v0  ;;  %589 = vst [vmem:[#allocation2 + $0x118] sm:$0xff] %v4649_v0 }
  0x78   : > { %590 = vst [vmem:[#allocation2 + $0x120] sm:$0xff] %v4649_v0  ;;  %591 = vst [vmem:[#allocation2 + $0x128] sm:$0xff] %v4649_v0 }
  0x79   : > { %592 = vst [vmem:[#allocation2 + $0x130] sm:$0xff] %v4649_v0  ;;  %593 = vst [vmem:[#allocation2 + $0x138] sm:$0xff] %v4649_v0 }
  0x7a   : > { %594 = vst [vmem:[#allocation2 + $0x140] sm:$0xff] %v4649_v0  ;;  %595 = vst [vmem:[#allocation2 + $0x148] sm:$0xff] %v4649_v0 }
  0x7b   : > { %596 = vst [vmem:[#allocation2 + $0x150] sm:$0xff] %v4649_v0  ;;  %597 = vst [vmem:[#allocation2 + $0x158] sm:$0xff] %v4649_v0 }
  0x7c   : > { %598 = vst [vmem:[#allocation2 + $0x160] sm:$0xff] %v4649_v0  ;;  %599 = vst [vmem:[#allocation2 + $0x168] sm:$0xff] %v4649_v0 }
  0x7d   : > { %600 = vst [vmem:[#allocation2 + $0x170] sm:$0xff] %v4649_v0  ;;  %601 = vst [vmem:[#allocation2 + $0x178] sm:$0xff] %v4649_v0 }
  0x7e   : > { %602 = vst [vmem:[#allocation2 + $0x180] sm:$0xff] %v4649_v0  ;;  %603 = vst [vmem:[#allocation2 + $0x188] sm:$0xff] %v4649_v0 }
  0x7f   : > { %604 = vst [vmem:[#allocation2 + $0x190] sm:$0xff] %v4649_v0  ;;  %605 = vst [vmem:[#allocation2 + $0x198] sm:$0xff] %v4649_v0 }
  0x80   : > { %606 = vst [vmem:[#allocation2 + $0x1a0] sm:$0xff] %v4649_v0  ;;  %607 = vst [vmem:[#allocation2 + $0x1a8] sm:$0xff] %v4649_v0 }
  0x81   : > { %608 = vst [vmem:[#allocation2 + $0x1b0] sm:$0xff] %v4649_v0  ;;  %609 = vst [vmem:[#allocation2 + $0x1b8] sm:$0xff] %v4649_v0 }
  0x82   : > { %610 = vst [vmem:[#allocation2 + $0x1c0] sm:$0xff] %v4649_v0  ;;  %611 = vst [vmem:[#allocation2 + $0x1c8] sm:$0xff] %v4649_v0 }
  0x83   : > { %612 = vst [vmem:[#allocation2 + $0x1d0] sm:$0xff] %v4649_v0  ;;  %613 = vst [vmem:[#allocation2 + $0x1d8] sm:$0xff] %v4649_v0 }
  0x84   : > { %614 = vst [vmem:[#allocation2 + $0x1e0] sm:$0xff] %v4649_v0  ;;  %615 = vst [vmem:[#allocation2 + $0x1e8] sm:$0xff] %v4649_v0 }
  0x85   : > { %616 = vst [vmem:[#allocation2 + $0x1f0] sm:$0xff] %v4649_v0  ;;  %617 = vst [vmem:[#allocation2 + $0x1f8] sm:$0xff] %v4649_v0 }
  0x86 PF: > { %v4401_v1 = vld [vmem:[%s4999_s26 + $0x4] ss:$8 sps:$4 sm:$0xff]   ;;  %v4405_v3 = vld [vmem:[%s4999_s26] ss:$8 sps:$4 sm:$0xff]   ;;  %v4407_v5 = vld [vmem:[%s4999_s26 + $0x14] ss:$8 sps:$4 sm:$0xff]  }
  0x87   : > { %v4403_v2 = vld [vmem:[%s4999_s26 + $0x204] ss:$8 sps:$4 sm:$0xff]   ;;  %2218 = vmatprep.subr.bf16.mxu1 %v4401_v1  ;;  %v4406_v4 = vld [vmem:[%s4999_s26 + $0x200] ss:$8 sps:$4 sm:$0xff]   ;;  %v4409_v6 = vld [vmem:[%s4999_s26 + $0x214] ss:$8 sps:$4 sm:$0xff]  }
  0x88   : > { %2604 = vmatprep.subr.bf16.mxu0 %v4403_v2  ;;  %2219 = vmatpush1.bf16.msra.mxu1 %v4405_v3  ;;  %v4411_v7 = vld [vmem:[%s4999_s26 + $0x10] ss:$8 sps:$4 sm:$0xff]   ;;  %v4413_v9 = vld [vmem:[%s4999_s26 + $0x24] ss:$8 sps:$4 sm:$0xff]   ;;  %v4417_v11 = vld [vmem:[%s4999_s26 + $0x20] ss:$8 sps:$4 sm:$0xff]  }
  0x89   : > { %2605 = vmatpush1.bf16.msra.mxu0 %v4406_v4  ;;  %2220 = vmatprep.subr.bf16.mxu1 %v4407_v5  ;;  %v4412_v8 = vld [vmem:[%s4999_s26 + $0x210] ss:$8 sps:$4 sm:$0xff]   ;;  %v4415_v10 = vld [vmem:[%s4999_s26 + $0x224] ss:$8 sps:$4 sm:$0xff]   ;;  %v4418_v12 = vld [vmem:[%s4999_s26 + $0x220] ss:$8 sps:$4 sm:$0xff]  }
  0x8a   : > { %2606 = vmatprep.subr.bf16.mxu0 %v4409_v6  ;;  %v4419_v13 = vld [vmem:[%s4999_s26 + $0x34] ss:$8 sps:$4 sm:$0xff]   ;;  %v4423_v15 = vld [vmem:[%s4999_s26 + $0x30] ss:$8 sps:$4 sm:$0xff]   ;;  %v4425_v17 = vld [vmem:[%s4999_s26 + $0x44] ss:$8 sps:$4 sm:$0xff]  }
  0x8b   : > { %v4421_v14 = vld [vmem:[%s4999_s26 + $0x234] ss:$8 sps:$4 sm:$0xff]   ;;  %v4424_v16 = vld [vmem:[%s4999_s26 + $0x230] ss:$8 sps:$4 sm:$0xff]   ;;  %v4427_v18 = vld [vmem:[%s4999_s26 + $0x244] ss:$8 sps:$4 sm:$0xff]  }
  0x8c   : > { %2221 = vmatpush1.bf16.msra.mxu1 %v4411_v7  ;;  %v4429_v19 = vld [vmem:[%s4999_s26 + $0x40] ss:$8 sps:$4 sm:$0xff]   ;;  %v4431_v21 = vld [vmem:[%s4999_s26 + $0x54] ss:$8 sps:$4 sm:$0xff]   ;;  %v4435_v23 = vld [vmem:[%s4999_s26 + $0x50] ss:$8 sps:$4 sm:$0xff]  }
  0x8d   : > { %2607 = vmatpush1.bf16.msra.mxu0 %v4412_v8  ;;  %2222 = vmatprep.subr.bf16.mxu1 %v4413_v9  ;;  %v4430_v20 = vld [vmem:[%s4999_s26 + $0x240] ss:$8 sps:$4 sm:$0xff]   ;;  %v4433_v22 = vld [vmem:[%s4999_s26 + $0x254] ss:$8 sps:$4 sm:$0xff]   ;;  %v4436_v24 = vld [vmem:[%s4999_s26 + $0x250] ss:$8 sps:$4 sm:$0xff]  }
  0x8e   : > { %2608 = vmatprep.subr.bf16.mxu0 %v4415_v10  ;;  %v4437_v25 = vld [vmem:[%s4999_s26 + $0x64] ss:$8 sps:$4 sm:$0xff]   ;;  %v4441_v27 = vld [vmem:[%s4999_s26 + $0x60] ss:$8 sps:$4 sm:$0xff]   ;;  %v4443_v29 = vld [vmem:[%s4999_s26 + $0x74] ss:$8 sps:$4 sm:$0xff]  }
  0x8f   : > { %v4439_v26 = vld [vmem:[%s4999_s26 + $0x264] ss:$8 sps:$4 sm:$0xff]   ;;  %v4442_v28 = vld [vmem:[%s4999_s26 + $0x260] ss:$8 sps:$4 sm:$0xff]   ;;  %v4445_v30 = vld [vmem:[%s4999_s26 + $0x274] ss:$8 sps:$4 sm:$0xff]  }
  0x90   : > { %2223 = vmatpush1.bf16.msra.mxu1 %v4417_v11  ;;  %v4447_v31 = vld [vmem:[%s4999_s26 + $0x70] ss:$8 sps:$4 sm:$0xff]   ;;  %v4449_v33 = vld [vmem:[%s4999_s26 + $0x84] ss:$8 sps:$4 sm:$0xff]   ;;  %v4453_v35 = vld [vmem:[%s4999_s26 + $0x80] ss:$8 sps:$4 sm:$0xff]  }
  0x91   : > { %2609 = vmatpush1.bf16.msra.mxu0 %v4418_v12  ;;  %2224 = vmatprep.subr.bf16.mxu1 %v4419_v13  ;;  %v4448_v32 = vld [vmem:[%s4999_s26 + $0x270] ss:$8 sps:$4 sm:$0xff]   ;;  %v4451_v34 = vld [vmem:[%s4999_s26 + $0x284] ss:$8 sps:$4 sm:$0xff]   ;;  %v4454_v36 = vld [vmem:[%s4999_s26 + $0x280] ss:$8 sps:$4 sm:$0xff]  }
  0x92   : > { %2610 = vmatprep.subr.bf16.mxu0 %v4421_v14  ;;  %v4455_v37 = vld [vmem:[%s4999_s26 + $0x94] ss:$8 sps:$4 sm:$0xff]   ;;  %v4459_v39 = vld [vmem:[%s4999_s26 + $0x90] ss:$8 sps:$4 sm:$0xff]   ;;  %v4461_v41 = vld [vmem:[%s4999_s26 + $0xa4] ss:$8 sps:$4 sm:$0xff]  }
  0x93   : > { %v4457_v38 = vld [vmem:[%s4999_s26 + $0x294] ss:$8 sps:$4 sm:$0xff]   ;;  %v4460_v40 = vld [vmem:[%s4999_s26 + $0x290] ss:$8 sps:$4 sm:$0xff]   ;;  %v4463_v42 = vld [vmem:[%s4999_s26 + $0x2a4] ss:$8 sps:$4 sm:$0xff]  }
  0x94   : > { %2225 = vmatpush1.bf16.msra.mxu1 %v4423_v15  ;;  %v4465_v43 = vld [vmem:[%s4999_s26 + $0xa0] ss:$8 sps:$4 sm:$0xff]   ;;  %v4467_v45 = vld [vmem:[%s4999_s26 + $0xb4] ss:$8 sps:$4 sm:$0xff]   ;;  %v4471_v47 = vld [vmem:[%s4999_s26 + $0xb0] ss:$8 sps:$4 sm:$0xff]  }
  0x95   : > { %2611 = vmatpush1.bf16.msra.mxu0 %v4424_v16  ;;  %2226 = vmatprep.subr.bf16.mxu1 %v4425_v17  ;;  %v4466_v44 = vld [vmem:[%s4999_s26 + $0x2a0] ss:$8 sps:$4 sm:$0xff]   ;;  %v4469_v46 = vld [vmem:[%s4999_s26 + $0x2b4] ss:$8 sps:$4 sm:$0xff]   ;;  %v4472_v48 = vld [vmem:[%s4999_s26 + $0x2b0] ss:$8 sps:$4 sm:$0xff]  }
  0x96   : > { %2612 = vmatprep.subr.bf16.mxu0 %v4427_v18  ;;  %v5128_v49 = vld [vmem:[%s5012_s7] sm:$0xff]  ;;  %v5134_v51 = vld [vmem:[%s5012_s7 + $0x10] sm:$0xff]  ;;  %p4080_p0 = scmp.ne.s32.totalorder %s4631_s14, 1 }
  0x97   : > { %v5131_v50 = vld [vmem:[%s5012_s7 + $0x20] sm:$0xff]  ;;  %v688_v52 = vld [vmem:[%s5012_s7 + $0x30] sm:$0xff]  ;;  %vm3398_vm0 = vcmask (!%p4080_p0), 1040384  }
  0x98   : > { %2227 = vmatpush1.bf16.msra.mxu1 %v4429_v19  ;;  %v4473_v53 = vld [vmem:[%s4999_s26 + $0xc4] ss:$8 sps:$4 sm:$0xff]   ;;  %v3825_v54 = vcombine.high %v5128_v49, %v5131_v50  ;;  %v3829_v56 = vcombine.high %v5134_v51, %v688_v52  ;;  %v4477_v57 = vld [vmem:[%s4999_s26 + $0xc0] ss:$8 sps:$4 sm:$0xff]   ;;  %v4479_v59 = vld [vmem:[%s4999_s26 + $0xd4] ss:$8 sps:$4 sm:$0xff]   ;;  %v3824_v13 = vcombine.low %v5128_v49, %v5131_v50  ;;  %v3828_v14 = vcombine.low %v5134_v51, %v688_v52 }
  0x99   : > { %2613 = vmatpush1.bf16.msra.mxu0 %v4430_v20  ;;  %2228 = vmatprep.subr.bf16.mxu1 %v4431_v21  ;;  %v4475_v55 = vld [vmem:[%s4999_s26 + $0x2c4] ss:$8 sps:$4 sm:$0xff]   ;;  %v4478_v58 = vld [vmem:[%s4999_s26 + $0x2c0] ss:$8 sps:$4 sm:$0xff]   ;;  %v4481_v60 = vld [vmem:[%s4999_s26 + $0x2d4] ss:$8 sps:$4 sm:$0xff]  }
  0x9a   : > { %2614 = vmatprep.subr.bf16.mxu0 %v4433_v22  ;;  %2250 = vmatprep.mubr.bf16.mxu1 %v3825_v54  ;;  %v4483_v61 = vld [vmem:[%s4999_s26 + $0xd0] ss:$8 sps:$4 sm:$0xff]   ;;  %v4485_v63 = vld [vmem:[%s4999_s26 + $0xe4] ss:$8 sps:$4 sm:$0xff]   ;;  %v4489_v1 = vld [vmem:[%s4999_s26 + $0xe0] ss:$8 sps:$4 sm:$0xff]  }
  0x9b   : > { %2636 = vmatprep.mubr.bf16.mxu0 %v3829_v56  ;;  %v4484_v62 = vld [vmem:[%s4999_s26 + $0x2d0] ss:$8 sps:$4 sm:$0xff]   ;;  %v4487_v0 = vld [vmem:[%s4999_s26 + $0x2e4] ss:$8 sps:$4 sm:$0xff]   ;;  %v4490_v2 = vld [vmem:[%s4999_s26 + $0x2e0] ss:$8 sps:$4 sm:$0xff]  }
  0x9c   : > { %2229 = vmatpush1.bf16.msra.mxu1 %v4435_v23  ;;  %v4491_v3 = vld [vmem:[%s4999_s26 + $0xf4] ss:$8 sps:$4 sm:$0xff]   ;;  %v4495_v5 = vld [vmem:[%s4999_s26 + $0xf0] ss:$8 sps:$4 sm:$0xff]   ;;  %v4499_v7 = vld [vmem:[%s4999_s26 + $0x104] ss:$8 sps:$4 sm:$0xff]  }
  0x9d   : > { %2615 = vmatpush1.bf16.msra.mxu0 %v4436_v24  ;;  %2230 = vmatprep.subr.bf16.mxu1 %v4437_v25  ;;  %v4493_v4 = vld [vmem:[%s4999_s26 + $0x2f4] ss:$8 sps:$4 sm:$0xff]   ;;  %v4496_v6 = vld [vmem:[%s4999_s26 + $0x2f0] ss:$8 sps:$4 sm:$0xff]   ;;  %v4502_v8 = vld [vmem:[%s4999_s26 + $0x304] ss:$8 sps:$4 sm:$0xff]  }
  0x9e   : > { %2616 = vmatprep.subr.bf16.mxu0 %v4439_v26  ;;  %v690_v9 = vld [vmem:[%s5012_s7 + $0x40] sm:$0xff]  ;;  %v692_v11 = vld [vmem:[%s5012_s7 + $0x50] sm:$0xff] }
  0x9f   : > { %v694_v10 = vld [vmem:[%s5012_s7 + $0x60] sm:$0xff]  ;;  %v696_v12 = vld [vmem:[%s5012_s7 + $0x70] sm:$0xff] }
  0xa0   : > { %2231 = vmatpush1.bf16.msra.mxu1 %v4441_v27  ;;  %v4497_v15 = vld [vmem:[%s4999_s26 + $0x100] ss:$8 sps:$4 sm:$0xff]   ;;  %v3833_v17 = vcombine.high %v690_v9, %v694_v10  ;;  %v3837_v18 = vcombine.high %v692_v11, %v696_v12  ;;  %v4503_v19 = vld [vmem:[%s4999_s26 + $0x110] ss:$8 sps:$4 sm:$0xff]   ;;  %v4505_v20 = vld [vmem:[%s4999_s26 + $0x114] ss:$8 sps:$4 sm:$0xff]  }
  0xa1   : > { %2617 = vmatpush1.bf16.msra.mxu0 %v4442_v28  ;;  %2232 = vmatprep.subr.bf16.mxu1 %v4443_v29  ;;  %v4500_v16 = vld [vmem:[%s4999_s26 + $0x300] ss:$8 sps:$4 sm:$0xff]   ;;  %v4506_v21 = vld [vmem:[%s4999_s26 + $0x310] ss:$8 sps:$4 sm:$0xff]   ;;  %v4508_v22 = vld [vmem:[%s4999_s26 + $0x314] ss:$8 sps:$4 sm:$0xff]   ;;  %v3832_v29 = vcombine.low %v690_v9, %v694_v10 }
  0xa2   : > { %2618 = vmatprep.subr.bf16.mxu0 %v4445_v30  ;;  %v698_v23 = vld [vmem:[%s5012_s7 + $0x80] sm:$0xff]  ;;  %v700_v25 = vld [vmem:[%s5012_s7 + $0x90] sm:$0xff]  ;;  %v3836_v30 = vcombine.low %v692_v11, %v696_v12 }
  0xa3   : > { %v702_v24 = vld [vmem:[%s5012_s7 + $0xa0] sm:$0xff]  ;;  %v704_v26 = vld [vmem:[%s5012_s7 + $0xb0] sm:$0xff] }
  0xa4   : > { %2233 = vmatpush1.bf16.msra.mxu1 %v4447_v31  ;;  %v4511_v27 = vld [vmem:[%s4999_s26 + $0x124] ss:$8 sps:$4 sm:$0xff]   ;;  %v3841_v31 = vcombine.high %v698_v23, %v702_v24  ;;  %v4521_v49 = vld [vmem:[%s4999_s26 + $0x140] ss:$8 sps:$4 sm:$0xff]   ;;  %v4529_v51 = vld [vmem:[%s4999_s26 + $0x154] ss:$8 sps:$4 sm:$0xff]  }
  0xa5   : > { %2619 = vmatpush1.bf16.msra.mxu0 %v4448_v32  ;;  %2234 = vmatprep.subr.bf16.mxu1 %v4449_v33  ;;  %v4514_v28 = vld [vmem:[%s4999_s26 + $0x324] ss:$8 sps:$4 sm:$0xff]   ;;  %v3845_v32 = vcombine.high %v700_v25, %v704_v26  ;;  %v4509_v33 = vld [vmem:[%s4999_s26 + $0x120] ss:$8 sps:$4 sm:$0xff]   ;;  %v4532_v52 = vld [vmem:[%s4999_s26 + $0x354] ss:$8 sps:$4 sm:$0xff]  }
  0xa6   : > { %2620 = vmatprep.subr.bf16.mxu0 %v4451_v34  ;;  %v4512_v34 = vld [vmem:[%s4999_s26 + $0x320] ss:$8 sps:$4 sm:$0xff]   ;;  %v720_v56 = vld [vmem:[%s5012_s7 + $0x130] sm:$0xff]  ;;  %v4547_v11 = vld [vmem:[%s4999_s26 + $0x184] ss:$8 sps:$4 sm:$0xff]  }
  0xa7   : > { %v4524_v50 = vld [vmem:[%s4999_s26 + $0x340] ss:$8 sps:$4 sm:$0xff]   ;;  %v4539_v9 = vld [vmem:[%s4999_s26 + $0x170] ss:$8 sps:$4 sm:$0xff]   ;;  %v4550_v12 = vld [vmem:[%s4999_s26 + $0x384] ss:$8 sps:$4 sm:$0xff]  }
  0xa8   : > { %2235 = vmatpush1.bf16.msra.mxu1 %v4453_v35  ;;  %v4517_v35 = vld [vmem:[%s4999_s26 + $0x134] ss:$8 sps:$4 sm:$0xff]   ;;  %v718_v54 = vld [vmem:[%s5012_s7 + $0x120] sm:$0xff]  ;;  %v4542_v10 = vld [vmem:[%s4999_s26 + $0x370] ss:$8 sps:$4 sm:$0xff]  }
  0xa9   : > { %2621 = vmatpush1.bf16.msra.mxu0 %v4454_v36  ;;  %2236 = vmatprep.subr.bf16.mxu1 %v4455_v37  ;;  %v4520_v36 = vld [vmem:[%s4999_s26 + $0x334] ss:$8 sps:$4 sm:$0xff]   ;;  %v706_v37 = vld [vmem:[%s5012_s7 + $0xc0] sm:$0xff] }
  0xaa   : > { %2622 = vmatprep.subr.bf16.mxu0 %v4457_v38  ;;  %v710_v38 = vld [vmem:[%s5012_s7 + $0xe0] sm:$0xff] }
  0xac   : > { %2237 = vmatpush1.bf16.msra.mxu1 %v4459_v39  ;;  %v708_v39 = vld [vmem:[%s5012_s7 + $0xd0] sm:$0xff] }
  0xad   : > { %2623 = vmatpush1.bf16.msra.mxu0 %v4460_v40  ;;  %2238 = vmatprep.subr.bf16.mxu1 %v4461_v41  ;;  %v712_v40 = vld [vmem:[%s5012_s7 + $0xf0] sm:$0xff] }
  0xae   : > { %2624 = vmatprep.subr.bf16.mxu0 %v4463_v42  ;;  %v4515_v41 = vld [vmem:[%s4999_s26 + $0x130] ss:$8 sps:$4 sm:$0xff]  }
  0xaf   : > { %v4518_v42 = vld [vmem:[%s4999_s26 + $0x330] ss:$8 sps:$4 sm:$0xff]  }
  0xb0   : > { %2239 = vmatpush1.bf16.msra.mxu1 %v4465_v43  ;;  %v4523_v43 = vld [vmem:[%s4999_s26 + $0x144] ss:$8 sps:$4 sm:$0xff]  }
  0xb1   : > { %2625 = vmatpush1.bf16.msra.mxu0 %v4466_v44  ;;  %2240 = vmatprep.subr.bf16.mxu1 %v4467_v45  ;;  %v4526_v44 = vld [vmem:[%s4999_s26 + $0x344] ss:$8 sps:$4 sm:$0xff]   ;;  %v3840_v45 = vcombine.low %v698_v23, %v702_v24  ;;  %v732_v23 = vld [vmem:[%s5012_s7 + $0x190] sm:$0xff] }
  0xb2   : > { %2626 = vmatprep.subr.bf16.mxu0 %v4469_v46  ;;  %v3844_v46 = vcombine.low %v700_v25, %v704_v26  ;;  %v736_v24 = vld [vmem:[%s5012_s7 + $0x1b0] sm:$0xff] }
  0xb3   : > { %v4551_v25 = vld [vmem:[%s4999_s26 + $0x190] ss:$8 sps:$4 sm:$0xff]  }
  0xb4   : > { %2241 = vmatpush1.bf16.msra.mxu1 %v4471_v47  ;;  %v3849_v47 = vcombine.high %v706_v37, %v710_v38  ;;  %v4554_v26 = vld [vmem:[%s4999_s26 + $0x390] ss:$8 sps:$4 sm:$0xff]  }
  0xb5   : > { %2627 = vmatpush1.bf16.msra.mxu0 %v4472_v48  ;;  %2242 = vmatprep.subr.bf16.mxu1 %v4473_v53  ;;  %v3853_v48 = vcombine.high %v708_v39, %v712_v40  ;;  %v714_v53 = vld [vmem:[%s5012_s7 + $0x100] sm:$0xff] }
  0xb6   : > { %2628 = vmatprep.subr.bf16.mxu0 %v4475_v55  ;;  %v716_v55 = vld [vmem:[%s5012_s7 + $0x110] sm:$0xff] }
  0xb8   : > { %2243 = vmatpush1.bf16.msra.mxu1 %v4477_v57  ;;  %v4527_v57 = vld [vmem:[%s4999_s26 + $0x150] ss:$8 sps:$4 sm:$0xff]  }
  0xb9   : > { %2629 = vmatpush1.bf16.msra.mxu0 %v4478_v58  ;;  %2244 = vmatprep.subr.bf16.mxu1 %v4479_v59  ;;  %v4530_v58 = vld [vmem:[%s4999_s26 + $0x350] ss:$8 sps:$4 sm:$0xff]   ;;  %v4535_v59 = vld [vmem:[%s4999_s26 + $0x164] ss:$8 sps:$4 sm:$0xff]  }
  0xba   : > { %2630 = vmatprep.subr.bf16.mxu0 %v4481_v60  ;;  %v4538_v60 = vld [vmem:[%s4999_s26 + $0x364] ss:$8 sps:$4 sm:$0xff]  }
  0xbc   : > { %2245 = vmatpush1.bf16.msra.mxu1 %v4483_v61  ;;  %v3848_v61 = vcombine.low %v706_v37, %v710_v38  ;;  %v738_v37 = vld [vmem:[%s5012_s7 + $0x1c0] sm:$0xff] }
  0xbd   : > { %2631 = vmatpush1.bf16.msra.mxu0 %v4484_v62  ;;  %2246 = vmatprep.subr.bf16.mxu1 %v4485_v63  ;;  %v3852_v62 = vcombine.low %v708_v39, %v712_v40  ;;  %v3857_v63 = vcombine.high %v714_v53, %v718_v54  ;;  %v742_v38 = vld [vmem:[%s5012_s7 + $0x1e0] sm:$0xff]  ;;  %v740_v39 = vld [vmem:[%s5012_s7 + $0x1d0] sm:$0xff] }
  0xbe   : > { %2632 = vmatprep.subr.bf16.mxu0 %v4487_v0  ;;  %v3861_v0 = vcombine.high %v716_v55, %v720_v56  ;;  %v744_v40 = vld [vmem:[%s5012_s7 + $0x1f0] sm:$0xff] }
  0xc0   : > { %2247 = vmatpush1.bf16.msra.mxu1 %v4489_v1  ;;  %v4533_v1 = vld [vmem:[%s4999_s26 + $0x160] ss:$8 sps:$4 sm:$0xff]  }
  0xc1   : > { %2633 = vmatpush1.bf16.msra.mxu0 %v4490_v2  ;;  %2248 = vmatprep.subr.bf16.mxu1 %v4491_v3  ;;  %v4536_v2 = vld [vmem:[%s4999_s26 + $0x360] ss:$8 sps:$4 sm:$0xff]   ;;  %v4541_v3 = vld [vmem:[%s4999_s26 + $0x174] ss:$8 sps:$4 sm:$0xff]  }
  0xc2   : > { %2634 = vmatprep.subr.bf16.mxu0 %v4493_v4  ;;  %v4544_v4 = vld [vmem:[%s4999_s26 + $0x374] ss:$8 sps:$4 sm:$0xff]  }
  0xc4   : > { %2249 = vmatpush1.bf16.msra.mxu1 %v4495_v5  ;;  %v722_v5 = vld [vmem:[%s5012_s7 + $0x140] sm:$0xff] }
  0xc5   : > { %2635 = vmatpush1.bf16.msra.mxu0 %v4496_v6  ;;  %2411 = vmatprep.subr.bf16.mxu1 %v4499_v7  ;;  %v726_v6 = vld [vmem:[%s5012_s7 + $0x160] sm:$0xff]  ;;  %v724_v7 = vld [vmem:[%s5012_s7 + $0x150] sm:$0xff] }
  0xc6   : > { %2797 = vmatprep.subr.bf16.mxu0 %v4502_v8  ;;  %v728_v8 = vld [vmem:[%s5012_s7 + $0x170] sm:$0xff] }
  0xc7   : > { %2251 = vmatmul.mubr.bf16.vlgmr.msra.gmra.mrb[0].mxu1 %v3824_v13  ;;  %v3856_v13 = vcombine.low %v714_v53, %v718_v54  ;;  %v746_v53 = vld [vmem:[%s5012_s7 + $0x200] sm:$0xff] }
  0xc8   : > { %2637 = vmatmul.mubr.bf16.vlgmr.msra.gmra.mrb[0].mxu0 %v3828_v14  ;;  %2412 = vmatpush1.bf16.msra.mxu1 %v4497_v15  ;;  %v3860_v14 = vcombine.low %v716_v55, %v720_v56  ;;  %v3865_v15 = vcombine.high %v722_v5, %v726_v6  ;;  %v750_v54 = vld [vmem:[%s5012_s7 + $0x220] sm:$0xff]  ;;  %v748_v55 = vld [vmem:[%s5012_s7 + $0x210] sm:$0xff] }
  0xc9   : > { %2798 = vmatpush1.bf16.msra.mxu0 %v4500_v16  ;;  %2260 = vmatprep.mubr.bf16.mxu1 %v3833_v17  ;;  %v3869_v16 = vcombine.high %v724_v7, %v728_v8  ;;  %v4545_v17 = vld [vmem:[%s4999_s26 + $0x180] ss:$8 sps:$4 sm:$0xff]   ;;  %v752_v56 = vld [vmem:[%s5012_s7 + $0x230] sm:$0xff] }
  0xca   : > { %2646 = vmatprep.mubr.bf16.mxu0 %v3837_v18  ;;  %2413 = vmatprep.subr.bf16.mxu1 %v4505_v20  ;;  %v4548_v18 = vld [vmem:[%s4999_s26 + $0x380] ss:$8 sps:$4 sm:$0xff]   ;;  %v4556_v20 = vld [vmem:[%s4999_s26 + $0x394] ss:$8 sps:$4 sm:$0xff]  }
  0xcb   : > { %2799 = vmatprep.subr.bf16.mxu0 %v4508_v22  ;;  %v734_v22 = vld [vmem:[%s5012_s7 + $0x1a0] sm:$0xff] }
  0xcc   : > { %2414 = vmatpush1.bf16.msra.mxu1 %v4503_v19  ;;  %v4553_v19 = vld [vmem:[%s4999_s26 + $0x194] ss:$8 sps:$4 sm:$0xff]  }
  0xcd   : > { %2800 = vmatpush1.bf16.msra.mxu0 %v4506_v21  ;;  %2415 = vmatprep.subr.bf16.mxu1 %v4511_v27  ;;  %v730_v21 = vld [vmem:[%s5012_s7 + $0x180] sm:$0xff] }
  0xce   : > { %2801 = vmatprep.subr.bf16.mxu0 %v4514_v28  ;;  %v4559_v27 = vld [vmem:[%s4999_s26 + $0x1a4] ss:$8 sps:$4 sm:$0xff]  }
  0xcf   : > { %2261 = vmatmul.mubr.bf16.gmra.mrb[4].mxu1 %v3832_v29  ;;  %v4562_v28 = vld [vmem:[%s4999_s26 + $0x3a4] ss:$8 sps:$4 sm:$0xff]   ;;  %v3864_v29 = vcombine.low %v722_v5, %v726_v6 }
  0xd0   : > { %2647 = vmatmul.mubr.bf16.gmra.mrb[4].mxu0 %v3836_v30  ;;  %2270 = vmatprep.mubr.bf16.mxu1 %v3841_v31  ;;  %v3868_v30 = vcombine.low %v724_v7, %v728_v8  ;;  %v3873_v31 = vcombine.high %v730_v21, %v734_v22  ;;  %v754_v5 = vld [vmem:[%s5012_s7 + $0x240] sm:$0xff]  ;;  %v756_v7 = vld [vmem:[%s5012_s7 + $0x250] sm:$0xff] }
  0xd1   : > { %2656 = vmatprep.mubr.bf16.mxu0 %v3845_v32  ;;  %2416 = vmatpush1.bf16.msra.mxu1 %v4509_v33  ;;  %v3877_v32 = vcombine.high %v732_v23, %v736_v24  ;;  %v4557_v33 = vld [vmem:[%s4999_s26 + $0x1a0] ss:$8 sps:$4 sm:$0xff]   ;;  %v760_v8 = vld [vmem:[%s5012_s7 + $0x270] sm:$0xff] }
  0xd2   : > { %2802 = vmatpush1.bf16.msra.mxu0 %v4512_v34  ;;  %2417 = vmatprep.subr.bf16.mxu1 %v4517_v35  ;;  %v4560_v34 = vld [vmem:[%s4999_s26 + $0x3a0] ss:$8 sps:$4 sm:$0xff]   ;;  %v4565_v35 = vld [vmem:[%s4999_s26 + $0x1b4] ss:$8 sps:$4 sm:$0xff]  }
  0xd3   : > { %2803 = vmatprep.subr.bf16.mxu0 %v4520_v36  ;;  %v4568_v36 = vld [vmem:[%s4999_s26 + $0x3b4] ss:$8 sps:$4 sm:$0xff]   ;;  %v758_v6 = vld [vmem:[%s5012_s7 + $0x260] sm:$0xff] }
  0xd5   : > { %2418 = vmatpush1.bf16.msra.mxu1 %v4515_v41  ;;  %v4563_v41 = vld [vmem:[%s4999_s26 + $0x1b0] ss:$8 sps:$4 sm:$0xff]  }
  0xd6   : > { %2804 = vmatpush1.bf16.msra.mxu0 %v4518_v42  ;;  %2419 = vmatprep.subr.bf16.mxu1 %v4523_v43  ;;  %v4566_v42 = vld [vmem:[%s4999_s26 + $0x3b0] ss:$8 sps:$4 sm:$0xff]   ;;  %v4571_v43 = vld [vmem:[%s4999_s26 + $0x1c4] ss:$8 sps:$4 sm:$0xff]  }
  0xd7   : > { %2805 = vmatprep.subr.bf16.mxu0 %v4526_v44  ;;  %2271 = vmatmul.mubr.bf16.gmra.mrb[8].mxu1 %v3840_v45  ;;  %v4574_v44 = vld [vmem:[%s4999_s26 + $0x3c4] ss:$8 sps:$4 sm:$0xff]   ;;  %v3872_v45 = vcombine.low %v730_v21, %v734_v22 }
  0xd8   : > { %2657 = vmatmul.mubr.bf16.gmra.mrb[8].mxu0 %v3844_v46  ;;  %2280 = vmatprep.mubr.bf16.mxu1 %v3849_v47  ;;  %v3876_v46 = vcombine.low %v732_v23, %v736_v24  ;;  %v3881_v47 = vcombine.high %v738_v37, %v742_v38  ;;  %v770_v23 = vld [vmem:[%s5012_s7 + $0x2c0] sm:$0xff] }
  0xd9   : > { %2666 = vmatprep.mubr.bf16.mxu0 %v3853_v48  ;;  %2420 = vmatpush1.bf16.msra.mxu1 %v4521_v49  ;;  %v3885_v48 = vcombine.high %v740_v39, %v744_v40  ;;  %v4569_v49 = vld [vmem:[%s4999_s26 + $0x1c0] ss:$8 sps:$4 sm:$0xff]  }
  0xda   : > { %2806 = vmatpush1.bf16.msra.mxu0 %v4524_v50  ;;  %2421 = vmatprep.subr.bf16.mxu1 %v4529_v51  ;;  %v4572_v50 = vld [vmem:[%s4999_s26 + $0x3c0] ss:$8 sps:$4 sm:$0xff]   ;;  %v4577_v51 = vld [vmem:[%s4999_s26 + $0x1d4] ss:$8 sps:$4 sm:$0xff]  }
  0xdb   : > { %2807 = vmatprep.subr.bf16.mxu0 %v4532_v52  ;;  %v4580_v52 = vld [vmem:[%s4999_s26 + $0x3d4] ss:$8 sps:$4 sm:$0xff]   ;;  %v774_v24 = vld [vmem:[%s5012_s7 + $0x2e0] sm:$0xff] }
  0xdd   : > { %2422 = vmatpush1.bf16.msra.mxu1 %v4527_v57  ;;  %v4575_v57 = vld [vmem:[%s4999_s26 + $0x1d0] ss:$8 sps:$4 sm:$0xff]  }
  0xde   : > { %2808 = vmatpush1.bf16.msra.mxu0 %v4530_v58  ;;  %2423 = vmatprep.subr.bf16.mxu1 %v4535_v59  ;;  %v4578_v58 = vld [vmem:[%s4999_s26 + $0x3d0] ss:$8 sps:$4 sm:$0xff]   ;;  %v4583_v59 = vld [vmem:[%s4999_s26 + $0x1e4] ss:$8 sps:$4 sm:$0xff]  }
  0xdf   : > { %2809 = vmatprep.subr.bf16.mxu0 %v4538_v60  ;;  %2281 = vmatmul.mubr.bf16.gmra.mrb[12].mxu1 %v3848_v61  ;;  %v4586_v60 = vld [vmem:[%s4999_s26 + $0x3e4] ss:$8 sps:$4 sm:$0xff]   ;;  %v3880_v61 = vcombine.low %v738_v37, %v742_v38 }
  0xe0   : > { %2667 = vmatmul.mubr.bf16.gmra.mrb[12].mxu0 %v3852_v62  ;;  %2290 = vmatprep.mubr.bf16.mxu1 %v3857_v63  ;;  %v3884_v62 = vcombine.low %v740_v39, %v744_v40  ;;  %v3889_v63 = vcombine.high %v746_v53, %v750_v54  ;;  %v786_v39 = vld [vmem:[%s5012_s7 + $0x340] sm:$0xff] }
  0xe1   : > { %2676 = vmatprep.mubr.bf16.mxu0 %v3861_v0  ;;  %2424 = vmatpush1.bf16.msra.mxu1 %v4533_v1  ;;  %v3893_v0 = vcombine.high %v748_v55, %v752_v56  ;;  %v4581_v1 = vld [vmem:[%s4999_s26 + $0x1e0] ss:$8 sps:$4 sm:$0xff]  }
  0xe2   : > { %2810 = vmatpush1.bf16.msra.mxu0 %v4536_v2  ;;  %2425 = vmatprep.subr.bf16.mxu1 %v4541_v3  ;;  %v4584_v2 = vld [vmem:[%s4999_s26 + $0x3e0] ss:$8 sps:$4 sm:$0xff]   ;;  %v4589_v3 = vld [vmem:[%s4999_s26 + $0x1f4] ss:$8 sps:$4 sm:$0xff]  }
  0xe3   : > { %2811 = vmatprep.subr.bf16.mxu0 %v4544_v4  ;;  %v4592_v4 = vld [vmem:[%s4999_s26 + $0x3f4] ss:$8 sps:$4 sm:$0xff]   ;;  %v790_v40 = vld [vmem:[%s5012_s7 + $0x360] sm:$0xff] }
  0xe5   : > { %2426 = vmatpush1.bf16.msra.mxu1 %v4539_v9  ;;  %v4587_v9 = vld [vmem:[%s4999_s26 + $0x1f0] ss:$8 sps:$4 sm:$0xff]  }
  0xe6   : > { %2812 = vmatpush1.bf16.msra.mxu0 %v4542_v10  ;;  %2427 = vmatprep.subr.bf16.mxu1 %v4547_v11  ;;  %v4590_v10 = vld [vmem:[%s4999_s26 + $0x3f0] ss:$8 sps:$4 sm:$0xff]   ;;  %v3888_v11 = vcombine.low %v746_v53, %v750_v54 }
  0xe7   : > { %2813 = vmatprep.subr.bf16.mxu0 %v4550_v12  ;;  %2291 = vmatmul.mubr.bf16.gmra.mrb[16].mxu1 %v3856_v13  ;;  %v3892_v12 = vcombine.low %v748_v55, %v752_v56  ;;  %v3897_v13 = vcombine.high %v754_v5, %v758_v6  ;;  %v802_v55 = vld [vmem:[%s5012_s7 + $0x3c0] sm:$0xff] }
  0xe8   : > { %2677 = vmatmul.mubr.bf16.gmra.mrb[16].mxu0 %v3860_v14  ;;  %2300 = vmatprep.mubr.bf16.mxu1 %v3865_v15  ;;  %v3901_v14 = vcombine.high %v756_v7, %v760_v8  ;;  %v762_v15 = vld [vmem:[%s5012_s7 + $0x280] sm:$0xff] }
  0xe9   : > { %2686 = vmatprep.mubr.bf16.mxu0 %v3869_v16  ;;  %2428 = vmatpush1.bf16.msra.mxu1 %v4545_v17  ;;  %v766_v16 = vld [vmem:[%s5012_s7 + $0x2a0] sm:$0xff]  ;;  %v764_v17 = vld [vmem:[%s5012_s7 + $0x290] sm:$0xff] }
  0xea   : > { %2814 = vmatpush1.bf16.msra.mxu0 %v4548_v18  ;;  %2429 = vmatprep.subr.bf16.mxu1 %v4553_v19  ;;  %v768_v18 = vld [vmem:[%s5012_s7 + $0x2b0] sm:$0xff]  ;;  %v3896_v19 = vcombine.low %v754_v5, %v758_v6  ;;  %v3905_v21 = vcombine.high %v762_v15, %v766_v16  ;;  %v806_v56 = vld [vmem:[%s5012_s7 + $0x3e0] sm:$0xff] }
  0xeb   : > { %2815 = vmatprep.subr.bf16.mxu0 %v4556_v20  ;;  %v3900_v20 = vcombine.low %v756_v7, %v760_v8  ;;  %v3909_v22 = vcombine.high %v764_v17, %v768_v18  ;;  %v691_v7 = vld [vmem:[%s5012_s7 + $0x48] sm:$0xff] }
  0xec   : > { %v695_v8 = vld [vmem:[%s5012_s7 + $0x68] sm:$0xff] }
  0xed   : > { %2430 = vmatpush1.bf16.msra.mxu1 %v4551_v25  ;;  %v772_v25 = vld [vmem:[%s5012_s7 + $0x2d0] sm:$0xff] }
  0xee   : > { %2816 = vmatpush1.bf16.msra.mxu0 %v4554_v26  ;;  %2431 = vmatprep.subr.bf16.mxu1 %v4559_v27  ;;  %v776_v26 = vld [vmem:[%s5012_s7 + $0x2f0] sm:$0xff]  ;;  %v3904_v27 = vcombine.low %v762_v15, %v766_v16  ;;  %v699_v15 = vld [vmem:[%s5012_s7 + $0x88] sm:$0xff] }
  0xef   : > { %2817 = vmatprep.subr.bf16.mxu0 %v4562_v28  ;;  %2301 = vmatmul.mubr.bf16.gmra.mrb[20].mxu1 %v3864_v29  ;;  %v3908_v28 = vcombine.low %v764_v17, %v768_v18  ;;  %v3913_v29 = vcombine.high %v770_v23, %v774_v24  ;;  %v703_v16 = vld [vmem:[%s5012_s7 + $0xa8] sm:$0xff]  ;;  %v701_v17 = vld [vmem:[%s5012_s7 + $0x98] sm:$0xff] }
  0xf0   : > { %2687 = vmatmul.mubr.bf16.gmra.mrb[20].mxu0 %v3868_v30  ;;  %2310 = vmatprep.mubr.bf16.mxu1 %v3873_v31  ;;  %v3917_v30 = vcombine.high %v772_v25, %v776_v26  ;;  %v778_v31 = vld [vmem:[%s5012_s7 + $0x300] sm:$0xff]  ;;  %v705_v18 = vld [vmem:[%s5012_s7 + $0xb8] sm:$0xff] }
  0xf1   : > { %2696 = vmatprep.mubr.bf16.mxu0 %v3877_v32  ;;  %2432 = vmatpush1.bf16.msra.mxu1 %v4557_v33  ;;  %v782_v32 = vld [vmem:[%s5012_s7 + $0x320] sm:$0xff]  ;;  %v780_v33 = vld [vmem:[%s5012_s7 + $0x310] sm:$0xff] }
  0xf2   : > { %2818 = vmatpush1.bf16.msra.mxu0 %v4560_v34  ;;  %2433 = vmatprep.subr.bf16.mxu1 %v4565_v35  ;;  %v784_v34 = vld [vmem:[%s5012_s7 + $0x330] sm:$0xff]  ;;  %v3912_v35 = vcombine.low %v770_v23, %v774_v24  ;;  %v3921_v37 = vcombine.high %v778_v31, %v782_v32  ;;  %v707_v23 = vld [vmem:[%s5012_s7 + $0xc8] sm:$0xff] }
  0xf3   : > { %2819 = vmatprep.subr.bf16.mxu0 %v4568_v36  ;;  %v3916_v36 = vcombine.low %v772_v25, %v776_v26  ;;  %v3925_v38 = vcombine.high %v780_v33, %v784_v34  ;;  %v711_v24 = vld [vmem:[%s5012_s7 + $0xe8] sm:$0xff]  ;;  %v709_v25 = vld [vmem:[%s5012_s7 + $0xd8] sm:$0xff] }
  0xf4   : > { %v713_v26 = vld [vmem:[%s5012_s7 + $0xf8] sm:$0xff] }
  0xf5   : > { %2434 = vmatpush1.bf16.msra.mxu1 %v4563_v41  ;;  %v788_v41 = vld [vmem:[%s5012_s7 + $0x350] sm:$0xff] }
  0xf6   : > { %2820 = vmatpush1.bf16.msra.mxu0 %v4566_v42  ;;  %2435 = vmatprep.subr.bf16.mxu1 %v4571_v43  ;;  %v792_v42 = vld [vmem:[%s5012_s7 + $0x370] sm:$0xff]  ;;  %v3920_v43 = vcombine.low %v778_v31, %v782_v32  ;;  %v715_v31 = vld [vmem:[%s5012_s7 + $0x108] sm:$0xff] }
  0xf7   : > { %2821 = vmatprep.subr.bf16.mxu0 %v4574_v44  ;;  %2311 = vmatmul.mubr.bf16.gmra.mrb[24].mxu1 %v3872_v45  ;;  %v3924_v44 = vcombine.low %v780_v33, %v784_v34  ;;  %v3929_v45 = vcombine.high %v786_v39, %v790_v40  ;;  %v719_v32 = vld [vmem:[%s5012_s7 + $0x128] sm:$0xff]  ;;  %v717_v33 = vld [vmem:[%s5012_s7 + $0x118] sm:$0xff] }
  0xf8   : > { %2697 = vmatmul.mubr.bf16.gmra.mrb[24].mxu0 %v3876_v46  ;;  %2320 = vmatprep.mubr.bf16.mxu1 %v3881_v47  ;;  %v3933_v46 = vcombine.high %v788_v41, %v792_v42  ;;  %v794_v47 = vld [vmem:[%s5012_s7 + $0x380] sm:$0xff]  ;;  %v721_v34 = vld [vmem:[%s5012_s7 + $0x138] sm:$0xff] }
  0xf9   : > { %2706 = vmatprep.mubr.bf16.mxu0 %v3885_v48  ;;  %2436 = vmatpush1.bf16.msra.mxu1 %v4569_v49  ;;  %v798_v48 = vld [vmem:[%s5012_s7 + $0x3a0] sm:$0xff]  ;;  %v796_v49 = vld [vmem:[%s5012_s7 + $0x390] sm:$0xff] }
  0xfa   : > { %2822 = vmatpush1.bf16.msra.mxu0 %v4572_v50  ;;  %2437 = vmatprep.subr.bf16.mxu1 %v4577_v51  ;;  %v800_v50 = vld [vmem:[%s5012_s7 + $0x3b0] sm:$0xff]  ;;  %v3928_v51 = vcombine.low %v786_v39, %v790_v40  ;;  %v3937_v53 = vcombine.high %v794_v47, %v798_v48  ;;  %v723_v39 = vld [vmem:[%s5012_s7 + $0x148] sm:$0xff] }
  0xfb   : > { %2823 = vmatprep.subr.bf16.mxu0 %v4580_v52  ;;  %v3932_v52 = vcombine.low %v788_v41, %v792_v42  ;;  %v3941_v54 = vcombine.high %v796_v49, %v800_v50  ;;  %v727_v40 = vld [vmem:[%s5012_s7 + $0x168] sm:$0xff]  ;;  %v725_v41 = vld [vmem:[%s5012_s7 + $0x158] sm:$0xff] }
  0xfc   : > { %v729_v42 = vld [vmem:[%s5012_s7 + $0x178] sm:$0xff] }
  0xfd   : > { %2438 = vmatpush1.bf16.msra.mxu1 %v4575_v57  ;;  %v804_v57 = vld [vmem:[%s5012_s7 + $0x3d0] sm:$0xff] }
  0xfe   : > { %2824 = vmatpush1.bf16.msra.mxu0 %v4578_v58  ;;  %2439 = vmatprep.subr.bf16.mxu1 %v4583_v59  ;;  %v808_v58 = vld [vmem:[%s5012_s7 + $0x3f0] sm:$0xff]  ;;  %v3936_v59 = vcombine.low %v794_v47, %v798_v48  ;;  %v731_v47 = vld [vmem:[%s5012_s7 + $0x188] sm:$0xff] }
  0xff   : > { %2825 = vmatprep.subr.bf16.mxu0 %v4586_v60  ;;  %2321 = vmatmul.mubr.bf16.gmra.mrb[28].mxu1 %v3880_v61  ;;  %v3940_v60 = vcombine.low %v796_v49, %v800_v50  ;;  %v3945_v61 = vcombine.high %v802_v55, %v806_v56  ;;  %v735_v48 = vld [vmem:[%s5012_s7 + $0x1a8] sm:$0xff]  ;;  %v733_v49 = vld [vmem:[%s5012_s7 + $0x198] sm:$0xff] }
 0x100   : > { %2707 = vmatmul.mubr.bf16.gmra.mrb[28].mxu0 %v3884_v62  ;;  %2330 = vmatprep.mubr.bf16.mxu1 %v3889_v63  ;;  %v3949_v62 = vcombine.high %v804_v57, %v808_v58  ;;  %v683_v63 = vld [vmem:[%s5012_s7 + $0x8] sm:$0xff]  ;;  %v737_v50 = vld [vmem:[%s5012_s7 + $0x1b8] sm:$0xff] }
 0x101   : > { %2716 = vmatprep.mubr.bf16.mxu0 %v3893_v0  ;;  %2440 = vmatpush1.bf16.msra.mxu1 %v4581_v1  ;;  %v687_v0 = vld [vmem:[%s5012_s7 + $0x28] sm:$0xff]  ;;  %v685_v1 = vld [vmem:[%s5012_s7 + $0x18] sm:$0xff] }
 0x102   : > { %2826 = vmatpush1.bf16.msra.mxu0 %v4584_v2  ;;  %2441 = vmatprep.subr.bf16.mxu1 %v4589_v3  ;;  %v689_v2 = vld [vmem:[%s5012_s7 + $0x38] sm:$0xff]  ;;  %v3944_v3 = vcombine.low %v802_v55, %v806_v56  ;;  %v3827_v5 = vcombine.high %v683_v63, %v687_v0  ;;  %v739_v55 = vld [vmem:[%s5012_s7 + $0x1c8] sm:$0xff] }
 0x103   : > { %2827 = vmatprep.subr.bf16.mxu0 %v4592_v4  ;;  %v3948_v4 = vcombine.low %v804_v57, %v808_v58  ;;  %v3831_v6 = vcombine.high %v685_v1, %v689_v2  ;;  %v743_v56 = vld [vmem:[%s5012_s7 + $0x1e8] sm:$0xff]  ;;  %v741_v57 = vld [vmem:[%s5012_s7 + $0x1d8] sm:$0xff] }
 0x104   : > { %v745_v58 = vld [vmem:[%s5012_s7 + $0x1f8] sm:$0xff] }
 0x105   : > { %2442 = vmatpush1.bf16.msra.mxu1 %v4587_v9  ;;  %v693_v9 = vld [vmem:[%s5012_s7 + $0x58] sm:$0xff] }
 0x106   : > { %2828 = vmatpush1.bf16.msra.mxu0 %v4590_v10  ;;  %v697_v10 = vld [vmem:[%s5012_s7 + $0x78] sm:$0xff] }
 0x107   : > { %2331 = vmatmul.mubr.bf16.gmra.mrb[32].mxu1 %v3888_v11  ;;  %v3826_v11 = vcombine.low %v683_v63, %v687_v0  ;;  %v747_v63 = vld [vmem:[%s5012_s7 + $0x208] sm:$0xff] }
 0x108   : > { %2717 = vmatmul.mubr.bf16.gmra.mrb[32].mxu0 %v3892_v12  ;;  %2340 = vmatprep.mubr.bf16.mxu1 %v3897_v13  ;;  %v3830_v12 = vcombine.low %v685_v1, %v689_v2  ;;  %v3835_v13 = vcombine.high %v691_v7, %v695_v8  ;;  %v751_v0 = vld [vmem:[%s5012_s7 + $0x228] sm:$0xff]  ;;  %v749_v1 = vld [vmem:[%s5012_s7 + $0x218] sm:$0xff] }
 0x109   : > { %2726 = vmatprep.mubr.bf16.mxu0 %v3901_v14  ;;  %v3839_v14 = vcombine.high %v693_v9, %v697_v10  ;;  %v753_v2 = vld [vmem:[%s5012_s7 + $0x238] sm:$0xff] }
 0x10f   : > { %2341 = vmatmul.mubr.bf16.gmra.mrb[36].mxu1 %v3896_v19  ;;  %v3834_v19 = vcombine.low %v691_v7, %v695_v8  ;;  %v755_v7 = vld [vmem:[%s5012_s7 + $0x248] sm:$0xff] }
 0x110   : > { %2727 = vmatmul.mubr.bf16.gmra.mrb[36].mxu0 %v3900_v20  ;;  %2350 = vmatprep.mubr.bf16.mxu1 %v3905_v21  ;;  %v3838_v20 = vcombine.low %v693_v9, %v697_v10  ;;  %v3843_v21 = vcombine.high %v699_v15, %v703_v16  ;;  %v759_v8 = vld [vmem:[%s5012_s7 + $0x268] sm:$0xff]  ;;  %v757_v9 = vld [vmem:[%s5012_s7 + $0x258] sm:$0xff] }
 0x111   : > { %2736 = vmatprep.mubr.bf16.mxu0 %v3909_v22  ;;  %v3847_v22 = vcombine.high %v701_v17, %v705_v18  ;;  %v761_v10 = vld [vmem:[%s5012_s7 + $0x278] sm:$0xff] }
 0x117   : > { %2351 = vmatmul.mubr.bf16.gmra.mrb[40].mxu1 %v3904_v27  ;;  %v3842_v27 = vcombine.low %v699_v15, %v703_v16  ;;  %v763_v15 = vld [vmem:[%s5012_s7 + $0x288] sm:$0xff] }
 0x118   : > { %2737 = vmatmul.mubr.bf16.gmra.mrb[40].mxu0 %v3908_v28  ;;  %2360 = vmatprep.mubr.bf16.mxu1 %v3913_v29  ;;  %v3846_v28 = vcombine.low %v701_v17, %v705_v18  ;;  %v3851_v29 = vcombine.high %v707_v23, %v711_v24  ;;  %v767_v16 = vld [vmem:[%s5012_s7 + $0x2a8] sm:$0xff]  ;;  %v765_v17 = vld [vmem:[%s5012_s7 + $0x298] sm:$0xff] }
 0x119   : > { %2746 = vmatprep.mubr.bf16.mxu0 %v3917_v30  ;;  %v3855_v30 = vcombine.high %v709_v25, %v713_v26  ;;  %v769_v18 = vld [vmem:[%s5012_s7 + $0x2b8] sm:$0xff] }
 0x11f   : > { %2361 = vmatmul.mubr.bf16.gmra.mrb[44].mxu1 %v3912_v35  ;;  %v3850_v35 = vcombine.low %v707_v23, %v711_v24  ;;  %v771_v23 = vld [vmem:[%s5012_s7 + $0x2c8] sm:$0xff] }
 0x120   : > { %2747 = vmatmul.mubr.bf16.gmra.mrb[44].mxu0 %v3916_v36  ;;  %2370 = vmatprep.mubr.bf16.mxu1 %v3921_v37  ;;  %v3854_v36 = vcombine.low %v709_v25, %v713_v26  ;;  %v3859_v37 = vcombine.high %v715_v31, %v719_v32  ;;  %v775_v24 = vld [vmem:[%s5012_s7 + $0x2e8] sm:$0xff]  ;;  %v773_v25 = vld [vmem:[%s5012_s7 + $0x2d8] sm:$0xff] }
 0x121   : > { %2756 = vmatprep.mubr.bf16.mxu0 %v3925_v38  ;;  %v3863_v38 = vcombine.high %v717_v33, %v721_v34  ;;  %v777_v26 = vld [vmem:[%s5012_s7 + $0x2f8] sm:$0xff] }
 0x127   : > { %2371 = vmatmul.mubr.bf16.gmra.mrb[48].mxu1 %v3920_v43  ;;  %v3858_v43 = vcombine.low %v715_v31, %v719_v32  ;;  %v779_v31 = vld [vmem:[%s5012_s7 + $0x308] sm:$0xff] }
 0x128   : > { %2757 = vmatmul.mubr.bf16.gmra.mrb[48].mxu0 %v3924_v44  ;;  %2380 = vmatprep.mubr.bf16.mxu1 %v3929_v45  ;;  %v3862_v44 = vcombine.low %v717_v33, %v721_v34  ;;  %v3867_v45 = vcombine.high %v723_v39, %v727_v40  ;;  %v783_v32 = vld [vmem:[%s5012_s7 + $0x328] sm:$0xff]  ;;  %v781_v33 = vld [vmem:[%s5012_s7 + $0x318] sm:$0xff] }
 0x129   : > { %2766 = vmatprep.mubr.bf16.mxu0 %v3933_v46  ;;  %v3871_v46 = vcombine.high %v725_v41, %v729_v42  ;;  %v785_v34 = vld [vmem:[%s5012_s7 + $0x338] sm:$0xff] }
 0x12f   : > { %2381 = vmatmul.mubr.bf16.gmra.mrb[52].mxu1 %v3928_v51  ;;  %v3866_v51 = vcombine.low %v723_v39, %v727_v40  ;;  %v787_v39 = vld [vmem:[%s5012_s7 + $0x348] sm:$0xff] }
 0x130   : > { %2767 = vmatmul.mubr.bf16.gmra.mrb[52].mxu0 %v3932_v52  ;;  %2390 = vmatprep.mubr.bf16.mxu1 %v3937_v53  ;;  %v3870_v52 = vcombine.low %v725_v41, %v729_v42  ;;  %v3875_v53 = vcombine.high %v731_v47, %v735_v48  ;;  %v791_v40 = vld [vmem:[%s5012_s7 + $0x368] sm:$0xff]  ;;  %v789_v41 = vld [vmem:[%s5012_s7 + $0x358] sm:$0xff] }
 0x131   : > { %2776 = vmatprep.mubr.bf16.mxu0 %v3941_v54  ;;  %v3879_v54 = vcombine.high %v733_v49, %v737_v50  ;;  %v793_v42 = vld [vmem:[%s5012_s7 + $0x378] sm:$0xff] }
 0x137   : > { %2391 = vmatmul.mubr.bf16.gmra.mrb[56].mxu1 %v3936_v59  ;;  %v3874_v59 = vcombine.low %v731_v47, %v735_v48  ;;  %v795_v47 = vld [vmem:[%s5012_s7 + $0x388] sm:$0xff] }
 0x138   : > { %2777 = vmatmul.mubr.bf16.gmra.mrb[56].mxu0 %v3940_v60  ;;  %2400 = vmatprep.mubr.bf16.mxu1 %v3945_v61  ;;  %v3878_v60 = vcombine.low %v733_v49, %v737_v50  ;;  %v3883_v61 = vcombine.high %v739_v55, %v743_v56  ;;  %v799_v48 = vld [vmem:[%s5012_s7 + $0x3a8] sm:$0xff]  ;;  %v797_v49 = vld [vmem:[%s5012_s7 + $0x398] sm:$0xff] }
 0x139   : > { %2786 = vmatprep.mubr.bf16.mxu0 %v3949_v62  ;;  %v3887_v62 = vcombine.high %v741_v57, %v745_v58  ;;  %v801_v50 = vld [vmem:[%s5012_s7 + $0x3b8] sm:$0xff] }
 0x13f   : > { %2401 = vmatmul.mubr.bf16.gmra.mrb[60].mxu1 %v3944_v3  ;;  %v3882_v3 = vcombine.low %v739_v55, %v743_v56  ;;  %v803_v55 = vld [vmem:[%s5012_s7 + $0x3c8] sm:$0xff] }
 0x140   : > { %2787 = vmatmul.mubr.bf16.gmra.mrb[60].mxu0 %v3948_v4  ;;  %2443 = vmatprep.mubr.bf16.mxu1 %v3827_v5  ;;  %v3886_v4 = vcombine.low %v741_v57, %v745_v58  ;;  %v3891_v5 = vcombine.high %v747_v63, %v751_v0  ;;  %v807_v56 = vld [vmem:[%s5012_s7 + $0x3e8] sm:$0xff]  ;;  %v805_v57 = vld [vmem:[%s5012_s7 + $0x3d8] sm:$0xff] }
 0x141   : > { %2829 = vmatprep.mubr.bf16.mxu0 %v3831_v6  ;;  %v3895_v6 = vcombine.high %v749_v1, %v753_v2  ;;  %v809_v58 = vld [vmem:[%s5012_s7 + $0x3f8] sm:$0xff] }
 0x147   : > { %2444 = vmatmul.mubr.bf16.vlgmr.msra.gmra.mrb[0].mxu1 %v3826_v11  ;;  %v3890_v11 = vcombine.low %v747_v63, %v751_v0  ;;  %v3946_v63 = vcombine.low %v803_v55, %v807_v56  ;;  %v3950_v0 = vcombine.low %v805_v57, %v809_v58 }
 0x148   : > { %2830 = vmatmul.mubr.bf16.vlgmr.msra.gmra.mrb[0].mxu0 %v3830_v12  ;;  %2453 = vmatprep.mubr.bf16.mxu1 %v3835_v13  ;;  %v3894_v12 = vcombine.low %v749_v1, %v753_v2  ;;  %v3899_v13 = vcombine.high %v755_v7, %v759_v8  ;;  %v618_v2 = vld [vmem:[#allocation2] sm:$0xff] }
 0x149   : > { %2839 = vmatprep.mubr.bf16.mxu0 %v3839_v14  ;;  %v3903_v14 = vcombine.high %v757_v9, %v761_v10 }
 0x14f   : > { %2454 = vmatmul.mubr.bf16.gmra.mrb[4].mxu1 %v3834_v19  ;;  %v3898_v19 = vcombine.low %v755_v7, %v759_v8 }
 0x150   : > { %2840 = vmatmul.mubr.bf16.gmra.mrb[4].mxu0 %v3838_v20  ;;  %2463 = vmatprep.mubr.bf16.mxu1 %v3843_v21  ;;  %v3902_v20 = vcombine.low %v757_v9, %v761_v10  ;;  %v3907_v21 = vcombine.high %v763_v15, %v767_v16  ;;  %v620_v10 = vld [vmem:[#allocation2 + $0x10] sm:$0xff] }
 0x151   : > { %2849 = vmatprep.mubr.bf16.mxu0 %v3847_v22  ;;  %v3911_v22 = vcombine.high %v765_v17, %v769_v18 }
 0x157   : > { %2464 = vmatmul.mubr.bf16.gmra.mrb[8].mxu1 %v3842_v27  ;;  %v3906_v27 = vcombine.low %v763_v15, %v767_v16  ;;  %v621_v15 = vld [vmem:[#allocation2 + $0x18] sm:$0xff] }
 0x158   : > { %2850 = vmatmul.mubr.bf16.gmra.mrb[8].mxu0 %v3846_v28  ;;  %2473 = vmatprep.mubr.bf16.mxu1 %v3851_v29  ;;  %v3910_v28 = vcombine.low %v765_v17, %v769_v18  ;;  %v3915_v29 = vcombine.high %v771_v23, %v775_v24 }
 0x159   : > { %2859 = vmatprep.mubr.bf16.mxu0 %v3855_v30  ;;  %v3919_v30 = vcombine.high %v773_v25, %v777_v26 }
 0x15f   : > { %2474 = vmatmul.mubr.bf16.gmra.mrb[12].mxu1 %v3850_v35  ;;  %v3914_v35 = vcombine.low %v771_v23, %v775_v24 }
 0x160   : > { %2860 = vmatmul.mubr.bf16.gmra.mrb[12].mxu0 %v3854_v36  ;;  %2483 = vmatprep.mubr.bf16.mxu1 %v3859_v37  ;;  %v3918_v36 = vcombine.low %v773_v25, %v777_v26  ;;  %v3923_v37 = vcombine.high %v779_v31, %v783_v32  ;;  %v623_v26 = vld [vmem:[#allocation2 + $0x28] sm:$0xff] }
 0x161   : > { %2869 = vmatprep.mubr.bf16.mxu0 %v3863_v38  ;;  %v3927_v38 = vcombine.high %v781_v33, %v785_v34 }
 0x167   : > { %2484 = vmatmul.mubr.bf16.gmra.mrb[16].mxu1 %v3858_v43  ;;  %v3922_v43 = vcombine.low %v779_v31, %v783_v32 }
 0x168   : > { %2870 = vmatmul.mubr.bf16.gmra.mrb[16].mxu0 %v3862_v44  ;;  %2493 = vmatprep.mubr.bf16.mxu1 %v3867_v45  ;;  %v3926_v44 = vcombine.low %v781_v33, %v785_v34  ;;  %v3931_v45 = vcombine.high %v787_v39, %v791_v40 }
 0x169   : > { %2879 = vmatprep.mubr.bf16.mxu0 %v3871_v46  ;;  %v3935_v46 = vcombine.high %v789_v41, %v793_v42 }
 0x16f   : > { %2494 = vmatmul.mubr.bf16.gmra.mrb[20].mxu1 %v3866_v51  ;;  %v3930_v51 = vcombine.low %v787_v39, %v791_v40 }
 0x170   : > { %2880 = vmatmul.mubr.bf16.gmra.mrb[20].mxu0 %v3870_v52  ;;  %2503 = vmatprep.mubr.bf16.mxu1 %v3875_v53  ;;  %v3934_v52 = vcombine.low %v789_v41, %v793_v42  ;;  %v3939_v53 = vcombine.high %v795_v47, %v799_v48  ;;  %v626_v42 = vld [vmem:[#allocation2 + $0x40] sm:$0xff] }
 0x171   : > { %2889 = vmatprep.mubr.bf16.mxu0 %v3879_v54  ;;  %v3943_v54 = vcombine.high %v797_v49, %v801_v50 }
 0x177   : > { %2504 = vmatmul.mubr.bf16.gmra.mrb[24].mxu1 %v3874_v59  ;;  %v3938_v59 = vcombine.low %v795_v47, %v799_v48 }
 0x178   : > { %2890 = vmatmul.mubr.bf16.gmra.mrb[24].mxu0 %v3878_v60  ;;  %2513 = vmatprep.mubr.bf16.mxu1 %v3883_v61  ;;  %v3942_v60 = vcombine.low %v797_v49, %v801_v50  ;;  %v3947_v61 = vcombine.high %v803_v55, %v807_v56  ;;  %v628_v50 = vld [vmem:[#allocation2 + $0x50] sm:$0xff]  ;;  %v629_v55 = vld [vmem:[#allocation2 + $0x58] sm:$0xff] }
 0x179   : > { %2899 = vmatprep.mubr.bf16.mxu0 %v3887_v62  ;;  %v3951_v62 = vcombine.high %v805_v57, %v809_v58 }
 0x17f   : > { %2514 = vmatmul.mubr.bf16.gmra.mrb[28].mxu1 %v3882_v3 }
 0x180   : > { %2900 = vmatmul.mubr.bf16.gmra.mrb[28].mxu0 %v3886_v4  ;;  %2523 = vmatprep.mubr.bf16.mxu1 %v3891_v5 }
 0x181   : > { %2909 = vmatprep.mubr.bf16.mxu0 %v3895_v6  ;;  %v619_v6 = vld [vmem:[#allocation2 + $0x8] sm:$0xff] }
 0x187   : > { %2524 = vmatmul.mubr.bf16.gmra.mrb[32].mxu1 %v3890_v11 }
 0x188   : > { %2910 = vmatmul.mubr.bf16.gmra.mrb[32].mxu0 %v3894_v12  ;;  %2533 = vmatprep.mubr.bf16.mxu1 %v3899_v13 }
 0x189   : > { %2919 = vmatprep.mubr.bf16.mxu0 %v3903_v14 }
 0x18f   : > { %2534 = vmatmul.mubr.bf16.gmra.mrb[36].mxu1 %v3898_v19 }
 0x190   : > { %2920 = vmatmul.mubr.bf16.gmra.mrb[36].mxu0 %v3902_v20  ;;  %2543 = vmatprep.mubr.bf16.mxu1 %v3907_v21 }
 0x191   : > { %2929 = vmatprep.mubr.bf16.mxu0 %v3911_v22  ;;  %v622_v22 = vld [vmem:[#allocation2 + $0x20] sm:$0xff] }
 0x197   : > { %2544 = vmatmul.mubr.bf16.gmra.mrb[40].mxu1 %v3906_v27 }
 0x198   : > { %2930 = vmatmul.mubr.bf16.gmra.mrb[40].mxu0 %v3910_v28  ;;  %2553 = vmatprep.mubr.bf16.mxu1 %v3915_v29 }
 0x199   : > { %2939 = vmatprep.mubr.bf16.mxu0 %v3919_v30  ;;  %v624_v30 = vld [vmem:[#allocation2 + $0x30] sm:$0xff] }
 0x19f   : > { %2554 = vmatmul.mubr.bf16.gmra.mrb[44].mxu1 %v3914_v35  ;;  %v625_v35 = vld [vmem:[#allocation2 + $0x38] sm:$0xff] }
 0x1a0   : > { %2940 = vmatmul.mubr.bf16.gmra.mrb[44].mxu0 %v3918_v36  ;;  %2563 = vmatprep.mubr.bf16.mxu1 %v3923_v37 }
 0x1a1   : > { %2949 = vmatprep.mubr.bf16.mxu0 %v3927_v38 }
 0x1a7   : > { %2564 = vmatmul.mubr.bf16.gmra.mrb[48].mxu1 %v3922_v43 }
 0x1a8   : > { %2950 = vmatmul.mubr.bf16.gmra.mrb[48].mxu0 %v3926_v44  ;;  %2573 = vmatprep.mubr.bf16.mxu1 %v3931_v45 }
 0x1a9   : > { %2959 = vmatprep.mubr.bf16.mxu0 %v3935_v46  ;;  %v627_v46 = vld [vmem:[#allocation2 + $0x48] sm:$0xff] }
 0x1af   : > { %2574 = vmatmul.mubr.bf16.gmra.mrb[52].mxu1 %v3930_v51 }
 0x1b0   : > { %2960 = vmatmul.mubr.bf16.gmra.mrb[52].mxu0 %v3934_v52  ;;  %2583 = vmatprep.mubr.bf16.mxu1 %v3939_v53 }
 0x1b1   : > { %2969 = vmatprep.mubr.bf16.mxu0 %v3943_v54 }
 0x1b7   : > { %2584 = vmatmul.mubr.bf16.gmra.mrb[56].mxu1 %v3938_v59 }
 0x1b8   : > { %2970 = vmatmul.mubr.bf16.gmra.mrb[56].mxu0 %v3942_v60  ;;  %2593 = vmatprep.mubr.bf16.mxu1 %v3947_v61 }
 0x1b9   : > { %2979 = vmatprep.mubr.bf16.mxu0 %v3951_v62  ;;  %v630_v62 = vld [vmem:[#allocation2 + $0x60] sm:$0xff] }
 0x1bf   : > { %2594 = vmatmul.mubr.bf16.gmra.mrb[60].mxu1 %v3946_v63 }
 0x1c0   : > { %2980 = vmatmul.mubr.bf16.gmra.mrb[60].mxu0 %v3950_v0 }
 0x21a   : > { %v2445_v1 = vpop.f32.mrb[0].mxu1 }
 0x21b   : > { %v2831_v3 = vpop.f32.mrb[0].mxu0  ;;  %v2447_v5 = vpop.f32.mrb[1].mxu1 }
 0x21c   : > { %v4152_v4 = vadd.f32 %v2831_v3, %v2445_v1  ;;  %v2833_v7 = vpop.f32.mrb[1].mxu0  ;;  %v2449_v9 = vpop.f32.mrb[2].mxu1 }
 0x21d   : > { %v4153_v8 = vadd.f32 %v2833_v7, %v2447_v5  ;;  %v2835_v11 = vpop.f32.mrb[2].mxu0  ;;  %v2451_v14 = vpop.f32.mrb[3].mxu1 }
 0x21e   : > { %v2990_v12 = vadd.f32 %v4152_v4, %v618_v2  ;;  %v4154_v13 = vadd.f32 %v2835_v11, %v2449_v9  ;;  %v2837_v16 = vpop.f32.mrb[3].mxu0  ;;  %v631_v2 = vld [vmem:[#allocation2 + $0x68] sm:$0xff]  ;;  %v633_v11 = vld [vmem:[#allocation2 + $0x78] sm:$0xff] }
 0x21f   : > { %v2991_v17 = vadd.f32 %v4153_v8, %v619_v6  ;;  %v4155_v18 = vadd.f32 %v2837_v16, %v2451_v14  ;;  %v632_v6 = vld [vmem:[#allocation2 + $0x70] sm:$0xff] }
 0x220   : > { %3054 = vst [vmem:[#allocation2] sm:$0xff] %v2990_v12  ;;  %v2992_v19 = vadd.f32 %v4154_v13, %v620_v10 }
 0x221   : > { %3055 = vst [vmem:[#allocation2 + $0x8] sm:$0xff] %v2991_v17  ;;  %v2993_v20 = vadd.f32 %v4155_v18, %v621_v15  ;;  %v634_v18 = vld [vmem:[#allocation2 + $0x80] sm:$0xff] }
 0x222   : > { %3056 = vst [vmem:[#allocation2 + $0x10] sm:$0xff] %v2992_v19  ;;  %v2455_v21 = vpop.f32.mrb[4].mxu1 }
 0x223   : > { %3057 = vst [vmem:[#allocation2 + $0x18] sm:$0xff] %v2993_v20  ;;  %v2841_v23 = vpop.f32.mrb[4].mxu0  ;;  %v2457_v25 = vpop.f32.mrb[5].mxu1 }
 0x224   : > { %v4156_v24 = vadd.f32 %v2841_v23, %v2455_v21  ;;  %v2843_v27 = vpop.f32.mrb[5].mxu0  ;;  %v2459_v29 = vpop.f32.mrb[6].mxu1 }
 0x225   : > { %v4157_v28 = vadd.f32 %v2843_v27, %v2457_v25  ;;  %v2845_v31 = vpop.f32.mrb[6].mxu0  ;;  %v2461_v34 = vpop.f32.mrb[7].mxu1 }
 0x226   : > { %v2994_v32 = vadd.f32 %v4156_v24, %v622_v22  ;;  %v4158_v33 = vadd.f32 %v2845_v31, %v2459_v29  ;;  %v2847_v36 = vpop.f32.mrb[7].mxu0  ;;  %v635_v22 = vld [vmem:[#allocation2 + $0x88] sm:$0xff]  ;;  %v637_v31 = vld [vmem:[#allocation2 + $0x98] sm:$0xff] }
 0x227   : > { %v2995_v37 = vadd.f32 %v4157_v28, %v623_v26  ;;  %v4159_v38 = vadd.f32 %v2847_v36, %v2461_v34  ;;  %v636_v26 = vld [vmem:[#allocation2 + $0x90] sm:$0xff] }
 0x228   : > { %3058 = vst [vmem:[#allocation2 + $0x20] sm:$0xff] %v2994_v32  ;;  %v2996_v39 = vadd.f32 %v4158_v33, %v624_v30 }
 0x229   : > { %3059 = vst [vmem:[#allocation2 + $0x28] sm:$0xff] %v2995_v37  ;;  %v2997_v40 = vadd.f32 %v4159_v38, %v625_v35  ;;  %v638_v38 = vld [vmem:[#allocation2 + $0xa0] sm:$0xff] }
 0x22a   : > { %3060 = vst [vmem:[#allocation2 + $0x30] sm:$0xff] %v2996_v39  ;;  %v2465_v41 = vpop.f32.mrb[8].mxu1 }
 0x22b   : > { %3061 = vst [vmem:[#allocation2 + $0x38] sm:$0xff] %v2997_v40  ;;  %v2851_v43 = vpop.f32.mrb[8].mxu0  ;;  %v2467_v45 = vpop.f32.mrb[9].mxu1 }
 0x22c   : > { %v4160_v44 = vadd.f32 %v2851_v43, %v2465_v41  ;;  %v2853_v47 = vpop.f32.mrb[9].mxu0  ;;  %v2469_v49 = vpop.f32.mrb[10].mxu1 }
 0x22d   : > { %v4161_v48 = vadd.f32 %v2853_v47, %v2467_v45  ;;  %v2855_v51 = vpop.f32.mrb[10].mxu0  ;;  %v2471_v54 = vpop.f32.mrb[11].mxu1 }
 0x22e   : > { %v2998_v52 = vadd.f32 %v4160_v44, %v626_v42  ;;  %v4162_v53 = vadd.f32 %v2855_v51, %v2469_v49  ;;  %v2857_v56 = vpop.f32.mrb[11].mxu0  ;;  %v639_v42 = vld [vmem:[#allocation2 + $0xa8] sm:$0xff]  ;;  %v641_v51 = vld [vmem:[#allocation2 + $0xb8] sm:$0xff] }
 0x22f   : > { %v2999_v57 = vadd.f32 %v4161_v48, %v627_v46  ;;  %v4163_v58 = vadd.f32 %v2857_v56, %v2471_v54  ;;  %v640_v46 = vld [vmem:[#allocation2 + $0xb0] sm:$0xff] }
 0x230   : > { %3062 = vst [vmem:[#allocation2 + $0x40] sm:$0xff] %v2998_v52  ;;  %v3000_v59 = vadd.f32 %v4162_v53, %v628_v50 }
 0x231   : > { %3063 = vst [vmem:[#allocation2 + $0x48] sm:$0xff] %v2999_v57  ;;  %v3001_v60 = vadd.f32 %v4163_v58, %v629_v55  ;;  %v642_v58 = vld [vmem:[#allocation2 + $0xc0] sm:$0xff] }
 0x232   : > { %3064 = vst [vmem:[#allocation2 + $0x50] sm:$0xff] %v3000_v59  ;;  %v2475_v61 = vpop.f32.mrb[12].mxu1 }
 0x233   : > { %3065 = vst [vmem:[#allocation2 + $0x58] sm:$0xff] %v3001_v60  ;;  %v2861_v63 = vpop.f32.mrb[12].mxu0  ;;  %v2477_v1 = vpop.f32.mrb[13].mxu1 }
 0x234   : > { %v4164_v0 = vadd.f32 %v2861_v63, %v2475_v61  ;;  %v2863_v3 = vpop.f32.mrb[13].mxu0  ;;  %v2479_v5 = vpop.f32.mrb[14].mxu1 }
 0x235   : > { %v4165_v4 = vadd.f32 %v2863_v3, %v2477_v1  ;;  %v2865_v7 = vpop.f32.mrb[14].mxu0  ;;  %v2481_v10 = vpop.f32.mrb[15].mxu1 }
 0x236   : > { %v3002_v8 = vadd.f32 %v4164_v0, %v630_v62  ;;  %v4166_v9 = vadd.f32 %v2865_v7, %v2479_v5  ;;  %v2867_v12 = vpop.f32.mrb[15].mxu0  ;;  %v643_v62 = vld [vmem:[#allocation2 + $0xc8] sm:$0xff]  ;;  %v645_v7 = vld [vmem:[#allocation2 + $0xd8] sm:$0xff] }
 0x237   : > { %v3003_v13 = vadd.f32 %v4165_v4, %v631_v2  ;;  %v4167_v14 = vadd.f32 %v2867_v12, %v2481_v10  ;;  %v644_v2 = vld [vmem:[#allocation2 + $0xd0] sm:$0xff] }
 0x238   : > { %3066 = vst [vmem:[#allocation2 + $0x60] sm:$0xff] %v3002_v8  ;;  %v3004_v15 = vadd.f32 %v4166_v9, %v632_v6 }
 0x239   : > { %3067 = vst [vmem:[#allocation2 + $0x68] sm:$0xff] %v3003_v13  ;;  %v3005_v16 = vadd.f32 %v4167_v14, %v633_v11  ;;  %v646_v14 = vld [vmem:[#allocation2 + $0xe0] sm:$0xff] }
 0x23a   : > { %3068 = vst [vmem:[#allocation2 + $0x70] sm:$0xff] %v3004_v15  ;;  %v2485_v17 = vpop.f32.mrb[16].mxu1 }
 0x23b   : > { %3069 = vst [vmem:[#allocation2 + $0x78] sm:$0xff] %v3005_v16  ;;  %v2871_v19 = vpop.f32.mrb[16].mxu0  ;;  %v2487_v21 = vpop.f32.mrb[17].mxu1 }
 0x23c   : > { %v4168_v20 = vadd.f32 %v2871_v19, %v2485_v17  ;;  %v2873_v23 = vpop.f32.mrb[17].mxu0  ;;  %v2489_v25 = vpop.f32.mrb[18].mxu1 }
 0x23d   : > { %v4169_v24 = vadd.f32 %v2873_v23, %v2487_v21  ;;  %v2875_v27 = vpop.f32.mrb[18].mxu0  ;;  %v2491_v30 = vpop.f32.mrb[19].mxu1 }
 0x23e   : > { %v3006_v28 = vadd.f32 %v4168_v20, %v634_v18  ;;  %v4170_v29 = vadd.f32 %v2875_v27, %v2489_v25  ;;  %v2877_v32 = vpop.f32.mrb[19].mxu0  ;;  %v647_v18 = vld [vmem:[#allocation2 + $0xe8] sm:$0xff]  ;;  %v649_v27 = vld [vmem:[#allocation2 + $0xf8] sm:$0xff] }
 0x23f   : > { %v3007_v33 = vadd.f32 %v4169_v24, %v635_v22  ;;  %v4171_v34 = vadd.f32 %v2877_v32, %v2491_v30  ;;  %v648_v22 = vld [vmem:[#allocation2 + $0xf0] sm:$0xff] }
 0x240   : > { %3070 = vst [vmem:[#allocation2 + $0x80] sm:$0xff] %v3006_v28  ;;  %v3008_v35 = vadd.f32 %v4170_v29, %v636_v26 }
 0x241   : > { %3071 = vst [vmem:[#allocation2 + $0x88] sm:$0xff] %v3007_v33  ;;  %v3009_v36 = vadd.f32 %v4171_v34, %v637_v31  ;;  %v650_v34 = vld [vmem:[#allocation2 + $0x100] sm:$0xff] }
 0x242   : > { %3072 = vst [vmem:[#allocation2 + $0x90] sm:$0xff] %v3008_v35  ;;  %v2495_v37 = vpop.f32.mrb[20].mxu1 }
 0x243   : > { %3073 = vst [vmem:[#allocation2 + $0x98] sm:$0xff] %v3009_v36  ;;  %v2881_v39 = vpop.f32.mrb[20].mxu0  ;;  %v2497_v41 = vpop.f32.mrb[21].mxu1 }
 0x244   : > { %v4172_v40 = vadd.f32 %v2881_v39, %v2495_v37  ;;  %v2883_v43 = vpop.f32.mrb[21].mxu0  ;;  %v2499_v45 = vpop.f32.mrb[22].mxu1 }
 0x245   : > { %v4173_v44 = vadd.f32 %v2883_v43, %v2497_v41  ;;  %v2885_v47 = vpop.f32.mrb[22].mxu0  ;;  %v2501_v50 = vpop.f32.mrb[23].mxu1 }
 0x246   : > { %v3010_v48 = vadd.f32 %v4172_v40, %v638_v38  ;;  %v4174_v49 = vadd.f32 %v2885_v47, %v2499_v45  ;;  %v2887_v52 = vpop.f32.mrb[23].mxu0  ;;  %v651_v38 = vld [vmem:[#allocation2 + $0x108] sm:$0xff]  ;;  %v653_v47 = vld [vmem:[#allocation2 + $0x118] sm:$0xff] }
 0x247   : > { %v3011_v53 = vadd.f32 %v4173_v44, %v639_v42  ;;  %v4175_v54 = vadd.f32 %v2887_v52, %v2501_v50  ;;  %v652_v42 = vld [vmem:[#allocation2 + $0x110] sm:$0xff] }
 0x248   : > { %3074 = vst [vmem:[#allocation2 + $0xa0] sm:$0xff] %v3010_v48  ;;  %v3012_v55 = vadd.f32 %v4174_v49, %v640_v46 }
 0x249   : > { %3075 = vst [vmem:[#allocation2 + $0xa8] sm:$0xff] %v3011_v53  ;;  %v3013_v56 = vadd.f32 %v4175_v54, %v641_v51  ;;  %v654_v54 = vld [vmem:[#allocation2 + $0x120] sm:$0xff] }
 0x24a   : > { %3076 = vst [vmem:[#allocation2 + $0xb0] sm:$0xff] %v3012_v55  ;;  %v2505_v57 = vpop.f32.mrb[24].mxu1 }
 0x24b   : > { %3077 = vst [vmem:[#allocation2 + $0xb8] sm:$0xff] %v3013_v56  ;;  %v2891_v59 = vpop.f32.mrb[24].mxu0  ;;  %v2507_v61 = vpop.f32.mrb[25].mxu1 }
 0x24c   : > { %v4176_v60 = vadd.f32 %v2891_v59, %v2505_v57  ;;  %v2893_v63 = vpop.f32.mrb[25].mxu0  ;;  %v2509_v1 = vpop.f32.mrb[26].mxu1 }
 0x24d   : > { %v4177_v0 = vadd.f32 %v2893_v63, %v2507_v61  ;;  %v2895_v3 = vpop.f32.mrb[26].mxu0  ;;  %v2511_v6 = vpop.f32.mrb[27].mxu1 }
 0x24e   : > { %v3014_v4 = vadd.f32 %v4176_v60, %v642_v58  ;;  %v4178_v5 = vadd.f32 %v2895_v3, %v2509_v1  ;;  %v2897_v8 = vpop.f32.mrb[27].mxu0  ;;  %v655_v58 = vld [vmem:[#allocation2 + $0x128] sm:$0xff]  ;;  %v657_v3 = vld [vmem:[#allocation2 + $0x138] sm:$0xff] }
 0x24f   : > { %v3015_v9 = vadd.f32 %v4177_v0, %v643_v62  ;;  %v4179_v10 = vadd.f32 %v2897_v8, %v2511_v6  ;;  %v656_v62 = vld [vmem:[#allocation2 + $0x130] sm:$0xff] }
 0x250   : > { %3078 = vst [vmem:[#allocation2 + $0xc0] sm:$0xff] %v3014_v4  ;;  %v3016_v11 = vadd.f32 %v4178_v5, %v644_v2 }
 0x251   : > { %3079 = vst [vmem:[#allocation2 + $0xc8] sm:$0xff] %v3015_v9  ;;  %v3017_v12 = vadd.f32 %v4179_v10, %v645_v7  ;;  %v658_v10 = vld [vmem:[#allocation2 + $0x140] sm:$0xff] }
 0x252   : > { %3080 = vst [vmem:[#allocation2 + $0xd0] sm:$0xff] %v3016_v11  ;;  %v2515_v13 = vpop.f32.mrb[28].mxu1 }
 0x253   : > { %3081 = vst [vmem:[#allocation2 + $0xd8] sm:$0xff] %v3017_v12  ;;  %v2901_v15 = vpop.f32.mrb[28].mxu0  ;;  %v2517_v17 = vpop.f32.mrb[29].mxu1 }
 0x254   : > { %v4180_v16 = vadd.f32 %v2901_v15, %v2515_v13  ;;  %v2903_v19 = vpop.f32.mrb[29].mxu0  ;;  %v2519_v21 = vpop.f32.mrb[30].mxu1 }
 0x255   : > { %v4181_v20 = vadd.f32 %v2903_v19, %v2517_v17  ;;  %v2905_v23 = vpop.f32.mrb[30].mxu0  ;;  %v2521_v26 = vpop.f32.mrb[31].mxu1 }
 0x256   : > { %v3018_v24 = vadd.f32 %v4180_v16, %v646_v14  ;;  %v4182_v25 = vadd.f32 %v2905_v23, %v2519_v21  ;;  %v2907_v28 = vpop.f32.mrb[31].mxu0  ;;  %v659_v14 = vld [vmem:[#allocation2 + $0x148] sm:$0xff]  ;;  %v661_v23 = vld [vmem:[#allocation2 + $0x158] sm:$0xff] }
 0x257   : > { %v3019_v29 = vadd.f32 %v4181_v20, %v647_v18  ;;  %v4183_v30 = vadd.f32 %v2907_v28, %v2521_v26  ;;  %v660_v18 = vld [vmem:[#allocation2 + $0x150] sm:$0xff] }
 0x258   : > { %3082 = vst [vmem:[#allocation2 + $0xe0] sm:$0xff] %v3018_v24  ;;  %v3020_v31 = vadd.f32 %v4182_v25, %v648_v22 }
 0x259   : > { %3083 = vst [vmem:[#allocation2 + $0xe8] sm:$0xff] %v3019_v29  ;;  %v3021_v32 = vadd.f32 %v4183_v30, %v649_v27  ;;  %v662_v30 = vld [vmem:[#allocation2 + $0x160] sm:$0xff] }
 0x25a   : > { %3084 = vst [vmem:[#allocation2 + $0xf0] sm:$0xff] %v3020_v31  ;;  %v2525_v33 = vpop.f32.mrb[32].mxu1 }
 0x25b   : > { %3085 = vst [vmem:[#allocation2 + $0xf8] sm:$0xff] %v3021_v32  ;;  %v2911_v35 = vpop.f32.mrb[32].mxu0  ;;  %v2527_v37 = vpop.f32.mrb[33].mxu1 }
 0x25c   : > { %v4184_v36 = vadd.f32 %v2911_v35, %v2525_v33  ;;  %v2913_v39 = vpop.f32.mrb[33].mxu0  ;;  %v2529_v41 = vpop.f32.mrb[34].mxu1 }
 0x25d   : > { %v4185_v40 = vadd.f32 %v2913_v39, %v2527_v37  ;;  %v2915_v43 = vpop.f32.mrb[34].mxu0  ;;  %v2531_v46 = vpop.f32.mrb[35].mxu1 }
 0x25e   : > { %v3022_v44 = vadd.f32 %v4184_v36, %v650_v34  ;;  %v4186_v45 = vadd.f32 %v2915_v43, %v2529_v41  ;;  %v2917_v48 = vpop.f32.mrb[35].mxu0  ;;  %v663_v34 = vld [vmem:[#allocation2 + $0x168] sm:$0xff]  ;;  %v665_v43 = vld [vmem:[#allocation2 + $0x178] sm:$0xff] }
 0x25f   : > { %v3023_v49 = vadd.f32 %v4185_v40, %v651_v38  ;;  %v4187_v50 = vadd.f32 %v2917_v48, %v2531_v46  ;;  %v664_v38 = vld [vmem:[#allocation2 + $0x170] sm:$0xff] }
 0x260   : > { %3086 = vst [vmem:[#allocation2 + $0x100] sm:$0xff] %v3022_v44  ;;  %v3024_v51 = vadd.f32 %v4186_v45, %v652_v42 }
 0x261   : > { %3087 = vst [vmem:[#allocation2 + $0x108] sm:$0xff] %v3023_v49  ;;  %v3025_v52 = vadd.f32 %v4187_v50, %v653_v47  ;;  %v666_v50 = vld [vmem:[#allocation2 + $0x180] sm:$0xff] }
 0x262   : > { %3088 = vst [vmem:[#allocation2 + $0x110] sm:$0xff] %v3024_v51  ;;  %v2535_v53 = vpop.f32.mrb[36].mxu1 }
 0x263   : > { %3089 = vst [vmem:[#allocation2 + $0x118] sm:$0xff] %v3025_v52  ;;  %v2921_v55 = vpop.f32.mrb[36].mxu0  ;;  %v2537_v57 = vpop.f32.mrb[37].mxu1 }
 0x264   : > { %v4188_v56 = vadd.f32 %v2921_v55, %v2535_v53  ;;  %v2923_v59 = vpop.f32.mrb[37].mxu0  ;;  %v2539_v61 = vpop.f32.mrb[38].mxu1 }
 0x265   : > { %v4189_v60 = vadd.f32 %v2923_v59, %v2537_v57  ;;  %v2925_v63 = vpop.f32.mrb[38].mxu0  ;;  %v2541_v2 = vpop.f32.mrb[39].mxu1 }
 0x266   : > { %v3026_v0 = vadd.f32 %v4188_v56, %v654_v54  ;;  %v4190_v1 = vadd.f32 %v2925_v63, %v2539_v61  ;;  %v2927_v4 = vpop.f32.mrb[39].mxu0  ;;  %v667_v54 = vld [vmem:[#allocation2 + $0x188] sm:$0xff]  ;;  %v669_v63 = vld [vmem:[#allocation2 + $0x198] sm:$0xff] }
 0x267   : > { %v3027_v5 = vadd.f32 %v4189_v60, %v655_v58  ;;  %v4191_v6 = vadd.f32 %v2927_v4, %v2541_v2  ;;  %v668_v58 = vld [vmem:[#allocation2 + $0x190] sm:$0xff] }
 0x268   : > { %3090 = vst [vmem:[#allocation2 + $0x120] sm:$0xff] %v3026_v0  ;;  %v3028_v7 = vadd.f32 %v4190_v1, %v656_v62 }
 0x269   : > { %3091 = vst [vmem:[#allocation2 + $0x128] sm:$0xff] %v3027_v5  ;;  %v3029_v8 = vadd.f32 %v4191_v6, %v657_v3  ;;  %v670_v6 = vld [vmem:[#allocation2 + $0x1a0] sm:$0xff] }
 0x26a   : > { %3092 = vst [vmem:[#allocation2 + $0x130] sm:$0xff] %v3028_v7  ;;  %v2545_v9 = vpop.f32.mrb[40].mxu1 }
 0x26b   : > { %3093 = vst [vmem:[#allocation2 + $0x138] sm:$0xff] %v3029_v8  ;;  %v2931_v11 = vpop.f32.mrb[40].mxu0  ;;  %v2547_v13 = vpop.f32.mrb[41].mxu1 }
 0x26c   : > { %v4192_v12 = vadd.f32 %v2931_v11, %v2545_v9  ;;  %v2933_v15 = vpop.f32.mrb[41].mxu0  ;;  %v2549_v17 = vpop.f32.mrb[42].mxu1 }
 0x26d   : > { %v4193_v16 = vadd.f32 %v2933_v15, %v2547_v13  ;;  %v2935_v19 = vpop.f32.mrb[42].mxu0  ;;  %v2551_v22 = vpop.f32.mrb[43].mxu1 }
 0x26e   : > { %v3030_v20 = vadd.f32 %v4192_v12, %v658_v10  ;;  %v4194_v21 = vadd.f32 %v2935_v19, %v2549_v17  ;;  %v2937_v24 = vpop.f32.mrb[43].mxu0  ;;  %v671_v10 = vld [vmem:[#allocation2 + $0x1a8] sm:$0xff]  ;;  %v673_v19 = vld [vmem:[#allocation2 + $0x1b8] sm:$0xff] }
 0x26f   : > { %v3031_v25 = vadd.f32 %v4193_v16, %v659_v14  ;;  %v4195_v26 = vadd.f32 %v2937_v24, %v2551_v22  ;;  %v672_v14 = vld [vmem:[#allocation2 + $0x1b0] sm:$0xff] }
 0x270   : > { %3094 = vst [vmem:[#allocation2 + $0x140] sm:$0xff] %v3030_v20  ;;  %v3032_v27 = vadd.f32 %v4194_v21, %v660_v18 }
 0x271   : > { %3095 = vst [vmem:[#allocation2 + $0x148] sm:$0xff] %v3031_v25  ;;  %v3033_v28 = vadd.f32 %v4195_v26, %v661_v23  ;;  %v674_v26 = vld [vmem:[#allocation2 + $0x1c0] sm:$0xff] }
 0x272   : > { %3096 = vst [vmem:[#allocation2 + $0x150] sm:$0xff] %v3032_v27  ;;  %v2555_v29 = vpop.f32.mrb[44].mxu1 }
 0x273   : > { %3097 = vst [vmem:[#allocation2 + $0x158] sm:$0xff] %v3033_v28  ;;  %v2941_v31 = vpop.f32.mrb[44].mxu0  ;;  %v2557_v33 = vpop.f32.mrb[45].mxu1 }
 0x274   : > { %v4196_v32 = vadd.f32 %v2941_v31, %v2555_v29  ;;  %v2943_v35 = vpop.f32.mrb[45].mxu0  ;;  %v2559_v37 = vpop.f32.mrb[46].mxu1 }
 0x275   : > { %v4197_v36 = vadd.f32 %v2943_v35, %v2557_v33  ;;  %v2945_v39 = vpop.f32.mrb[46].mxu0  ;;  %v2561_v42 = vpop.f32.mrb[47].mxu1 }
 0x276   : > { %v3034_v40 = vadd.f32 %v4196_v32, %v662_v30  ;;  %v4198_v41 = vadd.f32 %v2945_v39, %v2559_v37  ;;  %v2947_v44 = vpop.f32.mrb[47].mxu0  ;;  %v675_v30 = vld [vmem:[#allocation2 + $0x1c8] sm:$0xff]  ;;  %v677_v39 = vld [vmem:[#allocation2 + $0x1d8] sm:$0xff] }
 0x277   : > { %v3035_v45 = vadd.f32 %v4197_v36, %v663_v34  ;;  %v4199_v46 = vadd.f32 %v2947_v44, %v2561_v42  ;;  %v676_v34 = vld [vmem:[#allocation2 + $0x1d0] sm:$0xff] }
 0x278   : > { %3098 = vst [vmem:[#allocation2 + $0x160] sm:$0xff] %v3034_v40  ;;  %v3036_v47 = vadd.f32 %v4198_v41, %v664_v38 }
 0x279   : > { %3099 = vst [vmem:[#allocation2 + $0x168] sm:$0xff] %v3035_v45  ;;  %v3037_v48 = vadd.f32 %v4199_v46, %v665_v43  ;;  %v678_v46 = vld [vmem:[#allocation2 + $0x1e0] sm:$0xff] }
 0x27a   : > { %3100 = vst [vmem:[#allocation2 + $0x170] sm:$0xff] %v3036_v47  ;;  %v2565_v49 = vpop.f32.mrb[48].mxu1 }
 0x27b   : > { %3101 = vst [vmem:[#allocation2 + $0x178] sm:$0xff] %v3037_v48  ;;  %v2951_v51 = vpop.f32.mrb[48].mxu0  ;;  %v2567_v53 = vpop.f32.mrb[49].mxu1 }
 0x27c   : > { %v4200_v52 = vadd.f32 %v2951_v51, %v2565_v49  ;;  %v2953_v55 = vpop.f32.mrb[49].mxu0  ;;  %v2569_v57 = vpop.f32.mrb[50].mxu1 }
 0x27d   : > { %v4201_v56 = vadd.f32 %v2953_v55, %v2567_v53  ;;  %v2955_v59 = vpop.f32.mrb[50].mxu0  ;;  %v2571_v62 = vpop.f32.mrb[51].mxu1 }
 0x27e   : > { %v3038_v60 = vadd.f32 %v4200_v52, %v666_v50  ;;  %v4202_v61 = vadd.f32 %v2955_v59, %v2569_v57  ;;  %v2957_v0 = vpop.f32.mrb[51].mxu0  ;;  %v679_v50 = vld [vmem:[#allocation2 + $0x1e8] sm:$0xff]  ;;  %v681_v59 = vld [vmem:[#allocation2 + $0x1f8] sm:$0xff] }
 0x27f   : > { %v3039_v1 = vadd.f32 %v4201_v56, %v667_v54  ;;  %v4203_v2 = vadd.f32 %v2957_v0, %v2571_v62  ;;  %v680_v54 = vld [vmem:[#allocation2 + $0x1f0] sm:$0xff] }
 0x280   : > { %3102 = vst [vmem:[#allocation2 + $0x180] sm:$0xff] %v3038_v60  ;;  %v3040_v3 = vadd.f32 %v4202_v61, %v668_v58 }
 0x281   : > { %3103 = vst [vmem:[#allocation2 + $0x188] sm:$0xff] %v3039_v1  ;;  %v3041_v4 = vadd.f32 %v4203_v2, %v669_v63  ;;  %v5348_v1 = vld [vmem:[#allocation2] sm:$0xff] (!%p4080_p0)  ;;  %v5350_v2 = vld [vmem:[#allocation2 + $0x10] sm:$0xff] (!%p4080_p0) }
 0x282   : > { %3104 = vst [vmem:[#allocation2 + $0x190] sm:$0xff] %v3040_v3  ;;  %v2575_v5 = vpop.f32.mrb[52].mxu1  ;;  %v5352_v3 = vld [vmem:[#allocation2 + $0x8] sm:$0xff] (!%p4080_p0) }
 0x283   : > { %3105 = vst [vmem:[#allocation2 + $0x198] sm:$0xff] %v3041_v4  ;;  %v2961_v7 = vpop.f32.mrb[52].mxu0  ;;  %v2577_v9 = vpop.f32.mrb[53].mxu1  ;;  %v5354_v4 = vld [vmem:[#allocation2 + $0x18] sm:$0xff] (!%p4080_p0) }
 0x284   : > { %v4204_v8 = vadd.f32 %v2961_v7, %v2575_v5  ;;  %v2963_v11 = vpop.f32.mrb[53].mxu0  ;;  %v2579_v13 = vpop.f32.mrb[54].mxu1  ;;  %v3186_v5 = vadd.f32 (!%p4080_p0), %v5350_v2, %v5348_v1  ;;  %v3223_v7 = vadd.f32 (!%p4080_p0), %v5354_v4, %v5352_v3 }
 0x285   : > { %v4205_v12 = vadd.f32 %v2963_v11, %v2577_v9  ;;  %v2965_v15 = vpop.f32.mrb[54].mxu0  ;;  %v2581_v18 = vpop.f32.mrb[55].mxu1 }
 0x286   : > { %v3042_v16 = vadd.f32 %v4204_v8, %v670_v6  ;;  %v4206_v17 = vadd.f32 %v2965_v15, %v2579_v13  ;;  %v2967_v20 = vpop.f32.mrb[55].mxu0  ;;  %v5358_v6 = vld [vmem:[#allocation2 + $0x20] sm:$0xff] (!%p4080_p0)  ;;  %v5362_v8 = vld [vmem:[#allocation2 + $0x28] sm:$0xff] (!%p4080_p0) }
 0x287   : > { %v3043_v21 = vadd.f32 %v4205_v12, %v671_v10  ;;  %v4207_v22 = vadd.f32 %v2967_v20, %v2581_v18  ;;  %v3187_v9 = vadd.f32 (!%p4080_p0), %v3186_v5, %v5358_v6  ;;  %v5365_v10 = vld [vmem:[#allocation2 + $0x30] sm:$0xff] (!%p4080_p0)  ;;  %v3224_v11 = vadd.f32 (!%p4080_p0), %v3223_v7, %v5362_v8  ;;  %v5368_v12 = vld [vmem:[#allocation2 + $0x38] sm:$0xff] (!%p4080_p0) }
 0x288   : > { %3106 = vst [vmem:[#allocation2 + $0x1a0] sm:$0xff] %v3042_v16  ;;  %v3044_v23 = vadd.f32 %v4206_v17, %v672_v14  ;;  %v5371_v14 = vld [vmem:[#allocation2 + $0x40] sm:$0xff] (!%p4080_p0)  ;;  %v5374_v16 = vld [vmem:[#allocation2 + $0x48] sm:$0xff] (!%p4080_p0)  ;;  %v5377_v18 = vld [vmem:[#allocation2 + $0x50] sm:$0xff] (!%p4080_p0) }
 0x289   : > { %3107 = vst [vmem:[#allocation2 + $0x1a8] sm:$0xff] %v3043_v21  ;;  %v3045_v24 = vadd.f32 %v4207_v22, %v673_v19  ;;  %v3188_v13 = vadd.f32 (!%p4080_p0), %v3187_v9, %v5365_v10  ;;  %v3225_v15 = vadd.f32 (!%p4080_p0), %v3224_v11, %v5368_v12  ;;  %v5380_v20 = vld [vmem:[#allocation2 + $0x58] sm:$0xff] (!%p4080_p0)  ;;  %v5383_v22 = vld [vmem:[#allocation2 + $0x60] sm:$0xff] (!%p4080_p0) }
 0x28a   : > { %3108 = vst [vmem:[#allocation2 + $0x1b0] sm:$0xff] %v3044_v23  ;;  %v2585_v25 = vpop.f32.mrb[56].mxu1 }
 0x28b   : > { %3109 = vst [vmem:[#allocation2 + $0x1b8] sm:$0xff] %v3045_v24  ;;  %v2971_v27 = vpop.f32.mrb[56].mxu0  ;;  %v2587_v29 = vpop.f32.mrb[57].mxu1  ;;  %v3189_v17 = vadd.f32 (!%p4080_p0), %v3188_v13, %v5371_v14  ;;  %v3226_v19 = vadd.f32 (!%p4080_p0), %v3225_v15, %v5374_v16  ;;  %v5386_v24 = vld [vmem:[#allocation2 + $0x68] sm:$0xff] (!%p4080_p0)  ;;  %v5495_v13 = vld [vmem:[#allocation2 + $0xc0] sm:$0xff] (!%p4080_p0) }
 0x28c   : > { %v4208_v28 = vadd.f32 %v2971_v27, %v2585_v25  ;;  %v2973_v31 = vpop.f32.mrb[57].mxu0  ;;  %v2589_v33 = vpop.f32.mrb[58].mxu1 }
 0x28d   : > { %v4209_v32 = vadd.f32 %v2973_v31, %v2587_v29  ;;  %v2975_v35 = vpop.f32.mrb[58].mxu0  ;;  %v2591_v38 = vpop.f32.mrb[59].mxu1  ;;  %v3190_v21 = vadd.f32 (!%p4080_p0), %v3189_v17, %v5377_v18  ;;  %v3227_v23 = vadd.f32 (!%p4080_p0), %v3226_v19, %v5380_v20 }
 0x28e   : > { %v3046_v36 = vadd.f32 %v4208_v28, %v674_v26  ;;  %v4210_v37 = vadd.f32 %v2975_v35, %v2589_v33  ;;  %v2977_v40 = vpop.f32.mrb[59].mxu0  ;;  %v5389_v26 = vld [vmem:[#allocation2 + $0x70] sm:$0xff] (!%p4080_p0)  ;;  %v5392_v28 = vld [vmem:[#allocation2 + $0x78] sm:$0xff] (!%p4080_p0)  ;;  %v3261_v33 = vmul.f32 (!%p4080_p0), %v5352_v3, %v5352_v3 }
 0x28f   : > { %v3047_v41 = vadd.f32 %v4209_v32, %v675_v30  ;;  %v4211_v42 = vadd.f32 %v2977_v40, %v2591_v38  ;;  %v3191_v25 = vadd.f32 (!%p4080_p0), %v3190_v21, %v5383_v22  ;;  %v3228_v27 = vadd.f32 (!%p4080_p0), %v3227_v23, %v5386_v24  ;;  %v5395_v30 = vld [vmem:[#allocation2 + $0x80] sm:$0xff] (!%p4080_p0)  ;;  %v5502_v23 = vld [vmem:[#allocation2 + $0xc8] sm:$0xff] (!%p4080_p0) }
 0x290   : > { %3110 = vst [vmem:[#allocation2 + $0x1c0] sm:$0xff] %v3046_v36  ;;  %v3048_v43 = vadd.f32 %v4210_v37, %v676_v34  ;;  %v3260_v32 = vmul.f32 (!%p4080_p0), %v5348_v1, %v5348_v1  ;;  %v5402_v34 = vld [vmem:[#allocation2 + $0x88] sm:$0xff] (!%p4080_p0)  ;;  %v3262_v36 = vmul.f32 (!%p4080_p0), %v5350_v2, %v5350_v2  ;;  %v3263_v37 = vmul.f32 (!%p4080_p0), %v5354_v4, %v5354_v4 }
 0x291   : > { %3111 = vst [vmem:[#allocation2 + $0x1c8] sm:$0xff] %v3047_v41  ;;  %v3049_v44 = vadd.f32 %v4211_v42, %v677_v39  ;;  %v3192_v29 = vadd.f32 (!%p4080_p0), %v3191_v25, %v5389_v26  ;;  %v3229_v31 = vadd.f32 (!%p4080_p0), %v3228_v27, %v5392_v28  ;;  %v3264_v38 = vmul.f32 (!%p4080_p0), %v5358_v6, %v5358_v6  ;;  %v5411_v39 = vld [vmem:[#allocation2 + $0x90] sm:$0xff] (!%p4080_p0) }
 0x292   : > { %3112 = vst [vmem:[#allocation2 + $0x1d0] sm:$0xff] %v3048_v43  ;;  %v2595_v45 = vpop.f32.mrb[60].mxu1  ;;  %v3265_v41 = vmul.f32 (!%p4080_p0), %v5362_v8, %v5362_v8  ;;  %v3266_v42 = vmul.f32 (!%p4080_p0), %v5365_v10, %v5365_v10  ;;  %v3267_v43 = vmul.f32 (!%p4080_p0), %v5368_v12, %v5368_v12  ;;  %v3324_v19 = vadd.f32 (!%p4080_p0), %v3262_v36, %v3260_v32 }
 0x293   : > { %3113 = vst [vmem:[#allocation2 + $0x1d8] sm:$0xff] %v3049_v44  ;;  %v2981_v47 = vpop.f32.mrb[60].mxu0  ;;  %v2597_v49 = vpop.f32.mrb[61].mxu1  ;;  %v3193_v35 = vadd.f32 (!%p4080_p0), %v3192_v29, %v5395_v30  ;;  %v3230_v40 = vadd.f32 (!%p4080_p0), %v3229_v31, %v5402_v34  ;;  %v5420_v44 = vld [vmem:[#allocation2 + $0x98] sm:$0xff] (!%p4080_p0)  ;;  %v3361_v21 = vadd.f32 (!%p4080_p0), %v3263_v37, %v3261_v33  ;;  %v4120_v27 = vpack.c.bf16 (!%p4080_p0), %v5352_v3, %v5348_v1 }
 0x294   : > { %v4212_v48 = vadd.f32 %v2981_v47, %v2595_v45  ;;  %v2983_v51 = vpop.f32.mrb[61].mxu0  ;;  %v2599_v53 = vpop.f32.mrb[62].mxu1  ;;  %v5429_v47 = vmul.f32 (!%p4080_p0), %v5374_v16, %v5374_v16  ;;  %v4121_v29 = vpack.c.bf16 (!%p4080_p0), %v5354_v4, %v5350_v2  ;;  %v4122_v31 = vpack.c.bf16 (!%p4080_p0), %v5362_v8, %v5358_v6  ;;  %v5516_v37 = vld [vmem:[#allocation2 + $0xd8] sm:$0xff] (!%p4080_p0)  ;;  %v5528_v6 = vld [vmem:[#allocation2 + $0xe0] sm:$0xff] (!%p4080_p0) }
 0x295   : > { %v4213_v52 = vadd.f32 %v2983_v51, %v2597_v49  ;;  %v2985_v55 = vpop.f32.mrb[62].mxu0  ;;  %v2601_v58 = vpop.f32.mrb[63].mxu1  ;;  %3121 = sbr.rel (%p4080_p0) target bundleno = 747 (0x2eb), region = 59  ;;  %v3194_v45 = vadd.f32 (!%p4080_p0), %v3193_v35, %v5411_v39  ;;  %v5435_v49 = vld [vmem:[#allocation2 + $0xa0] sm:$0xff] (!%p4080_p0)  ;;  %v5439_v51 = vld [vmem:[#allocation2 + $0xb0] sm:$0xff] (!%p4080_p0)  ;;  %v3325_v32 = vadd.f32 (!%p4080_p0), %v3324_v19, %v3264_v38  ;;  %v3362_v33 = vadd.f32 (!%p4080_p0), %v3361_v21, %v3265_v41  ;;  %3605 = vst [vmem:[%s5005_s12] sm:$0xff] (!%p4080_p0), %v4120_v27  ;;  %v5534_v41 = vld [vmem:[#allocation2 + $0xe8] sm:$0xff] (!%p4080_p0) }
 0x296   : > { %v3050_v56 = vadd.f32 %v4212_v48, %v678_v46  ;;  %v4214_v57 = vadd.f32 %v2985_v55, %v2599_v53  ;;  %v2987_v60 = vpop.f32.mrb[63].mxu0  ;;  %v5425_v46 = vmul.f32 (!%p4080_p0), %v5371_v14, %v5371_v14  ;;  %v5433_v48 = vmul.f32 (!%p4080_p0), %v5377_v18, %v5377_v18  ;;  %v5511_v35 = vld [vmem:[#allocation2 + $0xd0] sm:$0xff] (!%p4080_p0)  ;;  %3606 = vst [vmem:[%s5005_s12 + $0x8] sm:$0xff] (!%p4080_p0), %v4121_v29  ;;  %v5596_v29 = vld [vmem:[#allocation2 + $0x160] sm:$0xff] (!%p4080_p0) }
 0x297   : > { %v3051_v61 = vadd.f32 %v4213_v52, %v679_v50  ;;  %v4215_v62 = vadd.f32 %v2987_v60, %v2601_v58  ;;  %v5437_v50 = vld [vmem:[#allocation2 + $0xa8] sm:$0xff] (!%p4080_p0)  ;;  %v3231_v52 = vadd.f32 (!%p4080_p0), %v3230_v40, %v5420_v44  ;;  %v5444_v53 = vmul.f32 (!%p4080_p0), %v5380_v20, %v5380_v20  ;;  %3607 = vst [vmem:[%s5005_s12 + $0x10] sm:$0xff] (!%p4080_p0), %v4122_v31 }
 0x298   : > { %3114 = vst [vmem:[#allocation2 + $0x1e0] sm:$0xff] %v3050_v56  ;;  %v3052_v63 = vadd.f32 %v4214_v57, %v680_v54  ;;  %v5448_v54 = vmul.f32 (!%p4080_p0), %v5383_v22, %v5383_v22  ;;  %v5452_v55 = vmul.f32 (!%p4080_p0), %v5386_v24, %v5386_v24  ;;  %v5454_v56 = vld [vmem:[#allocation2 + $0xb8] sm:$0xff] (!%p4080_p0)  ;;  %v3195_v57 = vadd.f32 (!%p4080_p0), %v3194_v45, %v5435_v49  ;;  %v5536_v45 = vld [vmem:[#allocation2 + $0xf0] sm:$0xff] (!%p4080_p0)  ;;  %v5598_v31 = vld [vmem:[#allocation2 + $0x168] sm:$0xff] (!%p4080_p0) }
 0x299   : > { %3115 = vst [vmem:[#allocation2 + $0x1e8] sm:$0xff] %v3051_v61  ;;  %v3053_v0 = vadd.f32 %v4215_v62, %v681_v59  ;;  %v5459_v58 = vmul.f32 (!%p4080_p0), %v5389_v26, %v5389_v26  ;;  %v5463_v59 = vmul.f32 (!%p4080_p0), %v5392_v28, %v5392_v28  ;;  %v5467_v60 = vmul.f32 (!%p4080_p0), %v5395_v30, %v5395_v30 }
 0x29a   : > { %3116 = vst [vmem:[#allocation2 + $0x1f0] sm:$0xff] %v3052_v63  ;;  %v3232_v61 = vadd.f32 (!%p4080_p0), %v3231_v52, %v5437_v50  ;;  %v5472_v62 = vmul.f32 (!%p4080_p0), %v5402_v34, %v5402_v34  ;;  %v5476_v63 = vmul.f32 (!%p4080_p0), %v5411_v39, %v5411_v39  ;;  %v3196_v5 = vadd.f32 (!%p4080_p0), %v3195_v57, %v5439_v51  ;;  %v5570_v52 = vld [vmem:[#allocation2 + $0x138] sm:$0xff] (!%p4080_p0) }
 0x29b   : > { %3117 = vst [vmem:[#allocation2 + $0x1f8] sm:$0xff] %v3053_v0  ;;  %v5480_v0 = vmul.f32 (!%p4080_p0), %v5420_v44, %v5420_v44  ;;  %v5485_v7 = vmul.f32 (!%p4080_p0), %v5435_v49, %v5435_v49  ;;  %v5489_v9 = vmul.f32 (!%p4080_p0), %v5437_v50, %v5437_v50  ;;  %v5493_v11 = vmul.f32 (!%p4080_p0), %v5439_v51, %v5439_v51 }
 0x29c   : > { %v3233_v15 = vadd.f32 %v3232_v61, %v5454_v56  ;;  %v5500_v17 = vmul.f32 %v5454_v56, %v5454_v56  ;;  %v3197_v25 = vadd.f32 %v3196_v5, %v5495_v13  ;;  %v4123_v36 = vpack.c.bf16 %v5368_v12, %v5365_v10  ;;  %v5584_v61 = vld [vmem:[#allocation2 + $0x148] sm:$0xff]  ;;  %v5586_v5 = vld [vmem:[#allocation2 + $0x150] sm:$0xff] }
 0x29d   : > { %v4124_v2 = vpack.c.bf16 %v5374_v16, %v5371_v14  ;;  %v4125_v3 = vpack.c.bf16 %v5380_v20, %v5377_v18  ;;  %v4126_v4 = vpack.c.bf16 %v5386_v24, %v5383_v22  ;;  %v3326_v10 = vadd.f32 %v3325_v32, %v3266_v42  ;;  %v5538_v14 = vld [vmem:[#allocation2 + $0xf8] sm:$0xff]  ;;  %v5550_v24 = vld [vmem:[#allocation2 + $0x100] sm:$0xff] }
 0x29e   : > { %v3234_v40 = vadd.f32 %v3233_v15, %v5502_v23  ;;  %v3198_v1 = vadd.f32 %v3197_v25, %v5511_v35  ;;  %v3363_v12 = vadd.f32 %v3362_v33, %v3267_v43  ;;  %3608 = vst [vmem:[%s5005_s12 + $0x18] sm:$0xff] %v4123_v36  ;;  %v4127_v38 = vpack.c.bf16 %v5392_v28, %v5389_v26  ;;  %v5552_v26 = vld [vmem:[#allocation2 + $0x108] sm:$0xff]  ;;  %v5554_v28 = vld [vmem:[#allocation2 + $0x110] sm:$0xff]  ;;  %v5556_v42 = vld [vmem:[#allocation2 + $0x118] sm:$0xff] }
 0x29f   : > { %3609 = vst [vmem:[%s5005_s12 + $0x20] sm:$0xff] %v4124_v2  ;;  %3610 = vst [vmem:[%s5005_s12 + $0x28] sm:$0xff] %v4125_v3  ;;  %v4128_v18 = vpack.c.bf16 %v5402_v34, %v5395_v30  ;;  %v4129_v20 = vpack.c.bf16 %v5420_v44, %v5411_v39  ;;  %v4130_v22 = vpack.c.bf16 %v5437_v50, %v5435_v49  ;;  %v5558_v43 = vld [vmem:[#allocation2 + $0x120] sm:$0xff]  ;;  %v5566_v49 = vld [vmem:[#allocation2 + $0x128] sm:$0xff] }
 0x2a0   : > { %v3235_v8 = vadd.f32 %v3234_v40, %v5516_v37  ;;  %v3199_v16 = vadd.f32 %v3198_v1, %v5528_v6  ;;  %3611 = vst [vmem:[%s5005_s12 + $0x30] sm:$0xff] %v4126_v4  ;;  %v3327_v34 = vadd.f32 %v3326_v10, %v5425_v46  ;;  %v3364_v39 = vadd.f32 %v3363_v12, %v5429_v47  ;;  %v5568_v50 = vld [vmem:[#allocation2 + $0x130] sm:$0xff]  ;;  %v5588_v15 = vld [vmem:[#allocation2 + $0x158] sm:$0xff]  ;;  %v5614_v1 = vld [vmem:[#allocation2 + $0x180] sm:$0xff] }
 0x2a1   : > { %3612 = vst [vmem:[%s5005_s12 + $0x38] sm:$0xff] %v4127_v38  ;;  %v4131_v44 = vpack.c.bf16 %v5454_v56, %v5439_v51  ;;  %3613 = vst [vmem:[%s5005_s12 + $0x40] sm:$0xff] %v4128_v18  ;;  %v4132_v46 = vpack.c.bf16 %v5502_v23, %v5495_v13  ;;  %v4133_v47 = vpack.c.bf16 %v5516_v37, %v5511_v35  ;;  %v5582_v56 = vld [vmem:[#allocation2 + $0x140] sm:$0xff]  ;;  %v5600_v40 = vld [vmem:[#allocation2 + $0x170] sm:$0xff] }
 0x2a2   : > { %v3236_v30 = vadd.f32 %v3235_v8, %v5534_v41  ;;  %v3200_v57 = vadd.f32 %v3199_v16, %v5536_v45  ;;  %3614 = vst [vmem:[%s5005_s12 + $0x48] sm:$0xff] %v4129_v20  ;;  %3615 = vst [vmem:[%s5005_s12 + $0x50] sm:$0xff] %v4130_v22  ;;  %v4134_v51 = vpack.c.bf16 %v5534_v41, %v5528_v6  ;;  %v5612_v36 = vld [vmem:[#allocation2 + $0x178] sm:$0xff]  ;;  %v5616_v2 = vld [vmem:[#allocation2 + $0x188] sm:$0xff] }
 0x2a3   : > { %v3328_v21 = vadd.f32 %v3327_v34, %v5433_v48  ;;  %v3365_v25 = vadd.f32 %v3364_v39, %v5444_v53  ;;  %3616 = vst [vmem:[%s5005_s12 + $0x58] sm:$0xff] %v4131_v44  ;;  %v4135_v27 = vpack.c.bf16 %v5538_v14, %v5536_v45  ;;  %3617 = vst [vmem:[%s5005_s12 + $0x60] sm:$0xff] %v4132_v46  ;;  %v5624_v12 = vld [vmem:[#allocation2 + $0x190] sm:$0xff]  ;;  %v5626_v38 = vld [vmem:[#allocation2 + $0x198] sm:$0xff] }
 0x2a4   : > { %v3237_v19 = vadd.f32 %v3236_v30, %v5538_v14  ;;  %v3201_v32 = vadd.f32 %v3200_v57, %v5550_v24  ;;  %3618 = vst [vmem:[%s5005_s12 + $0x68] sm:$0xff] %v4133_v47  ;;  %3619 = vst [vmem:[%s5005_s12 + $0x70] sm:$0xff] %v4134_v51  ;;  %v4136_v48 = vpack.c.bf16 %v5552_v26, %v5550_v24  ;;  %v5628_v16 = vld [vmem:[#allocation2 + $0x1a0] sm:$0xff]  ;;  %v5640_v22 = vld [vmem:[#allocation2 + $0x1a8] sm:$0xff] }
 0x2a5   : > { %v4137_v53 = vpack.c.bf16 %v5556_v42, %v5554_v28  ;;  %v4138_v33 = vpack.c.bf16 %v5566_v49, %v5558_v43  ;;  %v3329_v4 = vadd.f32 %v3328_v21, %v5448_v54  ;;  %v3366_v8 = vadd.f32 %v3365_v25, %v5452_v55  ;;  %3620 = vst [vmem:[%s5005_s12 + $0x78] sm:$0xff] %v4135_v27  ;;  %v5642_v30 = vld [vmem:[#allocation2 + $0x1b0] sm:$0xff]  ;;  %v5644_v34 = vld [vmem:[#allocation2 + $0x1b8] sm:$0xff]  ;;  %v5652_v47 = vld [vmem:[#allocation2 + $0x1c0] sm:$0xff] }
 0x2a6   : > { %v3238_v3 = vadd.f32 %v3237_v19, %v5552_v26  ;;  %v4139_v10 = vpack.c.bf16 %v5570_v52, %v5568_v50  ;;  %v3202_v18 = vadd.f32 %v3201_v32, %v5554_v28  ;;  %3621 = vst [vmem:[%s5005_s12 + $0x80] sm:$0xff] %v4136_v48  ;;  %v4140_v54 = vpack.c.bf16 %v5584_v61, %v5582_v56  ;;  %v5654_v51 = vld [vmem:[#allocation2 + $0x1c8] sm:$0xff]  ;;  %v5656_v19 = vld [vmem:[#allocation2 + $0x1d0] sm:$0xff]  ;;  %v5668_v27 = vld [vmem:[#allocation2 + $0x1d8] sm:$0xff] }
 0x2a7   : > { %3622 = vst [vmem:[%s5005_s12 + $0x88] sm:$0xff] %v4137_v53  ;;  %3623 = vst [vmem:[%s5005_s12 + $0x90] sm:$0xff] %v4138_v33  ;;  %v4141_v55 = vpack.c.bf16 %v5588_v15, %v5586_v5  ;;  %v4142_v20 = vpack.c.bf16 %v5598_v31, %v5596_v29  ;;  %v3330_v44 = vadd.f32 %v3329_v4, %v5459_v58  ;;  %v5670_v32 = vld [vmem:[#allocation2 + $0x1e0] sm:$0xff]  ;;  %v5672_v48 = vld [vmem:[#allocation2 + $0x1e8] sm:$0xff] }
 0x2a8   : > { %v3239_v39 = vadd.f32 %v3238_v3, %v5556_v42  ;;  %v3367_v57 = vadd.f32 %v3366_v8, %v5463_v59  ;;  %3624 = vst [vmem:[%s5005_s12 + $0x98] sm:$0xff] %v4139_v10  ;;  %v4143_v46 = vpack.c.bf16 %v5612_v36, %v5600_v40  ;;  %v3203_v21 = vadd.f32 %v3202_v18, %v5558_v43  ;;  %v5680_v8 = vld [vmem:[#allocation2 + $0x1f0] sm:$0xff]  ;;  %v5682_v10 = vld [vmem:[#allocation2 + $0x1f8] sm:$0xff] }
 0x2a9   : > { %3625 = vst [vmem:[%s5005_s12 + $0xa0] sm:$0xff] %v4140_v54  ;;  %3626 = vst [vmem:[%s5005_s12 + $0xa8] sm:$0xff] %v4141_v55  ;;  %v4144_v58 = vpack.c.bf16 %v5616_v2, %v5614_v1  ;;  %v4145_v59 = vpack.c.bf16 %v5626_v38, %v5624_v12  ;;  %v4146_v25 = vpack.c.bf16 %v5640_v22, %v5628_v16 }
 0x2aa   : > { %3627 = vst [vmem:[%s5005_s12 + $0xb0] sm:$0xff] %v4142_v20  ;;  %v3240_v53 = vadd.f32 %v3239_v39, %v5566_v49  ;;  %v3331_v33 = vadd.f32 %v3330_v44, %v5467_v60  ;;  %v3368_v3 = vadd.f32 %v3367_v57, %v5472_v62  ;;  %3628 = vst [vmem:[%s5005_s12 + $0xb8] sm:$0xff] %v4143_v46 }
 0x2ab   : > { %v4147_v4 = vpack.c.bf16 %v5644_v34, %v5642_v30  ;;  %v3204_v18 = vadd.f32 %v3203_v21, %v5568_v50  ;;  %3629 = vst [vmem:[%s5005_s12 + $0xc0] sm:$0xff] %v4144_v58  ;;  %3630 = vst [vmem:[%s5005_s12 + $0xc8] sm:$0xff] %v4145_v59  ;;  %v4148_v60 = vpack.c.bf16 %v5654_v51, %v5652_v47 }
 0x2ac   : > { %3631 = vst [vmem:[%s5005_s12 + $0xd0] sm:$0xff] %v4146_v25  ;;  %v4149_v62 = vpack.c.bf16 %v5668_v27, %v5656_v19  ;;  %v4150_v54 = vpack.c.bf16 %v5672_v48, %v5670_v32  ;;  %v3241_v55 = vadd.f32 %v3240_v53, %v5570_v52  ;;  %v3332_v20 = vadd.f32 %v3331_v33, %v5476_v63 }
 0x2ad   : > { %v3369_v39 = vadd.f32 %v3368_v3, %v5480_v0  ;;  %3632 = vst [vmem:[%s5005_s12 + $0xd8] sm:$0xff] %v4147_v4  ;;  %v4151_v44 = vpack.c.bf16 %v5682_v10, %v5680_v8  ;;  %v3205_v57 = vadd.f32 %v3204_v18, %v5582_v56  ;;  %v3284_v46 = vmul.f32 %v5495_v13, %v5495_v13 }
 0x2ae   : > { %3633 = vst [vmem:[%s5005_s12 + $0xe0] sm:$0xff] %v4148_v60  ;;  %3634 = vst [vmem:[%s5005_s12 + $0xe8] sm:$0xff] %v4149_v62  ;;  %v3242_v21 = vadd.f32 %v3241_v55, %v5584_v61  ;;  %v3285_v58 = vmul.f32 %v5502_v23, %v5502_v23  ;;  %v3333_v63 = vadd.f32 %v3332_v20, %v5485_v7 }
 0x2af   : > { %3635 = vst [vmem:[%s5005_s12 + $0xf0] sm:$0xff] %v4150_v54  ;;  %v3370_v0 = vadd.f32 %v3369_v39, %v5489_v9  ;;  %3636 = vst [vmem:[%s5005_s12 + $0xf8] sm:$0xff] %v4151_v44  ;;  %v3206_v59 = vadd.f32 %v3205_v57, %v5586_v5  ;;  %v3286_v25 = vmul.f32 %v5511_v35, %v5511_v35 }
 0x2b0   : > { %v3243_v13 = vadd.f32 %v3242_v21, %v5588_v15  ;;  %v3287_v53 = vmul.f32 %v5516_v37, %v5516_v37  ;;  %v3334_v33 = vadd.f32 %v3333_v63, %v5493_v11  ;;  %v3288_v7 = vmul.f32 %v5528_v6, %v5528_v6 }
 0x2b1   : > { %v3371_v3 = vadd.f32 %v3370_v0, %v5500_v17  ;;  %v3207_v23 = vadd.f32 %v3206_v59, %v5596_v29  ;;  %v3289_v4 = vmul.f32 %v5534_v41, %v5534_v41  ;;  %v3290_v37 = vmul.f32 %v5536_v45, %v5536_v45 }
 0x2b2   : > { %v3244_v9 = vadd.f32 %v3243_v13, %v5598_v31  ;;  %v3335_v35 = vadd.f32 %v3334_v33, %v3284_v46  ;;  %v3291_v17 = vmul.f32 %v5538_v14, %v5538_v14  ;;  %v3292_v55 = vmul.f32 %v5550_v24, %v5550_v24 }
 0x2b3   : > { %v3372_v18 = vadd.f32 %v3371_v3, %v3285_v58  ;;  %v3208_v60 = vadd.f32 %v3207_v23, %v5600_v40  ;;  %v3293_v20 = vmul.f32 %v5552_v26, %v5552_v26  ;;  %v3294_v57 = vmul.f32 %v5554_v28, %v5554_v28 }
 0x2b4   : > { %v3245_v11 = vadd.f32 %v3244_v9, %v5612_v36  ;;  %v3336_v62 = vadd.f32 %v3335_v35, %v3286_v25  ;;  %v3295_v46 = vmul.f32 %v5556_v42, %v5556_v42  ;;  %v3296_v63 = vmul.f32 %v5558_v43, %v5558_v43 }
 0x2b5   : > { %v3373_v54 = vadd.f32 %v3372_v18, %v3287_v53  ;;  %v3209_v6 = vadd.f32 %v3208_v60, %v5614_v1  ;;  %v3297_v0 = vmul.f32 %v5566_v49, %v5566_v49  ;;  %v3298_v13 = vmul.f32 %v5568_v50, %v5568_v50 }
 0x2b6   : > { %v3246_v41 = vadd.f32 %v3245_v11, %v5616_v2  ;;  %v3337_v39 = vadd.f32 %v3336_v62, %v3288_v7  ;;  %v3299_v53 = vmul.f32 %v5570_v52, %v5570_v52  ;;  %v3300_v43 = vmul.f32 %v5582_v56, %v5582_v56 }
 0x2b7   : > { %v3374_v44 = vadd.f32 %v3373_v54, %v3289_v4  ;;  %v3210_v45 = vadd.f32 %v3209_v6, %v5624_v12  ;;  %v3301_v49 = vmul.f32 %v5584_v61, %v5584_v61  ;;  %v3302_v50 = vmul.f32 %v5586_v5, %v5586_v5 }
 0x2b8   : > { %v3247_v14 = vadd.f32 %v3246_v41, %v5626_v38  ;;  %v3338_v21 = vadd.f32 %v3337_v39, %v3290_v37  ;;  %v3303_v52 = vmul.f32 %v5588_v15, %v5588_v15  ;;  %v3304_v56 = vmul.f32 %v5596_v29, %v5596_v29 }
 0x2b9   : > { %v3375_v58 = vadd.f32 %v3374_v44, %v3291_v17  ;;  %v3211_v24 = vadd.f32 %v3210_v45, %v5628_v16  ;;  %v3305_v61 = vmul.f32 %v5598_v31, %v5598_v31  ;;  %v3306_v5 = vmul.f32 %v5600_v40, %v5600_v40 }
 0x2ba   : > { %v3248_v26 = vadd.f32 %v3247_v14, %v5640_v22  ;;  %v3339_v59 = vadd.f32 %v3338_v21, %v3292_v55  ;;  %v3307_v15 = vmul.f32 %v5612_v36, %v5612_v36  ;;  %v3308_v29 = vmul.f32 %v5614_v1, %v5614_v1 }
 0x2bb   : > { %v3376_v25 = vadd.f32 %v3375_v58, %v3293_v20  ;;  %v3212_v28 = vadd.f32 %v3211_v24, %v5642_v30  ;;  %v3309_v31 = vmul.f32 %v5616_v2, %v5616_v2  ;;  %v3310_v40 = vmul.f32 %v5624_v12, %v5624_v12 }
 0x2bc   : > { %v3249_v42 = vadd.f32 %v3248_v26, %v5644_v34  ;;  %v3340_v33 = vadd.f32 %v3339_v59, %v3294_v57  ;;  %v3311_v36 = vmul.f32 %v5626_v38, %v5626_v38  ;;  %v3312_v1 = vmul.f32 %v5628_v16, %v5628_v16 }
 0x2bd   : > { %v3377_v3 = vadd.f32 %v3376_v25, %v3295_v46  ;;  %v3213_v23 = vadd.f32 %v3212_v28, %v5652_v47  ;;  %v3313_v2 = vmul.f32 %v5640_v22, %v5640_v22  ;;  %v3314_v12 = vmul.f32 %v5642_v30, %v5642_v30 }
 0x2be   : > { %v3250_v7 = vadd.f32 %v3249_v42, %v5654_v51  ;;  %v3341_v9 = vadd.f32 %v3340_v33, %v3296_v63  ;;  %v3315_v38 = vmul.f32 %v5644_v34, %v5644_v34  ;;  %v3316_v16 = vmul.f32 %v5652_v47, %v5652_v47 }
 0x2bf   : > { %v3378_v4 = vadd.f32 %v3377_v3, %v3297_v0  ;;  %v3214_v60 = vadd.f32 %v3213_v23, %v5656_v19  ;;  %v3317_v22 = vmul.f32 %v5654_v51, %v5654_v51  ;;  %v3318_v59 = vmul.f32 %v5656_v19, %v5656_v19 }
 0x2c0   : > { %v3342_v35 = vadd.f32 %v3341_v9, %v3298_v13  ;;  %v3251_v37 = vadd.f32 %v3250_v7, %v5668_v27  ;;  %v3319_v30 = vmul.f32 %v5668_v27, %v5668_v27  ;;  %v3320_v28 = vmul.f32 %v5670_v32, %v5670_v32 }
 0x2c1   : > { %v3379_v18 = vadd.f32 %v3378_v4, %v3299_v53  ;;  %v3215_v6 = vadd.f32 %v3214_v60, %v5670_v32  ;;  %v3321_v47 = vmul.f32 %v5672_v48, %v5672_v48  ;;  %v3322_v33 = vmul.f32 %v5680_v8, %v5680_v8 }
 0x2c2   : > { %v3343_v11 = vadd.f32 %v3342_v35, %v3300_v43  ;;  %v3252_v55 = vadd.f32 %v3251_v37, %v5672_v48  ;;  %v3323_v19 = vmul.f32 %v5682_v10, %v5682_v10 }
 0x2c3   : > { %v3380_v17 = vadd.f32 %v3379_v18, %v3301_v49  ;;  %v3216_v45 = vadd.f32 %v3215_v6, %v5680_v8 }
 0x2c4   : > { %v3344_v62 = vadd.f32 %v3343_v11, %v3302_v50  ;;  %v3253_v57 = vadd.f32 %v3252_v55, %v5682_v10 }
 0x2c5   : > { %v3381_v54 = vadd.f32 %v3380_v17, %v3303_v52  ;;  %v3217_v24 = vrot.slane %v3216_v45, 4 }
 0x2c6   : > { %v3345_v41 = vadd.f32 %v3344_v62, %v3304_v56  ;;  %v3254_v63 = vrot.slane %v3253_v57, 4 }
 0x2c7   : > { %v3382_v20 = vadd.f32 %v3381_v54, %v3305_v61  ;;  %v3218_v13 = vadd.f32 %v3217_v24, %v3216_v45 }
 0x2c8   : > { %v3346_v39 = vadd.f32 %v3345_v41, %v3306_v5  ;;  %v3255_v51 = vadd.f32 %v3254_v63, %v3253_v57 }
 0x2c9   : > { %v3383_v44 = vadd.f32 %v3382_v20, %v3307_v15  ;;  %v3219_v43 = vrot.slane %v3218_v13, 2 }
 0x2ca   : > { %v3347_v14 = vadd.f32 %v3346_v39, %v3308_v29  ;;  %v3256_v49 = vrot.slane %v3255_v51, 2 }
 0x2cb   : > { %v3384_v46 = vadd.f32 %v3383_v44, %v3309_v31  ;;  %v3220_v4 = vadd.f32 %v3219_v43, %v3218_v13 }
 0x2cc   : > { %v3348_v21 = vadd.f32 %v3347_v14, %v3310_v40  ;;  %v3257_v48 = vadd.f32 %v3256_v49, %v3255_v51 }
 0x2cd   : > { %v3385_v58 = vadd.f32 %v3384_v46, %v3311_v36  ;;  %v3221_v56 = vrot.slane %v3220_v4, 1 }
 0x2ce   : > { %v3349_v26 = vadd.f32 %v3348_v21, %v3312_v1  ;;  %v3258_v8 = vrot.slane %v3257_v48, 1 }
 0x2cf   : > { %v3386_v0 = vadd.f32 %v3385_v58, %v3313_v2  ;;  %v3222_v11 = vadd.f32 %v3221_v56, %v3220_v4 }
 0x2d0   : > { %v3350_v25 = vadd.f32 %v3349_v26, %v3314_v12  ;;  %v3259_v17 = vadd.f32 %v3258_v8, %v3257_v48 }
 0x2d1   : > { %v3387_v34 = vadd.f32 %v3386_v0, %v3315_v38 }
 0x2d2   : > { %v3351_v42 = vadd.f32 %v3350_v25, %v3316_v16 }
 0x2d3   : > { %v3388_v53 = vadd.f32 %v3387_v34, %v3317_v22 }
 0x2d4   : > { %v3352_v3 = vadd.f32 %v3351_v42, %v3318_v59 }
 0x2d5   : > { %v3389_v27 = vadd.f32 %v3388_v53, %v3319_v30 }
 0x2d6   : > { %v3353_v23 = vadd.f32 %v3352_v3, %v3320_v28 }
 0x2d7   : > { %v3390_v7 = vadd.f32 %v3389_v27, %v3321_v47 }
 0x2d8   : > { %v3354_v32 = vadd.f32 %v3353_v23, %v3322_v33 }
 0x2d9   : > { %v3391_v9 = vadd.f32 %v3390_v7, %v3323_v19 }
 0x2da   : > { %v3355_v50 = vrot.slane %v3354_v32, 4 }
 0x2db   : > { %v3392_v52 = vrot.slane %v3391_v9, 4 }
 0x2dc   : > { %v3356_v35 = vadd.f32 %v3355_v50, %v3354_v32 }
 0x2dd   : > { %v3393_v18 = vadd.f32 %v3392_v52, %v3391_v9 }
 0x2de   : > { %v3357_v61 = vrot.slane %v3356_v35, 2 }
 0x2df   : > { %v3394_v60 = vrot.slane %v3393_v18, 2 }
 0x2e0   : > { %v3358_v10 = vadd.f32 %v3357_v61, %v3356_v35 }
 0x2e1   : > { %v3395_v37 = vadd.f32 %v3394_v60, %v3393_v18 }
 0x2e2   : > { %v3359_v5 = vrot.slane %v3358_v10, 1 }
 0x2e3   : > { %v3396_v15 = vrot.slane %v3395_v37, 1 }
 0x2e4   : > { %v3360_v62 = vadd.f32 %v3359_v5, %v3358_v10 }
 0x2e5   : > { %v3397_v54 = vadd.f32 %v3396_v15, %v3395_v37 }
 0x2e6   : > { %v3399_v29 = vsel %vm3398_vm0, %v3222_v11, %v3360_v62 }
 0x2e7   : > { %v3400_v31 = vsel %vm3398_vm0, %v3259_v17, %v3397_v54 }
 0x2e8   : > { %v3403_v6 = vcombine.low %v3399_v29, %v3400_v31 }
 0x2ea   : > { %4081 = vst.sshfl [vmem:[%s5010_s6] sm:$0x33 pattern:$0x76325410] %v3403_v6 }
 0x2eb PF: > { %s14_s18 = sadd.s32 1, %s4647_s18   ;;  %s5838_s12 = smov %s4627_s13 }
 0x2ec   : > { %p11_p1 = scmp.ge.s32.totalorder %s14_s18, 6   ;;  %s5839_s13 = smov %s4721_s25 }
 0x2ed   : > { %s5840_s14 = smov %s4639_s16  ;;  %s5841_s15 = smov %s4643_s17 }
 0x2ee   : > { %s5842_s16 = smov %s5845_s19  ;;  %s5843_s17 = smov %s5849_s20 }
 0x2ef   :  { %13 = sbr.rel (!%p11_p1) target bundleno = 4 (0x4), region = 109 }

// kernel: _lambda_.10
= control target key start
LH: loop header
LB: loop body
LE: loop exit
PB: predicated region body
PF: predicated region fallthrough
CT: control target
= control target key end

     0   :  { %v208_v0 = vlaneseq  ;;  %s2144_s0 = inlined_call_operand.vmem [shape: bf16[512,256], index: 0, kind: input, shape index: {}]   ;;  %s2145_s1 = inlined_call_operand.vmem [shape: f32[1,256], index: 1, kind: input, shape index: {}]   ;;  %s2146_s2 = inlined_call_operand.vmem [shape: f32[1,256], index: 2, kind: input, shape index: {}]   ;;  %s2147_s3 = inlined_call_operand.vmem [shape: bf16[512,256], index: 3, kind: output, shape index: {}]  }
   0x1   :  { %v14_v1 = vld [vmem:[%s2144_s0] sm:$0xff]  ;;  %v15_v6 = vld [vmem:[%s2144_s0 + $0x8] sm:$0xff]  ;;  %v16_v7 = vld [vmem:[%s2144_s0 + $0x10] sm:$0xff] }
   0x2   :  { %v206_v2 = vld [vmem:[%s2145_s1] sm:$0x3]  ;;  %v78_v3 = vunpack.c.l.bf16 %v14_v1  ;;  %v79_v4 = vunpack.c.h.bf16 %v14_v1  ;;  %v209_v5 = vshrl.u32 %v208_v0, 7  ;;  %v17_v8 = vld [vmem:[%s2144_s0 + $0x18] sm:$0xff]  ;;  %v80_v10 = vunpack.c.l.bf16 %v15_v6  ;;  %v1496_v15 = vld [vmem:[%s2144_s0 + $0x28] sm:$0xff] }
   0x3   :  { %v346_v9 = vld [vmem:[%s2146_s2] sm:$0x3]  ;;  %v81_v11 = vunpack.c.h.bf16 %v15_v6  ;;  %v82_v12 = vunpack.c.l.bf16 %v16_v7  ;;  %v83_v13 = vunpack.c.h.bf16 %v16_v7  ;;  %v84_v18 = vunpack.c.l.bf16 %v17_v8  ;;  %v1501_v20 = vld [vmem:[%s2144_s0 + $0x30] sm:$0xff]  ;;  %v1506_v21 = vld [vmem:[%s2144_s0 + $0x38] sm:$0xff] }
   0x4   :  { %v1491_v14 = vld [vmem:[%s2144_s0 + $0x20] sm:$0xff]  ;;  %v210_v16 = vsub.s32 0, %v209_v5  ;;  %v214_v17 = vsub.s32 1, %v209_v5  ;;  %v85_v19 = vunpack.c.h.bf16 %v17_v8  ;;  %v88_v24 = vunpack.c.l.bf16 %v1496_v15 }
   0x5   :  { %v86_v22 = vunpack.c.l.bf16 %v1491_v14  ;;  %v87_v23 = vunpack.c.h.bf16 %v1491_v14  ;;  %v89_v25 = vunpack.c.h.bf16 %v1496_v15  ;;  %v90_v30 = vunpack.c.l.bf16 %v1501_v20 }
   0x6   :  { %v1512_v26 = vrot.slane %v206_v2, %v210_v16  ;;  %v1514_v27 = vrot.slane %v206_v2, %v214_v17  ;;  %v1516_v28 = vrot.slane %v346_v9, %v210_v16  ;;  %v1518_v29 = vrot.slane %v346_v9, %v214_v17 }
   0x7   :  { %v91_v31 = vunpack.c.h.bf16 %v1501_v20  ;;  %v92_v32 = vunpack.c.l.bf16 %v1506_v21  ;;  %v93_v33 = vunpack.c.h.bf16 %v1506_v21 }
   0x8   :  { %v218_v34 = vmul.f32 %v1512_v26, %v78_v3  ;;  %v219_v35 = vmul.f32 %v1514_v27, %v79_v4  ;;  %v220_v36 = vmul.f32 %v1512_v26, %v80_v10  ;;  %v221_v37 = vmul.f32 %v1514_v27, %v81_v11 }
   0x9   :  { %v222_v38 = vmul.f32 %v1512_v26, %v82_v12  ;;  %v223_v39 = vmul.f32 %v1514_v27, %v83_v13  ;;  %v224_v40 = vmul.f32 %v1512_v26, %v84_v18  ;;  %v225_v41 = vmul.f32 %v1514_v27, %v85_v19 }
   0xa   :  { %v358_v42 = vadd.f32 %v1516_v28, %v218_v34  ;;  %v359_v43 = vadd.f32 %v1518_v29, %v219_v35  ;;  %v360_v44 = vadd.f32 %v1516_v28, %v220_v36  ;;  %v361_v45 = vadd.f32 %v1518_v29, %v221_v37  ;;  %v23_v37 = vld [vmem:[%s2144_s0 + $0x48] sm:$0xff] }
   0xb   :  { %v362_v46 = vadd.f32 %v1516_v28, %v222_v38  ;;  %v363_v47 = vadd.f32 %v1518_v29, %v223_v39  ;;  %v364_v48 = vadd.f32 %v1516_v28, %v224_v40  ;;  %v365_v49 = vadd.f32 %v1518_v29, %v225_v41 }
   0xc   :  { %vm486_vm0 = vcmp.ge.f32.partialorder %v358_v42, 0.0  ;;  %vm487_vm1 = vcmp.ge.f32.partialorder %v359_v43, 0.0  ;;  %v614_v50 = vmul.f32 0.2, %v358_v42  ;;  %v615_v51 = vmul.f32 0.2, %v359_v43 }
   0xd   :  { %vm488_vm2 = vcmp.ge.f32.partialorder %v360_v44, 0.0  ;;  %vm489_vm3 = vcmp.ge.f32.partialorder %v361_v45, 0.0  ;;  %v616_v52 = vmul.f32 0.2, %v360_v44  ;;  %v617_v53 = vmul.f32 0.2, %v361_v45 }
   0xe   :  { %v742_v54 = vsel %vm486_vm0, %v358_v42, %v614_v50  ;;  %v743_v55 = vsel %vm487_vm1, %v359_v43, %v615_v51  ;;  %vm490_vm4 = vcmp.ge.f32.partialorder %v362_v46, 0.0  ;;  %vm491_vm5 = vcmp.ge.f32.partialorder %v363_v47, 0.0 }
   0xf   :  { %v1386_v56 = vpack.c.bf16 %v743_v55, %v742_v54  ;;  %v744_v57 = vsel %vm488_vm2, %v360_v44, %v616_v52  ;;  %v745_v58 = vsel %vm489_vm3, %v361_v45, %v617_v53  ;;  %v618_v59 = vmul.f32 0.2, %v362_v46 }
  0x10   :  { %v1387_v60 = vpack.c.bf16 %v745_v58, %v744_v57  ;;  %v619_v61 = vmul.f32 0.2, %v363_v47  ;;  %vm492_vm6 = vcmp.ge.f32.partialorder %v364_v48, 0.0  ;;  %vm493_vm7 = vcmp.ge.f32.partialorder %v365_v49, 0.0 }
  0x11   :  { %1254 = vst [vmem:[%s2147_s3] sm:$0xff] %v1386_v56  ;;  %v746_v62 = vsel %vm490_vm4, %v362_v46, %v618_v59  ;;  %v620_v63 = vmul.f32 0.2, %v364_v48  ;;  %v621_v0 = vmul.f32 0.2, %v365_v49  ;;  %v226_v1 = vmul.f32 %v1512_v26, %v86_v22  ;;  %v24_v46 = vld [vmem:[%s2144_s0 + $0x50] sm:$0xff] }
  0x12   :  { %1255 = vst [vmem:[%s2147_s3 + $0x8] sm:$0xff] %v1387_v60  ;;  %v747_v2 = vsel %vm491_vm5, %v363_v47, %v619_v61  ;;  %v227_v3 = vmul.f32 %v1514_v27, %v87_v23  ;;  %v228_v4 = vmul.f32 %v1512_v26, %v88_v24  ;;  %v229_v5 = vmul.f32 %v1514_v27, %v89_v25 }
  0x13   :  { %v1388_v6 = vpack.c.bf16 %v747_v2, %v746_v62  ;;  %v748_v7 = vsel %vm492_vm6, %v364_v48, %v620_v63  ;;  %v749_v8 = vsel %vm493_vm7, %v365_v49, %v621_v0  ;;  %v366_v9 = vadd.f32 %v1516_v28, %v226_v1  ;;  %v25_v1 = vld [vmem:[%s2144_s0 + $0x58] sm:$0xff] }
  0x14   :  { %v1389_v10 = vpack.c.bf16 %v749_v8, %v748_v7  ;;  %v367_v11 = vadd.f32 %v1518_v29, %v227_v3  ;;  %v368_v12 = vadd.f32 %v1516_v28, %v228_v4  ;;  %v369_v13 = vadd.f32 %v1518_v29, %v229_v5 }
  0x15   :  { %1256 = vst [vmem:[%s2147_s3 + $0x10] sm:$0xff] %v1388_v6  ;;  %vm494_vm8 = vcmp.ge.f32.partialorder %v366_v9, 0.0  ;;  %v622_v14 = vmul.f32 0.2, %v366_v9  ;;  %v230_v15 = vmul.f32 %v1512_v26, %v90_v30  ;;  %v231_v16 = vmul.f32 %v1514_v27, %v91_v31  ;;  %v22_v31 = vld [vmem:[%s2144_s0 + $0x40] sm:$0xff] }
  0x16   :  { %1257 = vst [vmem:[%s2147_s3 + $0x18] sm:$0xff] %v1389_v10  ;;  %vm495_vm9 = vcmp.ge.f32.partialorder %v367_v11, 0.0  ;;  %v623_v17 = vmul.f32 0.2, %v367_v11  ;;  %vm496_vm10 = vcmp.ge.f32.partialorder %v368_v12, 0.0  ;;  %vm497_vm11 = vcmp.ge.f32.partialorder %v369_v13, 0.0 }
  0x17   :  { %v750_v18 = vsel %vm494_vm8, %v366_v9, %v622_v14  ;;  %v624_v19 = vmul.f32 0.2, %v368_v12  ;;  %v625_v20 = vmul.f32 0.2, %v369_v13  ;;  %v370_v22 = vadd.f32 %v1516_v28, %v230_v15  ;;  %v26_v10 = vld [vmem:[%s2144_s0 + $0x60] sm:$0xff]  ;;  %v27_v15 = vld [vmem:[%s2144_s0 + $0x68] sm:$0xff] }
  0x18   :  { %v751_v23 = vsel %vm495_vm9, %v367_v11, %v623_v17  ;;  %v371_v24 = vadd.f32 %v1518_v29, %v231_v16  ;;  %v232_v25 = vmul.f32 %v1512_v26, %v92_v32  ;;  %v233_v30 = vmul.f32 %v1514_v27, %v93_v33 }
  0x19   :  { %v1390_v34 = vpack.c.bf16 %v751_v23, %v750_v18  ;;  %v752_v35 = vsel %vm496_vm10, %v368_v12, %v624_v19  ;;  %v753_v36 = vsel %vm497_vm11, %v369_v13, %v625_v20  ;;  %vm498_vm12 = vcmp.ge.f32.partialorder %v370_v22, 0.0 }
  0x1a   :  { %v1391_v38 = vpack.c.bf16 %v753_v36, %v752_v35  ;;  %vm499_vm13 = vcmp.ge.f32.partialorder %v371_v24, 0.0  ;;  %v626_v39 = vmul.f32 0.2, %v370_v22  ;;  %v627_v32 = vmul.f32 0.2, %v371_v24 }
  0x1b   :  { %1258 = vst [vmem:[%s2147_s3 + $0x20] sm:$0xff] %v1390_v34  ;;  %v372_v21 = vadd.f32 %v1516_v28, %v232_v25  ;;  %v373_v33 = vadd.f32 %v1518_v29, %v233_v30  ;;  %v94_v40 = vunpack.c.l.bf16 %v22_v31  ;;  %v95_v41 = vunpack.c.h.bf16 %v22_v31 }
  0x1c   :  { %1259 = vst [vmem:[%s2147_s3 + $0x28] sm:$0xff] %v1391_v38  ;;  %v754_v42 = vsel %vm498_vm12, %v370_v22, %v626_v39  ;;  %v755_v43 = vsel %vm499_vm13, %v371_v24, %v627_v32  ;;  %v96_v44 = vunpack.c.l.bf16 %v23_v37  ;;  %v97_v45 = vunpack.c.h.bf16 %v23_v37  ;;  %v28_v37 = vld [vmem:[%s2144_s0 + $0x70] sm:$0xff] }
  0x1d   :  { %v1392_v47 = vpack.c.bf16 %v755_v43, %v754_v42  ;;  %vm500_vm14 = vcmp.ge.f32.partialorder %v372_v21, 0.0  ;;  %vm501_vm15 = vcmp.ge.f32.partialorder %v373_v33, 0.0  ;;  %v628_v48 = vmul.f32 0.2, %v372_v21 }
  0x1e   :  { %v629_v49 = vmul.f32 0.2, %v373_v33  ;;  %v234_v50 = vmul.f32 %v1512_v26, %v94_v40  ;;  %v235_v51 = vmul.f32 %v1514_v27, %v95_v41  ;;  %v236_v52 = vmul.f32 %v1512_v26, %v96_v44 }
  0x1f   :  { %1260 = vst [vmem:[%s2147_s3 + $0x30] sm:$0xff] %v1392_v47  ;;  %v756_v53 = vsel %vm500_vm14, %v372_v21, %v628_v48  ;;  %v237_v54 = vmul.f32 %v1514_v27, %v97_v45  ;;  %v98_v55 = vunpack.c.l.bf16 %v24_v46  ;;  %v99_v56 = vunpack.c.h.bf16 %v24_v46 }
  0x20   :  { %v757_v57 = vsel %vm501_vm15, %v373_v33, %v629_v49  ;;  %v374_v58 = vadd.f32 %v1516_v28, %v234_v50  ;;  %v375_v59 = vadd.f32 %v1518_v29, %v235_v51  ;;  %v376_v60 = vadd.f32 %v1516_v28, %v236_v52 }
  0x21   :  { %v1393_v61 = vpack.c.bf16 %v757_v57, %v756_v53  ;;  %v377_v62 = vadd.f32 %v1518_v29, %v237_v54  ;;  %v238_v63 = vmul.f32 %v1512_v26, %v98_v55  ;;  %v239_v0 = vmul.f32 %v1514_v27, %v99_v56  ;;  %v29_v53 = vld [vmem:[%s2144_s0 + $0x78] sm:$0xff] }
  0x22   :  { %vm502_vm0 = vcmp.ge.f32.partialorder %v374_v58, 0.0  ;;  %vm503_vm1 = vcmp.ge.f32.partialorder %v375_v59, 0.0  ;;  %v630_v2 = vmul.f32 0.2, %v374_v58  ;;  %v631_v3 = vmul.f32 0.2, %v375_v59 }
  0x23   :  { %1261 = vst [vmem:[%s2147_s3 + $0x38] sm:$0xff] %v1393_v61  ;;  %vm504_vm2 = vcmp.ge.f32.partialorder %v376_v60, 0.0  ;;  %vm505_vm3 = vcmp.ge.f32.partialorder %v377_v62, 0.0  ;;  %v632_v4 = vmul.f32 0.2, %v376_v60  ;;  %v378_v8 = vadd.f32 %v1516_v28, %v238_v63 }
  0x24   :  { %v633_v5 = vmul.f32 0.2, %v377_v62  ;;  %v758_v6 = vsel %vm502_vm0, %v374_v58, %v630_v2  ;;  %v759_v7 = vsel %vm503_vm1, %v375_v59, %v631_v3  ;;  %v379_v9 = vadd.f32 %v1518_v29, %v239_v0  ;;  %v30_v58 = vld [vmem:[%s2144_s0 + $0x80] sm:$0xff]  ;;  %v31_v59 = vld [vmem:[%s2144_s0 + $0x88] sm:$0xff] }
  0x25   :  { %v1394_v11 = vpack.c.bf16 %v759_v7, %v758_v6  ;;  %v760_v12 = vsel %vm504_vm2, %v376_v60, %v632_v4  ;;  %v100_v14 = vunpack.c.l.bf16 %v25_v1  ;;  %vm506_vm4 = vcmp.ge.f32.partialorder %v378_v8, 0.0 }
  0x26   :  { %v761_v13 = vsel %vm505_vm3, %v377_v62, %v633_v5  ;;  %vm507_vm5 = vcmp.ge.f32.partialorder %v379_v9, 0.0  ;;  %v634_v17 = vmul.f32 0.2, %v378_v8  ;;  %v635_v18 = vmul.f32 0.2, %v379_v9 }
  0x27   :  { %v1395_v16 = vpack.c.bf16 %v761_v13, %v760_v12  ;;  %1262 = vst [vmem:[%s2147_s3 + $0x40] sm:$0xff] %v1394_v11  ;;  %v101_v19 = vunpack.c.h.bf16 %v25_v1  ;;  %v240_v20 = vmul.f32 %v1512_v26, %v100_v14  ;;  %v102_v22 = vunpack.c.l.bf16 %v26_v10 }
  0x28   :  { %v762_v23 = vsel %vm506_vm4, %v378_v8, %v634_v17  ;;  %v103_v24 = vunpack.c.h.bf16 %v26_v10  ;;  %v104_v25 = vunpack.c.l.bf16 %v27_v15  ;;  %v105_v30 = vunpack.c.h.bf16 %v27_v15 }
  0x29   :  { %1263 = vst [vmem:[%s2147_s3 + $0x48] sm:$0xff] %v1395_v16  ;;  %v763_v31 = vsel %vm507_vm5, %v379_v9, %v635_v18  ;;  %v241_v34 = vmul.f32 %v1514_v27, %v101_v19  ;;  %v380_v35 = vadd.f32 %v1516_v28, %v240_v20  ;;  %v242_v36 = vmul.f32 %v1512_v26, %v102_v22 }
  0x2a   :  { %v1396_v38 = vpack.c.bf16 %v763_v31, %v762_v23  ;;  %v243_v39 = vmul.f32 %v1514_v27, %v103_v24  ;;  %v244_v32 = vmul.f32 %v1512_v26, %v104_v25  ;;  %v245_v21 = vmul.f32 %v1514_v27, %v105_v30  ;;  %v32_v25 = vld [vmem:[%s2144_s0 + $0x90] sm:$0xff] }
  0x2b   :  { %v381_v33 = vadd.f32 %v1518_v29, %v241_v34  ;;  %vm508_vm6 = vcmp.ge.f32.partialorder %v380_v35, 0.0  ;;  %v636_v40 = vmul.f32 0.2, %v380_v35  ;;  %v382_v41 = vadd.f32 %v1516_v28, %v242_v36 }
  0x2c   :  { %1264 = vst [vmem:[%s2147_s3 + $0x50] sm:$0xff] %v1396_v38  ;;  %v383_v42 = vadd.f32 %v1518_v29, %v243_v39  ;;  %v384_v43 = vadd.f32 %v1516_v28, %v244_v32  ;;  %v385_v44 = vadd.f32 %v1518_v29, %v245_v21  ;;  %v106_v45 = vunpack.c.l.bf16 %v28_v37 }
  0x2d   :  { %vm509_vm7 = vcmp.ge.f32.partialorder %v381_v33, 0.0  ;;  %v637_v46 = vmul.f32 0.2, %v381_v33  ;;  %v764_v47 = vsel %vm508_vm6, %v380_v35, %v636_v40  ;;  %vm510_vm8 = vcmp.ge.f32.partialorder %v382_v41, 0.0 }
  0x2e   :  { %vm511_vm9 = vcmp.ge.f32.partialorder %v383_v42, 0.0  ;;  %v638_v48 = vmul.f32 0.2, %v382_v41  ;;  %v639_v49 = vmul.f32 0.2, %v383_v42  ;;  %vm512_vm10 = vcmp.ge.f32.partialorder %v384_v43, 0.0 }
  0x2f   :  { %v765_v50 = vsel %vm509_vm7, %v381_v33, %v637_v46  ;;  %vm513_vm11 = vcmp.ge.f32.partialorder %v385_v44, 0.0  ;;  %v640_v51 = vmul.f32 0.2, %v384_v43  ;;  %v641_v52 = vmul.f32 0.2, %v385_v44  ;;  %v33_v33 = vld [vmem:[%s2144_s0 + $0x98] sm:$0xff] }
  0x30   :  { %v1397_v54 = vpack.c.bf16 %v765_v50, %v764_v47  ;;  %v766_v55 = vsel %vm510_vm8, %v382_v41, %v638_v48  ;;  %v767_v56 = vsel %vm511_vm9, %v383_v42, %v639_v49  ;;  %v107_v57 = vunpack.c.h.bf16 %v28_v37 }
  0x31   :  { %v1398_v60 = vpack.c.bf16 %v767_v56, %v766_v55  ;;  %v768_v61 = vsel %vm512_vm10, %v384_v43, %v640_v51  ;;  %v769_v62 = vsel %vm513_vm11, %v385_v44, %v641_v52  ;;  %v246_v63 = vmul.f32 %v1512_v26, %v106_v45  ;;  %v34_v44 = vld [vmem:[%s2144_s0 + $0xa0] sm:$0xff] }
  0x32   :  { %1265 = vst [vmem:[%s2147_s3 + $0x58] sm:$0xff] %v1397_v54  ;;  %v1399_v0 = vpack.c.bf16 %v769_v62, %v768_v61  ;;  %v247_v1 = vmul.f32 %v1514_v27, %v107_v57  ;;  %v108_v2 = vunpack.c.l.bf16 %v29_v53  ;;  %v109_v3 = vunpack.c.h.bf16 %v29_v53 }
  0x33   :  { %1266 = vst [vmem:[%s2147_s3 + $0x60] sm:$0xff] %v1398_v60  ;;  %v386_v4 = vadd.f32 %v1516_v28, %v246_v63  ;;  %v110_v5 = vunpack.c.l.bf16 %v30_v58  ;;  %v111_v6 = vunpack.c.h.bf16 %v30_v58  ;;  %v112_v7 = vunpack.c.l.bf16 %v31_v59 }
  0x34   :  { %1267 = vst [vmem:[%s2147_s3 + $0x68] sm:$0xff] %v1399_v0  ;;  %v387_v8 = vadd.f32 %v1518_v29, %v247_v1  ;;  %v248_v9 = vmul.f32 %v1512_v26, %v108_v2  ;;  %v249_v10 = vmul.f32 %v1514_v27, %v109_v3  ;;  %v113_v11 = vunpack.c.h.bf16 %v31_v59  ;;  %v35_v59 = vld [vmem:[%s2144_s0 + $0xa8] sm:$0xff] }
  0x35   :  { %vm514_vm12 = vcmp.ge.f32.partialorder %v386_v4, 0.0  ;;  %v642_v12 = vmul.f32 0.2, %v386_v4  ;;  %v250_v13 = vmul.f32 %v1512_v26, %v110_v5  ;;  %v251_v14 = vmul.f32 %v1514_v27, %v111_v6 }
  0x36   :  { %vm515_vm13 = vcmp.ge.f32.partialorder %v387_v8, 0.0  ;;  %v643_v15 = vmul.f32 0.2, %v387_v8  ;;  %v388_v16 = vadd.f32 %v1516_v28, %v248_v9  ;;  %v389_v17 = vadd.f32 %v1518_v29, %v249_v10 }
  0x37   :  { %v770_v18 = vsel %vm514_vm12, %v386_v4, %v642_v12  ;;  %v390_v19 = vadd.f32 %v1516_v28, %v250_v13  ;;  %v391_v20 = vadd.f32 %v1518_v29, %v251_v14  ;;  %v252_v22 = vmul.f32 %v1512_v26, %v112_v7  ;;  %v36_v12 = vld [vmem:[%s2144_s0 + $0xb0] sm:$0xff] }
  0x38   :  { %v771_v23 = vsel %vm515_vm13, %v387_v8, %v643_v15  ;;  %vm516_vm14 = vcmp.ge.f32.partialorder %v388_v16, 0.0  ;;  %vm517_vm15 = vcmp.ge.f32.partialorder %v389_v17, 0.0  ;;  %v644_v24 = vmul.f32 0.2, %v388_v16 }
  0x39   :  { %v1400_v30 = vpack.c.bf16 %v771_v23, %v770_v18  ;;  %v645_v31 = vmul.f32 0.2, %v389_v17  ;;  %vm518_vm0 = vcmp.ge.f32.partialorder %v390_v19, 0.0  ;;  %vm519_vm1 = vcmp.ge.f32.partialorder %v391_v20, 0.0 }
  0x3a   :  { %v772_v34 = vsel %vm516_vm14, %v388_v16, %v644_v24  ;;  %v646_v35 = vmul.f32 0.2, %v390_v19  ;;  %v647_v36 = vmul.f32 0.2, %v391_v20  ;;  %v253_v37 = vmul.f32 %v1514_v27, %v113_v11  ;;  %v37_v16 = vld [vmem:[%s2144_s0 + $0xb8] sm:$0xff] }
  0x3b   :  { %1268 = vst [vmem:[%s2147_s3 + $0x70] sm:$0xff] %v1400_v30  ;;  %v773_v38 = vsel %vm517_vm15, %v389_v17, %v645_v31  ;;  %v392_v39 = vadd.f32 %v1516_v28, %v252_v22  ;;  %v114_v32 = vunpack.c.l.bf16 %v32_v25  ;;  %v115_v21 = vunpack.c.h.bf16 %v32_v25 }
  0x3c   :  { %v1401_v40 = vpack.c.bf16 %v773_v38, %v772_v34  ;;  %v774_v41 = vsel %vm518_vm0, %v390_v19, %v646_v35  ;;  %v775_v42 = vsel %vm519_vm1, %v391_v20, %v647_v36  ;;  %v393_v43 = vadd.f32 %v1518_v29, %v253_v37 }
  0x3d   :  { %v1402_v45 = vpack.c.bf16 %v775_v42, %v774_v41  ;;  %vm520_vm2 = vcmp.ge.f32.partialorder %v392_v39, 0.0  ;;  %v648_v46 = vmul.f32 0.2, %v392_v39  ;;  %v254_v47 = vmul.f32 %v1512_v26, %v114_v32 }
  0x3e   :  { %1269 = vst [vmem:[%s2147_s3 + $0x78] sm:$0xff] %v1401_v40  ;;  %vm521_vm3 = vcmp.ge.f32.partialorder %v393_v43, 0.0  ;;  %v649_v48 = vmul.f32 0.2, %v393_v43  ;;  %v255_v49 = vmul.f32 %v1514_v27, %v115_v21  ;;  %v116_v50 = vunpack.c.l.bf16 %v33_v33 }
  0x3f   :  { %1270 = vst [vmem:[%s2147_s3 + $0x80] sm:$0xff] %v1402_v45  ;;  %v776_v51 = vsel %vm520_vm2, %v392_v39, %v648_v46  ;;  %v394_v52 = vadd.f32 %v1516_v28, %v254_v47  ;;  %v117_v53 = vunpack.c.h.bf16 %v33_v33  ;;  %v118_v54 = vunpack.c.l.bf16 %v34_v44  ;;  %v38_v39 = vld [vmem:[%s2144_s0 + $0xc0] sm:$0xff] }
  0x40   :  { %v777_v55 = vsel %vm521_vm3, %v393_v43, %v649_v48  ;;  %v395_v56 = vadd.f32 %v1518_v29, %v255_v49  ;;  %v256_v57 = vmul.f32 %v1512_v26, %v116_v50  ;;  %v119_v58 = vunpack.c.h.bf16 %v34_v44  ;;  %v39_v50 = vld [vmem:[%s2144_s0 + $0xc8] sm:$0xff] }
  0x41   :  { %v1403_v60 = vpack.c.bf16 %v777_v55, %v776_v51  ;;  %vm522_vm4 = vcmp.ge.f32.partialorder %v394_v52, 0.0  ;;  %v650_v61 = vmul.f32 0.2, %v394_v52  ;;  %v257_v62 = vmul.f32 %v1514_v27, %v117_v53 }
  0x42   :  { %vm523_vm5 = vcmp.ge.f32.partialorder %v395_v56, 0.0  ;;  %v651_v63 = vmul.f32 0.2, %v395_v56  ;;  %v396_v0 = vadd.f32 %v1516_v28, %v256_v57  ;;  %v258_v1 = vmul.f32 %v1512_v26, %v118_v54 }
  0x43   :  { %1271 = vst [vmem:[%s2147_s3 + $0x88] sm:$0xff] %v1403_v60  ;;  %v778_v2 = vsel %vm522_vm4, %v394_v52, %v650_v61  ;;  %v397_v3 = vadd.f32 %v1518_v29, %v257_v62  ;;  %v259_v4 = vmul.f32 %v1514_v27, %v119_v58  ;;  %v120_v5 = vunpack.c.l.bf16 %v35_v59  ;;  %v40_v60 = vld [vmem:[%s2144_s0 + $0xd0] sm:$0xff]  ;;  %v41_v61 = vld [vmem:[%s2144_s0 + $0xd8] sm:$0xff] }
  0x44   :  { %v779_v6 = vsel %vm523_vm5, %v395_v56, %v651_v63  ;;  %vm524_vm6 = vcmp.ge.f32.partialorder %v396_v0, 0.0  ;;  %v652_v7 = vmul.f32 0.2, %v396_v0  ;;  %v398_v8 = vadd.f32 %v1516_v28, %v258_v1 }
  0x45   :  { %v1404_v9 = vpack.c.bf16 %v779_v6, %v778_v2  ;;  %vm525_vm7 = vcmp.ge.f32.partialorder %v397_v3, 0.0  ;;  %v653_v10 = vmul.f32 0.2, %v397_v3  ;;  %v399_v11 = vadd.f32 %v1518_v29, %v259_v4 }
  0x46   :  { %v780_v13 = vsel %vm524_vm6, %v396_v0, %v652_v7  ;;  %vm526_vm8 = vcmp.ge.f32.partialorder %v398_v8, 0.0  ;;  %v654_v14 = vmul.f32 0.2, %v398_v8  ;;  %v121_v15 = vunpack.c.h.bf16 %v35_v59 }
  0x47   :  { %1272 = vst [vmem:[%s2147_s3 + $0x90] sm:$0xff] %v1404_v9  ;;  %v781_v17 = vsel %vm525_vm7, %v397_v3, %v653_v10  ;;  %vm527_vm9 = vcmp.ge.f32.partialorder %v399_v11, 0.0  ;;  %v655_v18 = vmul.f32 0.2, %v399_v11  ;;  %v260_v19 = vmul.f32 %v1512_v26, %v120_v5 }
  0x48   :  { %v1405_v20 = vpack.c.bf16 %v781_v17, %v780_v13  ;;  %v782_v22 = vsel %vm526_vm8, %v398_v8, %v654_v14  ;;  %v261_v23 = vmul.f32 %v1514_v27, %v121_v15  ;;  %v122_v24 = vunpack.c.l.bf16 %v36_v12 }
  0x49   :  { %v783_v25 = vsel %vm527_vm9, %v399_v11, %v655_v18  ;;  %v400_v30 = vadd.f32 %v1516_v28, %v260_v19  ;;  %v123_v31 = vunpack.c.h.bf16 %v36_v12  ;;  %v124_v34 = vunpack.c.l.bf16 %v37_v16 }
  0x4a   :  { %1273 = vst [vmem:[%s2147_s3 + $0x98] sm:$0xff] %v1405_v20  ;;  %v1406_v35 = vpack.c.bf16 %v783_v25, %v782_v22  ;;  %v401_v36 = vadd.f32 %v1518_v29, %v261_v23  ;;  %v262_v37 = vmul.f32 %v1512_v26, %v122_v24  ;;  %v125_v38 = vunpack.c.h.bf16 %v37_v16 }
  0x4b   :  { %vm528_vm10 = vcmp.ge.f32.partialorder %v400_v30, 0.0  ;;  %v656_v32 = vmul.f32 0.2, %v400_v30  ;;  %v263_v21 = vmul.f32 %v1514_v27, %v123_v31  ;;  %v264_v33 = vmul.f32 %v1512_v26, %v124_v34  ;;  %v42_v31 = vld [vmem:[%s2144_s0 + $0xe0] sm:$0xff] }
  0x4c   :  { %1274 = vst [vmem:[%s2147_s3 + $0xa0] sm:$0xff] %v1406_v35  ;;  %vm529_vm11 = vcmp.ge.f32.partialorder %v401_v36, 0.0  ;;  %v657_v40 = vmul.f32 0.2, %v401_v36  ;;  %v402_v41 = vadd.f32 %v1516_v28, %v262_v37  ;;  %v265_v42 = vmul.f32 %v1514_v27, %v125_v38  ;;  %v43_v37 = vld [vmem:[%s2144_s0 + $0xe8] sm:$0xff] }
  0x4d   :  { %v784_v43 = vsel %vm528_vm10, %v400_v30, %v656_v32  ;;  %v403_v44 = vadd.f32 %v1518_v29, %v263_v21  ;;  %v404_v45 = vadd.f32 %v1516_v28, %v264_v33  ;;  %v126_v46 = vunpack.c.l.bf16 %v38_v39 }
  0x4e   :  { %v785_v47 = vsel %vm529_vm11, %v401_v36, %v657_v40  ;;  %vm530_vm12 = vcmp.ge.f32.partialorder %v402_v41, 0.0  ;;  %v658_v48 = vmul.f32 0.2, %v402_v41  ;;  %v405_v49 = vadd.f32 %v1518_v29, %v265_v42 }
  0x4f   :  { %v1407_v51 = vpack.c.bf16 %v785_v47, %v784_v43  ;;  %vm531_vm13 = vcmp.ge.f32.partialorder %v403_v44, 0.0  ;;  %v659_v52 = vmul.f32 0.2, %v403_v44  ;;  %vm532_vm14 = vcmp.ge.f32.partialorder %v404_v45, 0.0 }
  0x50   :  { %v786_v53 = vsel %vm530_vm12, %v402_v41, %v658_v48  ;;  %vm533_vm15 = vcmp.ge.f32.partialorder %v405_v49, 0.0  ;;  %v660_v54 = vmul.f32 0.2, %v404_v45  ;;  %v661_v55 = vmul.f32 0.2, %v405_v49 }
  0x51   :  { %1275 = vst [vmem:[%s2147_s3 + $0xa8] sm:$0xff] %v1407_v51  ;;  %v787_v56 = vsel %vm531_vm13, %v403_v44, %v659_v52  ;;  %v127_v57 = vunpack.c.h.bf16 %v38_v39  ;;  %v266_v58 = vmul.f32 %v1512_v26, %v126_v46  ;;  %v128_v59 = vunpack.c.l.bf16 %v39_v50  ;;  %v44_v46 = vld [vmem:[%s2144_s0 + $0xf0] sm:$0xff] }
  0x52   :  { %v1408_v62 = vpack.c.bf16 %v787_v56, %v786_v53  ;;  %v788_v63 = vsel %vm532_vm14, %v404_v45, %v660_v54  ;;  %v789_v0 = vsel %vm533_vm15, %v405_v49, %v661_v55  ;;  %v129_v1 = vunpack.c.h.bf16 %v39_v50 }
  0x53   :  { %v1409_v2 = vpack.c.bf16 %v789_v0, %v788_v63  ;;  %v267_v3 = vmul.f32 %v1514_v27, %v127_v57  ;;  %v406_v4 = vadd.f32 %v1516_v28, %v266_v58  ;;  %v268_v5 = vmul.f32 %v1512_v26, %v128_v59 }
  0x54   :  { %1276 = vst [vmem:[%s2147_s3 + $0xb0] sm:$0xff] %v1408_v62  ;;  %v269_v6 = vmul.f32 %v1514_v27, %v129_v1  ;;  %v130_v7 = vunpack.c.l.bf16 %v40_v60  ;;  %v131_v8 = vunpack.c.h.bf16 %v40_v60  ;;  %v132_v9 = vunpack.c.l.bf16 %v41_v61  ;;  %v45_v1 = vld [vmem:[%s2144_s0 + $0xf8] sm:$0xff] }
  0x55   :  { %1277 = vst [vmem:[%s2147_s3 + $0xb8] sm:$0xff] %v1409_v2  ;;  %v407_v10 = vadd.f32 %v1518_v29, %v267_v3  ;;  %vm534_vm0 = vcmp.ge.f32.partialorder %v406_v4, 0.0  ;;  %v662_v11 = vmul.f32 0.2, %v406_v4  ;;  %v408_v12 = vadd.f32 %v1516_v28, %v268_v5 }
  0x56   :  { %v409_v13 = vadd.f32 %v1518_v29, %v269_v6  ;;  %v270_v14 = vmul.f32 %v1512_v26, %v130_v7  ;;  %v271_v15 = vmul.f32 %v1514_v27, %v131_v8  ;;  %v133_v16 = vunpack.c.h.bf16 %v41_v61 }
  0x57   :  { %vm535_vm1 = vcmp.ge.f32.partialorder %v407_v10, 0.0  ;;  %v663_v17 = vmul.f32 0.2, %v407_v10  ;;  %v790_v18 = vsel %vm534_vm0, %v406_v4, %v662_v11  ;;  %vm536_vm2 = vcmp.ge.f32.partialorder %v408_v12, 0.0 }
  0x58   :  { %vm537_vm3 = vcmp.ge.f32.partialorder %v409_v13, 0.0  ;;  %v664_v19 = vmul.f32 0.2, %v408_v12  ;;  %v665_v20 = vmul.f32 0.2, %v409_v13  ;;  %v410_v22 = vadd.f32 %v1516_v28, %v270_v14 }
  0x59   :  { %v791_v23 = vsel %vm535_vm1, %v407_v10, %v663_v17  ;;  %v411_v24 = vadd.f32 %v1518_v29, %v271_v15  ;;  %v272_v25 = vmul.f32 %v1512_v26, %v132_v9  ;;  %v273_v30 = vmul.f32 %v1514_v27, %v133_v16  ;;  %v46_v10 = vld [vmem:[%s2144_s0 + $0x100] sm:$0xff]  ;;  %v47_v15 = vld [vmem:[%s2144_s0 + $0x108] sm:$0xff] }
  0x5a   :  { %v1410_v34 = vpack.c.bf16 %v791_v23, %v790_v18  ;;  %v792_v35 = vsel %vm536_vm2, %v408_v12, %v664_v19  ;;  %v793_v36 = vsel %vm537_vm3, %v409_v13, %v665_v20  ;;  %vm538_vm4 = vcmp.ge.f32.partialorder %v410_v22, 0.0 }
  0x5b   :  { %v1411_v38 = vpack.c.bf16 %v793_v36, %v792_v35  ;;  %vm539_vm5 = vcmp.ge.f32.partialorder %v411_v24, 0.0  ;;  %v666_v39 = vmul.f32 0.2, %v410_v22  ;;  %v667_v32 = vmul.f32 0.2, %v411_v24 }
  0x5c   :  { %1278 = vst [vmem:[%s2147_s3 + $0xc0] sm:$0xff] %v1410_v34  ;;  %v412_v21 = vadd.f32 %v1516_v28, %v272_v25  ;;  %v413_v33 = vadd.f32 %v1518_v29, %v273_v30  ;;  %v134_v40 = vunpack.c.l.bf16 %v42_v31  ;;  %v135_v41 = vunpack.c.h.bf16 %v42_v31 }
  0x5d   :  { %1279 = vst [vmem:[%s2147_s3 + $0xc8] sm:$0xff] %v1411_v38  ;;  %v794_v42 = vsel %vm538_vm4, %v410_v22, %v666_v39  ;;  %v795_v43 = vsel %vm539_vm5, %v411_v24, %v667_v32  ;;  %v136_v44 = vunpack.c.l.bf16 %v43_v37  ;;  %v137_v45 = vunpack.c.h.bf16 %v43_v37  ;;  %v48_v37 = vld [vmem:[%s2144_s0 + $0x110] sm:$0xff] }
  0x5e   :  { %v1412_v47 = vpack.c.bf16 %v795_v43, %v794_v42  ;;  %vm540_vm6 = vcmp.ge.f32.partialorder %v412_v21, 0.0  ;;  %vm541_vm7 = vcmp.ge.f32.partialorder %v413_v33, 0.0  ;;  %v668_v48 = vmul.f32 0.2, %v412_v21 }
  0x5f   :  { %v669_v49 = vmul.f32 0.2, %v413_v33  ;;  %v274_v50 = vmul.f32 %v1512_v26, %v134_v40  ;;  %v275_v51 = vmul.f32 %v1514_v27, %v135_v41  ;;  %v276_v52 = vmul.f32 %v1512_v26, %v136_v44 }
  0x60   :  { %1280 = vst [vmem:[%s2147_s3 + $0xd0] sm:$0xff] %v1412_v47  ;;  %v796_v53 = vsel %vm540_vm6, %v412_v21, %v668_v48  ;;  %v277_v54 = vmul.f32 %v1514_v27, %v137_v45  ;;  %v138_v55 = vunpack.c.l.bf16 %v44_v46  ;;  %v139_v56 = vunpack.c.h.bf16 %v44_v46 }
  0x61   :  { %v797_v57 = vsel %vm541_vm7, %v413_v33, %v669_v49  ;;  %v414_v58 = vadd.f32 %v1516_v28, %v274_v50  ;;  %v415_v59 = vadd.f32 %v1518_v29, %v275_v51  ;;  %v416_v60 = vadd.f32 %v1516_v28, %v276_v52 }
  0x62   :  { %v1413_v61 = vpack.c.bf16 %v797_v57, %v796_v53  ;;  %v417_v62 = vadd.f32 %v1518_v29, %v277_v54  ;;  %v278_v63 = vmul.f32 %v1512_v26, %v138_v55  ;;  %v279_v0 = vmul.f32 %v1514_v27, %v139_v56  ;;  %v49_v53 = vld [vmem:[%s2144_s0 + $0x118] sm:$0xff] }
  0x63   :  { %vm542_vm8 = vcmp.ge.f32.partialorder %v414_v58, 0.0  ;;  %vm543_vm9 = vcmp.ge.f32.partialorder %v415_v59, 0.0  ;;  %v670_v2 = vmul.f32 0.2, %v414_v58  ;;  %v671_v3 = vmul.f32 0.2, %v415_v59 }
  0x64   :  { %1281 = vst [vmem:[%s2147_s3 + $0xd8] sm:$0xff] %v1413_v61  ;;  %vm544_vm10 = vcmp.ge.f32.partialorder %v416_v60, 0.0  ;;  %vm545_vm11 = vcmp.ge.f32.partialorder %v417_v62, 0.0  ;;  %v672_v4 = vmul.f32 0.2, %v416_v60  ;;  %v418_v8 = vadd.f32 %v1516_v28, %v278_v63 }
  0x65   :  { %v673_v5 = vmul.f32 0.2, %v417_v62  ;;  %v798_v6 = vsel %vm542_vm8, %v414_v58, %v670_v2  ;;  %v799_v7 = vsel %vm543_vm9, %v415_v59, %v671_v3  ;;  %v419_v9 = vadd.f32 %v1518_v29, %v279_v0  ;;  %v50_v58 = vld [vmem:[%s2144_s0 + $0x120] sm:$0xff]  ;;  %v51_v59 = vld [vmem:[%s2144_s0 + $0x128] sm:$0xff] }
  0x66   :  { %v1414_v11 = vpack.c.bf16 %v799_v7, %v798_v6  ;;  %v800_v12 = vsel %vm544_vm10, %v416_v60, %v672_v4  ;;  %v140_v14 = vunpack.c.l.bf16 %v45_v1  ;;  %vm546_vm12 = vcmp.ge.f32.partialorder %v418_v8, 0.0 }
  0x67   :  { %v801_v13 = vsel %vm545_vm11, %v417_v62, %v673_v5  ;;  %vm547_vm13 = vcmp.ge.f32.partialorder %v419_v9, 0.0  ;;  %v674_v17 = vmul.f32 0.2, %v418_v8  ;;  %v675_v18 = vmul.f32 0.2, %v419_v9 }
  0x68   :  { %v1415_v16 = vpack.c.bf16 %v801_v13, %v800_v12  ;;  %1282 = vst [vmem:[%s2147_s3 + $0xe0] sm:$0xff] %v1414_v11  ;;  %v141_v19 = vunpack.c.h.bf16 %v45_v1  ;;  %v280_v20 = vmul.f32 %v1512_v26, %v140_v14  ;;  %v142_v22 = vunpack.c.l.bf16 %v46_v10 }
  0x69   :  { %v802_v23 = vsel %vm546_vm12, %v418_v8, %v674_v17  ;;  %v143_v24 = vunpack.c.h.bf16 %v46_v10  ;;  %v144_v25 = vunpack.c.l.bf16 %v47_v15  ;;  %v145_v30 = vunpack.c.h.bf16 %v47_v15 }
  0x6a   :  { %1283 = vst [vmem:[%s2147_s3 + $0xe8] sm:$0xff] %v1415_v16  ;;  %v803_v31 = vsel %vm547_vm13, %v419_v9, %v675_v18  ;;  %v281_v34 = vmul.f32 %v1514_v27, %v141_v19  ;;  %v420_v35 = vadd.f32 %v1516_v28, %v280_v20  ;;  %v282_v36 = vmul.f32 %v1512_v26, %v142_v22 }
  0x6b   :  { %v1416_v38 = vpack.c.bf16 %v803_v31, %v802_v23  ;;  %v283_v39 = vmul.f32 %v1514_v27, %v143_v24  ;;  %v284_v32 = vmul.f32 %v1512_v26, %v144_v25  ;;  %v285_v21 = vmul.f32 %v1514_v27, %v145_v30  ;;  %v52_v25 = vld [vmem:[%s2144_s0 + $0x130] sm:$0xff] }
  0x6c   :  { %v421_v33 = vadd.f32 %v1518_v29, %v281_v34  ;;  %vm548_vm14 = vcmp.ge.f32.partialorder %v420_v35, 0.0  ;;  %v676_v40 = vmul.f32 0.2, %v420_v35  ;;  %v422_v41 = vadd.f32 %v1516_v28, %v282_v36 }
  0x6d   :  { %1284 = vst [vmem:[%s2147_s3 + $0xf0] sm:$0xff] %v1416_v38  ;;  %v423_v42 = vadd.f32 %v1518_v29, %v283_v39  ;;  %v424_v43 = vadd.f32 %v1516_v28, %v284_v32  ;;  %v425_v44 = vadd.f32 %v1518_v29, %v285_v21  ;;  %v146_v45 = vunpack.c.l.bf16 %v48_v37 }
  0x6e   :  { %vm549_vm15 = vcmp.ge.f32.partialorder %v421_v33, 0.0  ;;  %v677_v46 = vmul.f32 0.2, %v421_v33  ;;  %v804_v47 = vsel %vm548_vm14, %v420_v35, %v676_v40  ;;  %vm550_vm0 = vcmp.ge.f32.partialorder %v422_v41, 0.0 }
  0x6f   :  { %vm551_vm1 = vcmp.ge.f32.partialorder %v423_v42, 0.0  ;;  %v678_v48 = vmul.f32 0.2, %v422_v41  ;;  %v679_v49 = vmul.f32 0.2, %v423_v42  ;;  %vm552_vm2 = vcmp.ge.f32.partialorder %v424_v43, 0.0 }
  0x70   :  { %v805_v50 = vsel %vm549_vm15, %v421_v33, %v677_v46  ;;  %vm553_vm3 = vcmp.ge.f32.partialorder %v425_v44, 0.0  ;;  %v680_v51 = vmul.f32 0.2, %v424_v43  ;;  %v681_v52 = vmul.f32 0.2, %v425_v44  ;;  %v53_v33 = vld [vmem:[%s2144_s0 + $0x138] sm:$0xff] }
  0x71   :  { %v1417_v54 = vpack.c.bf16 %v805_v50, %v804_v47  ;;  %v806_v55 = vsel %vm550_vm0, %v422_v41, %v678_v48  ;;  %v807_v56 = vsel %vm551_vm1, %v423_v42, %v679_v49  ;;  %v147_v57 = vunpack.c.h.bf16 %v48_v37 }
  0x72   :  { %v1418_v60 = vpack.c.bf16 %v807_v56, %v806_v55  ;;  %v808_v61 = vsel %vm552_vm2, %v424_v43, %v680_v51  ;;  %v809_v62 = vsel %vm553_vm3, %v425_v44, %v681_v52  ;;  %v286_v63 = vmul.f32 %v1512_v26, %v146_v45  ;;  %v54_v44 = vld [vmem:[%s2144_s0 + $0x140] sm:$0xff] }
  0x73   :  { %1285 = vst [vmem:[%s2147_s3 + $0xf8] sm:$0xff] %v1417_v54  ;;  %v1419_v0 = vpack.c.bf16 %v809_v62, %v808_v61  ;;  %v287_v1 = vmul.f32 %v1514_v27, %v147_v57  ;;  %v148_v2 = vunpack.c.l.bf16 %v49_v53  ;;  %v149_v3 = vunpack.c.h.bf16 %v49_v53 }
  0x74   :  { %1286 = vst [vmem:[%s2147_s3 + $0x100] sm:$0xff] %v1418_v60  ;;  %v426_v4 = vadd.f32 %v1516_v28, %v286_v63  ;;  %v150_v5 = vunpack.c.l.bf16 %v50_v58  ;;  %v151_v6 = vunpack.c.h.bf16 %v50_v58  ;;  %v152_v7 = vunpack.c.l.bf16 %v51_v59 }
  0x75   :  { %1287 = vst [vmem:[%s2147_s3 + $0x108] sm:$0xff] %v1419_v0  ;;  %v427_v8 = vadd.f32 %v1518_v29, %v287_v1  ;;  %v288_v9 = vmul.f32 %v1512_v26, %v148_v2  ;;  %v289_v10 = vmul.f32 %v1514_v27, %v149_v3  ;;  %v153_v11 = vunpack.c.h.bf16 %v51_v59  ;;  %v55_v59 = vld [vmem:[%s2144_s0 + $0x148] sm:$0xff] }
  0x76   :  { %vm554_vm4 = vcmp.ge.f32.partialorder %v426_v4, 0.0  ;;  %v682_v12 = vmul.f32 0.2, %v426_v4  ;;  %v290_v13 = vmul.f32 %v1512_v26, %v150_v5  ;;  %v291_v14 = vmul.f32 %v1514_v27, %v151_v6 }
  0x77   :  { %vm555_vm5 = vcmp.ge.f32.partialorder %v427_v8, 0.0  ;;  %v683_v15 = vmul.f32 0.2, %v427_v8  ;;  %v428_v16 = vadd.f32 %v1516_v28, %v288_v9  ;;  %v429_v17 = vadd.f32 %v1518_v29, %v289_v10 }
  0x78   :  { %v810_v18 = vsel %vm554_vm4, %v426_v4, %v682_v12  ;;  %v430_v19 = vadd.f32 %v1516_v28, %v290_v13  ;;  %v431_v20 = vadd.f32 %v1518_v29, %v291_v14  ;;  %v292_v22 = vmul.f32 %v1512_v26, %v152_v7  ;;  %v56_v12 = vld [vmem:[%s2144_s0 + $0x150] sm:$0xff] }
  0x79   :  { %v811_v23 = vsel %vm555_vm5, %v427_v8, %v683_v15  ;;  %vm556_vm6 = vcmp.ge.f32.partialorder %v428_v16, 0.0  ;;  %vm557_vm7 = vcmp.ge.f32.partialorder %v429_v17, 0.0  ;;  %v684_v24 = vmul.f32 0.2, %v428_v16 }
  0x7a   :  { %v1420_v30 = vpack.c.bf16 %v811_v23, %v810_v18  ;;  %v685_v31 = vmul.f32 0.2, %v429_v17  ;;  %vm558_vm8 = vcmp.ge.f32.partialorder %v430_v19, 0.0  ;;  %vm559_vm9 = vcmp.ge.f32.partialorder %v431_v20, 0.0 }
  0x7b   :  { %v812_v34 = vsel %vm556_vm6, %v428_v16, %v684_v24  ;;  %v686_v35 = vmul.f32 0.2, %v430_v19  ;;  %v687_v36 = vmul.f32 0.2, %v431_v20  ;;  %v293_v37 = vmul.f32 %v1514_v27, %v153_v11  ;;  %v57_v16 = vld [vmem:[%s2144_s0 + $0x158] sm:$0xff] }
  0x7c   :  { %1288 = vst [vmem:[%s2147_s3 + $0x110] sm:$0xff] %v1420_v30  ;;  %v813_v38 = vsel %vm557_vm7, %v429_v17, %v685_v31  ;;  %v432_v39 = vadd.f32 %v1516_v28, %v292_v22  ;;  %v154_v32 = vunpack.c.l.bf16 %v52_v25  ;;  %v155_v21 = vunpack.c.h.bf16 %v52_v25 }
  0x7d   :  { %v1421_v40 = vpack.c.bf16 %v813_v38, %v812_v34  ;;  %v814_v41 = vsel %vm558_vm8, %v430_v19, %v686_v35  ;;  %v815_v42 = vsel %vm559_vm9, %v431_v20, %v687_v36  ;;  %v433_v43 = vadd.f32 %v1518_v29, %v293_v37 }
  0x7e   :  { %v1422_v45 = vpack.c.bf16 %v815_v42, %v814_v41  ;;  %vm560_vm10 = vcmp.ge.f32.partialorder %v432_v39, 0.0  ;;  %v688_v46 = vmul.f32 0.2, %v432_v39  ;;  %v294_v47 = vmul.f32 %v1512_v26, %v154_v32 }
  0x7f   :  { %1289 = vst [vmem:[%s2147_s3 + $0x118] sm:$0xff] %v1421_v40  ;;  %vm561_vm11 = vcmp.ge.f32.partialorder %v433_v43, 0.0  ;;  %v689_v48 = vmul.f32 0.2, %v433_v43  ;;  %v295_v49 = vmul.f32 %v1514_v27, %v155_v21  ;;  %v156_v50 = vunpack.c.l.bf16 %v53_v33 }
  0x80   :  { %1290 = vst [vmem:[%s2147_s3 + $0x120] sm:$0xff] %v1422_v45  ;;  %v816_v51 = vsel %vm560_vm10, %v432_v39, %v688_v46  ;;  %v434_v52 = vadd.f32 %v1516_v28, %v294_v47  ;;  %v157_v53 = vunpack.c.h.bf16 %v53_v33  ;;  %v158_v54 = vunpack.c.l.bf16 %v54_v44  ;;  %v58_v39 = vld [vmem:[%s2144_s0 + $0x160] sm:$0xff] }
  0x81   :  { %v817_v55 = vsel %vm561_vm11, %v433_v43, %v689_v48  ;;  %v435_v56 = vadd.f32 %v1518_v29, %v295_v49  ;;  %v296_v57 = vmul.f32 %v1512_v26, %v156_v50  ;;  %v159_v58 = vunpack.c.h.bf16 %v54_v44  ;;  %v59_v50 = vld [vmem:[%s2144_s0 + $0x168] sm:$0xff] }
  0x82   :  { %v1423_v60 = vpack.c.bf16 %v817_v55, %v816_v51  ;;  %vm562_vm12 = vcmp.ge.f32.partialorder %v434_v52, 0.0  ;;  %v690_v61 = vmul.f32 0.2, %v434_v52  ;;  %v297_v62 = vmul.f32 %v1514_v27, %v157_v53 }
  0x83   :  { %vm563_vm13 = vcmp.ge.f32.partialorder %v435_v56, 0.0  ;;  %v691_v63 = vmul.f32 0.2, %v435_v56  ;;  %v436_v0 = vadd.f32 %v1516_v28, %v296_v57  ;;  %v298_v1 = vmul.f32 %v1512_v26, %v158_v54 }
  0x84   :  { %1291 = vst [vmem:[%s2147_s3 + $0x128] sm:$0xff] %v1423_v60  ;;  %v818_v2 = vsel %vm562_vm12, %v434_v52, %v690_v61  ;;  %v437_v3 = vadd.f32 %v1518_v29, %v297_v62  ;;  %v299_v4 = vmul.f32 %v1514_v27, %v159_v58  ;;  %v160_v5 = vunpack.c.l.bf16 %v55_v59  ;;  %v60_v60 = vld [vmem:[%s2144_s0 + $0x170] sm:$0xff]  ;;  %v61_v61 = vld [vmem:[%s2144_s0 + $0x178] sm:$0xff] }
  0x85   :  { %v819_v6 = vsel %vm563_vm13, %v435_v56, %v691_v63  ;;  %vm564_vm14 = vcmp.ge.f32.partialorder %v436_v0, 0.0  ;;  %v692_v7 = vmul.f32 0.2, %v436_v0  ;;  %v438_v8 = vadd.f32 %v1516_v28, %v298_v1 }
  0x86   :  { %v1424_v9 = vpack.c.bf16 %v819_v6, %v818_v2  ;;  %vm565_vm15 = vcmp.ge.f32.partialorder %v437_v3, 0.0  ;;  %v693_v10 = vmul.f32 0.2, %v437_v3  ;;  %v439_v11 = vadd.f32 %v1518_v29, %v299_v4 }
  0x87   :  { %v820_v13 = vsel %vm564_vm14, %v436_v0, %v692_v7  ;;  %vm566_vm0 = vcmp.ge.f32.partialorder %v438_v8, 0.0  ;;  %v694_v14 = vmul.f32 0.2, %v438_v8  ;;  %v161_v15 = vunpack.c.h.bf16 %v55_v59 }
  0x88   :  { %1292 = vst [vmem:[%s2147_s3 + $0x130] sm:$0xff] %v1424_v9  ;;  %v821_v17 = vsel %vm565_vm15, %v437_v3, %v693_v10  ;;  %vm567_vm1 = vcmp.ge.f32.partialorder %v439_v11, 0.0  ;;  %v695_v18 = vmul.f32 0.2, %v439_v11  ;;  %v300_v19 = vmul.f32 %v1512_v26, %v160_v5 }
  0x89   :  { %v1425_v20 = vpack.c.bf16 %v821_v17, %v820_v13  ;;  %v822_v22 = vsel %vm566_vm0, %v438_v8, %v694_v14  ;;  %v301_v23 = vmul.f32 %v1514_v27, %v161_v15  ;;  %v162_v24 = vunpack.c.l.bf16 %v56_v12 }
  0x8a   :  { %v823_v25 = vsel %vm567_vm1, %v439_v11, %v695_v18  ;;  %v440_v30 = vadd.f32 %v1516_v28, %v300_v19  ;;  %v163_v31 = vunpack.c.h.bf16 %v56_v12  ;;  %v164_v34 = vunpack.c.l.bf16 %v57_v16 }
  0x8b   :  { %1293 = vst [vmem:[%s2147_s3 + $0x138] sm:$0xff] %v1425_v20  ;;  %v1426_v35 = vpack.c.bf16 %v823_v25, %v822_v22  ;;  %v441_v36 = vadd.f32 %v1518_v29, %v301_v23  ;;  %v302_v37 = vmul.f32 %v1512_v26, %v162_v24  ;;  %v165_v38 = vunpack.c.h.bf16 %v57_v16 }
  0x8c   :  { %vm568_vm2 = vcmp.ge.f32.partialorder %v440_v30, 0.0  ;;  %v696_v32 = vmul.f32 0.2, %v440_v30  ;;  %v303_v21 = vmul.f32 %v1514_v27, %v163_v31  ;;  %v304_v33 = vmul.f32 %v1512_v26, %v164_v34  ;;  %v62_v31 = vld [vmem:[%s2144_s0 + $0x180] sm:$0xff] }
  0x8d   :  { %1294 = vst [vmem:[%s2147_s3 + $0x140] sm:$0xff] %v1426_v35  ;;  %vm569_vm3 = vcmp.ge.f32.partialorder %v441_v36, 0.0  ;;  %v697_v40 = vmul.f32 0.2, %v441_v36  ;;  %v442_v41 = vadd.f32 %v1516_v28, %v302_v37  ;;  %v305_v42 = vmul.f32 %v1514_v27, %v165_v38  ;;  %v63_v37 = vld [vmem:[%s2144_s0 + $0x188] sm:$0xff] }
  0x8e   :  { %v824_v43 = vsel %vm568_vm2, %v440_v30, %v696_v32  ;;  %v443_v44 = vadd.f32 %v1518_v29, %v303_v21  ;;  %v444_v45 = vadd.f32 %v1516_v28, %v304_v33  ;;  %v166_v46 = vunpack.c.l.bf16 %v58_v39 }
  0x8f   :  { %v825_v47 = vsel %vm569_vm3, %v441_v36, %v697_v40  ;;  %vm570_vm4 = vcmp.ge.f32.partialorder %v442_v41, 0.0  ;;  %v698_v48 = vmul.f32 0.2, %v442_v41  ;;  %v445_v49 = vadd.f32 %v1518_v29, %v305_v42 }
  0x90   :  { %v1427_v51 = vpack.c.bf16 %v825_v47, %v824_v43  ;;  %vm571_vm5 = vcmp.ge.f32.partialorder %v443_v44, 0.0  ;;  %v699_v52 = vmul.f32 0.2, %v443_v44  ;;  %vm572_vm6 = vcmp.ge.f32.partialorder %v444_v45, 0.0 }
  0x91   :  { %v826_v53 = vsel %vm570_vm4, %v442_v41, %v698_v48  ;;  %vm573_vm7 = vcmp.ge.f32.partialorder %v445_v49, 0.0  ;;  %v700_v54 = vmul.f32 0.2, %v444_v45  ;;  %v701_v55 = vmul.f32 0.2, %v445_v49 }
  0x92   :  { %1295 = vst [vmem:[%s2147_s3 + $0x148] sm:$0xff] %v1427_v51  ;;  %v827_v56 = vsel %vm571_vm5, %v443_v44, %v699_v52  ;;  %v167_v57 = vunpack.c.h.bf16 %v58_v39  ;;  %v306_v58 = vmul.f32 %v1512_v26, %v166_v46  ;;  %v168_v59 = vunpack.c.l.bf16 %v59_v50  ;;  %v64_v46 = vld [vmem:[%s2144_s0 + $0x190] sm:$0xff] }
  0x93   :  { %v1428_v62 = vpack.c.bf16 %v827_v56, %v826_v53  ;;  %v828_v63 = vsel %vm572_vm6, %v444_v45, %v700_v54  ;;  %v829_v0 = vsel %vm573_vm7, %v445_v49, %v701_v55  ;;  %v169_v1 = vunpack.c.h.bf16 %v59_v50 }
  0x94   :  { %v1429_v2 = vpack.c.bf16 %v829_v0, %v828_v63  ;;  %v307_v3 = vmul.f32 %v1514_v27, %v167_v57  ;;  %v446_v4 = vadd.f32 %v1516_v28, %v306_v58  ;;  %v308_v5 = vmul.f32 %v1512_v26, %v168_v59 }
  0x95   :  { %1296 = vst [vmem:[%s2147_s3 + $0x150] sm:$0xff] %v1428_v62  ;;  %v309_v6 = vmul.f32 %v1514_v27, %v169_v1  ;;  %v170_v7 = vunpack.c.l.bf16 %v60_v60  ;;  %v171_v8 = vunpack.c.h.bf16 %v60_v60  ;;  %v172_v9 = vunpack.c.l.bf16 %v61_v61  ;;  %v65_v1 = vld [vmem:[%s2144_s0 + $0x198] sm:$0xff] }
  0x96   :  { %1297 = vst [vmem:[%s2147_s3 + $0x158] sm:$0xff] %v1429_v2  ;;  %v447_v10 = vadd.f32 %v1518_v29, %v307_v3  ;;  %vm574_vm8 = vcmp.ge.f32.partialorder %v446_v4, 0.0  ;;  %v702_v11 = vmul.f32 0.2, %v446_v4  ;;  %v448_v12 = vadd.f32 %v1516_v28, %v308_v5 }
  0x97   :  { %v449_v13 = vadd.f32 %v1518_v29, %v309_v6  ;;  %v310_v14 = vmul.f32 %v1512_v26, %v170_v7  ;;  %v311_v15 = vmul.f32 %v1514_v27, %v171_v8  ;;  %v173_v16 = vunpack.c.h.bf16 %v61_v61 }
  0x98   :  { %vm575_vm9 = vcmp.ge.f32.partialorder %v447_v10, 0.0  ;;  %v703_v17 = vmul.f32 0.2, %v447_v10  ;;  %v830_v18 = vsel %vm574_vm8, %v446_v4, %v702_v11  ;;  %vm576_vm10 = vcmp.ge.f32.partialorder %v448_v12, 0.0 }
  0x99   :  { %vm577_vm11 = vcmp.ge.f32.partialorder %v449_v13, 0.0  ;;  %v704_v19 = vmul.f32 0.2, %v448_v12  ;;  %v705_v20 = vmul.f32 0.2, %v449_v13  ;;  %v450_v22 = vadd.f32 %v1516_v28, %v310_v14 }
  0x9a   :  { %v831_v23 = vsel %vm575_vm9, %v447_v10, %v703_v17  ;;  %v451_v24 = vadd.f32 %v1518_v29, %v311_v15  ;;  %v312_v25 = vmul.f32 %v1512_v26, %v172_v9  ;;  %v313_v30 = vmul.f32 %v1514_v27, %v173_v16  ;;  %v66_v10 = vld [vmem:[%s2144_s0 + $0x1a0] sm:$0xff]  ;;  %v67_v15 = vld [vmem:[%s2144_s0 + $0x1a8] sm:$0xff] }
  0x9b   :  { %v1430_v34 = vpack.c.bf16 %v831_v23, %v830_v18  ;;  %v832_v35 = vsel %vm576_vm10, %v448_v12, %v704_v19  ;;  %v833_v36 = vsel %vm577_vm11, %v449_v13, %v705_v20  ;;  %vm578_vm12 = vcmp.ge.f32.partialorder %v450_v22, 0.0 }
  0x9c   :  { %v1431_v38 = vpack.c.bf16 %v833_v36, %v832_v35  ;;  %vm579_vm13 = vcmp.ge.f32.partialorder %v451_v24, 0.0  ;;  %v706_v39 = vmul.f32 0.2, %v450_v22  ;;  %v707_v32 = vmul.f32 0.2, %v451_v24 }
  0x9d   :  { %1298 = vst [vmem:[%s2147_s3 + $0x160] sm:$0xff] %v1430_v34  ;;  %v452_v21 = vadd.f32 %v1516_v28, %v312_v25  ;;  %v453_v33 = vadd.f32 %v1518_v29, %v313_v30  ;;  %v174_v40 = vunpack.c.l.bf16 %v62_v31  ;;  %v175_v41 = vunpack.c.h.bf16 %v62_v31 }
  0x9e   :  { %1299 = vst [vmem:[%s2147_s3 + $0x168] sm:$0xff] %v1431_v38  ;;  %v834_v42 = vsel %vm578_vm12, %v450_v22, %v706_v39  ;;  %v835_v43 = vsel %vm579_vm13, %v451_v24, %v707_v32  ;;  %v176_v44 = vunpack.c.l.bf16 %v63_v37  ;;  %v177_v45 = vunpack.c.h.bf16 %v63_v37  ;;  %v68_v37 = vld [vmem:[%s2144_s0 + $0x1b0] sm:$0xff] }
  0x9f   :  { %v1432_v47 = vpack.c.bf16 %v835_v43, %v834_v42  ;;  %vm580_vm14 = vcmp.ge.f32.partialorder %v452_v21, 0.0  ;;  %vm581_vm15 = vcmp.ge.f32.partialorder %v453_v33, 0.0  ;;  %v708_v48 = vmul.f32 0.2, %v452_v21 }
  0xa0   :  { %v709_v49 = vmul.f32 0.2, %v453_v33  ;;  %v314_v50 = vmul.f32 %v1512_v26, %v174_v40  ;;  %v315_v51 = vmul.f32 %v1514_v27, %v175_v41  ;;  %v316_v52 = vmul.f32 %v1512_v26, %v176_v44 }
  0xa1   :  { %1300 = vst [vmem:[%s2147_s3 + $0x170] sm:$0xff] %v1432_v47  ;;  %v836_v53 = vsel %vm580_vm14, %v452_v21, %v708_v48  ;;  %v317_v54 = vmul.f32 %v1514_v27, %v177_v45  ;;  %v178_v55 = vunpack.c.l.bf16 %v64_v46  ;;  %v179_v56 = vunpack.c.h.bf16 %v64_v46 }
  0xa2   :  { %v837_v57 = vsel %vm581_vm15, %v453_v33, %v709_v49  ;;  %v454_v58 = vadd.f32 %v1516_v28, %v314_v50  ;;  %v455_v59 = vadd.f32 %v1518_v29, %v315_v51  ;;  %v456_v60 = vadd.f32 %v1516_v28, %v316_v52 }
  0xa3   :  { %v1433_v61 = vpack.c.bf16 %v837_v57, %v836_v53  ;;  %v457_v62 = vadd.f32 %v1518_v29, %v317_v54  ;;  %v318_v63 = vmul.f32 %v1512_v26, %v178_v55  ;;  %v319_v0 = vmul.f32 %v1514_v27, %v179_v56  ;;  %v69_v53 = vld [vmem:[%s2144_s0 + $0x1b8] sm:$0xff] }
  0xa4   :  { %vm582_vm0 = vcmp.ge.f32.partialorder %v454_v58, 0.0  ;;  %vm583_vm1 = vcmp.ge.f32.partialorder %v455_v59, 0.0  ;;  %v710_v2 = vmul.f32 0.2, %v454_v58  ;;  %v711_v3 = vmul.f32 0.2, %v455_v59 }
  0xa5   :  { %1301 = vst [vmem:[%s2147_s3 + $0x178] sm:$0xff] %v1433_v61  ;;  %vm584_vm2 = vcmp.ge.f32.partialorder %v456_v60, 0.0  ;;  %vm585_vm3 = vcmp.ge.f32.partialorder %v457_v62, 0.0  ;;  %v712_v4 = vmul.f32 0.2, %v456_v60  ;;  %v458_v8 = vadd.f32 %v1516_v28, %v318_v63 }
  0xa6   :  { %v713_v5 = vmul.f32 0.2, %v457_v62  ;;  %v838_v6 = vsel %vm582_vm0, %v454_v58, %v710_v2  ;;  %v839_v7 = vsel %vm583_vm1, %v455_v59, %v711_v3  ;;  %v459_v9 = vadd.f32 %v1518_v29, %v319_v0  ;;  %v70_v58 = vld [vmem:[%s2144_s0 + $0x1c0] sm:$0xff]  ;;  %v71_v59 = vld [vmem:[%s2144_s0 + $0x1c8] sm:$0xff] }
  0xa7   :  { %v1434_v11 = vpack.c.bf16 %v839_v7, %v838_v6  ;;  %v840_v12 = vsel %vm584_vm2, %v456_v60, %v712_v4  ;;  %v180_v14 = vunpack.c.l.bf16 %v65_v1  ;;  %vm586_vm4 = vcmp.ge.f32.partialorder %v458_v8, 0.0 }
  0xa8   :  { %v841_v13 = vsel %vm585_vm3, %v457_v62, %v713_v5  ;;  %vm587_vm5 = vcmp.ge.f32.partialorder %v459_v9, 0.0  ;;  %v714_v17 = vmul.f32 0.2, %v458_v8  ;;  %v715_v18 = vmul.f32 0.2, %v459_v9 }
  0xa9   :  { %v1435_v16 = vpack.c.bf16 %v841_v13, %v840_v12  ;;  %1302 = vst [vmem:[%s2147_s3 + $0x180] sm:$0xff] %v1434_v11  ;;  %v181_v19 = vunpack.c.h.bf16 %v65_v1  ;;  %v320_v20 = vmul.f32 %v1512_v26, %v180_v14  ;;  %v182_v22 = vunpack.c.l.bf16 %v66_v10 }
  0xaa   :  { %v842_v23 = vsel %vm586_vm4, %v458_v8, %v714_v17  ;;  %v183_v24 = vunpack.c.h.bf16 %v66_v10  ;;  %v184_v25 = vunpack.c.l.bf16 %v67_v15  ;;  %v185_v30 = vunpack.c.h.bf16 %v67_v15 }
  0xab   :  { %1303 = vst [vmem:[%s2147_s3 + $0x188] sm:$0xff] %v1435_v16  ;;  %v843_v31 = vsel %vm587_vm5, %v459_v9, %v715_v18  ;;  %v321_v34 = vmul.f32 %v1514_v27, %v181_v19  ;;  %v460_v35 = vadd.f32 %v1516_v28, %v320_v20  ;;  %v322_v36 = vmul.f32 %v1512_v26, %v182_v22 }
  0xac   :  { %v1436_v38 = vpack.c.bf16 %v843_v31, %v842_v23  ;;  %v323_v39 = vmul.f32 %v1514_v27, %v183_v24  ;;  %v324_v32 = vmul.f32 %v1512_v26, %v184_v25  ;;  %v325_v21 = vmul.f32 %v1514_v27, %v185_v30  ;;  %v72_v25 = vld [vmem:[%s2144_s0 + $0x1d0] sm:$0xff] }
  0xad   :  { %v461_v33 = vadd.f32 %v1518_v29, %v321_v34  ;;  %vm588_vm6 = vcmp.ge.f32.partialorder %v460_v35, 0.0  ;;  %v716_v40 = vmul.f32 0.2, %v460_v35  ;;  %v462_v41 = vadd.f32 %v1516_v28, %v322_v36 }
  0xae   :  { %1304 = vst [vmem:[%s2147_s3 + $0x190] sm:$0xff] %v1436_v38  ;;  %v463_v42 = vadd.f32 %v1518_v29, %v323_v39  ;;  %v464_v43 = vadd.f32 %v1516_v28, %v324_v32  ;;  %v465_v44 = vadd.f32 %v1518_v29, %v325_v21  ;;  %v186_v45 = vunpack.c.l.bf16 %v68_v37 }
  0xaf   :  { %vm589_vm7 = vcmp.ge.f32.partialorder %v461_v33, 0.0  ;;  %v717_v46 = vmul.f32 0.2, %v461_v33  ;;  %v844_v47 = vsel %vm588_vm6, %v460_v35, %v716_v40  ;;  %vm590_vm8 = vcmp.ge.f32.partialorder %v462_v41, 0.0 }
  0xb0   :  { %vm591_vm9 = vcmp.ge.f32.partialorder %v463_v42, 0.0  ;;  %v718_v48 = vmul.f32 0.2, %v462_v41  ;;  %v719_v49 = vmul.f32 0.2, %v463_v42  ;;  %vm592_vm10 = vcmp.ge.f32.partialorder %v464_v43, 0.0 }
  0xb1   :  { %v845_v50 = vsel %vm589_vm7, %v461_v33, %v717_v46  ;;  %vm593_vm11 = vcmp.ge.f32.partialorder %v465_v44, 0.0  ;;  %v720_v51 = vmul.f32 0.2, %v464_v43  ;;  %v721_v52 = vmul.f32 0.2, %v465_v44  ;;  %v73_v33 = vld [vmem:[%s2144_s0 + $0x1d8] sm:$0xff] }
  0xb2   :  { %v1437_v54 = vpack.c.bf16 %v845_v50, %v844_v47  ;;  %v846_v55 = vsel %vm590_vm8, %v462_v41, %v718_v48  ;;  %v847_v56 = vsel %vm591_vm9, %v463_v42, %v719_v49  ;;  %v187_v57 = vunpack.c.h.bf16 %v68_v37 }
  0xb3   :  { %v1438_v60 = vpack.c.bf16 %v847_v56, %v846_v55  ;;  %v848_v61 = vsel %vm592_vm10, %v464_v43, %v720_v51  ;;  %v849_v62 = vsel %vm593_vm11, %v465_v44, %v721_v52  ;;  %v326_v63 = vmul.f32 %v1512_v26, %v186_v45  ;;  %v74_v44 = vld [vmem:[%s2144_s0 + $0x1e0] sm:$0xff] }
  0xb4   :  { %1305 = vst [vmem:[%s2147_s3 + $0x198] sm:$0xff] %v1437_v54  ;;  %v1439_v0 = vpack.c.bf16 %v849_v62, %v848_v61  ;;  %v327_v1 = vmul.f32 %v1514_v27, %v187_v57  ;;  %v188_v2 = vunpack.c.l.bf16 %v69_v53  ;;  %v189_v3 = vunpack.c.h.bf16 %v69_v53 }
  0xb5   :  { %1306 = vst [vmem:[%s2147_s3 + $0x1a0] sm:$0xff] %v1438_v60  ;;  %v466_v4 = vadd.f32 %v1516_v28, %v326_v63  ;;  %v190_v5 = vunpack.c.l.bf16 %v70_v58  ;;  %v191_v6 = vunpack.c.h.bf16 %v70_v58  ;;  %v192_v7 = vunpack.c.l.bf16 %v71_v59 }
  0xb6   :  { %1307 = vst [vmem:[%s2147_s3 + $0x1a8] sm:$0xff] %v1439_v0  ;;  %v467_v8 = vadd.f32 %v1518_v29, %v327_v1  ;;  %v328_v9 = vmul.f32 %v1512_v26, %v188_v2  ;;  %v329_v10 = vmul.f32 %v1514_v27, %v189_v3  ;;  %v193_v11 = vunpack.c.h.bf16 %v71_v59  ;;  %v75_v59 = vld [vmem:[%s2144_s0 + $0x1e8] sm:$0xff] }
  0xb7   :  { %vm594_vm12 = vcmp.ge.f32.partialorder %v466_v4, 0.0  ;;  %v722_v12 = vmul.f32 0.2, %v466_v4  ;;  %v330_v13 = vmul.f32 %v1512_v26, %v190_v5  ;;  %v331_v14 = vmul.f32 %v1514_v27, %v191_v6 }
  0xb8   :  { %vm595_vm13 = vcmp.ge.f32.partialorder %v467_v8, 0.0  ;;  %v723_v15 = vmul.f32 0.2, %v467_v8  ;;  %v468_v16 = vadd.f32 %v1516_v28, %v328_v9  ;;  %v469_v17 = vadd.f32 %v1518_v29, %v329_v10 }
  0xb9   :  { %v850_v18 = vsel %vm594_vm12, %v466_v4, %v722_v12  ;;  %v470_v19 = vadd.f32 %v1516_v28, %v330_v13  ;;  %v471_v20 = vadd.f32 %v1518_v29, %v331_v14  ;;  %v332_v22 = vmul.f32 %v1512_v26, %v192_v7  ;;  %v76_v12 = vld [vmem:[%s2144_s0 + $0x1f0] sm:$0xff] }
  0xba   :  { %v851_v23 = vsel %vm595_vm13, %v467_v8, %v723_v15  ;;  %vm596_vm14 = vcmp.ge.f32.partialorder %v468_v16, 0.0  ;;  %vm597_vm15 = vcmp.ge.f32.partialorder %v469_v17, 0.0  ;;  %v724_v24 = vmul.f32 0.2, %v468_v16 }
  0xbb   :  { %v1440_v30 = vpack.c.bf16 %v851_v23, %v850_v18  ;;  %v725_v31 = vmul.f32 0.2, %v469_v17  ;;  %vm598_vm0 = vcmp.ge.f32.partialorder %v470_v19, 0.0  ;;  %vm599_vm1 = vcmp.ge.f32.partialorder %v471_v20, 0.0 }
  0xbc   :  { %v852_v34 = vsel %vm596_vm14, %v468_v16, %v724_v24  ;;  %v726_v35 = vmul.f32 0.2, %v470_v19  ;;  %v727_v36 = vmul.f32 0.2, %v471_v20  ;;  %v333_v37 = vmul.f32 %v1514_v27, %v193_v11  ;;  %v77_v16 = vld [vmem:[%s2144_s0 + $0x1f8] sm:$0xff] }
  0xbd   :  { %1308 = vst [vmem:[%s2147_s3 + $0x1b0] sm:$0xff] %v1440_v30  ;;  %v853_v38 = vsel %vm597_vm15, %v469_v17, %v725_v31  ;;  %v472_v39 = vadd.f32 %v1516_v28, %v332_v22  ;;  %v194_v32 = vunpack.c.l.bf16 %v72_v25  ;;  %v195_v21 = vunpack.c.h.bf16 %v72_v25 }
  0xbe   :  { %v1441_v40 = vpack.c.bf16 %v853_v38, %v852_v34  ;;  %v854_v41 = vsel %vm598_vm0, %v470_v19, %v726_v35  ;;  %v855_v42 = vsel %vm599_vm1, %v471_v20, %v727_v36  ;;  %v473_v43 = vadd.f32 %v1518_v29, %v333_v37 }
  0xbf   :  { %v1442_v45 = vpack.c.bf16 %v855_v42, %v854_v41  ;;  %vm600_vm2 = vcmp.ge.f32.partialorder %v472_v39, 0.0  ;;  %v728_v46 = vmul.f32 0.2, %v472_v39  ;;  %v334_v47 = vmul.f32 %v1512_v26, %v194_v32 }
  0xc0   :  { %1309 = vst [vmem:[%s2147_s3 + $0x1b8] sm:$0xff] %v1441_v40  ;;  %vm601_vm3 = vcmp.ge.f32.partialorder %v473_v43, 0.0  ;;  %v729_v48 = vmul.f32 0.2, %v473_v43  ;;  %v335_v49 = vmul.f32 %v1514_v27, %v195_v21  ;;  %v196_v50 = vunpack.c.l.bf16 %v73_v33 }
  0xc1   :  { %1310 = vst [vmem:[%s2147_s3 + $0x1c0] sm:$0xff] %v1442_v45  ;;  %v856_v51 = vsel %vm600_vm2, %v472_v39, %v728_v46  ;;  %v474_v52 = vadd.f32 %v1516_v28, %v334_v47  ;;  %v197_v53 = vunpack.c.h.bf16 %v73_v33  ;;  %v198_v54 = vunpack.c.l.bf16 %v74_v44 }
  0xc2   :  { %v857_v55 = vsel %vm601_vm3, %v473_v43, %v729_v48  ;;  %v475_v56 = vadd.f32 %v1518_v29, %v335_v49  ;;  %v336_v57 = vmul.f32 %v1512_v26, %v196_v50  ;;  %v199_v58 = vunpack.c.h.bf16 %v74_v44 }
  0xc3   :  { %v1443_v60 = vpack.c.bf16 %v857_v55, %v856_v51  ;;  %vm602_vm4 = vcmp.ge.f32.partialorder %v474_v52, 0.0  ;;  %v730_v61 = vmul.f32 0.2, %v474_v52  ;;  %v337_v62 = vmul.f32 %v1514_v27, %v197_v53 }
  0xc4   :  { %vm603_vm5 = vcmp.ge.f32.partialorder %v475_v56, 0.0  ;;  %v731_v63 = vmul.f32 0.2, %v475_v56  ;;  %v476_v0 = vadd.f32 %v1516_v28, %v336_v57  ;;  %v338_v1 = vmul.f32 %v1512_v26, %v198_v54 }
  0xc5   :  { %1311 = vst [vmem:[%s2147_s3 + $0x1c8] sm:$0xff] %v1443_v60  ;;  %v858_v2 = vsel %vm602_vm4, %v474_v52, %v730_v61  ;;  %v477_v3 = vadd.f32 %v1518_v29, %v337_v62  ;;  %v339_v4 = vmul.f32 %v1514_v27, %v199_v58  ;;  %v200_v5 = vunpack.c.l.bf16 %v75_v59 }
  0xc6   :  { %v859_v6 = vsel %vm603_vm5, %v475_v56, %v731_v63  ;;  %vm604_vm6 = vcmp.ge.f32.partialorder %v476_v0, 0.0  ;;  %v732_v7 = vmul.f32 0.2, %v476_v0  ;;  %v478_v8 = vadd.f32 %v1516_v28, %v338_v1 }
  0xc7   :  { %v1444_v9 = vpack.c.bf16 %v859_v6, %v858_v2  ;;  %vm605_vm7 = vcmp.ge.f32.partialorder %v477_v3, 0.0  ;;  %v733_v10 = vmul.f32 0.2, %v477_v3  ;;  %v479_v11 = vadd.f32 %v1518_v29, %v339_v4 }
  0xc8   :  { %v860_v13 = vsel %vm604_vm6, %v476_v0, %v732_v7  ;;  %vm606_vm8 = vcmp.ge.f32.partialorder %v478_v8, 0.0  ;;  %v734_v14 = vmul.f32 0.2, %v478_v8  ;;  %v201_v15 = vunpack.c.h.bf16 %v75_v59 }
  0xc9   :  { %1312 = vst [vmem:[%s2147_s3 + $0x1d0] sm:$0xff] %v1444_v9  ;;  %v861_v17 = vsel %vm605_vm7, %v477_v3, %v733_v10  ;;  %vm607_vm9 = vcmp.ge.f32.partialorder %v479_v11, 0.0  ;;  %v735_v18 = vmul.f32 0.2, %v479_v11  ;;  %v340_v19 = vmul.f32 %v1512_v26, %v200_v5 }
  0xca   :  { %v1445_v20 = vpack.c.bf16 %v861_v17, %v860_v13  ;;  %v862_v22 = vsel %vm606_vm8, %v478_v8, %v734_v14  ;;  %v341_v23 = vmul.f32 %v1514_v27, %v201_v15  ;;  %v202_v24 = vunpack.c.l.bf16 %v76_v12 }
  0xcb   :  { %v863_v25 = vsel %vm607_vm9, %v479_v11, %v735_v18  ;;  %v480_v30 = vadd.f32 %v1516_v28, %v340_v19  ;;  %v203_v31 = vunpack.c.h.bf16 %v76_v12  ;;  %v204_v34 = vunpack.c.l.bf16 %v77_v16 }
  0xcc   :  { %1313 = vst [vmem:[%s2147_s3 + $0x1d8] sm:$0xff] %v1445_v20  ;;  %v1446_v35 = vpack.c.bf16 %v863_v25, %v862_v22  ;;  %v481_v36 = vadd.f32 %v1518_v29, %v341_v23  ;;  %v342_v37 = vmul.f32 %v1512_v26, %v202_v24  ;;  %v205_v38 = vunpack.c.h.bf16 %v77_v16 }
  0xcd   :  { %vm608_vm10 = vcmp.ge.f32.partialorder %v480_v30, 0.0  ;;  %v736_v39 = vmul.f32 0.2, %v480_v30  ;;  %v343_v32 = vmul.f32 %v1514_v27, %v203_v31  ;;  %v344_v21 = vmul.f32 %v1512_v26, %v204_v34 }
  0xce   :  { %1314 = vst [vmem:[%s2147_s3 + $0x1e0] sm:$0xff] %v1446_v35  ;;  %vm609_vm11 = vcmp.ge.f32.partialorder %v481_v36, 0.0  ;;  %v737_v33 = vmul.f32 0.2, %v481_v36  ;;  %v482_v40 = vadd.f32 %v1516_v28, %v342_v37  ;;  %v345_v41 = vmul.f32 %v1514_v27, %v205_v38 }
  0xcf   :  { %v864_v42 = vsel %vm608_vm10, %v480_v30, %v736_v39  ;;  %v483_v43 = vadd.f32 %v1518_v29, %v343_v32  ;;  %v484_v44 = vadd.f32 %v1516_v28, %v344_v21 }
  0xd0   :  { %v865_v45 = vsel %vm609_vm11, %v481_v36, %v737_v33  ;;  %vm610_vm12 = vcmp.ge.f32.partialorder %v482_v40, 0.0  ;;  %v738_v46 = vmul.f32 0.2, %v482_v40  ;;  %v485_v26 = vadd.f32 %v1518_v29, %v345_v41 }
  0xd1   :  { %v1447_v47 = vpack.c.bf16 %v865_v45, %v864_v42  ;;  %vm611_vm13 = vcmp.ge.f32.partialorder %v483_v43, 0.0  ;;  %v739_v48 = vmul.f32 0.2, %v483_v43  ;;  %vm612_vm14 = vcmp.ge.f32.partialorder %v484_v44, 0.0 }
  0xd2   :  { %v866_v49 = vsel %vm610_vm12, %v482_v40, %v738_v46  ;;  %vm613_vm15 = vcmp.ge.f32.partialorder %v485_v26, 0.0  ;;  %v740_v50 = vmul.f32 0.2, %v484_v44  ;;  %v741_v51 = vmul.f32 0.2, %v485_v26 }
  0xd3   :  { %1315 = vst [vmem:[%s2147_s3 + $0x1e8] sm:$0xff] %v1447_v47  ;;  %v867_v27 = vsel %vm611_vm13, %v483_v43, %v739_v48 }
  0xd4   :  { %v1448_v52 = vpack.c.bf16 %v867_v27, %v866_v49  ;;  %v868_v28 = vsel %vm612_vm14, %v484_v44, %v740_v50  ;;  %v869_v53 = vsel %vm613_vm15, %v485_v26, %v741_v51 }
  0xd5   :  { %v1449_v54 = vpack.c.bf16 %v869_v53, %v868_v28 }
  0xd6   :  { %1316 = vst [vmem:[%s2147_s3 + $0x1f0] sm:$0xff] %v1448_v52 }
  0xd7   :  { %1317 = vst [vmem:[%s2147_s3 + $0x1f8] sm:$0xff] %v1449_v54 }

// kernel: _lambda_.11
= control target key start
LH: loop header
LB: loop body
LE: loop exit
PB: predicated region body
PF: predicated region fallthrough
CT: control target
= control target key end

     0   :  { %s4812_s0 = inlined_call_operand.vmem [shape: bf16[128,4096], index: 0, kind: input, shape index: {}]   ;;  %s4813_s1 = inlined_call_operand.vmem [shape: bf16[4096,512], index: 1, kind: input, shape index: {}]   ;;  %s4814_s2 = inlined_call_operand.vmem [shape: bf16[128,512], index: 2, kind: output, shape index: {0}]   ;;  %s4815_s3 = inlined_call_operand.vmem [shape: f32[1,2,512], index: 3, kind: output, shape index: {1}]  }
   0x1   :  { %4818 = sst [smem:[#allocation8_spill]] %s4812_s0 }
   0x2   :  { %4819 = sst [smem:[#allocation9_spill]] %s4813_s1 }
   0x3   :  { %s3942_s12 = smov 0   ;;  %s3944_s13 = smov 0  }
   0x4   :  { %s3946_s14 = smov 0   ;;  %s3948_s15 = smov 0  }
   0x5   :  { %s3950_s16 = smov 0   ;;  %s3952_s17 = smov 0  }
   0x6   :  { %s3954_s18 = smov 0   ;;  %s3956_s19 = smov 0  }
   0x7   :  { %s3958_s20 = smov 0   ;;  %s3960_s21 = smov 0  }
   0x8   :  { %s3962_s22 = smov 0  }
   0x9 LB: > { %s3203_s23 = sadd.s32 4294967295, %s3919_s22   ;;  %s26_s24 = sadd.s32 1, %s3911_s20  ;;  %s3919_s22 = sphi %s3962_s22, %s14_s22   ;;  %s3915_s21 = sphi %s3960_s21, %s4838_s21   ;;  %s3911_s20 = sphi %s3958_s20, %s4837_s20   ;;  %s3907_s19 = sphi %s3956_s19, %s4836_s19   ;;  %s3903_s18 = sphi %s3954_s18, %s4835_s18   ;;  %s3899_s17 = sphi %s3952_s17, %s4834_s17   ;;  %s3895_s16 = sphi %s3950_s16, %s4833_s16   ;;  %s3891_s15 = sphi %s3948_s15, %s4832_s15   ;;  %s3887_s14 = sphi %s3946_s14, %s4831_s14   ;;  %s3883_s13 = sphi %s3944_s13, %s4830_s13   ;;  %s3879_s12 = sphi %s3942_s12, %s4829_s12  }
   0xa   : > { %p27_p0 = scmp.ge.s32.totalorder %s26_s24, 4  ;;  %s29_s25 = sadd.s32 1, %s3915_s21 }
   0xb   : > { %s42_s26 = sadd.s32 1, %s3899_s17  ;;  %p49_p1 = scmp.ne.s32.totalorder %s3899_s17, %s3895_s16 }
   0xc   : > { %s4840_s24 = smov (%p27_p0, %s26_s24), 0  ;;  %s4842_s25 = smov (!%p27_p0, %s29_s25), %s3915_s21 }
   0xd   : > { %4820 = sst [smem:[#allocation6_spill]] %s4840_s24  ;;  %s38_s27 = ssub.s32 %s3911_s20, %s4840_s24 }
   0xe   : > { %p50_p2 = scmp.eq.s32.totalorder %s3919_s22, 0  ;;  %p31_p3 = scmp.ge.s32.totalorder %s4842_s25, 2 }
   0xf   : > { %p40_p4 = scmp.eq.s32.totalorder %s38_s27, 0  ;;  %s70_s29 = sadd.s32 1, %s3891_s15 }
  0x10   : > { %p4009_p5 = por %p50_p2, %p49_p1  ;;  %s4844_s25 = smov (%p31_p3, %s4842_s25), 0 }
  0x11   : > { %4822 = sst [smem:[#allocation7_spill]] %s4844_s25  ;;  %s66_s4 = ssub.s32 %s3915_s21, %s4844_s25 }
  0x12   : > { %s4017_s30 = scalar_select %p40_p4, %s3899_s17, %s42_s26  }
  0x13   : > { %p77_p6 = scmp.ne.s32.totalorder %s3891_s15, %s3887_s14  ;;  %s67_s5 = sor.u32 %s66_s4, %s38_s27 }
  0x14   : > { %p96_p7 = scmp.eq.s32.totalorder %s66_s4, 0  ;;  %p68_p8 = scmp.eq.s32.totalorder %s67_s5, 0 }
  0x15   : > { %p4023_p9 = por %p77_p6, %p50_p2  ;;  %s98_s7 = sadd.s32 1, %s3883_s13 }
  0x16   : > { %p108_p10 = scmp.ne.s32.totalorder %s3883_s13, %s3879_s12  ;;  %p109_p11 = scmp.eq.s32.totalorder %s3203_s23, 7 }
  0x17   : > { %s4031_s8 = scalar_select %p68_p8, %s3891_s15, %s70_s29  }
  0x18   : > { %s4034_s9 = scalar_select %p96_p7, %s3883_s13, %s98_s7  }
  0x19   : > { %p4036_p12 = por %p109_p11, %p108_p10  ;;  %p3206_p13 = scmp.ge.s32.totalorder %s3919_s22, 8 }
  0x1b   : > { %159 = sbr.rel (%p3206_p13) target bundleno = 150 (0x96), region = 16 }
  0x22   : > { %162 = sbr.rel (!%p4009_p5) target bundleno = 76 (0x4c), region = 20  ;;  %s164_s11 = sand.u32 (%p4009_p5), 1, %s3899_s17  }
  0x23   : > { %s3437_s26 = sshll.u32 (%p4009_p5), %s3911_s20, 5  ;;  %s3207_s27 = sshll.u32 (%p4009_p5), %s164_s11, 9 }
  0x24   : > { %s4825_s0 = sld [smem:[#allocation8_spill]] (%p4009_p5)  ;;  %s4053_s23 = scalar_lea.vmem (%p4009_p5), [#allocation3], %s3207_s27 }
  0x2a   : > { %s4048_s5 = scalar_lea.vmem %s4825_s0, %s3437_s26 }
  0x2b   : > { %v185_v0 = vld [vmem:[%s4048_s5] sm:$0xff]  ;;  %v187_v1 = vld [vmem:[%s4048_s5 + $0x8] sm:$0xff]  ;;  %v189_v2 = vld [vmem:[%s4048_s5 + $0x10] sm:$0xff] }
  0x2c   : > { %186 = vst [vmem:[%s4053_s23] sm:$0xff] %v185_v0  ;;  %188 = vst [vmem:[%s4053_s23 + $0x8] sm:$0xff] %v187_v1  ;;  %v191_v3 = vld [vmem:[%s4048_s5 + $0x18] sm:$0xff]  ;;  %v193_v4 = vld [vmem:[%s4048_s5 + $0x80] sm:$0xff] }
  0x2d   : > { %190 = vst [vmem:[%s4053_s23 + $0x10] sm:$0xff] %v189_v2  ;;  %v195_v5 = vld [vmem:[%s4048_s5 + $0x88] sm:$0xff]  ;;  %192 = vst [vmem:[%s4053_s23 + $0x18] sm:$0xff] %v191_v3  ;;  %v197_v6 = vld [vmem:[%s4048_s5 + $0x90] sm:$0xff] }
  0x2e   : > { %194 = vst [vmem:[%s4053_s23 + $0x20] sm:$0xff] %v193_v4  ;;  %196 = vst [vmem:[%s4053_s23 + $0x28] sm:$0xff] %v195_v5  ;;  %v199_v7 = vld [vmem:[%s4048_s5 + $0x98] sm:$0xff]  ;;  %v201_v8 = vld [vmem:[%s4048_s5 + $0x100] sm:$0xff] }
  0x2f   : > { %198 = vst [vmem:[%s4053_s23 + $0x30] sm:$0xff] %v197_v6  ;;  %200 = vst [vmem:[%s4053_s23 + $0x38] sm:$0xff] %v199_v7  ;;  %v203_v9 = vld [vmem:[%s4048_s5 + $0x108] sm:$0xff]  ;;  %v205_v10 = vld [vmem:[%s4048_s5 + $0x110] sm:$0xff] }
  0x30   : > { %202 = vst [vmem:[%s4053_s23 + $0x40] sm:$0xff] %v201_v8  ;;  %v207_v11 = vld [vmem:[%s4048_s5 + $0x118] sm:$0xff]  ;;  %204 = vst [vmem:[%s4053_s23 + $0x48] sm:$0xff] %v203_v9  ;;  %v209_v12 = vld [vmem:[%s4048_s5 + $0x180] sm:$0xff] }
  0x31   : > { %206 = vst [vmem:[%s4053_s23 + $0x50] sm:$0xff] %v205_v10  ;;  %208 = vst [vmem:[%s4053_s23 + $0x58] sm:$0xff] %v207_v11  ;;  %v211_v13 = vld [vmem:[%s4048_s5 + $0x188] sm:$0xff]  ;;  %v213_v14 = vld [vmem:[%s4048_s5 + $0x190] sm:$0xff] }
  0x32   : > { %210 = vst [vmem:[%s4053_s23 + $0x60] sm:$0xff] %v209_v12  ;;  %212 = vst [vmem:[%s4053_s23 + $0x68] sm:$0xff] %v211_v13  ;;  %v215_v15 = vld [vmem:[%s4048_s5 + $0x198] sm:$0xff]  ;;  %v217_v16 = vld [vmem:[%s4048_s5 + $0x200] sm:$0xff] }
  0x33   : > { %214 = vst [vmem:[%s4053_s23 + $0x70] sm:$0xff] %v213_v14  ;;  %v219_v17 = vld [vmem:[%s4048_s5 + $0x208] sm:$0xff]  ;;  %216 = vst [vmem:[%s4053_s23 + $0x78] sm:$0xff] %v215_v15  ;;  %v221_v18 = vld [vmem:[%s4048_s5 + $0x210] sm:$0xff] }
  0x34   : > { %218 = vst [vmem:[%s4053_s23 + $0x80] sm:$0xff] %v217_v16  ;;  %220 = vst [vmem:[%s4053_s23 + $0x88] sm:$0xff] %v219_v17  ;;  %v223_v19 = vld [vmem:[%s4048_s5 + $0x218] sm:$0xff]  ;;  %v225_v20 = vld [vmem:[%s4048_s5 + $0x280] sm:$0xff] }
  0x35   : > { %222 = vst [vmem:[%s4053_s23 + $0x90] sm:$0xff] %v221_v18  ;;  %224 = vst [vmem:[%s4053_s23 + $0x98] sm:$0xff] %v223_v19  ;;  %v227_v21 = vld [vmem:[%s4048_s5 + $0x288] sm:$0xff]  ;;  %v229_v22 = vld [vmem:[%s4048_s5 + $0x290] sm:$0xff] }
  0x36   : > { %226 = vst [vmem:[%s4053_s23 + $0xa0] sm:$0xff] %v225_v20  ;;  %v231_v23 = vld [vmem:[%s4048_s5 + $0x298] sm:$0xff]  ;;  %228 = vst [vmem:[%s4053_s23 + $0xa8] sm:$0xff] %v227_v21  ;;  %v233_v24 = vld [vmem:[%s4048_s5 + $0x300] sm:$0xff] }
  0x37   : > { %230 = vst [vmem:[%s4053_s23 + $0xb0] sm:$0xff] %v229_v22  ;;  %232 = vst [vmem:[%s4053_s23 + $0xb8] sm:$0xff] %v231_v23  ;;  %v235_v25 = vld [vmem:[%s4048_s5 + $0x308] sm:$0xff]  ;;  %v237_v26 = vld [vmem:[%s4048_s5 + $0x310] sm:$0xff] }
  0x38   : > { %234 = vst [vmem:[%s4053_s23 + $0xc0] sm:$0xff] %v233_v24  ;;  %236 = vst [vmem:[%s4053_s23 + $0xc8] sm:$0xff] %v235_v25  ;;  %v239_v27 = vld [vmem:[%s4048_s5 + $0x318] sm:$0xff]  ;;  %v241_v28 = vld [vmem:[%s4048_s5 + $0x380] sm:$0xff] }
  0x39   : > { %238 = vst [vmem:[%s4053_s23 + $0xd0] sm:$0xff] %v237_v26  ;;  %v243_v29 = vld [vmem:[%s4048_s5 + $0x388] sm:$0xff]  ;;  %240 = vst [vmem:[%s4053_s23 + $0xd8] sm:$0xff] %v239_v27  ;;  %v245_v30 = vld [vmem:[%s4048_s5 + $0x390] sm:$0xff] }
  0x3a   : > { %242 = vst [vmem:[%s4053_s23 + $0xe0] sm:$0xff] %v241_v28  ;;  %244 = vst [vmem:[%s4053_s23 + $0xe8] sm:$0xff] %v243_v29  ;;  %v247_v31 = vld [vmem:[%s4048_s5 + $0x398] sm:$0xff]  ;;  %v249_v32 = vld [vmem:[%s4048_s5 + $0x400] sm:$0xff] }
  0x3b   : > { %246 = vst [vmem:[%s4053_s23 + $0xf0] sm:$0xff] %v245_v30  ;;  %248 = vst [vmem:[%s4053_s23 + $0xf8] sm:$0xff] %v247_v31  ;;  %v251_v33 = vld [vmem:[%s4048_s5 + $0x408] sm:$0xff]  ;;  %v253_v34 = vld [vmem:[%s4048_s5 + $0x410] sm:$0xff] }
  0x3c   : > { %250 = vst [vmem:[%s4053_s23 + $0x100] sm:$0xff] %v249_v32  ;;  %v255_v35 = vld [vmem:[%s4048_s5 + $0x418] sm:$0xff]  ;;  %252 = vst [vmem:[%s4053_s23 + $0x108] sm:$0xff] %v251_v33  ;;  %v257_v36 = vld [vmem:[%s4048_s5 + $0x480] sm:$0xff] }
  0x3d   : > { %254 = vst [vmem:[%s4053_s23 + $0x110] sm:$0xff] %v253_v34  ;;  %256 = vst [vmem:[%s4053_s23 + $0x118] sm:$0xff] %v255_v35  ;;  %v259_v37 = vld [vmem:[%s4048_s5 + $0x488] sm:$0xff]  ;;  %v261_v38 = vld [vmem:[%s4048_s5 + $0x490] sm:$0xff] }
  0x3e   : > { %258 = vst [vmem:[%s4053_s23 + $0x120] sm:$0xff] %v257_v36  ;;  %260 = vst [vmem:[%s4053_s23 + $0x128] sm:$0xff] %v259_v37  ;;  %v263_v39 = vld [vmem:[%s4048_s5 + $0x498] sm:$0xff]  ;;  %v265_v40 = vld [vmem:[%s4048_s5 + $0x500] sm:$0xff] }
  0x3f   : > { %262 = vst [vmem:[%s4053_s23 + $0x130] sm:$0xff] %v261_v38  ;;  %v267_v41 = vld [vmem:[%s4048_s5 + $0x508] sm:$0xff]  ;;  %264 = vst [vmem:[%s4053_s23 + $0x138] sm:$0xff] %v263_v39  ;;  %v269_v42 = vld [vmem:[%s4048_s5 + $0x510] sm:$0xff] }
  0x40   : > { %266 = vst [vmem:[%s4053_s23 + $0x140] sm:$0xff] %v265_v40  ;;  %268 = vst [vmem:[%s4053_s23 + $0x148] sm:$0xff] %v267_v41  ;;  %v271_v43 = vld [vmem:[%s4048_s5 + $0x518] sm:$0xff]  ;;  %v273_v44 = vld [vmem:[%s4048_s5 + $0x580] sm:$0xff] }
  0x41   : > { %270 = vst [vmem:[%s4053_s23 + $0x150] sm:$0xff] %v269_v42  ;;  %272 = vst [vmem:[%s4053_s23 + $0x158] sm:$0xff] %v271_v43  ;;  %v275_v45 = vld [vmem:[%s4048_s5 + $0x588] sm:$0xff]  ;;  %v277_v46 = vld [vmem:[%s4048_s5 + $0x590] sm:$0xff] }
  0x42   : > { %274 = vst [vmem:[%s4053_s23 + $0x160] sm:$0xff] %v273_v44  ;;  %v279_v47 = vld [vmem:[%s4048_s5 + $0x598] sm:$0xff]  ;;  %276 = vst [vmem:[%s4053_s23 + $0x168] sm:$0xff] %v275_v45  ;;  %v281_v48 = vld [vmem:[%s4048_s5 + $0x600] sm:$0xff] }
  0x43   : > { %278 = vst [vmem:[%s4053_s23 + $0x170] sm:$0xff] %v277_v46  ;;  %280 = vst [vmem:[%s4053_s23 + $0x178] sm:$0xff] %v279_v47  ;;  %v283_v49 = vld [vmem:[%s4048_s5 + $0x608] sm:$0xff]  ;;  %v285_v50 = vld [vmem:[%s4048_s5 + $0x610] sm:$0xff] }
  0x44   : > { %282 = vst [vmem:[%s4053_s23 + $0x180] sm:$0xff] %v281_v48  ;;  %284 = vst [vmem:[%s4053_s23 + $0x188] sm:$0xff] %v283_v49  ;;  %v287_v51 = vld [vmem:[%s4048_s5 + $0x618] sm:$0xff]  ;;  %v289_v52 = vld [vmem:[%s4048_s5 + $0x680] sm:$0xff] }
  0x45   : > { %286 = vst [vmem:[%s4053_s23 + $0x190] sm:$0xff] %v285_v50  ;;  %v291_v53 = vld [vmem:[%s4048_s5 + $0x688] sm:$0xff]  ;;  %288 = vst [vmem:[%s4053_s23 + $0x198] sm:$0xff] %v287_v51  ;;  %v293_v54 = vld [vmem:[%s4048_s5 + $0x690] sm:$0xff] }
  0x46   : > { %290 = vst [vmem:[%s4053_s23 + $0x1a0] sm:$0xff] %v289_v52  ;;  %292 = vst [vmem:[%s4053_s23 + $0x1a8] sm:$0xff] %v291_v53  ;;  %v295_v55 = vld [vmem:[%s4048_s5 + $0x698] sm:$0xff]  ;;  %v297_v56 = vld [vmem:[%s4048_s5 + $0x700] sm:$0xff] }
  0x47   : > { %294 = vst [vmem:[%s4053_s23 + $0x1b0] sm:$0xff] %v293_v54  ;;  %296 = vst [vmem:[%s4053_s23 + $0x1b8] sm:$0xff] %v295_v55  ;;  %v299_v57 = vld [vmem:[%s4048_s5 + $0x708] sm:$0xff]  ;;  %v301_v58 = vld [vmem:[%s4048_s5 + $0x710] sm:$0xff] }
  0x48   : > { %298 = vst [vmem:[%s4053_s23 + $0x1c0] sm:$0xff] %v297_v56  ;;  %v303_v59 = vld [vmem:[%s4048_s5 + $0x718] sm:$0xff]  ;;  %300 = vst [vmem:[%s4053_s23 + $0x1c8] sm:$0xff] %v299_v57  ;;  %v305_v60 = vld [vmem:[%s4048_s5 + $0x780] sm:$0xff] }
  0x49   : > { %302 = vst [vmem:[%s4053_s23 + $0x1d0] sm:$0xff] %v301_v58  ;;  %304 = vst [vmem:[%s4053_s23 + $0x1d8] sm:$0xff] %v303_v59  ;;  %v307_v61 = vld [vmem:[%s4048_s5 + $0x788] sm:$0xff]  ;;  %v309_v62 = vld [vmem:[%s4048_s5 + $0x790] sm:$0xff] }
  0x4a   : > { %306 = vst [vmem:[%s4053_s23 + $0x1e0] sm:$0xff] %v305_v60  ;;  %308 = vst [vmem:[%s4053_s23 + $0x1e8] sm:$0xff] %v307_v61  ;;  %v311_v63 = vld [vmem:[%s4048_s5 + $0x798] sm:$0xff] }
  0x4b   : > { %310 = vst [vmem:[%s4053_s23 + $0x1f0] sm:$0xff] %v309_v62  ;;  %312 = vst [vmem:[%s4053_s23 + $0x1f8] sm:$0xff] %v311_v63 }
  0x4c PF: > { %318 = sbr.rel (!%p4023_p9) target bundleno = 150 (0x96), region = 43  ;;  %s320_s28 = sand.u32 (%p4023_p9), 1, %s3891_s15  }
  0x4d   : > { %s3212_s7 = sshll.u32 (%p4023_p9), %s3915_s21, 1  ;;  %s3210_s11 = sshll.u32 (%p4023_p9), %s320_s28, 10 }
  0x4e   : > { %s3438_s26 = sshll.u32 (%p4023_p9), %s3911_s20, 9  ;;  %s4826_s1 = sld [smem:[#allocation9_spill]] (%p4023_p9) }
  0x4f   : > { %s326_s27 = sadd.s32 (%p4023_p9), %s3438_s26, %s3212_s7  ;;  %s4193_s6 = scalar_lea.vmem (%p4023_p9), [#allocation4], %s3210_s11 }
  0x50   : > { %s3214_s29 = sshll.u32 (%p4023_p9), %s326_s27, 2 }
  0x54   : > { %s4188_s25 = scalar_lea.vmem %s4826_s1, %s3214_s29 }
  0x55   : > { %v610_v0 = vld [vmem:[%s4188_s25] sm:$0xff]  ;;  %v612_v1 = vld [vmem:[%s4188_s25 + $0x10] sm:$0xff] }
  0x56   : > { %v614_v2 = vld [vmem:[%s4188_s25 + $0x20] sm:$0xff]  ;;  %611 = vst [vmem:[%s4193_s6] sm:$0xff] %v610_v0  ;;  %613 = vst [vmem:[%s4193_s6 + $0x8] sm:$0xff] %v612_v1  ;;  %v616_v3 = vld [vmem:[%s4188_s25 + $0x30] sm:$0xff] }
  0x57   : > { %615 = vst [vmem:[%s4193_s6 + $0x10] sm:$0xff] %v614_v2  ;;  %v618_v4 = vld [vmem:[%s4188_s25 + $0x40] sm:$0xff]  ;;  %v620_v5 = vld [vmem:[%s4188_s25 + $0x50] sm:$0xff]  ;;  %617 = vst [vmem:[%s4193_s6 + $0x18] sm:$0xff] %v616_v3 }
  0x58   : > { %619 = vst [vmem:[%s4193_s6 + $0x20] sm:$0xff] %v618_v4  ;;  %621 = vst [vmem:[%s4193_s6 + $0x28] sm:$0xff] %v620_v5  ;;  %v622_v6 = vld [vmem:[%s4188_s25 + $0x60] sm:$0xff]  ;;  %v624_v7 = vld [vmem:[%s4188_s25 + $0x70] sm:$0xff] }
  0x59   : > { %v626_v8 = vld [vmem:[%s4188_s25 + $0x80] sm:$0xff]  ;;  %623 = vst [vmem:[%s4193_s6 + $0x30] sm:$0xff] %v622_v6  ;;  %625 = vst [vmem:[%s4193_s6 + $0x38] sm:$0xff] %v624_v7  ;;  %v628_v9 = vld [vmem:[%s4188_s25 + $0x90] sm:$0xff] }
  0x5a   : > { %627 = vst [vmem:[%s4193_s6 + $0x40] sm:$0xff] %v626_v8  ;;  %v630_v10 = vld [vmem:[%s4188_s25 + $0xa0] sm:$0xff]  ;;  %v632_v11 = vld [vmem:[%s4188_s25 + $0xb0] sm:$0xff]  ;;  %629 = vst [vmem:[%s4193_s6 + $0x48] sm:$0xff] %v628_v9 }
  0x5b   : > { %631 = vst [vmem:[%s4193_s6 + $0x50] sm:$0xff] %v630_v10  ;;  %633 = vst [vmem:[%s4193_s6 + $0x58] sm:$0xff] %v632_v11  ;;  %v634_v12 = vld [vmem:[%s4188_s25 + $0xc0] sm:$0xff]  ;;  %v636_v13 = vld [vmem:[%s4188_s25 + $0xd0] sm:$0xff] }
  0x5c   : > { %v638_v14 = vld [vmem:[%s4188_s25 + $0xe0] sm:$0xff]  ;;  %635 = vst [vmem:[%s4193_s6 + $0x60] sm:$0xff] %v634_v12  ;;  %637 = vst [vmem:[%s4193_s6 + $0x68] sm:$0xff] %v636_v13  ;;  %v640_v15 = vld [vmem:[%s4188_s25 + $0xf0] sm:$0xff] }
  0x5d   : > { %639 = vst [vmem:[%s4193_s6 + $0x70] sm:$0xff] %v638_v14  ;;  %v642_v16 = vld [vmem:[%s4188_s25 + $0x100] sm:$0xff]  ;;  %v644_v17 = vld [vmem:[%s4188_s25 + $0x110] sm:$0xff]  ;;  %641 = vst [vmem:[%s4193_s6 + $0x78] sm:$0xff] %v640_v15 }
  0x5e   : > { %643 = vst [vmem:[%s4193_s6 + $0x80] sm:$0xff] %v642_v16  ;;  %645 = vst [vmem:[%s4193_s6 + $0x88] sm:$0xff] %v644_v17  ;;  %v646_v18 = vld [vmem:[%s4188_s25 + $0x120] sm:$0xff]  ;;  %v648_v19 = vld [vmem:[%s4188_s25 + $0x130] sm:$0xff] }
  0x5f   : > { %v650_v20 = vld [vmem:[%s4188_s25 + $0x140] sm:$0xff]  ;;  %647 = vst [vmem:[%s4193_s6 + $0x90] sm:$0xff] %v646_v18  ;;  %649 = vst [vmem:[%s4193_s6 + $0x98] sm:$0xff] %v648_v19  ;;  %v652_v21 = vld [vmem:[%s4188_s25 + $0x150] sm:$0xff] }
  0x60   : > { %651 = vst [vmem:[%s4193_s6 + $0xa0] sm:$0xff] %v650_v20  ;;  %v654_v22 = vld [vmem:[%s4188_s25 + $0x160] sm:$0xff]  ;;  %v656_v23 = vld [vmem:[%s4188_s25 + $0x170] sm:$0xff]  ;;  %653 = vst [vmem:[%s4193_s6 + $0xa8] sm:$0xff] %v652_v21 }
  0x61   : > { %655 = vst [vmem:[%s4193_s6 + $0xb0] sm:$0xff] %v654_v22  ;;  %657 = vst [vmem:[%s4193_s6 + $0xb8] sm:$0xff] %v656_v23  ;;  %v658_v24 = vld [vmem:[%s4188_s25 + $0x180] sm:$0xff]  ;;  %v660_v25 = vld [vmem:[%s4188_s25 + $0x190] sm:$0xff] }
  0x62   : > { %v662_v26 = vld [vmem:[%s4188_s25 + $0x1a0] sm:$0xff]  ;;  %659 = vst [vmem:[%s4193_s6 + $0xc0] sm:$0xff] %v658_v24  ;;  %661 = vst [vmem:[%s4193_s6 + $0xc8] sm:$0xff] %v660_v25  ;;  %v664_v27 = vld [vmem:[%s4188_s25 + $0x1b0] sm:$0xff] }
  0x63   : > { %663 = vst [vmem:[%s4193_s6 + $0xd0] sm:$0xff] %v662_v26  ;;  %v666_v28 = vld [vmem:[%s4188_s25 + $0x1c0] sm:$0xff]  ;;  %v668_v29 = vld [vmem:[%s4188_s25 + $0x1d0] sm:$0xff]  ;;  %665 = vst [vmem:[%s4193_s6 + $0xd8] sm:$0xff] %v664_v27 }
  0x64   : > { %667 = vst [vmem:[%s4193_s6 + $0xe0] sm:$0xff] %v666_v28  ;;  %669 = vst [vmem:[%s4193_s6 + $0xe8] sm:$0xff] %v668_v29  ;;  %v670_v30 = vld [vmem:[%s4188_s25 + $0x1e0] sm:$0xff]  ;;  %v672_v31 = vld [vmem:[%s4188_s25 + $0x1f0] sm:$0xff] }
  0x65   : > { %v674_v32 = vld [vmem:[%s4188_s25 + $0x200] sm:$0xff]  ;;  %671 = vst [vmem:[%s4193_s6 + $0xf0] sm:$0xff] %v670_v30  ;;  %673 = vst [vmem:[%s4193_s6 + $0xf8] sm:$0xff] %v672_v31  ;;  %v676_v33 = vld [vmem:[%s4188_s25 + $0x210] sm:$0xff] }
  0x66   : > { %675 = vst [vmem:[%s4193_s6 + $0x100] sm:$0xff] %v674_v32  ;;  %v678_v34 = vld [vmem:[%s4188_s25 + $0x220] sm:$0xff]  ;;  %v680_v35 = vld [vmem:[%s4188_s25 + $0x230] sm:$0xff]  ;;  %677 = vst [vmem:[%s4193_s6 + $0x108] sm:$0xff] %v676_v33 }
  0x67   : > { %679 = vst [vmem:[%s4193_s6 + $0x110] sm:$0xff] %v678_v34  ;;  %681 = vst [vmem:[%s4193_s6 + $0x118] sm:$0xff] %v680_v35  ;;  %v682_v36 = vld [vmem:[%s4188_s25 + $0x240] sm:$0xff]  ;;  %v684_v37 = vld [vmem:[%s4188_s25 + $0x250] sm:$0xff] }
  0x68   : > { %v686_v38 = vld [vmem:[%s4188_s25 + $0x260] sm:$0xff]  ;;  %683 = vst [vmem:[%s4193_s6 + $0x120] sm:$0xff] %v682_v36  ;;  %685 = vst [vmem:[%s4193_s6 + $0x128] sm:$0xff] %v684_v37  ;;  %v688_v39 = vld [vmem:[%s4188_s25 + $0x270] sm:$0xff] }
  0x69   : > { %687 = vst [vmem:[%s4193_s6 + $0x130] sm:$0xff] %v686_v38  ;;  %v690_v40 = vld [vmem:[%s4188_s25 + $0x280] sm:$0xff]  ;;  %v692_v41 = vld [vmem:[%s4188_s25 + $0x290] sm:$0xff]  ;;  %689 = vst [vmem:[%s4193_s6 + $0x138] sm:$0xff] %v688_v39 }
  0x6a   : > { %691 = vst [vmem:[%s4193_s6 + $0x140] sm:$0xff] %v690_v40  ;;  %693 = vst [vmem:[%s4193_s6 + $0x148] sm:$0xff] %v692_v41  ;;  %v694_v42 = vld [vmem:[%s4188_s25 + $0x2a0] sm:$0xff]  ;;  %v696_v43 = vld [vmem:[%s4188_s25 + $0x2b0] sm:$0xff] }
  0x6b   : > { %v698_v44 = vld [vmem:[%s4188_s25 + $0x2c0] sm:$0xff]  ;;  %695 = vst [vmem:[%s4193_s6 + $0x150] sm:$0xff] %v694_v42  ;;  %697 = vst [vmem:[%s4193_s6 + $0x158] sm:$0xff] %v696_v43  ;;  %v700_v45 = vld [vmem:[%s4188_s25 + $0x2d0] sm:$0xff] }
  0x6c   : > { %699 = vst [vmem:[%s4193_s6 + $0x160] sm:$0xff] %v698_v44  ;;  %v702_v46 = vld [vmem:[%s4188_s25 + $0x2e0] sm:$0xff]  ;;  %v704_v47 = vld [vmem:[%s4188_s25 + $0x2f0] sm:$0xff]  ;;  %701 = vst [vmem:[%s4193_s6 + $0x168] sm:$0xff] %v700_v45 }
  0x6d   : > { %703 = vst [vmem:[%s4193_s6 + $0x170] sm:$0xff] %v702_v46  ;;  %705 = vst [vmem:[%s4193_s6 + $0x178] sm:$0xff] %v704_v47  ;;  %v706_v48 = vld [vmem:[%s4188_s25 + $0x300] sm:$0xff]  ;;  %v708_v49 = vld [vmem:[%s4188_s25 + $0x310] sm:$0xff] }
  0x6e   : > { %v710_v50 = vld [vmem:[%s4188_s25 + $0x320] sm:$0xff]  ;;  %707 = vst [vmem:[%s4193_s6 + $0x180] sm:$0xff] %v706_v48  ;;  %709 = vst [vmem:[%s4193_s6 + $0x188] sm:$0xff] %v708_v49  ;;  %v712_v51 = vld [vmem:[%s4188_s25 + $0x330] sm:$0xff] }
  0x6f   : > { %711 = vst [vmem:[%s4193_s6 + $0x190] sm:$0xff] %v710_v50  ;;  %v714_v52 = vld [vmem:[%s4188_s25 + $0x340] sm:$0xff]  ;;  %v716_v53 = vld [vmem:[%s4188_s25 + $0x350] sm:$0xff]  ;;  %713 = vst [vmem:[%s4193_s6 + $0x198] sm:$0xff] %v712_v51 }
  0x70   : > { %715 = vst [vmem:[%s4193_s6 + $0x1a0] sm:$0xff] %v714_v52  ;;  %717 = vst [vmem:[%s4193_s6 + $0x1a8] sm:$0xff] %v716_v53  ;;  %v718_v54 = vld [vmem:[%s4188_s25 + $0x360] sm:$0xff]  ;;  %v720_v55 = vld [vmem:[%s4188_s25 + $0x370] sm:$0xff] }
  0x71   : > { %v722_v56 = vld [vmem:[%s4188_s25 + $0x380] sm:$0xff]  ;;  %719 = vst [vmem:[%s4193_s6 + $0x1b0] sm:$0xff] %v718_v54  ;;  %721 = vst [vmem:[%s4193_s6 + $0x1b8] sm:$0xff] %v720_v55  ;;  %v724_v57 = vld [vmem:[%s4188_s25 + $0x390] sm:$0xff] }
  0x72   : > { %723 = vst [vmem:[%s4193_s6 + $0x1c0] sm:$0xff] %v722_v56  ;;  %v726_v58 = vld [vmem:[%s4188_s25 + $0x3a0] sm:$0xff]  ;;  %v728_v59 = vld [vmem:[%s4188_s25 + $0x3b0] sm:$0xff]  ;;  %725 = vst [vmem:[%s4193_s6 + $0x1c8] sm:$0xff] %v724_v57 }
  0x73   : > { %727 = vst [vmem:[%s4193_s6 + $0x1d0] sm:$0xff] %v726_v58  ;;  %729 = vst [vmem:[%s4193_s6 + $0x1d8] sm:$0xff] %v728_v59  ;;  %v730_v60 = vld [vmem:[%s4188_s25 + $0x3c0] sm:$0xff]  ;;  %v732_v61 = vld [vmem:[%s4188_s25 + $0x3d0] sm:$0xff] }
  0x74   : > { %v734_v62 = vld [vmem:[%s4188_s25 + $0x3e0] sm:$0xff]  ;;  %731 = vst [vmem:[%s4193_s6 + $0x1e0] sm:$0xff] %v730_v60  ;;  %733 = vst [vmem:[%s4193_s6 + $0x1e8] sm:$0xff] %v732_v61  ;;  %v736_v63 = vld [vmem:[%s4188_s25 + $0x3f0] sm:$0xff] }
  0x75   : > { %735 = vst [vmem:[%s4193_s6 + $0x1f0] sm:$0xff] %v734_v62  ;;  %v738_v0 = vld [vmem:[%s4188_s25 + $0x400] sm:$0xff]  ;;  %v740_v1 = vld [vmem:[%s4188_s25 + $0x410] sm:$0xff]  ;;  %737 = vst [vmem:[%s4193_s6 + $0x1f8] sm:$0xff] %v736_v63 }
  0x76   : > { %739 = vst [vmem:[%s4193_s6 + $0x200] sm:$0xff] %v738_v0  ;;  %741 = vst [vmem:[%s4193_s6 + $0x208] sm:$0xff] %v740_v1  ;;  %v742_v2 = vld [vmem:[%s4188_s25 + $0x420] sm:$0xff]  ;;  %v744_v3 = vld [vmem:[%s4188_s25 + $0x430] sm:$0xff] }
  0x77   : > { %v746_v4 = vld [vmem:[%s4188_s25 + $0x440] sm:$0xff]  ;;  %743 = vst [vmem:[%s4193_s6 + $0x210] sm:$0xff] %v742_v2  ;;  %745 = vst [vmem:[%s4193_s6 + $0x218] sm:$0xff] %v744_v3  ;;  %v748_v5 = vld [vmem:[%s4188_s25 + $0x450] sm:$0xff] }
  0x78   : > { %747 = vst [vmem:[%s4193_s6 + $0x220] sm:$0xff] %v746_v4  ;;  %v750_v6 = vld [vmem:[%s4188_s25 + $0x460] sm:$0xff]  ;;  %v752_v7 = vld [vmem:[%s4188_s25 + $0x470] sm:$0xff]  ;;  %749 = vst [vmem:[%s4193_s6 + $0x228] sm:$0xff] %v748_v5 }
  0x79   : > { %751 = vst [vmem:[%s4193_s6 + $0x230] sm:$0xff] %v750_v6  ;;  %753 = vst [vmem:[%s4193_s6 + $0x238] sm:$0xff] %v752_v7  ;;  %v754_v8 = vld [vmem:[%s4188_s25 + $0x480] sm:$0xff]  ;;  %v756_v9 = vld [vmem:[%s4188_s25 + $0x490] sm:$0xff] }
  0x7a   : > { %v758_v10 = vld [vmem:[%s4188_s25 + $0x4a0] sm:$0xff]  ;;  %755 = vst [vmem:[%s4193_s6 + $0x240] sm:$0xff] %v754_v8  ;;  %757 = vst [vmem:[%s4193_s6 + $0x248] sm:$0xff] %v756_v9  ;;  %v760_v11 = vld [vmem:[%s4188_s25 + $0x4b0] sm:$0xff] }
  0x7b   : > { %759 = vst [vmem:[%s4193_s6 + $0x250] sm:$0xff] %v758_v10  ;;  %v762_v12 = vld [vmem:[%s4188_s25 + $0x4c0] sm:$0xff]  ;;  %v764_v13 = vld [vmem:[%s4188_s25 + $0x4d0] sm:$0xff]  ;;  %761 = vst [vmem:[%s4193_s6 + $0x258] sm:$0xff] %v760_v11 }
  0x7c   : > { %763 = vst [vmem:[%s4193_s6 + $0x260] sm:$0xff] %v762_v12  ;;  %765 = vst [vmem:[%s4193_s6 + $0x268] sm:$0xff] %v764_v13  ;;  %v766_v14 = vld [vmem:[%s4188_s25 + $0x4e0] sm:$0xff]  ;;  %v768_v15 = vld [vmem:[%s4188_s25 + $0x4f0] sm:$0xff] }
  0x7d   : > { %v770_v16 = vld [vmem:[%s4188_s25 + $0x500] sm:$0xff]  ;;  %767 = vst [vmem:[%s4193_s6 + $0x270] sm:$0xff] %v766_v14  ;;  %769 = vst [vmem:[%s4193_s6 + $0x278] sm:$0xff] %v768_v15  ;;  %v772_v17 = vld [vmem:[%s4188_s25 + $0x510] sm:$0xff] }
  0x7e   : > { %771 = vst [vmem:[%s4193_s6 + $0x280] sm:$0xff] %v770_v16  ;;  %v774_v18 = vld [vmem:[%s4188_s25 + $0x520] sm:$0xff]  ;;  %v776_v19 = vld [vmem:[%s4188_s25 + $0x530] sm:$0xff]  ;;  %773 = vst [vmem:[%s4193_s6 + $0x288] sm:$0xff] %v772_v17 }
  0x7f   : > { %775 = vst [vmem:[%s4193_s6 + $0x290] sm:$0xff] %v774_v18  ;;  %777 = vst [vmem:[%s4193_s6 + $0x298] sm:$0xff] %v776_v19  ;;  %v778_v20 = vld [vmem:[%s4188_s25 + $0x540] sm:$0xff]  ;;  %v780_v21 = vld [vmem:[%s4188_s25 + $0x550] sm:$0xff] }
  0x80   : > { %v782_v22 = vld [vmem:[%s4188_s25 + $0x560] sm:$0xff]  ;;  %779 = vst [vmem:[%s4193_s6 + $0x2a0] sm:$0xff] %v778_v20  ;;  %781 = vst [vmem:[%s4193_s6 + $0x2a8] sm:$0xff] %v780_v21  ;;  %v784_v23 = vld [vmem:[%s4188_s25 + $0x570] sm:$0xff] }
  0x81   : > { %783 = vst [vmem:[%s4193_s6 + $0x2b0] sm:$0xff] %v782_v22  ;;  %v786_v24 = vld [vmem:[%s4188_s25 + $0x580] sm:$0xff]  ;;  %v788_v25 = vld [vmem:[%s4188_s25 + $0x590] sm:$0xff]  ;;  %785 = vst [vmem:[%s4193_s6 + $0x2b8] sm:$0xff] %v784_v23 }
  0x82   : > { %787 = vst [vmem:[%s4193_s6 + $0x2c0] sm:$0xff] %v786_v24  ;;  %789 = vst [vmem:[%s4193_s6 + $0x2c8] sm:$0xff] %v788_v25  ;;  %v790_v26 = vld [vmem:[%s4188_s25 + $0x5a0] sm:$0xff]  ;;  %v792_v27 = vld [vmem:[%s4188_s25 + $0x5b0] sm:$0xff] }
  0x83   : > { %v794_v28 = vld [vmem:[%s4188_s25 + $0x5c0] sm:$0xff]  ;;  %791 = vst [vmem:[%s4193_s6 + $0x2d0] sm:$0xff] %v790_v26  ;;  %793 = vst [vmem:[%s4193_s6 + $0x2d8] sm:$0xff] %v792_v27  ;;  %v796_v29 = vld [vmem:[%s4188_s25 + $0x5d0] sm:$0xff] }
  0x84   : > { %795 = vst [vmem:[%s4193_s6 + $0x2e0] sm:$0xff] %v794_v28  ;;  %v798_v30 = vld [vmem:[%s4188_s25 + $0x5e0] sm:$0xff]  ;;  %v800_v31 = vld [vmem:[%s4188_s25 + $0x5f0] sm:$0xff]  ;;  %797 = vst [vmem:[%s4193_s6 + $0x2e8] sm:$0xff] %v796_v29 }
  0x85   : > { %799 = vst [vmem:[%s4193_s6 + $0x2f0] sm:$0xff] %v798_v30  ;;  %801 = vst [vmem:[%s4193_s6 + $0x2f8] sm:$0xff] %v800_v31  ;;  %v802_v32 = vld [vmem:[%s4188_s25 + $0x600] sm:$0xff]  ;;  %v804_v33 = vld [vmem:[%s4188_s25 + $0x610] sm:$0xff] }
  0x86   : > { %v806_v34 = vld [vmem:[%s4188_s25 + $0x620] sm:$0xff]  ;;  %803 = vst [vmem:[%s4193_s6 + $0x300] sm:$0xff] %v802_v32  ;;  %805 = vst [vmem:[%s4193_s6 + $0x308] sm:$0xff] %v804_v33  ;;  %v808_v35 = vld [vmem:[%s4188_s25 + $0x630] sm:$0xff] }
  0x87   : > { %807 = vst [vmem:[%s4193_s6 + $0x310] sm:$0xff] %v806_v34  ;;  %v810_v36 = vld [vmem:[%s4188_s25 + $0x640] sm:$0xff]  ;;  %v812_v37 = vld [vmem:[%s4188_s25 + $0x650] sm:$0xff]  ;;  %809 = vst [vmem:[%s4193_s6 + $0x318] sm:$0xff] %v808_v35 }
  0x88   : > { %811 = vst [vmem:[%s4193_s6 + $0x320] sm:$0xff] %v810_v36  ;;  %813 = vst [vmem:[%s4193_s6 + $0x328] sm:$0xff] %v812_v37  ;;  %v814_v38 = vld [vmem:[%s4188_s25 + $0x660] sm:$0xff]  ;;  %v816_v39 = vld [vmem:[%s4188_s25 + $0x670] sm:$0xff] }
  0x89   : > { %v818_v40 = vld [vmem:[%s4188_s25 + $0x680] sm:$0xff]  ;;  %815 = vst [vmem:[%s4193_s6 + $0x330] sm:$0xff] %v814_v38  ;;  %817 = vst [vmem:[%s4193_s6 + $0x338] sm:$0xff] %v816_v39  ;;  %v820_v41 = vld [vmem:[%s4188_s25 + $0x690] sm:$0xff] }
  0x8a   : > { %819 = vst [vmem:[%s4193_s6 + $0x340] sm:$0xff] %v818_v40  ;;  %v822_v42 = vld [vmem:[%s4188_s25 + $0x6a0] sm:$0xff]  ;;  %v824_v43 = vld [vmem:[%s4188_s25 + $0x6b0] sm:$0xff]  ;;  %821 = vst [vmem:[%s4193_s6 + $0x348] sm:$0xff] %v820_v41 }
  0x8b   : > { %823 = vst [vmem:[%s4193_s6 + $0x350] sm:$0xff] %v822_v42  ;;  %825 = vst [vmem:[%s4193_s6 + $0x358] sm:$0xff] %v824_v43  ;;  %v826_v44 = vld [vmem:[%s4188_s25 + $0x6c0] sm:$0xff]  ;;  %v828_v45 = vld [vmem:[%s4188_s25 + $0x6d0] sm:$0xff] }
  0x8c   : > { %v830_v46 = vld [vmem:[%s4188_s25 + $0x6e0] sm:$0xff]  ;;  %827 = vst [vmem:[%s4193_s6 + $0x360] sm:$0xff] %v826_v44  ;;  %829 = vst [vmem:[%s4193_s6 + $0x368] sm:$0xff] %v828_v45  ;;  %v832_v47 = vld [vmem:[%s4188_s25 + $0x6f0] sm:$0xff] }
  0x8d   : > { %831 = vst [vmem:[%s4193_s6 + $0x370] sm:$0xff] %v830_v46  ;;  %v834_v48 = vld [vmem:[%s4188_s25 + $0x700] sm:$0xff]  ;;  %v836_v49 = vld [vmem:[%s4188_s25 + $0x710] sm:$0xff]  ;;  %833 = vst [vmem:[%s4193_s6 + $0x378] sm:$0xff] %v832_v47 }
  0x8e   : > { %835 = vst [vmem:[%s4193_s6 + $0x380] sm:$0xff] %v834_v48  ;;  %837 = vst [vmem:[%s4193_s6 + $0x388] sm:$0xff] %v836_v49  ;;  %v838_v50 = vld [vmem:[%s4188_s25 + $0x720] sm:$0xff]  ;;  %v840_v51 = vld [vmem:[%s4188_s25 + $0x730] sm:$0xff] }
  0x8f   : > { %v842_v52 = vld [vmem:[%s4188_s25 + $0x740] sm:$0xff]  ;;  %839 = vst [vmem:[%s4193_s6 + $0x390] sm:$0xff] %v838_v50  ;;  %841 = vst [vmem:[%s4193_s6 + $0x398] sm:$0xff] %v840_v51  ;;  %v844_v53 = vld [vmem:[%s4188_s25 + $0x750] sm:$0xff] }
  0x90   : > { %843 = vst [vmem:[%s4193_s6 + $0x3a0] sm:$0xff] %v842_v52  ;;  %v846_v54 = vld [vmem:[%s4188_s25 + $0x760] sm:$0xff]  ;;  %v848_v55 = vld [vmem:[%s4188_s25 + $0x770] sm:$0xff]  ;;  %845 = vst [vmem:[%s4193_s6 + $0x3a8] sm:$0xff] %v844_v53 }
  0x91   : > { %847 = vst [vmem:[%s4193_s6 + $0x3b0] sm:$0xff] %v846_v54  ;;  %849 = vst [vmem:[%s4193_s6 + $0x3b8] sm:$0xff] %v848_v55  ;;  %v850_v56 = vld [vmem:[%s4188_s25 + $0x780] sm:$0xff]  ;;  %v852_v57 = vld [vmem:[%s4188_s25 + $0x790] sm:$0xff] }
  0x92   : > { %v854_v58 = vld [vmem:[%s4188_s25 + $0x7a0] sm:$0xff]  ;;  %851 = vst [vmem:[%s4193_s6 + $0x3c0] sm:$0xff] %v850_v56  ;;  %853 = vst [vmem:[%s4193_s6 + $0x3c8] sm:$0xff] %v852_v57  ;;  %v856_v59 = vld [vmem:[%s4188_s25 + $0x7b0] sm:$0xff] }
  0x93   : > { %855 = vst [vmem:[%s4193_s6 + $0x3d0] sm:$0xff] %v854_v58  ;;  %v858_v60 = vld [vmem:[%s4188_s25 + $0x7c0] sm:$0xff]  ;;  %v860_v61 = vld [vmem:[%s4188_s25 + $0x7d0] sm:$0xff]  ;;  %857 = vst [vmem:[%s4193_s6 + $0x3d8] sm:$0xff] %v856_v59 }
  0x94   : > { %859 = vst [vmem:[%s4193_s6 + $0x3e0] sm:$0xff] %v858_v60  ;;  %861 = vst [vmem:[%s4193_s6 + $0x3e8] sm:$0xff] %v860_v61  ;;  %v862_v62 = vld [vmem:[%s4188_s25 + $0x7e0] sm:$0xff]  ;;  %v864_v63 = vld [vmem:[%s4188_s25 + $0x7f0] sm:$0xff] }
  0x95   : > { %863 = vst [vmem:[%s4193_s6 + $0x3f0] sm:$0xff] %v862_v62  ;;  %865 = vst [vmem:[%s4193_s6 + $0x3f8] sm:$0xff] %v864_v63 }
  0x96 PF: > { %p3215_p0 = scmp.ge.s32.totalorder %s3919_s22, 1  ;;  %p870_p1 = scmp.lt.s32.totalorder %s3919_s22, 9 }
  0x98   : > { %p871_p2 = pnand %p3215_p0, %p870_p1 }
  0x99   : > { %s877_s0 = sand.u32 (!%p871_p2), 1, %s3895_s16   ;;  %s884_s5 = sand.u32 (!%p871_p2), 1, %s3887_s14  }
  0x9a   : > { %874 = sbr.rel (%p871_p2) target bundleno = 636 (0x27c), region = 81  ;;  %s3216_s23 = sshll.u32 (!%p871_p2), %s877_s0, 9 }
  0x9b   : > { %s3217_s28 = sshll.u32 (!%p871_p2), %s884_s5, 10  ;;  %s905_s7 = sand.u32 (!%p871_p2), 1, %s3879_s12  }
  0x9c   : > { %s3219_s25 = sshll.u32 (!%p871_p2), %s3907_s19, 1  ;;  %s3218_s11 = sshll.u32 (!%p871_p2), %s905_s7, 7 }
  0x9d   : > { %p928_p3 = scmp.lt.s32.totalorder (!%p871_p2), %s3219_s25, 3  ;;  %s4459_s6 = scalar_lea.vmem (!%p871_p2), [#allocation3], %s3216_s23 }
  0x9e   : > { %s4461_s1 = scalar_lea.vmem (!%p871_p2), [#allocation4], %s3217_s28  ;;  %s4463_s24 = scalar_lea.vmem (!%p871_p2), [#allocation5], %s3218_s11 }
  0x9f   : > { %p3221_p4 = scmp.ne.s32.totalorder (!%p871_p2), %s3903_s18, 0 }
  0xa1   : > { %s4846_s25 = smov (!%p928_p3, %s3219_s25), 3  ;;  %938 = sbr.rel (%p3221_p4) target bundleno = 179 (0xb3), region = 93 }
  0xa2   : > { %s3220_s26 = sshll.u32 %s4846_s25, 1  ;;  %v3921_v0 = vmov (!%p3221_p4), 0.0  }
  0xa3   : > { %s4457_s4 = scalar_lea.vmem %s4815_s3, %s3220_s26  ;;  %939 = vst [vmem:[#allocation2] sm:$0xff] (!%p3221_p4), %v3921_v0  ;;  %940 = vst [vmem:[#allocation2 + $0x8] sm:$0xff] (!%p3221_p4), %v3921_v0 }
  0xa4   : > { %941 = vst [vmem:[#allocation2 + $0x10] sm:$0xff] (!%p3221_p4), %v3921_v0  ;;  %942 = vst [vmem:[#allocation2 + $0x18] sm:$0xff] (!%p3221_p4), %v3921_v0 }
  0xa5   : > { %943 = vst [vmem:[#allocation2 + $0x20] sm:$0xff] (!%p3221_p4), %v3921_v0  ;;  %944 = vst [vmem:[#allocation2 + $0x28] sm:$0xff] (!%p3221_p4), %v3921_v0 }
  0xa6   : > { %945 = vst [vmem:[#allocation2 + $0x30] sm:$0xff] (!%p3221_p4), %v3921_v0  ;;  %946 = vst [vmem:[#allocation2 + $0x38] sm:$0xff] (!%p3221_p4), %v3921_v0 }
  0xa7   : > { %947 = vst [vmem:[#allocation2 + $0x40] sm:$0xff] (!%p3221_p4), %v3921_v0  ;;  %948 = vst [vmem:[#allocation2 + $0x48] sm:$0xff] (!%p3221_p4), %v3921_v0 }
  0xa8   : > { %949 = vst [vmem:[#allocation2 + $0x50] sm:$0xff] %v3921_v0  ;;  %950 = vst [vmem:[#allocation2 + $0x58] sm:$0xff] %v3921_v0 }
  0xa9   : > { %951 = vst [vmem:[#allocation2 + $0x60] sm:$0xff] %v3921_v0  ;;  %952 = vst [vmem:[#allocation2 + $0x68] sm:$0xff] %v3921_v0 }
  0xaa   : > { %953 = vst [vmem:[#allocation2 + $0x70] sm:$0xff] %v3921_v0  ;;  %954 = vst [vmem:[#allocation2 + $0x78] sm:$0xff] %v3921_v0 }
  0xab   : > { %955 = vst [vmem:[#allocation2 + $0x80] sm:$0xff] %v3921_v0  ;;  %956 = vst [vmem:[#allocation2 + $0x88] sm:$0xff] %v3921_v0 }
  0xac   : > { %957 = vst [vmem:[#allocation2 + $0x90] sm:$0xff] %v3921_v0  ;;  %958 = vst [vmem:[#allocation2 + $0x98] sm:$0xff] %v3921_v0 }
  0xad   : > { %959 = vst [vmem:[#allocation2 + $0xa0] sm:$0xff] %v3921_v0  ;;  %960 = vst [vmem:[#allocation2 + $0xa8] sm:$0xff] %v3921_v0 }
  0xae   : > { %961 = vst [vmem:[#allocation2 + $0xb0] sm:$0xff] %v3921_v0  ;;  %962 = vst [vmem:[#allocation2 + $0xb8] sm:$0xff] %v3921_v0 }
  0xaf   : > { %963 = vst [vmem:[#allocation2 + $0xc0] sm:$0xff] %v3921_v0  ;;  %964 = vst [vmem:[#allocation2 + $0xc8] sm:$0xff] %v3921_v0 }
  0xb0   : > { %965 = vst [vmem:[#allocation2 + $0xd0] sm:$0xff] %v3921_v0  ;;  %966 = vst [vmem:[#allocation2 + $0xd8] sm:$0xff] %v3921_v0 }
  0xb1   : > { %967 = vst [vmem:[#allocation2 + $0xe0] sm:$0xff] %v3921_v0  ;;  %968 = vst [vmem:[#allocation2 + $0xe8] sm:$0xff] %v3921_v0 }
  0xb2   : > { %969 = vst [vmem:[#allocation2 + $0xf0] sm:$0xff] %v3921_v0  ;;  %970 = vst [vmem:[#allocation2 + $0xf8] sm:$0xff] %v3921_v0 }
  0xb3 PF: > { %v3641_v1 = vld [vmem:[%s4461_s1 + $0x4] ss:$8 sps:$4 sm:$0xff]   ;;  %v3645_v3 = vld [vmem:[%s4461_s1] ss:$8 sps:$4 sm:$0xff]   ;;  %v3647_v5 = vld [vmem:[%s4461_s1 + $0x14] ss:$8 sps:$4 sm:$0xff]  }
  0xb4   : > { %v3643_v2 = vld [vmem:[%s4461_s1 + $0x204] ss:$8 sps:$4 sm:$0xff]   ;;  %2155 = vmatprep.subr.bf16.mxu1 %v3641_v1  ;;  %v3646_v4 = vld [vmem:[%s4461_s1 + $0x200] ss:$8 sps:$4 sm:$0xff]   ;;  %v3649_v6 = vld [vmem:[%s4461_s1 + $0x214] ss:$8 sps:$4 sm:$0xff]  }
  0xb5   : > { %2381 = vmatprep.subr.bf16.mxu0 %v3643_v2  ;;  %2156 = vmatpush1.bf16.msra.mxu1 %v3645_v3  ;;  %v3651_v7 = vld [vmem:[%s4461_s1 + $0x10] ss:$8 sps:$4 sm:$0xff]   ;;  %v3653_v9 = vld [vmem:[%s4461_s1 + $0x24] ss:$8 sps:$4 sm:$0xff]   ;;  %v3657_v11 = vld [vmem:[%s4461_s1 + $0x20] ss:$8 sps:$4 sm:$0xff]  }
  0xb6   : > { %2382 = vmatpush1.bf16.msra.mxu0 %v3646_v4  ;;  %2157 = vmatprep.subr.bf16.mxu1 %v3647_v5  ;;  %v3652_v8 = vld [vmem:[%s4461_s1 + $0x210] ss:$8 sps:$4 sm:$0xff]   ;;  %v3655_v10 = vld [vmem:[%s4461_s1 + $0x224] ss:$8 sps:$4 sm:$0xff]   ;;  %v3658_v12 = vld [vmem:[%s4461_s1 + $0x220] ss:$8 sps:$4 sm:$0xff]  }
  0xb7   : > { %2383 = vmatprep.subr.bf16.mxu0 %v3649_v6  ;;  %v3659_v13 = vld [vmem:[%s4461_s1 + $0x34] ss:$8 sps:$4 sm:$0xff]   ;;  %v3663_v15 = vld [vmem:[%s4461_s1 + $0x30] ss:$8 sps:$4 sm:$0xff]   ;;  %v3665_v17 = vld [vmem:[%s4461_s1 + $0x44] ss:$8 sps:$4 sm:$0xff]  }
  0xb8   : > { %v3661_v14 = vld [vmem:[%s4461_s1 + $0x234] ss:$8 sps:$4 sm:$0xff]   ;;  %v3664_v16 = vld [vmem:[%s4461_s1 + $0x230] ss:$8 sps:$4 sm:$0xff]   ;;  %v3667_v18 = vld [vmem:[%s4461_s1 + $0x244] ss:$8 sps:$4 sm:$0xff]  }
  0xb9   : > { %2158 = vmatpush1.bf16.msra.mxu1 %v3651_v7  ;;  %v3669_v19 = vld [vmem:[%s4461_s1 + $0x40] ss:$8 sps:$4 sm:$0xff]   ;;  %v3671_v21 = vld [vmem:[%s4461_s1 + $0x54] ss:$8 sps:$4 sm:$0xff]   ;;  %v3675_v23 = vld [vmem:[%s4461_s1 + $0x50] ss:$8 sps:$4 sm:$0xff]  }
  0xba   : > { %2384 = vmatpush1.bf16.msra.mxu0 %v3652_v8  ;;  %2159 = vmatprep.subr.bf16.mxu1 %v3653_v9  ;;  %v3670_v20 = vld [vmem:[%s4461_s1 + $0x240] ss:$8 sps:$4 sm:$0xff]   ;;  %v3673_v22 = vld [vmem:[%s4461_s1 + $0x254] ss:$8 sps:$4 sm:$0xff]   ;;  %v3676_v24 = vld [vmem:[%s4461_s1 + $0x250] ss:$8 sps:$4 sm:$0xff]  }
  0xbb   : > { %2385 = vmatprep.subr.bf16.mxu0 %v3655_v10  ;;  %v3677_v25 = vld [vmem:[%s4461_s1 + $0x64] ss:$8 sps:$4 sm:$0xff]   ;;  %v3681_v27 = vld [vmem:[%s4461_s1 + $0x60] ss:$8 sps:$4 sm:$0xff]   ;;  %v3683_v29 = vld [vmem:[%s4461_s1 + $0x74] ss:$8 sps:$4 sm:$0xff]  }
  0xbc   : > { %v3679_v26 = vld [vmem:[%s4461_s1 + $0x264] ss:$8 sps:$4 sm:$0xff]   ;;  %v3682_v28 = vld [vmem:[%s4461_s1 + $0x260] ss:$8 sps:$4 sm:$0xff]   ;;  %v3685_v30 = vld [vmem:[%s4461_s1 + $0x274] ss:$8 sps:$4 sm:$0xff]  }
  0xbd   : > { %2160 = vmatpush1.bf16.msra.mxu1 %v3657_v11  ;;  %v3687_v31 = vld [vmem:[%s4461_s1 + $0x70] ss:$8 sps:$4 sm:$0xff]   ;;  %v3689_v33 = vld [vmem:[%s4461_s1 + $0x84] ss:$8 sps:$4 sm:$0xff]   ;;  %v3693_v35 = vld [vmem:[%s4461_s1 + $0x80] ss:$8 sps:$4 sm:$0xff]  }
  0xbe   : > { %2386 = vmatpush1.bf16.msra.mxu0 %v3658_v12  ;;  %2161 = vmatprep.subr.bf16.mxu1 %v3659_v13  ;;  %v3688_v32 = vld [vmem:[%s4461_s1 + $0x270] ss:$8 sps:$4 sm:$0xff]   ;;  %v3691_v34 = vld [vmem:[%s4461_s1 + $0x284] ss:$8 sps:$4 sm:$0xff]   ;;  %v3694_v36 = vld [vmem:[%s4461_s1 + $0x280] ss:$8 sps:$4 sm:$0xff]  }
  0xbf   : > { %2387 = vmatprep.subr.bf16.mxu0 %v3661_v14  ;;  %v3695_v37 = vld [vmem:[%s4461_s1 + $0x94] ss:$8 sps:$4 sm:$0xff]   ;;  %v3699_v39 = vld [vmem:[%s4461_s1 + $0x90] ss:$8 sps:$4 sm:$0xff]   ;;  %v3701_v41 = vld [vmem:[%s4461_s1 + $0xa4] ss:$8 sps:$4 sm:$0xff]  }
  0xc0   : > { %v3697_v38 = vld [vmem:[%s4461_s1 + $0x294] ss:$8 sps:$4 sm:$0xff]   ;;  %v3700_v40 = vld [vmem:[%s4461_s1 + $0x290] ss:$8 sps:$4 sm:$0xff]   ;;  %v3703_v42 = vld [vmem:[%s4461_s1 + $0x2a4] ss:$8 sps:$4 sm:$0xff]  }
  0xc1   : > { %2162 = vmatpush1.bf16.msra.mxu1 %v3663_v15  ;;  %v3705_v43 = vld [vmem:[%s4461_s1 + $0xa0] ss:$8 sps:$4 sm:$0xff]   ;;  %v3707_v45 = vld [vmem:[%s4461_s1 + $0xb4] ss:$8 sps:$4 sm:$0xff]   ;;  %v3711_v47 = vld [vmem:[%s4461_s1 + $0xb0] ss:$8 sps:$4 sm:$0xff]  }
  0xc2   : > { %2388 = vmatpush1.bf16.msra.mxu0 %v3664_v16  ;;  %2163 = vmatprep.subr.bf16.mxu1 %v3665_v17  ;;  %v3706_v44 = vld [vmem:[%s4461_s1 + $0x2a0] ss:$8 sps:$4 sm:$0xff]   ;;  %v3709_v46 = vld [vmem:[%s4461_s1 + $0x2b4] ss:$8 sps:$4 sm:$0xff]   ;;  %v3712_v48 = vld [vmem:[%s4461_s1 + $0x2b0] ss:$8 sps:$4 sm:$0xff]  }
  0xc3   : > { %2389 = vmatprep.subr.bf16.mxu0 %v3667_v18  ;;  %v1003_v49 = vld [vmem:[%s4459_s6] sm:$0xff]  ;;  %v1005_v51 = vld [vmem:[%s4459_s6 + $0x10] sm:$0xff]  ;;  %p3414_p5 = scmp.ne.s32.totalorder %s3903_s18, 3 }
  0xc4   : > { %v1007_v50 = vld [vmem:[%s4459_s6 + $0x20] sm:$0xff]  ;;  %v1009_v52 = vld [vmem:[%s4459_s6 + $0x30] sm:$0xff]  ;;  %vm2823_vm0 = vcmask (!%p3414_p5), 1040384  }
  0xc5   : > { %2164 = vmatpush1.bf16.msra.mxu1 %v3669_v19  ;;  %v3713_v53 = vld [vmem:[%s4461_s1 + $0xc4] ss:$8 sps:$4 sm:$0xff]   ;;  %v3223_v54 = vcombine.high %v1003_v49, %v1007_v50  ;;  %v3227_v56 = vcombine.high %v1005_v51, %v1009_v52  ;;  %v3717_v57 = vld [vmem:[%s4461_s1 + $0xc0] ss:$8 sps:$4 sm:$0xff]   ;;  %v3719_v59 = vld [vmem:[%s4461_s1 + $0xd4] ss:$8 sps:$4 sm:$0xff]   ;;  %v3222_v12 = vcombine.low %v1003_v49, %v1007_v50  ;;  %v3226_v13 = vcombine.low %v1005_v51, %v1009_v52 }
  0xc6   : > { %2390 = vmatpush1.bf16.msra.mxu0 %v3670_v20  ;;  %2165 = vmatprep.subr.bf16.mxu1 %v3671_v21  ;;  %v3715_v55 = vld [vmem:[%s4461_s1 + $0x2c4] ss:$8 sps:$4 sm:$0xff]   ;;  %v3718_v58 = vld [vmem:[%s4461_s1 + $0x2c0] ss:$8 sps:$4 sm:$0xff]   ;;  %v3721_v60 = vld [vmem:[%s4461_s1 + $0x2d4] ss:$8 sps:$4 sm:$0xff]  }
  0xc7   : > { %2391 = vmatprep.subr.bf16.mxu0 %v3673_v22  ;;  %2187 = vmatprep.mubr.bf16.mxu1 %v3223_v54  ;;  %v3723_v61 = vld [vmem:[%s4461_s1 + $0xd0] ss:$8 sps:$4 sm:$0xff]   ;;  %v3725_v63 = vld [vmem:[%s4461_s1 + $0xe4] ss:$8 sps:$4 sm:$0xff]   ;;  %v3729_v1 = vld [vmem:[%s4461_s1 + $0xe0] ss:$8 sps:$4 sm:$0xff]  }
  0xc8   : > { %2413 = vmatprep.mubr.bf16.mxu0 %v3227_v56  ;;  %v3724_v62 = vld [vmem:[%s4461_s1 + $0x2d0] ss:$8 sps:$4 sm:$0xff]   ;;  %v3727_v0 = vld [vmem:[%s4461_s1 + $0x2e4] ss:$8 sps:$4 sm:$0xff]   ;;  %v3730_v2 = vld [vmem:[%s4461_s1 + $0x2e0] ss:$8 sps:$4 sm:$0xff]  }
  0xc9   : > { %2166 = vmatpush1.bf16.msra.mxu1 %v3675_v23  ;;  %v3731_v3 = vld [vmem:[%s4461_s1 + $0xf4] ss:$8 sps:$4 sm:$0xff]   ;;  %v3735_v5 = vld [vmem:[%s4461_s1 + $0xf0] ss:$8 sps:$4 sm:$0xff]   ;;  %v3739_v7 = vld [vmem:[%s4461_s1 + $0x104] ss:$8 sps:$4 sm:$0xff]  }
  0xca   : > { %2392 = vmatpush1.bf16.msra.mxu0 %v3676_v24  ;;  %2167 = vmatprep.subr.bf16.mxu1 %v3677_v25  ;;  %v3733_v4 = vld [vmem:[%s4461_s1 + $0x2f4] ss:$8 sps:$4 sm:$0xff]   ;;  %v3736_v6 = vld [vmem:[%s4461_s1 + $0x2f0] ss:$8 sps:$4 sm:$0xff]   ;;  %v3742_v8 = vld [vmem:[%s4461_s1 + $0x304] ss:$8 sps:$4 sm:$0xff]  }
  0xcb   : > { %2393 = vmatprep.subr.bf16.mxu0 %v3679_v26  ;;  %v3737_v9 = vld [vmem:[%s4461_s1 + $0x100] ss:$8 sps:$4 sm:$0xff]   ;;  %v1013_v15 = vld [vmem:[%s4459_s6 + $0x50] sm:$0xff]  ;;  %v3751_v23 = vld [vmem:[%s4461_s1 + $0x124] ss:$8 sps:$4 sm:$0xff]  }
  0xcc   : > { %v3740_v10 = vld [vmem:[%s4461_s1 + $0x300] ss:$8 sps:$4 sm:$0xff]   ;;  %v1017_v16 = vld [vmem:[%s4459_s6 + $0x70] sm:$0xff]  ;;  %v3754_v24 = vld [vmem:[%s4461_s1 + $0x324] ss:$8 sps:$4 sm:$0xff]  }
  0xcd   : > { %2168 = vmatpush1.bf16.msra.mxu1 %v3681_v27  ;;  %v1011_v11 = vld [vmem:[%s4459_s6 + $0x40] sm:$0xff]  ;;  %v3745_v17 = vld [vmem:[%s4461_s1 + $0x114] ss:$8 sps:$4 sm:$0xff]   ;;  %v3235_v20 = vcombine.high %v1013_v15, %v1017_v16  ;;  %v3743_v21 = vld [vmem:[%s4461_s1 + $0x110] ss:$8 sps:$4 sm:$0xff]  }
  0xce   : > { %2394 = vmatpush1.bf16.msra.mxu0 %v3682_v28  ;;  %2169 = vmatprep.subr.bf16.mxu1 %v3683_v29  ;;  %v1015_v14 = vld [vmem:[%s4459_s6 + $0x60] sm:$0xff]  ;;  %v3748_v18 = vld [vmem:[%s4461_s1 + $0x314] ss:$8 sps:$4 sm:$0xff]   ;;  %v3746_v22 = vld [vmem:[%s4461_s1 + $0x310] ss:$8 sps:$4 sm:$0xff]  }
  0xcf   : > { %2395 = vmatprep.subr.bf16.mxu0 %v3685_v30  ;;  %v3231_v19 = vcombine.high %v1011_v11, %v1015_v14  ;;  %v3749_v25 = vld [vmem:[%s4461_s1 + $0x120] ss:$8 sps:$4 sm:$0xff]   ;;  %v3230_v29 = vcombine.low %v1011_v11, %v1015_v14  ;;  %v3234_v30 = vcombine.low %v1013_v15, %v1017_v16  ;;  %v3769_v49 = vld [vmem:[%s4461_s1 + $0x154] ss:$8 sps:$4 sm:$0xff]   ;;  %v3770_v54 = vld [vmem:[%s4461_s1 + $0x350] ss:$8 sps:$4 sm:$0xff]  }
  0xd0   : > { %v3752_v26 = vld [vmem:[%s4461_s1 + $0x320] ss:$8 sps:$4 sm:$0xff]   ;;  %v3772_v50 = vld [vmem:[%s4461_s1 + $0x354] ss:$8 sps:$4 sm:$0xff]   ;;  %v3778_v56 = vld [vmem:[%s4461_s1 + $0x364] ss:$8 sps:$4 sm:$0xff]  }
  0xd1   : > { %2170 = vmatpush1.bf16.msra.mxu1 %v3687_v31  ;;  %v1019_v27 = vld [vmem:[%s4459_s6 + $0x80] sm:$0xff]  ;;  %v1021_v31 = vld [vmem:[%s4459_s6 + $0x90] sm:$0xff] }
  0xd2   : > { %2396 = vmatpush1.bf16.msra.mxu0 %v3688_v32  ;;  %2171 = vmatprep.subr.bf16.mxu1 %v3689_v33  ;;  %v1023_v28 = vld [vmem:[%s4459_s6 + $0xa0] sm:$0xff]  ;;  %v1025_v32 = vld [vmem:[%s4459_s6 + $0xb0] sm:$0xff] }
  0xd3   : > { %2397 = vmatprep.subr.bf16.mxu0 %v3691_v34  ;;  %v3757_v33 = vld [vmem:[%s4461_s1 + $0x134] ss:$8 sps:$4 sm:$0xff]   ;;  %v3785_v15 = vld [vmem:[%s4461_s1 + $0x180] ss:$8 sps:$4 sm:$0xff]  }
  0xd4   : > { %v3760_v34 = vld [vmem:[%s4461_s1 + $0x334] ss:$8 sps:$4 sm:$0xff]   ;;  %v3788_v16 = vld [vmem:[%s4461_s1 + $0x380] ss:$8 sps:$4 sm:$0xff]  }
  0xd5   : > { %2172 = vmatpush1.bf16.msra.mxu1 %v3693_v35  ;;  %v3239_v35 = vcombine.high %v1019_v27, %v1023_v28  ;;  %v1049_v14 = vld [vmem:[%s4459_s6 + $0x170] sm:$0xff] }
  0xd6   : > { %2398 = vmatpush1.bf16.msra.mxu0 %v3694_v36  ;;  %2173 = vmatprep.subr.bf16.mxu1 %v3695_v37  ;;  %v3243_v36 = vcombine.high %v1021_v31, %v1025_v32  ;;  %v3755_v37 = vld [vmem:[%s4461_s1 + $0x130] ss:$8 sps:$4 sm:$0xff]  }
  0xd7   : > { %2399 = vmatprep.subr.bf16.mxu0 %v3697_v38  ;;  %v3758_v38 = vld [vmem:[%s4461_s1 + $0x330] ss:$8 sps:$4 sm:$0xff]  }
  0xd9   : > { %2174 = vmatpush1.bf16.msra.mxu1 %v3699_v39  ;;  %v3763_v39 = vld [vmem:[%s4461_s1 + $0x144] ss:$8 sps:$4 sm:$0xff]  }
  0xda   : > { %2400 = vmatpush1.bf16.msra.mxu0 %v3700_v40  ;;  %2175 = vmatprep.subr.bf16.mxu1 %v3701_v41  ;;  %v3766_v40 = vld [vmem:[%s4461_s1 + $0x344] ss:$8 sps:$4 sm:$0xff]   ;;  %v3761_v41 = vld [vmem:[%s4461_s1 + $0x140] ss:$8 sps:$4 sm:$0xff]  }
  0xdb   : > { %2401 = vmatprep.subr.bf16.mxu0 %v3703_v42  ;;  %v3764_v42 = vld [vmem:[%s4461_s1 + $0x340] ss:$8 sps:$4 sm:$0xff]  }
  0xdd   : > { %2176 = vmatpush1.bf16.msra.mxu1 %v3705_v43  ;;  %v1027_v43 = vld [vmem:[%s4459_s6 + $0xc0] sm:$0xff] }
  0xde   : > { %2402 = vmatpush1.bf16.msra.mxu0 %v3706_v44  ;;  %2177 = vmatprep.subr.bf16.mxu1 %v3707_v45  ;;  %v1031_v44 = vld [vmem:[%s4459_s6 + $0xe0] sm:$0xff]  ;;  %v3238_v45 = vcombine.low %v1019_v27, %v1023_v28 }
  0xdf   : > { %2403 = vmatprep.subr.bf16.mxu0 %v3709_v46  ;;  %v3242_v46 = vcombine.low %v1021_v31, %v1025_v32  ;;  %v3247_v51 = vcombine.high %v1027_v43, %v1031_v44  ;;  %v1055_v28 = vld [vmem:[%s4459_s6 + $0x1a0] sm:$0xff] }
  0xe0   : > { %v3797_v31 = vld [vmem:[%s4461_s1 + $0x1a0] ss:$8 sps:$4 sm:$0xff]  }
  0xe1   : > { %2178 = vmatpush1.bf16.msra.mxu1 %v3711_v47  ;;  %v1029_v47 = vld [vmem:[%s4459_s6 + $0xd0] sm:$0xff]  ;;  %v3800_v32 = vld [vmem:[%s4461_s1 + $0x3a0] ss:$8 sps:$4 sm:$0xff]  }
  0xe2   : > { %2404 = vmatpush1.bf16.msra.mxu0 %v3712_v48  ;;  %2179 = vmatprep.subr.bf16.mxu1 %v3713_v53  ;;  %v1033_v48 = vld [vmem:[%s4459_s6 + $0xf0] sm:$0xff] }
  0xe3   : > { %2405 = vmatprep.subr.bf16.mxu0 %v3715_v55  ;;  %v3251_v52 = vcombine.high %v1029_v47, %v1033_v48  ;;  %v3767_v53 = vld [vmem:[%s4461_s1 + $0x150] ss:$8 sps:$4 sm:$0xff]   ;;  %v3775_v55 = vld [vmem:[%s4461_s1 + $0x164] ss:$8 sps:$4 sm:$0xff]  }
  0xe5   : > { %2180 = vmatpush1.bf16.msra.mxu1 %v3717_v57  ;;  %v3773_v57 = vld [vmem:[%s4461_s1 + $0x160] ss:$8 sps:$4 sm:$0xff]  }
  0xe6   : > { %2406 = vmatpush1.bf16.msra.mxu0 %v3718_v58  ;;  %2181 = vmatprep.subr.bf16.mxu1 %v3719_v59  ;;  %v1035_v58 = vld [vmem:[%s4459_s6 + $0x100] sm:$0xff] }
  0xe7   : > { %2407 = vmatprep.subr.bf16.mxu0 %v3721_v60  ;;  %v1039_v59 = vld [vmem:[%s4459_s6 + $0x120] sm:$0xff]  ;;  %v3246_v60 = vcombine.low %v1027_v43, %v1031_v44 }
  0xe8   : > { %v3254_v11 = vcombine.low %v1035_v58, %v1039_v59  ;;  %v1063_v44 = vld [vmem:[%s4459_s6 + $0x1e0] sm:$0xff] }
  0xe9   : > { %2182 = vmatpush1.bf16.msra.mxu1 %v3723_v61  ;;  %v3250_v61 = vcombine.low %v1029_v47, %v1033_v48  ;;  %v3809_v47 = vld [vmem:[%s4461_s1 + $0x1c0] ss:$8 sps:$4 sm:$0xff]  }
  0xea   : > { %2408 = vmatpush1.bf16.msra.mxu0 %v3724_v62  ;;  %2183 = vmatprep.subr.bf16.mxu1 %v3725_v63  ;;  %v1037_v62 = vld [vmem:[%s4459_s6 + $0x110] sm:$0xff]  ;;  %v3812_v48 = vld [vmem:[%s4461_s1 + $0x3c0] ss:$8 sps:$4 sm:$0xff]  }
  0xeb   : > { %2409 = vmatprep.subr.bf16.mxu0 %v3727_v0  ;;  %v1041_v63 = vld [vmem:[%s4459_s6 + $0x130] sm:$0xff]  ;;  %v3776_v0 = vld [vmem:[%s4461_s1 + $0x360] ss:$8 sps:$4 sm:$0xff]  }
  0xed   : > { %2184 = vmatpush1.bf16.msra.mxu1 %v3729_v1  ;;  %v3781_v1 = vld [vmem:[%s4461_s1 + $0x174] ss:$8 sps:$4 sm:$0xff]  }
  0xee   : > { %2410 = vmatpush1.bf16.msra.mxu0 %v3730_v2  ;;  %2185 = vmatprep.subr.bf16.mxu1 %v3731_v3  ;;  %v3784_v2 = vld [vmem:[%s4461_s1 + $0x374] ss:$8 sps:$4 sm:$0xff]   ;;  %v3255_v3 = vcombine.high %v1035_v58, %v1039_v59 }
  0xef   : > { %2411 = vmatprep.subr.bf16.mxu0 %v3733_v4  ;;  %v3259_v4 = vcombine.high %v1037_v62, %v1041_v63 }
  0xf1   : > { %2186 = vmatpush1.bf16.msra.mxu1 %v3735_v5  ;;  %v3779_v5 = vld [vmem:[%s4461_s1 + $0x170] ss:$8 sps:$4 sm:$0xff]  }
  0xf2   : > { %2412 = vmatpush1.bf16.msra.mxu0 %v3736_v6  ;;  %2268 = vmatprep.subr.bf16.mxu1 %v3739_v7  ;;  %v3782_v6 = vld [vmem:[%s4461_s1 + $0x370] ss:$8 sps:$4 sm:$0xff]   ;;  %v3787_v7 = vld [vmem:[%s4461_s1 + $0x184] ss:$8 sps:$4 sm:$0xff]  }
  0xf3   : > { %2494 = vmatprep.subr.bf16.mxu0 %v3742_v8  ;;  %v3790_v8 = vld [vmem:[%s4461_s1 + $0x384] ss:$8 sps:$4 sm:$0xff]  }
  0xf4   : > { %2188 = vmatmul.mubr.bf16.vlgmr.msra.gmra.mrb[0].mxu1 %v3222_v12  ;;  %v3258_v12 = vcombine.low %v1037_v62, %v1041_v63  ;;  %v1010_v62 = vld [vmem:[%s4459_s6 + $0x38] sm:$0xff]  ;;  %v3821_v63 = vld [vmem:[%s4461_s1 + $0x1e0] ss:$8 sps:$4 sm:$0xff]  }
  0xf5   : > { %2414 = vmatmul.mubr.bf16.vlgmr.msra.gmra.mrb[0].mxu0 %v3226_v13  ;;  %2269 = vmatpush1.bf16.msra.mxu1 %v3737_v9  ;;  %v1043_v9 = vld [vmem:[%s4459_s6 + $0x140] sm:$0xff]  ;;  %v1045_v13 = vld [vmem:[%s4459_s6 + $0x150] sm:$0xff] }
  0xf6   : > { %2495 = vmatpush1.bf16.msra.mxu0 %v3740_v10  ;;  %2270 = vmatprep.subr.bf16.mxu1 %v3745_v17  ;;  %v1047_v10 = vld [vmem:[%s4459_s6 + $0x160] sm:$0xff]  ;;  %v3793_v17 = vld [vmem:[%s4461_s1 + $0x194] ss:$8 sps:$4 sm:$0xff]   ;;  %v3266_v27 = vcombine.low %v1045_v13, %v1049_v14 }
  0xf7   : > { %2496 = vmatprep.subr.bf16.mxu0 %v3748_v18  ;;  %2197 = vmatprep.mubr.bf16.mxu1 %v3231_v19  ;;  %v3796_v18 = vld [vmem:[%s4461_s1 + $0x394] ss:$8 sps:$4 sm:$0xff]   ;;  %v3263_v19 = vcombine.high %v1043_v9, %v1047_v10 }
  0xf8   : > { %2423 = vmatprep.mubr.bf16.mxu0 %v3235_v20  ;;  %v3267_v20 = vcombine.high %v1045_v13, %v1049_v14 }
  0xf9   : > { %2271 = vmatpush1.bf16.msra.mxu1 %v3743_v21  ;;  %v3791_v21 = vld [vmem:[%s4461_s1 + $0x190] ss:$8 sps:$4 sm:$0xff]  }
  0xfa   : > { %2497 = vmatpush1.bf16.msra.mxu0 %v3746_v22  ;;  %2272 = vmatprep.subr.bf16.mxu1 %v3751_v23  ;;  %v3794_v22 = vld [vmem:[%s4461_s1 + $0x390] ss:$8 sps:$4 sm:$0xff]   ;;  %v3799_v23 = vld [vmem:[%s4461_s1 + $0x1a4] ss:$8 sps:$4 sm:$0xff]  }
  0xfb   : > { %2498 = vmatprep.subr.bf16.mxu0 %v3754_v24  ;;  %v3802_v24 = vld [vmem:[%s4461_s1 + $0x3a4] ss:$8 sps:$4 sm:$0xff]  }
  0xfc   : > { %2198 = vmatmul.mubr.bf16.gmra.mrb[4].mxu1 %v3230_v29  ;;  %v1053_v29 = vld [vmem:[%s4459_s6 + $0x190] sm:$0xff] }
  0xfd   : > { %2424 = vmatmul.mubr.bf16.gmra.mrb[4].mxu0 %v3234_v30  ;;  %2273 = vmatpush1.bf16.msra.mxu1 %v3749_v25  ;;  %v1051_v25 = vld [vmem:[%s4459_s6 + $0x180] sm:$0xff]  ;;  %v1057_v30 = vld [vmem:[%s4459_s6 + $0x1b0] sm:$0xff] }
  0xfe   : > { %2499 = vmatpush1.bf16.msra.mxu0 %v3752_v26  ;;  %2274 = vmatprep.subr.bf16.mxu1 %v3757_v33  ;;  %v3262_v26 = vcombine.low %v1043_v9, %v1047_v10  ;;  %v3805_v33 = vld [vmem:[%s4461_s1 + $0x1b4] ss:$8 sps:$4 sm:$0xff]   ;;  %v3274_v43 = vcombine.low %v1053_v29, %v1057_v30 }
  0xff   : > { %2500 = vmatprep.subr.bf16.mxu0 %v3760_v34  ;;  %2207 = vmatprep.mubr.bf16.mxu1 %v3239_v35  ;;  %v3808_v34 = vld [vmem:[%s4461_s1 + $0x3b4] ss:$8 sps:$4 sm:$0xff]   ;;  %v3271_v35 = vcombine.high %v1051_v25, %v1055_v28 }
 0x100   : > { %2433 = vmatprep.mubr.bf16.mxu0 %v3243_v36  ;;  %v3275_v36 = vcombine.high %v1053_v29, %v1057_v30  ;;  %v1014_v9 = vld [vmem:[%s4459_s6 + $0x58] sm:$0xff] }
 0x101   : > { %2275 = vmatpush1.bf16.msra.mxu1 %v3755_v37  ;;  %v3803_v37 = vld [vmem:[%s4461_s1 + $0x1b0] ss:$8 sps:$4 sm:$0xff]  }
 0x102   : > { %2501 = vmatpush1.bf16.msra.mxu0 %v3758_v38  ;;  %2276 = vmatprep.subr.bf16.mxu1 %v3763_v39  ;;  %v3806_v38 = vld [vmem:[%s4461_s1 + $0x3b0] ss:$8 sps:$4 sm:$0xff]   ;;  %v3811_v39 = vld [vmem:[%s4461_s1 + $0x1c4] ss:$8 sps:$4 sm:$0xff]  }
 0x103   : > { %2502 = vmatprep.subr.bf16.mxu0 %v3766_v40  ;;  %v3814_v40 = vld [vmem:[%s4461_s1 + $0x3c4] ss:$8 sps:$4 sm:$0xff]   ;;  %v1018_v10 = vld [vmem:[%s4459_s6 + $0x78] sm:$0xff] }
 0x104   : > { %2208 = vmatmul.mubr.bf16.gmra.mrb[8].mxu1 %v3238_v45  ;;  %v1061_v45 = vld [vmem:[%s4459_s6 + $0x1d0] sm:$0xff]  ;;  %v3237_v14 = vcombine.high %v1014_v9, %v1018_v10 }
 0x105   : > { %2434 = vmatmul.mubr.bf16.gmra.mrb[8].mxu0 %v3242_v46  ;;  %2277 = vmatpush1.bf16.msra.mxu1 %v3761_v41  ;;  %v1059_v41 = vld [vmem:[%s4459_s6 + $0x1c0] sm:$0xff]  ;;  %v1065_v46 = vld [vmem:[%s4459_s6 + $0x1f0] sm:$0xff] }
 0x106   : > { %2503 = vmatpush1.bf16.msra.mxu0 %v3764_v42  ;;  %2278 = vmatprep.subr.bf16.mxu1 %v3769_v49  ;;  %v3270_v42 = vcombine.low %v1051_v25, %v1055_v28  ;;  %v3817_v49 = vld [vmem:[%s4461_s1 + $0x1d4] ss:$8 sps:$4 sm:$0xff]   ;;  %v3278_v58 = vcombine.low %v1059_v41, %v1063_v44  ;;  %v3282_v59 = vcombine.low %v1061_v45, %v1065_v46 }
 0x107   : > { %2504 = vmatprep.subr.bf16.mxu0 %v3772_v50  ;;  %2217 = vmatprep.mubr.bf16.mxu1 %v3247_v51  ;;  %v3820_v50 = vld [vmem:[%s4461_s1 + $0x3d4] ss:$8 sps:$4 sm:$0xff]   ;;  %v3279_v51 = vcombine.high %v1059_v41, %v1063_v44 }
 0x108   : > { %2443 = vmatprep.mubr.bf16.mxu0 %v3251_v52  ;;  %v3283_v52 = vcombine.high %v1061_v45, %v1065_v46  ;;  %v1030_v25 = vld [vmem:[%s4459_s6 + $0xd8] sm:$0xff] }
 0x109   : > { %2279 = vmatpush1.bf16.msra.mxu1 %v3767_v53  ;;  %v3815_v53 = vld [vmem:[%s4461_s1 + $0x1d0] ss:$8 sps:$4 sm:$0xff]  }
 0x10a   : > { %2505 = vmatpush1.bf16.msra.mxu0 %v3770_v54  ;;  %2280 = vmatprep.subr.bf16.mxu1 %v3775_v55  ;;  %v3818_v54 = vld [vmem:[%s4461_s1 + $0x3d0] ss:$8 sps:$4 sm:$0xff]   ;;  %v3823_v55 = vld [vmem:[%s4461_s1 + $0x1e4] ss:$8 sps:$4 sm:$0xff]  }
 0x10b   : > { %2506 = vmatprep.subr.bf16.mxu0 %v3778_v56  ;;  %v3826_v56 = vld [vmem:[%s4461_s1 + $0x3e4] ss:$8 sps:$4 sm:$0xff]   ;;  %v1046_v41 = vld [vmem:[%s4459_s6 + $0x158] sm:$0xff] }
 0x10c   : > { %2218 = vmatmul.mubr.bf16.gmra.mrb[12].mxu1 %v3246_v60  ;;  %v1008_v60 = vld [vmem:[%s4459_s6 + $0x28] sm:$0xff] }
 0x10d   : > { %2444 = vmatmul.mubr.bf16.gmra.mrb[12].mxu0 %v3250_v61  ;;  %2281 = vmatpush1.bf16.msra.mxu1 %v3773_v57  ;;  %v1004_v57 = vld [vmem:[%s4459_s6 + $0x8] sm:$0xff]  ;;  %v1006_v61 = vld [vmem:[%s4459_s6 + $0x18] sm:$0xff] }
 0x10e   : > { %2507 = vmatpush1.bf16.msra.mxu0 %v3776_v0  ;;  %2282 = vmatprep.subr.bf16.mxu1 %v3781_v1  ;;  %v3824_v0 = vld [vmem:[%s4461_s1 + $0x3e0] ss:$8 sps:$4 sm:$0xff]   ;;  %v3829_v1 = vld [vmem:[%s4461_s1 + $0x1f4] ss:$8 sps:$4 sm:$0xff]  }
 0x10f   : > { %2508 = vmatprep.subr.bf16.mxu0 %v3784_v2  ;;  %2227 = vmatprep.mubr.bf16.mxu1 %v3255_v3  ;;  %v3832_v2 = vld [vmem:[%s4461_s1 + $0x3f4] ss:$8 sps:$4 sm:$0xff]   ;;  %v3225_v3 = vcombine.high %v1004_v57, %v1008_v60 }
 0x110   : > { %2453 = vmatprep.mubr.bf16.mxu0 %v3259_v4  ;;  %v3229_v4 = vcombine.high %v1006_v61, %v1010_v62 }
 0x111   : > { %2283 = vmatpush1.bf16.msra.mxu1 %v3779_v5  ;;  %v3827_v5 = vld [vmem:[%s4461_s1 + $0x1f0] ss:$8 sps:$4 sm:$0xff]  }
 0x112   : > { %2509 = vmatpush1.bf16.msra.mxu0 %v3782_v6  ;;  %2284 = vmatprep.subr.bf16.mxu1 %v3787_v7  ;;  %v3830_v6 = vld [vmem:[%s4461_s1 + $0x3f0] ss:$8 sps:$4 sm:$0xff]   ;;  %v1012_v7 = vld [vmem:[%s4459_s6 + $0x48] sm:$0xff] }
 0x113   : > { %2510 = vmatprep.subr.bf16.mxu0 %v3790_v8  ;;  %v1016_v8 = vld [vmem:[%s4459_s6 + $0x68] sm:$0xff] }
 0x114   : > { %2228 = vmatmul.mubr.bf16.gmra.mrb[16].mxu1 %v3254_v11  ;;  %v3224_v11 = vcombine.low %v1004_v57, %v1008_v60  ;;  %v3233_v13 = vcombine.high %v1012_v7, %v1016_v8  ;;  %v1062_v57 = vld [vmem:[%s4459_s6 + $0x1d8] sm:$0xff] }
 0x115   : > { %2454 = vmatmul.mubr.bf16.gmra.mrb[16].mxu0 %v3258_v12  ;;  %2285 = vmatpush1.bf16.msra.mxu1 %v3785_v15  ;;  %v3228_v12 = vcombine.low %v1006_v61, %v1010_v62  ;;  %v1020_v15 = vld [vmem:[%s4459_s6 + $0x88] sm:$0xff] }
 0x116   : > { %2511 = vmatpush1.bf16.msra.mxu0 %v3788_v16  ;;  %2286 = vmatprep.subr.bf16.mxu1 %v3793_v17  ;;  %v1024_v16 = vld [vmem:[%s4459_s6 + $0xa8] sm:$0xff]  ;;  %v1022_v17 = vld [vmem:[%s4459_s6 + $0x98] sm:$0xff] }
 0x117   : > { %2512 = vmatprep.subr.bf16.mxu0 %v3796_v18  ;;  %2237 = vmatprep.mubr.bf16.mxu1 %v3263_v19  ;;  %v1026_v18 = vld [vmem:[%s4459_s6 + $0xb8] sm:$0xff]  ;;  %v3232_v19 = vcombine.low %v1012_v7, %v1016_v8 }
 0x118   : > { %2463 = vmatprep.mubr.bf16.mxu0 %v3267_v20  ;;  %v3236_v20 = vcombine.low %v1014_v9, %v1018_v10  ;;  %v3244_v28 = vcombine.low %v1022_v17, %v1026_v18  ;;  %v973_v10 = vld [vmem:[#allocation2 + $0x10] sm:$0xff] }
 0x119   : > { %2287 = vmatpush1.bf16.msra.mxu1 %v3791_v21  ;;  %v3241_v21 = vcombine.high %v1020_v15, %v1024_v16 }
 0x11a   : > { %2513 = vmatpush1.bf16.msra.mxu0 %v3794_v22  ;;  %2288 = vmatprep.subr.bf16.mxu1 %v3799_v23  ;;  %v3245_v22 = vcombine.high %v1022_v17, %v1026_v18  ;;  %v1028_v23 = vld [vmem:[%s4459_s6 + $0xc8] sm:$0xff] }
 0x11b   : > { %2514 = vmatprep.subr.bf16.mxu0 %v3802_v24  ;;  %v1032_v24 = vld [vmem:[%s4459_s6 + $0xe8] sm:$0xff] }
 0x11c   : > { %2238 = vmatmul.mubr.bf16.gmra.mrb[20].mxu1 %v3262_v26  ;;  %v1034_v26 = vld [vmem:[%s4459_s6 + $0xf8] sm:$0xff]  ;;  %v3249_v29 = vcombine.high %v1028_v23, %v1032_v24 }
 0x11d   : > { %2464 = vmatmul.mubr.bf16.gmra.mrb[20].mxu0 %v3266_v27  ;;  %2289 = vmatpush1.bf16.msra.mxu1 %v3797_v31  ;;  %v3240_v27 = vcombine.low %v1020_v15, %v1024_v16  ;;  %v3253_v30 = vcombine.high %v1030_v25, %v1034_v26  ;;  %v1036_v31 = vld [vmem:[%s4459_s6 + $0x108] sm:$0xff]  ;;  %v974_v15 = vld [vmem:[#allocation2 + $0x18] sm:$0xff] }
 0x11e   : > { %2515 = vmatpush1.bf16.msra.mxu0 %v3800_v32  ;;  %2290 = vmatprep.subr.bf16.mxu1 %v3805_v33  ;;  %v1040_v32 = vld [vmem:[%s4459_s6 + $0x128] sm:$0xff]  ;;  %v1038_v33 = vld [vmem:[%s4459_s6 + $0x118] sm:$0xff] }
 0x11f   : > { %2516 = vmatprep.subr.bf16.mxu0 %v3808_v34  ;;  %2247 = vmatprep.mubr.bf16.mxu1 %v3271_v35  ;;  %v1042_v34 = vld [vmem:[%s4459_s6 + $0x138] sm:$0xff]  ;;  %v3248_v35 = vcombine.low %v1028_v23, %v1032_v24 }
 0x120   : > { %2473 = vmatprep.mubr.bf16.mxu0 %v3275_v36  ;;  %v3252_v36 = vcombine.low %v1030_v25, %v1034_v26  ;;  %v3260_v44 = vcombine.low %v1038_v33, %v1042_v34  ;;  %v976_v26 = vld [vmem:[#allocation2 + $0x28] sm:$0xff] }
 0x121   : > { %2291 = vmatpush1.bf16.msra.mxu1 %v3803_v37  ;;  %v3257_v37 = vcombine.high %v1036_v31, %v1040_v32 }
 0x122   : > { %2517 = vmatpush1.bf16.msra.mxu0 %v3806_v38  ;;  %2292 = vmatprep.subr.bf16.mxu1 %v3811_v39  ;;  %v3261_v38 = vcombine.high %v1038_v33, %v1042_v34  ;;  %v1044_v39 = vld [vmem:[%s4459_s6 + $0x148] sm:$0xff] }
 0x123   : > { %2518 = vmatprep.subr.bf16.mxu0 %v3814_v40  ;;  %v1048_v40 = vld [vmem:[%s4459_s6 + $0x168] sm:$0xff] }
 0x124   : > { %2248 = vmatmul.mubr.bf16.gmra.mrb[24].mxu1 %v3270_v42  ;;  %v1050_v42 = vld [vmem:[%s4459_s6 + $0x178] sm:$0xff]  ;;  %v3265_v45 = vcombine.high %v1044_v39, %v1048_v40 }
 0x125   : > { %2474 = vmatmul.mubr.bf16.gmra.mrb[24].mxu0 %v3274_v43  ;;  %2293 = vmatpush1.bf16.msra.mxu1 %v3809_v47  ;;  %v3256_v43 = vcombine.low %v1036_v31, %v1040_v32  ;;  %v3269_v46 = vcombine.high %v1046_v41, %v1050_v42  ;;  %v1052_v47 = vld [vmem:[%s4459_s6 + $0x188] sm:$0xff] }
 0x126   : > { %2519 = vmatpush1.bf16.msra.mxu0 %v3812_v48  ;;  %2294 = vmatprep.subr.bf16.mxu1 %v3817_v49  ;;  %v1056_v48 = vld [vmem:[%s4459_s6 + $0x1a8] sm:$0xff]  ;;  %v1054_v49 = vld [vmem:[%s4459_s6 + $0x198] sm:$0xff] }
 0x127   : > { %2520 = vmatprep.subr.bf16.mxu0 %v3820_v50  ;;  %2257 = vmatprep.mubr.bf16.mxu1 %v3279_v51  ;;  %v1058_v50 = vld [vmem:[%s4459_s6 + $0x1b8] sm:$0xff]  ;;  %v3264_v51 = vcombine.low %v1044_v39, %v1048_v40 }
 0x128   : > { %2483 = vmatprep.mubr.bf16.mxu0 %v3283_v52  ;;  %v3268_v52 = vcombine.low %v1046_v41, %v1050_v42  ;;  %v3276_v60 = vcombine.low %v1054_v49, %v1058_v50  ;;  %v979_v42 = vld [vmem:[#allocation2 + $0x40] sm:$0xff] }
 0x129   : > { %2295 = vmatpush1.bf16.msra.mxu1 %v3815_v53  ;;  %v3273_v53 = vcombine.high %v1052_v47, %v1056_v48 }
 0x12a   : > { %2521 = vmatpush1.bf16.msra.mxu0 %v3818_v54  ;;  %2296 = vmatprep.subr.bf16.mxu1 %v3823_v55  ;;  %v3277_v54 = vcombine.high %v1054_v49, %v1058_v50  ;;  %v1060_v55 = vld [vmem:[%s4459_s6 + $0x1c8] sm:$0xff]  ;;  %v981_v50 = vld [vmem:[#allocation2 + $0x50] sm:$0xff] }
 0x12b   : > { %2522 = vmatprep.subr.bf16.mxu0 %v3826_v56  ;;  %v1064_v56 = vld [vmem:[%s4459_s6 + $0x1e8] sm:$0xff] }
 0x12c   : > { %2258 = vmatmul.mubr.bf16.gmra.mrb[28].mxu1 %v3278_v58  ;;  %v1066_v58 = vld [vmem:[%s4459_s6 + $0x1f8] sm:$0xff]  ;;  %v3281_v61 = vcombine.high %v1060_v55, %v1064_v56 }
 0x12d   : > { %2484 = vmatmul.mubr.bf16.gmra.mrb[28].mxu0 %v3282_v59  ;;  %2297 = vmatpush1.bf16.msra.mxu1 %v3821_v63  ;;  %v3272_v59 = vcombine.low %v1052_v47, %v1056_v48  ;;  %v3285_v62 = vcombine.high %v1062_v57, %v1066_v58  ;;  %v3280_v63 = vcombine.low %v1060_v55, %v1064_v56  ;;  %v982_v55 = vld [vmem:[#allocation2 + $0x58] sm:$0xff] }
 0x12e   : > { %2523 = vmatpush1.bf16.msra.mxu0 %v3824_v0  ;;  %2298 = vmatprep.subr.bf16.mxu1 %v3829_v1  ;;  %v3284_v0 = vcombine.low %v1062_v57, %v1066_v58 }
 0x12f   : > { %2524 = vmatprep.subr.bf16.mxu0 %v3832_v2  ;;  %2300 = vmatprep.mubr.bf16.mxu1 %v3225_v3  ;;  %v971_v2 = vld [vmem:[#allocation2] sm:$0xff] }
 0x130   : > { %2526 = vmatprep.mubr.bf16.mxu0 %v3229_v4 }
 0x131   : > { %2299 = vmatpush1.bf16.msra.mxu1 %v3827_v5 }
 0x132   : > { %2525 = vmatpush1.bf16.msra.mxu0 %v3830_v6  ;;  %v972_v6 = vld [vmem:[#allocation2 + $0x8] sm:$0xff] }
 0x134   : > { %2301 = vmatmul.mubr.bf16.vlgmr.msra.gmra.mrb[0].mxu1 %v3224_v11 }
 0x135   : > { %2527 = vmatmul.mubr.bf16.vlgmr.msra.gmra.mrb[0].mxu0 %v3228_v12  ;;  %2310 = vmatprep.mubr.bf16.mxu1 %v3233_v13 }
 0x136   : > { %2536 = vmatprep.mubr.bf16.mxu0 %v3237_v14 }
 0x13c   : > { %2311 = vmatmul.mubr.bf16.gmra.mrb[4].mxu1 %v3232_v19 }
 0x13d   : > { %2537 = vmatmul.mubr.bf16.gmra.mrb[4].mxu0 %v3236_v20  ;;  %2320 = vmatprep.mubr.bf16.mxu1 %v3241_v21 }
 0x13e   : > { %2546 = vmatprep.mubr.bf16.mxu0 %v3245_v22  ;;  %v975_v22 = vld [vmem:[#allocation2 + $0x20] sm:$0xff] }
 0x144   : > { %2321 = vmatmul.mubr.bf16.gmra.mrb[8].mxu1 %v3240_v27 }
 0x145   : > { %2547 = vmatmul.mubr.bf16.gmra.mrb[8].mxu0 %v3244_v28  ;;  %2330 = vmatprep.mubr.bf16.mxu1 %v3249_v29 }
 0x146   : > { %2556 = vmatprep.mubr.bf16.mxu0 %v3253_v30  ;;  %v977_v30 = vld [vmem:[#allocation2 + $0x30] sm:$0xff] }
 0x14c   : > { %2331 = vmatmul.mubr.bf16.gmra.mrb[12].mxu1 %v3248_v35  ;;  %v978_v35 = vld [vmem:[#allocation2 + $0x38] sm:$0xff] }
 0x14d   : > { %2557 = vmatmul.mubr.bf16.gmra.mrb[12].mxu0 %v3252_v36  ;;  %2340 = vmatprep.mubr.bf16.mxu1 %v3257_v37 }
 0x14e   : > { %2566 = vmatprep.mubr.bf16.mxu0 %v3261_v38 }
 0x154   : > { %2341 = vmatmul.mubr.bf16.gmra.mrb[16].mxu1 %v3256_v43 }
 0x155   : > { %2567 = vmatmul.mubr.bf16.gmra.mrb[16].mxu0 %v3260_v44  ;;  %2350 = vmatprep.mubr.bf16.mxu1 %v3265_v45 }
 0x156   : > { %2576 = vmatprep.mubr.bf16.mxu0 %v3269_v46  ;;  %v980_v46 = vld [vmem:[#allocation2 + $0x48] sm:$0xff] }
 0x15c   : > { %2351 = vmatmul.mubr.bf16.gmra.mrb[20].mxu1 %v3264_v51 }
 0x15d   : > { %2577 = vmatmul.mubr.bf16.gmra.mrb[20].mxu0 %v3268_v52  ;;  %2360 = vmatprep.mubr.bf16.mxu1 %v3273_v53 }
 0x15e   : > { %2586 = vmatprep.mubr.bf16.mxu0 %v3277_v54 }
 0x164   : > { %2361 = vmatmul.mubr.bf16.gmra.mrb[24].mxu1 %v3272_v59 }
 0x165   : > { %2587 = vmatmul.mubr.bf16.gmra.mrb[24].mxu0 %v3276_v60  ;;  %2370 = vmatprep.mubr.bf16.mxu1 %v3281_v61 }
 0x166   : > { %2596 = vmatprep.mubr.bf16.mxu0 %v3285_v62  ;;  %v983_v62 = vld [vmem:[#allocation2 + $0x60] sm:$0xff] }
 0x16c   : > { %2371 = vmatmul.mubr.bf16.gmra.mrb[28].mxu1 %v3280_v63 }
 0x16d   : > { %2597 = vmatmul.mubr.bf16.gmra.mrb[28].mxu0 %v3284_v0 }
 0x207   : > { %v2302_v1 = vpop.f32.mrb[0].mxu1 }
 0x208   : > { %v2528_v3 = vpop.f32.mrb[0].mxu0  ;;  %v2304_v5 = vpop.f32.mrb[1].mxu1 }
 0x209   : > { %v3456_v4 = vadd.f32 %v2528_v3, %v2302_v1  ;;  %v2530_v7 = vpop.f32.mrb[1].mxu0  ;;  %v2306_v9 = vpop.f32.mrb[2].mxu1 }
 0x20a   : > { %v3457_v8 = vadd.f32 %v2530_v7, %v2304_v5  ;;  %v2532_v11 = vpop.f32.mrb[2].mxu0  ;;  %v2308_v14 = vpop.f32.mrb[3].mxu1 }
 0x20b   : > { %v2607_v12 = vadd.f32 %v3456_v4, %v971_v2  ;;  %v3458_v13 = vadd.f32 %v2532_v11, %v2306_v9  ;;  %v2534_v16 = vpop.f32.mrb[3].mxu0  ;;  %v984_v2 = vld [vmem:[#allocation2 + $0x68] sm:$0xff]  ;;  %v986_v11 = vld [vmem:[#allocation2 + $0x78] sm:$0xff] }
 0x20c   : > { %v2608_v17 = vadd.f32 %v3457_v8, %v972_v6  ;;  %v3459_v18 = vadd.f32 %v2534_v16, %v2308_v14  ;;  %v985_v6 = vld [vmem:[#allocation2 + $0x70] sm:$0xff] }
 0x20d   : > { %2639 = vst [vmem:[#allocation2] sm:$0xff] %v2607_v12  ;;  %v2609_v19 = vadd.f32 %v3458_v13, %v973_v10 }
 0x20e   : > { %2640 = vst [vmem:[#allocation2 + $0x8] sm:$0xff] %v2608_v17  ;;  %v2610_v20 = vadd.f32 %v3459_v18, %v974_v15  ;;  %v987_v18 = vld [vmem:[#allocation2 + $0x80] sm:$0xff] }
 0x20f   : > { %2641 = vst [vmem:[#allocation2 + $0x10] sm:$0xff] %v2609_v19  ;;  %v2312_v21 = vpop.f32.mrb[4].mxu1 }
 0x210   : > { %2642 = vst [vmem:[#allocation2 + $0x18] sm:$0xff] %v2610_v20  ;;  %v2538_v23 = vpop.f32.mrb[4].mxu0  ;;  %v2314_v25 = vpop.f32.mrb[5].mxu1 }
 0x211   : > { %v3460_v24 = vadd.f32 %v2538_v23, %v2312_v21  ;;  %v2540_v27 = vpop.f32.mrb[5].mxu0  ;;  %v2316_v29 = vpop.f32.mrb[6].mxu1 }
 0x212   : > { %v3461_v28 = vadd.f32 %v2540_v27, %v2314_v25  ;;  %v2542_v31 = vpop.f32.mrb[6].mxu0  ;;  %v2318_v34 = vpop.f32.mrb[7].mxu1 }
 0x213   : > { %v2611_v32 = vadd.f32 %v3460_v24, %v975_v22  ;;  %v3462_v33 = vadd.f32 %v2542_v31, %v2316_v29  ;;  %v2544_v36 = vpop.f32.mrb[7].mxu0  ;;  %v988_v22 = vld [vmem:[#allocation2 + $0x88] sm:$0xff]  ;;  %v990_v31 = vld [vmem:[#allocation2 + $0x98] sm:$0xff] }
 0x214   : > { %v2612_v37 = vadd.f32 %v3461_v28, %v976_v26  ;;  %v3463_v38 = vadd.f32 %v2544_v36, %v2318_v34  ;;  %v989_v26 = vld [vmem:[#allocation2 + $0x90] sm:$0xff] }
 0x215   : > { %2643 = vst [vmem:[#allocation2 + $0x20] sm:$0xff] %v2611_v32  ;;  %v2613_v39 = vadd.f32 %v3462_v33, %v977_v30 }
 0x216   : > { %2644 = vst [vmem:[#allocation2 + $0x28] sm:$0xff] %v2612_v37  ;;  %v2614_v40 = vadd.f32 %v3463_v38, %v978_v35  ;;  %v991_v38 = vld [vmem:[#allocation2 + $0xa0] sm:$0xff] }
 0x217   : > { %2645 = vst [vmem:[#allocation2 + $0x30] sm:$0xff] %v2613_v39  ;;  %v2322_v41 = vpop.f32.mrb[8].mxu1 }
 0x218   : > { %2646 = vst [vmem:[#allocation2 + $0x38] sm:$0xff] %v2614_v40  ;;  %v2548_v43 = vpop.f32.mrb[8].mxu0  ;;  %v2324_v45 = vpop.f32.mrb[9].mxu1 }
 0x219   : > { %v3464_v44 = vadd.f32 %v2548_v43, %v2322_v41  ;;  %v2550_v47 = vpop.f32.mrb[9].mxu0  ;;  %v2326_v49 = vpop.f32.mrb[10].mxu1 }
 0x21a   : > { %v3465_v48 = vadd.f32 %v2550_v47, %v2324_v45  ;;  %v2552_v51 = vpop.f32.mrb[10].mxu0  ;;  %v2328_v54 = vpop.f32.mrb[11].mxu1 }
 0x21b   : > { %v2615_v52 = vadd.f32 %v3464_v44, %v979_v42  ;;  %v3466_v53 = vadd.f32 %v2552_v51, %v2326_v49  ;;  %v2554_v56 = vpop.f32.mrb[11].mxu0  ;;  %v992_v42 = vld [vmem:[#allocation2 + $0xa8] sm:$0xff]  ;;  %v994_v51 = vld [vmem:[#allocation2 + $0xb8] sm:$0xff] }
 0x21c   : > { %v2616_v57 = vadd.f32 %v3465_v48, %v980_v46  ;;  %v3467_v58 = vadd.f32 %v2554_v56, %v2328_v54  ;;  %v993_v46 = vld [vmem:[#allocation2 + $0xb0] sm:$0xff] }
 0x21d   : > { %2647 = vst [vmem:[#allocation2 + $0x40] sm:$0xff] %v2615_v52  ;;  %v2617_v59 = vadd.f32 %v3466_v53, %v981_v50 }
 0x21e   : > { %2648 = vst [vmem:[#allocation2 + $0x48] sm:$0xff] %v2616_v57  ;;  %v2618_v60 = vadd.f32 %v3467_v58, %v982_v55  ;;  %v995_v58 = vld [vmem:[#allocation2 + $0xc0] sm:$0xff] }
 0x21f   : > { %2649 = vst [vmem:[#allocation2 + $0x50] sm:$0xff] %v2617_v59  ;;  %v2332_v61 = vpop.f32.mrb[12].mxu1 }
 0x220   : > { %2650 = vst [vmem:[#allocation2 + $0x58] sm:$0xff] %v2618_v60  ;;  %v2558_v63 = vpop.f32.mrb[12].mxu0  ;;  %v2334_v1 = vpop.f32.mrb[13].mxu1 }
 0x221   : > { %v3468_v0 = vadd.f32 %v2558_v63, %v2332_v61  ;;  %v2560_v3 = vpop.f32.mrb[13].mxu0  ;;  %v2336_v5 = vpop.f32.mrb[14].mxu1 }
 0x222   : > { %v3469_v4 = vadd.f32 %v2560_v3, %v2334_v1  ;;  %v2562_v7 = vpop.f32.mrb[14].mxu0  ;;  %v2338_v10 = vpop.f32.mrb[15].mxu1 }
 0x223   : > { %v2619_v8 = vadd.f32 %v3468_v0, %v983_v62  ;;  %v3470_v9 = vadd.f32 %v2562_v7, %v2336_v5  ;;  %v2564_v12 = vpop.f32.mrb[15].mxu0  ;;  %v996_v62 = vld [vmem:[#allocation2 + $0xc8] sm:$0xff]  ;;  %v998_v7 = vld [vmem:[#allocation2 + $0xd8] sm:$0xff] }
 0x224   : > { %v2620_v13 = vadd.f32 %v3469_v4, %v984_v2  ;;  %v3471_v14 = vadd.f32 %v2564_v12, %v2338_v10  ;;  %v997_v2 = vld [vmem:[#allocation2 + $0xd0] sm:$0xff] }
 0x225   : > { %2651 = vst [vmem:[#allocation2 + $0x60] sm:$0xff] %v2619_v8  ;;  %v2621_v15 = vadd.f32 %v3470_v9, %v985_v6 }
 0x226   : > { %2652 = vst [vmem:[#allocation2 + $0x68] sm:$0xff] %v2620_v13  ;;  %v2622_v16 = vadd.f32 %v3471_v14, %v986_v11  ;;  %v999_v14 = vld [vmem:[#allocation2 + $0xe0] sm:$0xff] }
 0x227   : > { %2653 = vst [vmem:[#allocation2 + $0x70] sm:$0xff] %v2621_v15  ;;  %v2342_v17 = vpop.f32.mrb[16].mxu1 }
 0x228   : > { %2654 = vst [vmem:[#allocation2 + $0x78] sm:$0xff] %v2622_v16  ;;  %v2568_v19 = vpop.f32.mrb[16].mxu0  ;;  %v2344_v21 = vpop.f32.mrb[17].mxu1 }
 0x229   : > { %v3472_v20 = vadd.f32 %v2568_v19, %v2342_v17  ;;  %v2570_v23 = vpop.f32.mrb[17].mxu0  ;;  %v2346_v25 = vpop.f32.mrb[18].mxu1 }
 0x22a   : > { %v3473_v24 = vadd.f32 %v2570_v23, %v2344_v21  ;;  %v2572_v27 = vpop.f32.mrb[18].mxu0  ;;  %v2348_v30 = vpop.f32.mrb[19].mxu1 }
 0x22b   : > { %v2623_v28 = vadd.f32 %v3472_v20, %v987_v18  ;;  %v3474_v29 = vadd.f32 %v2572_v27, %v2346_v25  ;;  %v2574_v32 = vpop.f32.mrb[19].mxu0  ;;  %v1000_v18 = vld [vmem:[#allocation2 + $0xe8] sm:$0xff]  ;;  %v1002_v27 = vld [vmem:[#allocation2 + $0xf8] sm:$0xff] }
 0x22c   : > { %v2624_v33 = vadd.f32 %v3473_v24, %v988_v22  ;;  %v3475_v34 = vadd.f32 %v2574_v32, %v2348_v30  ;;  %v1001_v22 = vld [vmem:[#allocation2 + $0xf0] sm:$0xff] }
 0x22d   : > { %2655 = vst [vmem:[#allocation2 + $0x80] sm:$0xff] %v2623_v28  ;;  %v2625_v35 = vadd.f32 %v3474_v29, %v989_v26 }
 0x22e   : > { %2656 = vst [vmem:[#allocation2 + $0x88] sm:$0xff] %v2624_v33  ;;  %v2626_v36 = vadd.f32 %v3475_v34, %v990_v31  ;;  %v2675_v33 = vld [vmem:[#allocation2] sm:$0xff] (!%p3414_p5)  ;;  %v2677_v34 = vld [vmem:[#allocation2 + $0x10] sm:$0xff] (!%p3414_p5) }
 0x22f   : > { %2657 = vst [vmem:[#allocation2 + $0x90] sm:$0xff] %v2625_v35  ;;  %v2352_v37 = vpop.f32.mrb[20].mxu1  ;;  %v2676_v35 = vld [vmem:[#allocation2 + $0x8] sm:$0xff] (!%p3414_p5) }
 0x230   : > { %2658 = vst [vmem:[#allocation2 + $0x98] sm:$0xff] %v2626_v36  ;;  %v2578_v39 = vpop.f32.mrb[20].mxu0  ;;  %v2354_v41 = vpop.f32.mrb[21].mxu1  ;;  %v2678_v36 = vld [vmem:[#allocation2 + $0x18] sm:$0xff] (!%p3414_p5) }
 0x231   : > { %v3476_v40 = vadd.f32 %v2578_v39, %v2352_v37  ;;  %v2580_v43 = vpop.f32.mrb[21].mxu0  ;;  %v2356_v45 = vpop.f32.mrb[22].mxu1  ;;  %v2707_v37 = vadd.f32 (!%p3414_p5), %v2677_v34, %v2675_v33  ;;  %v2728_v39 = vadd.f32 (!%p3414_p5), %v2678_v36, %v2676_v35 }
 0x232   : > { %v3477_v44 = vadd.f32 %v2580_v43, %v2354_v41  ;;  %v2582_v47 = vpop.f32.mrb[22].mxu0  ;;  %v2358_v50 = vpop.f32.mrb[23].mxu1 }
 0x233   : > { %v2627_v48 = vadd.f32 %v3476_v40, %v991_v38  ;;  %v3478_v49 = vadd.f32 %v2582_v47, %v2356_v45  ;;  %v2584_v52 = vpop.f32.mrb[23].mxu0  ;;  %v2679_v38 = vld [vmem:[#allocation2 + $0x20] sm:$0xff] (!%p3414_p5)  ;;  %v2680_v40 = vld [vmem:[#allocation2 + $0x28] sm:$0xff] (!%p3414_p5) }
 0x234   : > { %v2628_v53 = vadd.f32 %v3477_v44, %v992_v42  ;;  %v3479_v54 = vadd.f32 %v2584_v52, %v2358_v50  ;;  %v2708_v41 = vadd.f32 (!%p3414_p5), %v2707_v37, %v2679_v38  ;;  %v2681_v42 = vld [vmem:[#allocation2 + $0x30] sm:$0xff] (!%p3414_p5)  ;;  %v2729_v43 = vadd.f32 (!%p3414_p5), %v2728_v39, %v2680_v40  ;;  %v2682_v44 = vld [vmem:[#allocation2 + $0x38] sm:$0xff] (!%p3414_p5)  ;;  %v2684_v47 = vld [vmem:[#allocation2 + $0x48] sm:$0xff] (!%p3414_p5) }
 0x235   : > { %2659 = vst [vmem:[#allocation2 + $0xa0] sm:$0xff] %v2627_v48  ;;  %v2629_v55 = vadd.f32 %v3478_v49, %v993_v46  ;;  %v2683_v46 = vld [vmem:[#allocation2 + $0x40] sm:$0xff] (!%p3414_p5)  ;;  %v2749_v49 = vmul.f32 (!%p3414_p5), %v2675_v33, %v2675_v33  ;;  %v2685_v50 = vld [vmem:[#allocation2 + $0x50] sm:$0xff] (!%p3414_p5) }
 0x236   : > { %2660 = vst [vmem:[#allocation2 + $0xa8] sm:$0xff] %v2628_v53  ;;  %v2630_v56 = vadd.f32 %v3479_v54, %v994_v51  ;;  %v2709_v45 = vadd.f32 (!%p3414_p5), %v2708_v41, %v2681_v42  ;;  %v2730_v48 = vadd.f32 (!%p3414_p5), %v2729_v43, %v2682_v44  ;;  %v2686_v51 = vld [vmem:[#allocation2 + $0x58] sm:$0xff] (!%p3414_p5)  ;;  %v4659_v52 = vld [vmem:[#allocation2 + $0x60] sm:$0xff] (!%p3414_p5)  ;;  %v2750_v54 = vmul.f32 (!%p3414_p5), %v2676_v35, %v2676_v35 }
 0x237   : > { %2661 = vst [vmem:[#allocation2 + $0xb0] sm:$0xff] %v2629_v55  ;;  %v2362_v57 = vpop.f32.mrb[24].mxu1  ;;  %v2751_v55 = vmul.f32 (!%p3414_p5), %v2677_v34, %v2677_v34 }
 0x238   : > { %2662 = vst [vmem:[#allocation2 + $0xb8] sm:$0xff] %v2630_v56  ;;  %v2588_v59 = vpop.f32.mrb[24].mxu0  ;;  %v2364_v61 = vpop.f32.mrb[25].mxu1  ;;  %v2710_v53 = vadd.f32 (!%p3414_p5), %v2709_v45, %v2683_v46  ;;  %v2752_v56 = vmul.f32 (!%p3414_p5), %v2678_v36, %v2678_v36 }
 0x239   : > { %v3480_v60 = vadd.f32 %v2588_v59, %v2362_v57  ;;  %v2590_v63 = vpop.f32.mrb[25].mxu0  ;;  %v2366_v1 = vpop.f32.mrb[26].mxu1  ;;  %v2688_v57 = vld [vmem:[#allocation2 + $0x68] sm:$0xff] (!%p3414_p5)  ;;  %v2731_v59 = vadd.f32 (!%p3414_p5), %v2730_v48, %v2684_v47 }
 0x23a   : > { %v3481_v0 = vadd.f32 %v2590_v63, %v2364_v61  ;;  %v2592_v3 = vpop.f32.mrb[26].mxu0  ;;  %v2368_v6 = vpop.f32.mrb[27].mxu1  ;;  %v2754_v61 = vmul.f32 (!%p3414_p5), %v2680_v40, %v2680_v40  ;;  %v2711_v63 = vadd.f32 (!%p3414_p5), %v2710_v53, %v2685_v50 }
 0x23b   : > { %v2631_v4 = vadd.f32 %v3480_v60, %v995_v58  ;;  %v3482_v5 = vadd.f32 %v2592_v3, %v2366_v1  ;;  %v2594_v8 = vpop.f32.mrb[27].mxu0  ;;  %v2689_v58 = vld [vmem:[#allocation2 + $0x70] sm:$0xff] (!%p3414_p5)  ;;  %v2753_v60 = vmul.f32 (!%p3414_p5), %v2679_v38, %v2679_v38  ;;  %v2757_v1 = vmul.f32 (!%p3414_p5), %v2683_v46, %v2683_v46 }
 0x23c   : > { %v2632_v9 = vadd.f32 %v3481_v0, %v996_v62  ;;  %v3483_v10 = vadd.f32 %v2594_v8, %v2368_v6  ;;  %v2755_v62 = vmul.f32 (!%p3414_p5), %v2681_v42, %v2681_v42  ;;  %v2756_v0 = vmul.f32 (!%p3414_p5), %v2682_v44, %v2682_v44 }
 0x23d   : > { %2663 = vst [vmem:[#allocation2 + $0xc0] sm:$0xff] %v2631_v4  ;;  %v2633_v11 = vadd.f32 %v3482_v5, %v997_v2  ;;  %v2758_v2 = vmul.f32 (!%p3414_p5), %v2684_v47, %v2684_v47  ;;  %v2732_v3 = vadd.f32 (!%p3414_p5), %v2731_v59, %v2686_v51  ;;  %v4661_v4 = vmul.f32 (!%p3414_p5), %v2685_v50, %v2685_v50 }
 0x23e   : > { %2664 = vst [vmem:[#allocation2 + $0xc8] sm:$0xff] %v2632_v9  ;;  %v2634_v12 = vadd.f32 %v3483_v10, %v998_v7  ;;  %v4663_v5 = vmul.f32 (!%p3414_p5), %v2686_v51, %v2686_v51  ;;  %v4667_v6 = vmul.f32 (!%p3414_p5), %v4659_v52, %v4659_v52  ;;  %v2712_v7 = vadd.f32 (!%p3414_p5), %v2711_v63, %v4659_v52 }
 0x23f   : > { %2665 = vst [vmem:[#allocation2 + $0xd0] sm:$0xff] %v2633_v11  ;;  %v2372_v13 = vpop.f32.mrb[28].mxu1  ;;  %v4670_v8 = vmul.f32 (!%p3414_p5), %v2688_v57, %v2688_v57  ;;  %v4672_v9 = vmul.f32 (!%p3414_p5), %v2689_v58, %v2689_v58  ;;  %v2781_v10 = vadd.f32 (!%p3414_p5), %v2751_v55, %v2749_v49  ;;  %v2733_v11 = vadd.f32 (!%p3414_p5), %v2732_v3, %v2688_v57 }
 0x240   : > { %2666 = vst [vmem:[#allocation2 + $0xd8] sm:$0xff] %v2634_v12  ;;  %v2598_v15 = vpop.f32.mrb[28].mxu0  ;;  %v2374_v17 = vpop.f32.mrb[29].mxu1  ;;  %v2802_v12 = vadd.f32 (!%p3414_p5), %v2752_v56, %v2750_v54 }
 0x241   : > { %v3484_v16 = vadd.f32 %v2598_v15, %v2372_v13  ;;  %v2600_v19 = vpop.f32.mrb[29].mxu0  ;;  %v2376_v21 = vpop.f32.mrb[30].mxu1  ;;  %v3439_v13 = vpack.c.bf16 (!%p3414_p5), %v2676_v35, %v2675_v33  ;;  %v2690_v15 = vld [vmem:[#allocation2 + $0x78] sm:$0xff] (!%p3414_p5)  ;;  %v3445_v33 = vpack.c.bf16 (!%p3414_p5), %v2688_v57, %v4659_v52 }
 0x242   : > { %v3485_v20 = vadd.f32 %v2600_v19, %v2374_v17  ;;  %v2602_v23 = vpop.f32.mrb[30].mxu0  ;;  %v2378_v26 = vpop.f32.mrb[31].mxu1  ;;  %2674 = sbr.rel (%p3414_p5) target bundleno = 626 (0x272), region = 97  ;;  %v2713_v17 = vadd.f32 (!%p3414_p5), %v2712_v7, %v2689_v58  ;;  %v3441_v19 = vpack.c.bf16 (!%p3414_p5), %v2680_v40, %v2679_v38  ;;  %v2698_v35 = vld [vmem:[#allocation2 + $0xb8] sm:$0xff] (!%p3414_p5) }
 0x243   : > { %v2635_v24 = vadd.f32 %v3484_v16, %v999_v14  ;;  %v3486_v25 = vadd.f32 %v2602_v23, %v2376_v21  ;;  %v2604_v28 = vpop.f32.mrb[31].mxu0  ;;  %v3440_v14 = vpack.c.bf16 (!%p3414_p5), %v2678_v36, %v2677_v34  ;;  %v2691_v16 = vld [vmem:[#allocation2 + $0x80] sm:$0xff] (!%p3414_p5)  ;;  %v2692_v21 = vld [vmem:[#allocation2 + $0x88] sm:$0xff] (!%p3414_p5)  ;;  %v4676_v23 = vld [vmem:[#allocation2 + $0x98] sm:$0xff] (!%p3414_p5)  ;;  %2934 = vst [vmem:[%s4463_s24] sm:$0xff] (!%p3414_p5), %v3439_v13  ;;  %v3446_v34 = vpack.c.bf16 (!%p3414_p5), %v2690_v15, %v2689_v58 }
 0x244   : > { %v2636_v29 = vadd.f32 %v3485_v20, %v1000_v18  ;;  %v3487_v30 = vadd.f32 %v2604_v28, %v2378_v26  ;;  %v2782_v18 = vadd.f32 (!%p3414_p5), %v2781_v10, %v2753_v60  ;;  %v3442_v20 = vpack.c.bf16 (!%p3414_p5), %v2682_v44, %v2681_v42  ;;  %v2695_v28 = vld [vmem:[#allocation2 + $0xa0] sm:$0xff] (!%p3414_p5)  ;;  %2936 = vst [vmem:[%s4463_s24 + $0x10] sm:$0xff] (!%p3414_p5), %v3441_v19 }
 0x245   : > { %2667 = vst [vmem:[#allocation2 + $0xe0] sm:$0xff] %v2635_v24  ;;  %v2637_v31 = vadd.f32 %v3486_v25, %v1001_v22  ;;  %v4674_v22 = vld [vmem:[#allocation2 + $0x90] sm:$0xff] (!%p3414_p5)  ;;  %v2734_v24 = vadd.f32 (!%p3414_p5), %v2733_v11, %v2690_v15  ;;  %v2803_v25 = vadd.f32 (!%p3414_p5), %v2802_v12, %v2754_v61  ;;  %2935 = vst [vmem:[%s4463_s24 + $0x8] sm:$0xff] (!%p3414_p5), %v3440_v14  ;;  %v4687_v36 = vld [vmem:[#allocation2 + $0xc0] sm:$0xff] (!%p3414_p5) }
 0x246   : > { %2668 = vst [vmem:[#allocation2 + $0xe8] sm:$0xff] %v2636_v29  ;;  %v2638_v32 = vadd.f32 %v3487_v30, %v1002_v27  ;;  %v3443_v26 = vpack.c.bf16 (!%p3414_p5), %v2684_v47, %v2683_v46  ;;  %v3444_v27 = vpack.c.bf16 (!%p3414_p5), %v2686_v51, %v2685_v50  ;;  %v4680_v29 = vld [vmem:[#allocation2 + $0xa8] sm:$0xff] (!%p3414_p5)  ;;  %v4682_v30 = vld [vmem:[#allocation2 + $0xb0] sm:$0xff] (!%p3414_p5)  ;;  %2937 = vst [vmem:[%s4463_s24 + $0x18] sm:$0xff] (!%p3414_p5), %v3442_v20 }
 0x247   : > { %2669 = vst [vmem:[#allocation2 + $0xf0] sm:$0xff] %v2637_v31  ;;  %v2714_v31 = vadd.f32 (!%p3414_p5), %v2713_v17, %v2691_v16  ;;  %v4689_v37 = vld [vmem:[#allocation2 + $0xc8] sm:$0xff] (!%p3414_p5)  ;;  %v2735_v38 = vadd.f32 (!%p3414_p5), %v2734_v24, %v2692_v21  ;;  %v2804_v39 = vadd.f32 (!%p3414_p5), %v2803_v25, %v2756_v0  ;;  %v3447_v40 = vpack.c.bf16 (!%p3414_p5), %v2692_v21, %v2691_v16  ;;  %v2701_v42 = vld [vmem:[#allocation2 + $0xd0] sm:$0xff] (!%p3414_p5)  ;;  %v4695_v43 = vld [vmem:[#allocation2 + $0xd8] sm:$0xff] (!%p3414_p5) }
 0x248   : > { %2670 = vst [vmem:[#allocation2 + $0xf8] sm:$0xff] %v2638_v32  ;;  %v2783_v32 = vadd.f32 (!%p3414_p5), %v2782_v18, %v2755_v62  ;;  %2938 = vst [vmem:[%s4463_s24 + $0x20] sm:$0xff] (!%p3414_p5), %v3443_v26  ;;  %v3448_v41 = vpack.c.bf16 (!%p3414_p5), %v4676_v23, %v4674_v22  ;;  %v3449_v47 = vpack.c.bf16 (!%p3414_p5), %v4680_v29, %v2695_v28 }
 0x249   : > { %2939 = vst [vmem:[%s4463_s24 + $0x28] sm:$0xff] %v3444_v27  ;;  %v2715_v45 = vadd.f32 %v2714_v31, %v4674_v22  ;;  %2940 = vst [vmem:[%s4463_s24 + $0x30] sm:$0xff] %v3445_v33  ;;  %v3450_v48 = vpack.c.bf16 %v2698_v35, %v4682_v30  ;;  %v2736_v52 = vadd.f32 %v2735_v38, %v4676_v23 }
 0x24a   : > { %v2784_v46 = vadd.f32 %v2783_v32, %v2757_v1  ;;  %2941 = vst [vmem:[%s4463_s24 + $0x38] sm:$0xff] %v3446_v34  ;;  %v2805_v53 = vadd.f32 %v2804_v39, %v2758_v2  ;;  %2942 = vst [vmem:[%s4463_s24 + $0x40] sm:$0xff] %v3447_v40  ;;  %v3451_v54 = vpack.c.bf16 %v4689_v37, %v4687_v36 }
 0x24b   : > { %2943 = vst [vmem:[%s4463_s24 + $0x48] sm:$0xff] %v3448_v41  ;;  %v3452_v55 = vpack.c.bf16 %v4695_v43, %v2701_v42  ;;  %v2716_v56 = vadd.f32 %v2715_v45, %v2695_v28  ;;  %2944 = vst [vmem:[%s4463_s24 + $0x50] sm:$0xff] %v3449_v47  ;;  %v2737_v60 = vadd.f32 %v2736_v52, %v4680_v29 }
 0x24c   : > { %v4697_v44 = vld [vmem:[#allocation2 + $0xe0] sm:$0xff]  ;;  %v2785_v57 = vadd.f32 %v2784_v46, %v4661_v4  ;;  %2945 = vst [vmem:[%s4463_s24 + $0x58] sm:$0xff] %v3450_v48  ;;  %v2764_v61 = vmul.f32 %v2690_v15, %v2690_v15  ;;  %v2806_v62 = vadd.f32 %v2805_v53, %v4663_v5  ;;  %2946 = vst [vmem:[%s4463_s24 + $0x60] sm:$0xff] %v3451_v54 }
 0x24d   : > { %v2704_v49 = vld [vmem:[#allocation2 + $0xe8] sm:$0xff]  ;;  %2947 = vst [vmem:[%s4463_s24 + $0x68] sm:$0xff] %v3452_v55  ;;  %v2717_v63 = vadd.f32 %v2716_v56, %v4682_v30  ;;  %v2765_v0 = vmul.f32 %v2691_v16, %v2691_v16  ;;  %v2738_v2 = vadd.f32 %v2737_v60, %v2698_v35  ;;  %v2766_v3 = vmul.f32 %v2692_v21, %v2692_v21 }
 0x24e   : > { %v4704_v50 = vld [vmem:[#allocation2 + $0xf0] sm:$0xff]  ;;  %v3453_v58 = vpack.c.bf16 %v2704_v49, %v4697_v44  ;;  %v2786_v1 = vadd.f32 %v2785_v57, %v4667_v6  ;;  %v2807_v4 = vadd.f32 %v2806_v62, %v4670_v8  ;;  %v2767_v10 = vmul.f32 %v4674_v22, %v4674_v22 }
 0x24f   : > { %v4706_v51 = vld [vmem:[#allocation2 + $0xf8] sm:$0xff]  ;;  %v2718_v7 = vadd.f32 %v2717_v63, %v4687_v36  ;;  %v2739_v11 = vadd.f32 %v2738_v2, %v4689_v37  ;;  %v2768_v12 = vmul.f32 %v4676_v23, %v4676_v23  ;;  %v2769_v14 = vmul.f32 %v2695_v28, %v2695_v28 }
 0x250   : > { %v3454_v59 = vpack.c.bf16 %v4706_v51, %v4704_v50  ;;  %2948 = vst [vmem:[%s4463_s24 + $0x70] sm:$0xff] %v3453_v58  ;;  %v2787_v5 = vadd.f32 %v2786_v1, %v4672_v9  ;;  %v2808_v13 = vadd.f32 %v2807_v4, %v2764_v61  ;;  %v2770_v8 = vmul.f32 %v4680_v29, %v4680_v29 }
 0x251   : > { %v2719_v6 = vadd.f32 %v2718_v7, %v2701_v42  ;;  %v2740_v16 = vadd.f32 %v2739_v11, %v4695_v43  ;;  %v2771_v9 = vmul.f32 %v4682_v30, %v4682_v30  ;;  %v2772_v21 = vmul.f32 %v2698_v35, %v2698_v35 }
 0x252   : > { %2949 = vst [vmem:[%s4463_s24 + $0x78] sm:$0xff] %v3454_v59  ;;  %v2788_v15 = vadd.f32 %v2787_v5, %v2765_v0  ;;  %v2809_v17 = vadd.f32 %v2808_v13, %v2766_v3  ;;  %v2773_v24 = vmul.f32 %v4687_v36, %v4687_v36  ;;  %v2774_v27 = vmul.f32 %v4689_v37, %v4689_v37 }
 0x253   : > { %v2720_v18 = vadd.f32 %v2719_v6, %v4697_v44  ;;  %v2741_v20 = vadd.f32 %v2740_v16, %v2704_v49  ;;  %v2775_v31 = vmul.f32 %v2701_v42, %v2701_v42  ;;  %v2776_v33 = vmul.f32 %v4695_v43, %v4695_v43 }
 0x254   : > { %v2789_v19 = vadd.f32 %v2788_v15, %v2767_v10  ;;  %v2810_v22 = vadd.f32 %v2809_v17, %v2768_v12  ;;  %v2777_v38 = vmul.f32 %v4697_v44, %v4697_v44  ;;  %v2778_v40 = vmul.f32 %v2704_v49, %v2704_v49 }
 0x255   : > { %v2721_v23 = vadd.f32 %v2720_v18, %v4704_v50  ;;  %v2742_v26 = vadd.f32 %v2741_v20, %v4706_v51  ;;  %v2779_v37 = vmul.f32 %v4704_v50, %v4704_v50  ;;  %v2780_v42 = vmul.f32 %v4706_v51, %v4706_v51 }
 0x256   : > { %v2790_v25 = vadd.f32 %v2789_v19, %v2769_v14  ;;  %v2811_v28 = vadd.f32 %v2810_v22, %v2770_v8 }
 0x257   : > { %v2722_v29 = vrot.slane %v2721_v23, 4  ;;  %v2743_v30 = vrot.slane %v2742_v26, 4 }
 0x258   : > { %v2791_v32 = vadd.f32 %v2790_v25, %v2771_v9  ;;  %v2812_v34 = vadd.f32 %v2811_v28, %v2772_v21 }
 0x259   : > { %v2723_v35 = vadd.f32 %v2722_v29, %v2721_v23  ;;  %v2744_v39 = vadd.f32 %v2743_v30, %v2742_v26 }
 0x25a   : > { %v2792_v36 = vadd.f32 %v2791_v32, %v2773_v24  ;;  %v2813_v41 = vadd.f32 %v2812_v34, %v2774_v27 }
 0x25b   : > { %v2724_v47 = vrot.slane %v2723_v35, 2  ;;  %v2745_v43 = vrot.slane %v2744_v39, 2 }
 0x25c   : > { %v2793_v45 = vadd.f32 %v2792_v36, %v2775_v31  ;;  %v2814_v46 = vadd.f32 %v2813_v41, %v2776_v33 }
 0x25d   : > { %v2725_v55 = vadd.f32 %v2724_v47, %v2723_v35  ;;  %v2746_v56 = vadd.f32 %v2745_v43, %v2744_v39 }
 0x25e   : > { %v2794_v48 = vadd.f32 %v2793_v45, %v2777_v38  ;;  %v2815_v52 = vadd.f32 %v2814_v46, %v2778_v40 }
 0x25f   : > { %v2726_v59 = vrot.slane %v2725_v55, 1  ;;  %v2747_v60 = vrot.slane %v2746_v56, 1 }
 0x260   : > { %v2795_v53 = vadd.f32 %v2794_v48, %v2779_v37  ;;  %v2816_v54 = vadd.f32 %v2815_v52, %v2780_v42 }
 0x261   : > { %v2727_v63 = vadd.f32 %v2726_v59, %v2725_v55  ;;  %v2748_v1 = vadd.f32 %v2747_v60, %v2746_v56 }
 0x262   : > { %v2796_v44 = vrot.slane %v2795_v53, 4  ;;  %v2817_v57 = vrot.slane %v2816_v54, 4 }
 0x264   : > { %v2797_v49 = vadd.f32 %v2796_v44, %v2795_v53  ;;  %v2818_v58 = vadd.f32 %v2817_v57, %v2816_v54 }
 0x266   : > { %v2798_v50 = vrot.slane %v2797_v49, 2  ;;  %v2819_v61 = vrot.slane %v2818_v58, 2 }
 0x268   : > { %v2799_v62 = vadd.f32 %v2798_v50, %v2797_v49  ;;  %v2820_v51 = vadd.f32 %v2819_v61, %v2818_v58 }
 0x26a   : > { %v2800_v0 = vrot.slane %v2799_v62, 1  ;;  %v2821_v2 = vrot.slane %v2820_v51, 1 }
 0x26c   : > { %v2801_v3 = vadd.f32 %v2800_v0, %v2799_v62  ;;  %v2822_v4 = vadd.f32 %v2821_v2, %v2820_v51 }
 0x26e   : > { %v2824_v7 = vsel %vm2823_vm0, %v2727_v63, %v2801_v3  ;;  %v2825_v10 = vsel %vm2823_vm0, %v2748_v1, %v2822_v4 }
 0x26f   : > { %v2828_v5 = vcombine.low %v2824_v7, %v2825_v10 }
 0x271   : > { %3415 = vst.sshfl [vmem:[%s4457_s4] sm:$0x33 pattern:$0x76325410] %v2828_v5 }
 0x272 PF: > { %2965 = sbr.rel (!%p4036_p12) target bundleno = 636 (0x27c), region = 101  ;;  %s3455_s1 = sshll.u32 (%p4036_p12), %s3907_s19, 3  ;;  %v3043_v8 = vld [vmem:[%s4463_s24 + $0x38] sm:$0xff] (%p4036_p12)  ;;  %v3045_v17 = vld [vmem:[%s4463_s24 + $0x40] sm:$0xff] (%p4036_p12)  ;;  %v3047_v18 = vld [vmem:[%s4463_s24 + $0x48] sm:$0xff] (%p4036_p12) }
 0x273   : > { %v3029_v11 = vld [vmem:[%s4463_s24] sm:$0xff] (%p4036_p12)  ;;  %s2971_s16 = scalar_lea.vmem (%p4036_p12), %s4814_s2, %s3455_s1  ;;  %v3049_v9 = vld [vmem:[%s4463_s24 + $0x50] sm:$0xff] (%p4036_p12)  ;;  %v3051_v19 = vld [vmem:[%s4463_s24 + $0x58] sm:$0xff] (%p4036_p12) }
 0x274   : > { %v3033_v13 = vld [vmem:[%s4463_s24 + $0x10] sm:$0xff] (%p4036_p12)  ;;  %3030 = vst [vmem:[%s2971_s16] sm:$0xff] (%p4036_p12), %v3029_v11  ;;  %3044 = vst [vmem:[%s2971_s16 + $0x70] sm:$0xff] (%p4036_p12), %v3043_v8  ;;  %v3053_v20 = vld [vmem:[%s4463_s24 + $0x60] sm:$0xff] (%p4036_p12) }
 0x275   : > { %v3031_v12 = vld [vmem:[%s4463_s24 + $0x8] sm:$0xff] (%p4036_p12)  ;;  %3034 = vst [vmem:[%s2971_s16 + $0x20] sm:$0xff] (%p4036_p12), %v3033_v13  ;;  %3046 = vst [vmem:[%s2971_s16 + $0x80] sm:$0xff] (%p4036_p12), %v3045_v17  ;;  %v3057_v22 = vld [vmem:[%s4463_s24 + $0x70] sm:$0xff] (%p4036_p12) }
 0x276   : > { %v3035_v6 = vld [vmem:[%s4463_s24 + $0x18] sm:$0xff] (%p4036_p12)  ;;  %3032 = vst [vmem:[%s2971_s16 + $0x10] sm:$0xff] (%p4036_p12), %v3031_v12  ;;  %3048 = vst [vmem:[%s2971_s16 + $0x90] sm:$0xff] (%p4036_p12), %v3047_v18  ;;  %v3055_v21 = vld [vmem:[%s4463_s24 + $0x68] sm:$0xff] (%p4036_p12) }
 0x277   : > { %3036 = vst [vmem:[%s2971_s16 + $0x30] sm:$0xff] (%p4036_p12), %v3035_v6  ;;  %3050 = vst [vmem:[%s2971_s16 + $0xa0] sm:$0xff] (%p4036_p12), %v3049_v9  ;;  %v3059_v23 = vld [vmem:[%s4463_s24 + $0x78] sm:$0xff] (%p4036_p12) }
 0x278   : > { %v3037_v14 = vld [vmem:[%s4463_s24 + $0x20] sm:$0xff] (%p4036_p12)  ;;  %3052 = vst [vmem:[%s2971_s16 + $0xb0] sm:$0xff] (%p4036_p12), %v3051_v19  ;;  %3054 = vst [vmem:[%s2971_s16 + $0xc0] sm:$0xff] (%p4036_p12), %v3053_v20 }
 0x279   : > { %v3039_v15 = vld [vmem:[%s4463_s24 + $0x28] sm:$0xff]  ;;  %3038 = vst [vmem:[%s2971_s16 + $0x40] sm:$0xff] %v3037_v14  ;;  %v3041_v16 = vld [vmem:[%s4463_s24 + $0x30] sm:$0xff]  ;;  %3056 = vst [vmem:[%s2971_s16 + $0xd0] sm:$0xff] %v3055_v21 }
 0x27a   : > { %3040 = vst [vmem:[%s2971_s16 + $0x50] sm:$0xff] %v3039_v15  ;;  %3042 = vst [vmem:[%s2971_s16 + $0x60] sm:$0xff] %v3041_v16 }
 0x27b   : > { %3058 = vst [vmem:[%s2971_s16 + $0xe0] sm:$0xff] %v3057_v22  ;;  %3060 = vst [vmem:[%s2971_s16 + $0xf0] sm:$0xff] %v3059_v23 }
 0x27c PF: > { %s14_s22 = sadd.s32 1, %s3919_s22   ;;  %s4827_s10 = sld [smem:[#allocation6_spill]] }
 0x27d   : > { %p11_p6 = scmp.ge.s32.totalorder %s14_s22, 10   ;;  %s4828_s0 = sld [smem:[#allocation7_spill]] }
 0x27e   : > { %s4829_s12 = smov %s3883_s13  ;;  %s4830_s13 = smov %s4034_s9 }
 0x27f   : > { %s4831_s14 = smov %s3891_s15  ;;  %s4832_s15 = smov %s4031_s8 }
 0x280   : > { %s4833_s16 = smov %s3899_s17  ;;  %s4834_s17 = smov %s4017_s30 }
 0x281   : > { %s4835_s18 = smov %s3911_s20  ;;  %s4836_s19 = smov %s3915_s21 }
 0x282   : > { %s4837_s20 = smov %s4827_s10  ;;  %13 = sbr.rel (!%p11_p6) target bundleno = 9 (0x9), region = 190 }
 0x283   : > { %s4838_s21 = smov %s4828_s0 }

// kernel: _lambda_.12
= control target key start
LH: loop header
LB: loop body
LE: loop exit
PB: predicated region body
PF: predicated region fallthrough
CT: control target
= control target key end

     0   :  { %v112_v0 = vlaneseq  ;;  %s1133_s0 = inlined_call_operand.vmem [shape: bf16[128,512], index: 0, kind: input, shape index: {}]   ;;  %s1134_s1 = inlined_call_operand.vmem [shape: f32[1,512], index: 1, kind: input, shape index: {}]   ;;  %s1135_s2 = inlined_call_operand.vmem [shape: f32[1,512], index: 2, kind: input, shape index: {}]   ;;  %s1136_s3 = inlined_call_operand.vmem [shape: bf16[128,512], index: 3, kind: output, shape index: {}]  }
   0x1   :  { %v14_v1 = vld [vmem:[%s1133_s0] sm:$0xff]  ;;  %v15_v5 = vld [vmem:[%s1133_s0 + $0x8] sm:$0xff]  ;;  %v16_v6 = vld [vmem:[%s1133_s0 + $0x10] sm:$0xff] }
   0x2   :  { %v46_v2 = vunpack.c.l.bf16 %v14_v1  ;;  %v47_v3 = vunpack.c.h.bf16 %v14_v1  ;;  %v113_v4 = vshrl.u32 %v112_v0, 7  ;;  %v17_v7 = vld [vmem:[%s1133_s0 + $0x18] sm:$0xff]  ;;  %v110_v8 = vld [vmem:[%s1134_s1] sm:$0xf]  ;;  %v48_v10 = vunpack.c.l.bf16 %v15_v5  ;;  %v19_v57 = vld [vmem:[%s1133_s0 + $0x28] sm:$0xff] }
   0x3   :  { %v196_v9 = vld [vmem:[%s1135_s2] sm:$0xf]  ;;  %v49_v11 = vunpack.c.h.bf16 %v15_v5  ;;  %v50_v12 = vunpack.c.l.bf16 %v16_v6  ;;  %v51_v13 = vunpack.c.h.bf16 %v16_v6  ;;  %v52_v19 = vunpack.c.l.bf16 %v17_v7 }
   0x4   :  { %v807_v14 = vld [vmem:[%s1133_s0 + $0x20] sm:$0xff]  ;;  %v114_v15 = vsub.s32 0, %v113_v4  ;;  %v118_v16 = vsub.s32 1, %v113_v4  ;;  %v122_v17 = vsub.s32 2, %v113_v4  ;;  %v126_v18 = vsub.s32 3, %v113_v4  ;;  %v20_v4 = vld [vmem:[%s1133_s0 + $0x30] sm:$0xff] }
   0x5   :  { %v53_v20 = vunpack.c.h.bf16 %v17_v7  ;;  %v54_v21 = vunpack.c.l.bf16 %v807_v14  ;;  %v55_v22 = vunpack.c.h.bf16 %v807_v14 }
   0x6   :  { %v811_v23 = vrot.slane %v110_v8, %v114_v15  ;;  %v813_v24 = vrot.slane %v110_v8, %v118_v16  ;;  %v815_v25 = vrot.slane %v196_v9, %v114_v15  ;;  %v817_v26 = vrot.slane %v196_v9, %v118_v16 }
   0x7   :  { %v819_v27 = vrot.slane %v110_v8, %v122_v17  ;;  %v821_v28 = vrot.slane %v110_v8, %v126_v18  ;;  %v823_v29 = vrot.slane %v196_v9, %v122_v17  ;;  %v825_v30 = vrot.slane %v196_v9, %v126_v18 }
   0x8   :  { %v132_v31 = vmul.f32 %v811_v23, %v46_v2  ;;  %v133_v32 = vmul.f32 %v813_v24, %v47_v3  ;;  %v136_v33 = vmul.f32 %v811_v23, %v50_v12  ;;  %v137_v34 = vmul.f32 %v813_v24, %v51_v13  ;;  %v21_v13 = vld [vmem:[%s1133_s0 + $0x38] sm:$0xff] }
   0x9   :  { %v134_v35 = vmul.f32 %v819_v27, %v48_v10  ;;  %v135_v36 = vmul.f32 %v821_v28, %v49_v11  ;;  %v138_v37 = vmul.f32 %v819_v27, %v52_v19  ;;  %v139_v38 = vmul.f32 %v821_v28, %v53_v20 }
   0xa   :  { %v218_v39 = vadd.f32 %v815_v25, %v132_v31  ;;  %v219_v40 = vadd.f32 %v817_v26, %v133_v32  ;;  %v222_v41 = vadd.f32 %v815_v25, %v136_v33  ;;  %v223_v42 = vadd.f32 %v817_v26, %v137_v34  ;;  %v22_v32 = vld [vmem:[%s1133_s0 + $0x40] sm:$0xff] }
   0xb   :  { %v220_v43 = vadd.f32 %v823_v29, %v134_v35  ;;  %v221_v44 = vadd.f32 %v825_v30, %v135_v36  ;;  %v224_v45 = vadd.f32 %v823_v29, %v138_v37  ;;  %v225_v46 = vadd.f32 %v825_v30, %v139_v38 }
   0xc   :  { %vm282_vm0 = vcmp.ge.f32.partialorder %v218_v39, 0.0  ;;  %vm283_vm1 = vcmp.ge.f32.partialorder %v219_v40, 0.0  ;;  %v346_v47 = vmul.f32 0.2, %v218_v39  ;;  %v347_v48 = vmul.f32 0.2, %v219_v40 }
   0xd   :  { %vm284_vm2 = vcmp.ge.f32.partialorder %v220_v43, 0.0  ;;  %vm285_vm3 = vcmp.ge.f32.partialorder %v221_v44, 0.0  ;;  %v348_v49 = vmul.f32 0.2, %v220_v43  ;;  %v349_v50 = vmul.f32 0.2, %v221_v44 }
   0xe   :  { %v410_v51 = vsel %vm282_vm0, %v218_v39, %v346_v47  ;;  %v411_v52 = vsel %vm283_vm1, %v219_v40, %v347_v48  ;;  %vm286_vm4 = vcmp.ge.f32.partialorder %v222_v41, 0.0  ;;  %vm287_vm5 = vcmp.ge.f32.partialorder %v223_v42, 0.0 }
   0xf   :  { %v734_v53 = vpack.c.bf16 %v411_v52, %v410_v51  ;;  %v412_v54 = vsel %vm284_vm2, %v220_v43, %v348_v49  ;;  %v413_v55 = vsel %vm285_vm3, %v221_v44, %v349_v50  ;;  %v350_v56 = vmul.f32 0.2, %v222_v41  ;;  %v23_v43 = vld [vmem:[%s1133_s0 + $0x48] sm:$0xff] }
  0x10   :  { %v735_v58 = vpack.c.bf16 %v413_v55, %v412_v54  ;;  %v351_v59 = vmul.f32 0.2, %v223_v42  ;;  %vm288_vm6 = vcmp.ge.f32.partialorder %v224_v45, 0.0  ;;  %vm289_vm7 = vcmp.ge.f32.partialorder %v225_v46, 0.0 }
  0x11   :  { %666 = vst [vmem:[%s1136_s3] sm:$0xff] %v734_v53  ;;  %v414_v60 = vsel %vm286_vm4, %v222_v41, %v350_v56  ;;  %v352_v61 = vmul.f32 0.2, %v224_v45  ;;  %v353_v62 = vmul.f32 0.2, %v225_v46  ;;  %v140_v63 = vmul.f32 %v811_v23, %v54_v21 }
  0x12   :  { %667 = vst [vmem:[%s1136_s3 + $0x8] sm:$0xff] %v735_v58  ;;  %v415_v0 = vsel %vm287_vm5, %v223_v42, %v351_v59  ;;  %v141_v1 = vmul.f32 %v813_v24, %v55_v22  ;;  %v56_v2 = vunpack.c.l.bf16 %v19_v57  ;;  %v57_v3 = vunpack.c.h.bf16 %v19_v57 }
  0x13   :  { %v736_v5 = vpack.c.bf16 %v415_v0, %v414_v60  ;;  %v416_v6 = vsel %vm288_vm6, %v224_v45, %v352_v61  ;;  %v417_v7 = vsel %vm289_vm7, %v225_v46, %v353_v62  ;;  %v226_v8 = vadd.f32 %v815_v25, %v140_v63  ;;  %v24_v61 = vld [vmem:[%s1133_s0 + $0x50] sm:$0xff] }
  0x14   :  { %v737_v9 = vpack.c.bf16 %v417_v7, %v416_v6  ;;  %v227_v10 = vadd.f32 %v817_v26, %v141_v1  ;;  %v142_v11 = vmul.f32 %v819_v27, %v56_v2  ;;  %v143_v12 = vmul.f32 %v821_v28, %v57_v3 }
  0x15   :  { %668 = vst [vmem:[%s1136_s3 + $0x10] sm:$0xff] %v736_v5  ;;  %vm290_vm8 = vcmp.ge.f32.partialorder %v226_v8, 0.0  ;;  %v354_v14 = vmul.f32 0.2, %v226_v8  ;;  %v58_v15 = vunpack.c.l.bf16 %v20_v4  ;;  %v59_v16 = vunpack.c.h.bf16 %v20_v4 }
  0x16   :  { %669 = vst [vmem:[%s1136_s3 + $0x18] sm:$0xff] %v737_v9  ;;  %vm291_vm9 = vcmp.ge.f32.partialorder %v227_v10, 0.0  ;;  %v355_v17 = vmul.f32 0.2, %v227_v10  ;;  %v228_v18 = vadd.f32 %v823_v29, %v142_v11  ;;  %v229_v19 = vadd.f32 %v825_v30, %v143_v12 }
  0x17   :  { %v418_v20 = vsel %vm290_vm8, %v226_v8, %v354_v14  ;;  %v144_v21 = vmul.f32 %v811_v23, %v58_v15  ;;  %v145_v22 = vmul.f32 %v813_v24, %v59_v16  ;;  %v60_v31 = vunpack.c.l.bf16 %v21_v13  ;;  %v25_v8 = vld [vmem:[%s1133_s0 + $0x58] sm:$0xff] }
  0x18   :  { %v419_v33 = vsel %vm291_vm9, %v227_v10, %v355_v17  ;;  %vm292_vm10 = vcmp.ge.f32.partialorder %v228_v18, 0.0  ;;  %vm293_vm11 = vcmp.ge.f32.partialorder %v229_v19, 0.0  ;;  %v356_v34 = vmul.f32 0.2, %v228_v18 }
  0x19   :  { %v738_v35 = vpack.c.bf16 %v419_v33, %v418_v20  ;;  %v357_v36 = vmul.f32 0.2, %v229_v19  ;;  %v230_v37 = vadd.f32 %v815_v25, %v144_v21  ;;  %v231_v38 = vadd.f32 %v817_v26, %v145_v22  ;;  %v27_v20 = vld [vmem:[%s1133_s0 + $0x68] sm:$0xff] }
  0x1a   :  { %v420_v39 = vsel %vm292_vm10, %v228_v18, %v356_v34  ;;  %v61_v40 = vunpack.c.h.bf16 %v21_v13  ;;  %v146_v41 = vmul.f32 %v819_v27, %v60_v31  ;;  %v62_v42 = vunpack.c.l.bf16 %v22_v32 }
  0x1b   :  { %670 = vst [vmem:[%s1136_s3 + $0x20] sm:$0xff] %v738_v35  ;;  %v421_v44 = vsel %vm293_vm11, %v229_v19, %v357_v36  ;;  %vm294_vm12 = vcmp.ge.f32.partialorder %v230_v37, 0.0  ;;  %vm295_vm13 = vcmp.ge.f32.partialorder %v231_v38, 0.0  ;;  %v358_v45 = vmul.f32 0.2, %v230_v37  ;;  %v26_v19 = vld [vmem:[%s1133_s0 + $0x60] sm:$0xff] }
  0x1c   :  { %v739_v46 = vpack.c.bf16 %v421_v44, %v420_v39  ;;  %v359_v47 = vmul.f32 0.2, %v231_v38  ;;  %v147_v48 = vmul.f32 %v821_v28, %v61_v40  ;;  %v232_v49 = vadd.f32 %v823_v29, %v146_v41 }
  0x1d   :  { %v422_v50 = vsel %vm294_vm12, %v230_v37, %v358_v45  ;;  %v63_v51 = vunpack.c.h.bf16 %v22_v32  ;;  %v148_v52 = vmul.f32 %v811_v23, %v62_v42  ;;  %v64_v53 = vunpack.c.l.bf16 %v23_v43 }
  0x1e   :  { %671 = vst [vmem:[%s1136_s3 + $0x28] sm:$0xff] %v739_v46  ;;  %v423_v54 = vsel %vm295_vm13, %v231_v38, %v359_v47  ;;  %v233_v55 = vadd.f32 %v825_v30, %v147_v48  ;;  %vm296_vm14 = vcmp.ge.f32.partialorder %v232_v49, 0.0  ;;  %v360_v56 = vmul.f32 0.2, %v232_v49 }
  0x1f   :  { %v740_v57 = vpack.c.bf16 %v423_v54, %v422_v50  ;;  %v149_v58 = vmul.f32 %v813_v24, %v63_v51  ;;  %v234_v59 = vadd.f32 %v815_v25, %v148_v52  ;;  %v65_v60 = vunpack.c.h.bf16 %v23_v43  ;;  %v28_v50 = vld [vmem:[%s1133_s0 + $0x70] sm:$0xff] }
  0x20   :  { %vm297_vm15 = vcmp.ge.f32.partialorder %v233_v55, 0.0  ;;  %v361_v62 = vmul.f32 0.2, %v233_v55  ;;  %v424_v63 = vsel %vm296_vm14, %v232_v49, %v360_v56  ;;  %v150_v0 = vmul.f32 %v819_v27, %v64_v53 }
  0x21   :  { %672 = vst [vmem:[%s1136_s3 + $0x30] sm:$0xff] %v740_v57  ;;  %v235_v1 = vadd.f32 %v817_v26, %v149_v58  ;;  %vm298_vm0 = vcmp.ge.f32.partialorder %v234_v59, 0.0  ;;  %v362_v2 = vmul.f32 0.2, %v234_v59  ;;  %v151_v3 = vmul.f32 %v821_v28, %v65_v60 }
  0x22   :  { %v425_v4 = vsel %vm297_vm15, %v233_v55, %v361_v62  ;;  %v236_v5 = vadd.f32 %v823_v29, %v150_v0  ;;  %v66_v6 = vunpack.c.l.bf16 %v24_v61  ;;  %v67_v7 = vunpack.c.h.bf16 %v24_v61 }
  0x23   :  { %v741_v9 = vpack.c.bf16 %v425_v4, %v424_v63  ;;  %vm299_vm1 = vcmp.ge.f32.partialorder %v235_v1, 0.0  ;;  %v363_v10 = vmul.f32 0.2, %v235_v1  ;;  %v426_v11 = vsel %vm298_vm0, %v234_v59, %v362_v2  ;;  %v29_v63 = vld [vmem:[%s1133_s0 + $0x78] sm:$0xff] }
  0x24   :  { %v237_v12 = vadd.f32 %v825_v30, %v151_v3  ;;  %vm300_vm2 = vcmp.ge.f32.partialorder %v236_v5, 0.0  ;;  %v364_v13 = vmul.f32 0.2, %v236_v5  ;;  %v152_v14 = vmul.f32 %v811_v23, %v66_v6 }
  0x25   :  { %673 = vst [vmem:[%s1136_s3 + $0x38] sm:$0xff] %v741_v9  ;;  %v427_v15 = vsel %vm299_vm1, %v235_v1, %v363_v10  ;;  %v153_v16 = vmul.f32 %v813_v24, %v67_v7  ;;  %v68_v17 = vunpack.c.l.bf16 %v25_v8  ;;  %v69_v18 = vunpack.c.h.bf16 %v25_v8  ;;  %v30_v7 = vld [vmem:[%s1133_s0 + $0x80] sm:$0xff] }
  0x26   :  { %v742_v21 = vpack.c.bf16 %v427_v15, %v426_v11  ;;  %vm301_vm3 = vcmp.ge.f32.partialorder %v237_v12, 0.0  ;;  %v365_v22 = vmul.f32 0.2, %v237_v12  ;;  %v428_v31 = vsel %vm300_vm2, %v236_v5, %v364_v13 }
  0x27   :  { %v238_v32 = vadd.f32 %v815_v25, %v152_v14  ;;  %v239_v33 = vadd.f32 %v817_v26, %v153_v16  ;;  %v154_v34 = vmul.f32 %v819_v27, %v68_v17  ;;  %v155_v35 = vmul.f32 %v821_v28, %v69_v18 }
  0x28   :  { %674 = vst [vmem:[%s1136_s3 + $0x40] sm:$0xff] %v742_v21  ;;  %v429_v36 = vsel %vm301_vm3, %v237_v12, %v365_v22  ;;  %v70_v37 = vunpack.c.l.bf16 %v26_v19  ;;  %v71_v38 = vunpack.c.h.bf16 %v26_v19  ;;  %v72_v39 = vunpack.c.l.bf16 %v27_v20  ;;  %v31_v19 = vld [vmem:[%s1133_s0 + $0x88] sm:$0xff] }
  0x29   :  { %v743_v40 = vpack.c.bf16 %v429_v36, %v428_v31  ;;  %vm302_vm4 = vcmp.ge.f32.partialorder %v238_v32, 0.0  ;;  %vm303_vm5 = vcmp.ge.f32.partialorder %v239_v33, 0.0  ;;  %v366_v41 = vmul.f32 0.2, %v238_v32 }
  0x2a   :  { %v367_v42 = vmul.f32 0.2, %v239_v33  ;;  %v240_v43 = vadd.f32 %v823_v29, %v154_v34  ;;  %v241_v44 = vadd.f32 %v825_v30, %v155_v35  ;;  %v156_v45 = vmul.f32 %v811_v23, %v70_v37 }
  0x2b   :  { %675 = vst [vmem:[%s1136_s3 + $0x48] sm:$0xff] %v743_v40  ;;  %v430_v46 = vsel %vm302_vm4, %v238_v32, %v366_v41  ;;  %v157_v47 = vmul.f32 %v813_v24, %v71_v38  ;;  %v73_v48 = vunpack.c.h.bf16 %v27_v20  ;;  %v158_v49 = vmul.f32 %v819_v27, %v72_v39 }
  0x2c   :  { %v431_v51 = vsel %vm303_vm5, %v239_v33, %v367_v42  ;;  %vm304_vm6 = vcmp.ge.f32.partialorder %v240_v43, 0.0  ;;  %vm305_vm7 = vcmp.ge.f32.partialorder %v241_v44, 0.0  ;;  %v368_v52 = vmul.f32 0.2, %v240_v43 }
  0x2d   :  { %v744_v53 = vpack.c.bf16 %v431_v51, %v430_v46  ;;  %v369_v54 = vmul.f32 0.2, %v241_v44  ;;  %v242_v55 = vadd.f32 %v815_v25, %v156_v45  ;;  %v243_v56 = vadd.f32 %v817_v26, %v157_v47  ;;  %v32_v45 = vld [vmem:[%s1133_s0 + $0x90] sm:$0xff] }
  0x2e   :  { %v432_v57 = vsel %vm304_vm6, %v240_v43, %v368_v52  ;;  %v159_v58 = vmul.f32 %v821_v28, %v73_v48  ;;  %v244_v59 = vadd.f32 %v823_v29, %v158_v49  ;;  %v74_v60 = vunpack.c.l.bf16 %v28_v50 }
  0x2f   :  { %676 = vst [vmem:[%s1136_s3 + $0x50] sm:$0xff] %v744_v53  ;;  %v433_v61 = vsel %vm305_vm7, %v241_v44, %v369_v54  ;;  %vm306_vm8 = vcmp.ge.f32.partialorder %v242_v55, 0.0  ;;  %vm307_vm9 = vcmp.ge.f32.partialorder %v243_v56, 0.0  ;;  %v370_v62 = vmul.f32 0.2, %v242_v55 }
  0x30   :  { %v745_v0 = vpack.c.bf16 %v433_v61, %v432_v57  ;;  %v371_v1 = vmul.f32 0.2, %v243_v56  ;;  %v245_v2 = vadd.f32 %v825_v30, %v159_v58  ;;  %vm308_vm10 = vcmp.ge.f32.partialorder %v244_v59, 0.0 }
  0x31   :  { %v434_v3 = vsel %vm306_vm8, %v242_v55, %v370_v62  ;;  %v372_v4 = vmul.f32 0.2, %v244_v59  ;;  %v75_v5 = vunpack.c.h.bf16 %v28_v50  ;;  %v160_v6 = vmul.f32 %v811_v23, %v74_v60 }
  0x32   :  { %677 = vst [vmem:[%s1136_s3 + $0x58] sm:$0xff] %v745_v0  ;;  %v435_v8 = vsel %vm307_vm9, %v243_v56, %v371_v1  ;;  %vm309_vm11 = vcmp.ge.f32.partialorder %v245_v2, 0.0  ;;  %v373_v9 = vmul.f32 0.2, %v245_v2  ;;  %v76_v10 = vunpack.c.l.bf16 %v29_v63  ;;  %v33_v56 = vld [vmem:[%s1133_s0 + $0x98] sm:$0xff] }
  0x33   :  { %v746_v11 = vpack.c.bf16 %v435_v8, %v434_v3  ;;  %v436_v12 = vsel %vm308_vm10, %v244_v59, %v372_v4  ;;  %v161_v13 = vmul.f32 %v813_v24, %v75_v5  ;;  %v246_v14 = vadd.f32 %v815_v25, %v160_v6  ;;  %v34_v3 = vld [vmem:[%s1133_s0 + $0xa0] sm:$0xff]  ;;  %v35_v4 = vld [vmem:[%s1133_s0 + $0xa8] sm:$0xff] }
  0x34   :  { %v437_v15 = vsel %vm309_vm11, %v245_v2, %v373_v9  ;;  %v77_v16 = vunpack.c.h.bf16 %v29_v63  ;;  %v162_v17 = vmul.f32 %v819_v27, %v76_v10  ;;  %v78_v18 = vunpack.c.l.bf16 %v30_v7 }
  0x35   :  { %678 = vst [vmem:[%s1136_s3 + $0x60] sm:$0xff] %v746_v11  ;;  %v747_v20 = vpack.c.bf16 %v437_v15, %v436_v12  ;;  %v247_v21 = vadd.f32 %v817_v26, %v161_v13  ;;  %vm310_vm12 = vcmp.ge.f32.partialorder %v246_v14, 0.0  ;;  %v374_v22 = vmul.f32 0.2, %v246_v14 }
  0x36   :  { %v163_v31 = vmul.f32 %v821_v28, %v77_v16  ;;  %v248_v32 = vadd.f32 %v823_v29, %v162_v17  ;;  %v79_v33 = vunpack.c.h.bf16 %v30_v7  ;;  %v164_v34 = vmul.f32 %v811_v23, %v78_v18 }
  0x37   :  { %679 = vst [vmem:[%s1136_s3 + $0x68] sm:$0xff] %v747_v20  ;;  %vm311_vm13 = vcmp.ge.f32.partialorder %v247_v21, 0.0  ;;  %v375_v35 = vmul.f32 0.2, %v247_v21  ;;  %v438_v36 = vsel %vm310_vm12, %v246_v14, %v374_v22  ;;  %v80_v37 = vunpack.c.l.bf16 %v31_v19 }
  0x38   :  { %v249_v38 = vadd.f32 %v825_v30, %v163_v31  ;;  %vm312_vm14 = vcmp.ge.f32.partialorder %v248_v32, 0.0  ;;  %v376_v39 = vmul.f32 0.2, %v248_v32  ;;  %v165_v40 = vmul.f32 %v813_v24, %v79_v33 }
  0x39   :  { %v439_v41 = vsel %vm311_vm13, %v247_v21, %v375_v35  ;;  %v250_v42 = vadd.f32 %v815_v25, %v164_v34  ;;  %v81_v43 = vunpack.c.h.bf16 %v31_v19  ;;  %v166_v44 = vmul.f32 %v819_v27, %v80_v37  ;;  %v36_v34 = vld [vmem:[%s1133_s0 + $0xb0] sm:$0xff] }
  0x3a   :  { %v748_v46 = vpack.c.bf16 %v439_v41, %v438_v36  ;;  %vm313_vm15 = vcmp.ge.f32.partialorder %v249_v38, 0.0  ;;  %v377_v47 = vmul.f32 0.2, %v249_v38  ;;  %v440_v48 = vsel %vm312_vm14, %v248_v32, %v376_v39 }
  0x3b   :  { %v251_v49 = vadd.f32 %v817_v26, %v165_v40  ;;  %vm314_vm0 = vcmp.ge.f32.partialorder %v250_v42, 0.0  ;;  %v378_v50 = vmul.f32 0.2, %v250_v42  ;;  %v167_v51 = vmul.f32 %v821_v28, %v81_v43 }
  0x3c   :  { %680 = vst [vmem:[%s1136_s3 + $0x70] sm:$0xff] %v748_v46  ;;  %v441_v52 = vsel %vm313_vm15, %v249_v38, %v377_v47  ;;  %v252_v53 = vadd.f32 %v823_v29, %v166_v44  ;;  %v82_v54 = vunpack.c.l.bf16 %v32_v45  ;;  %v83_v55 = vunpack.c.h.bf16 %v32_v45  ;;  %v37_v47 = vld [vmem:[%s1133_s0 + $0xb8] sm:$0xff] }
  0x3d   :  { %v749_v57 = vpack.c.bf16 %v441_v52, %v440_v48  ;;  %vm315_vm1 = vcmp.ge.f32.partialorder %v251_v49, 0.0  ;;  %v379_v58 = vmul.f32 0.2, %v251_v49  ;;  %v442_v59 = vsel %vm314_vm0, %v250_v42, %v378_v50 }
  0x3e   :  { %v253_v60 = vadd.f32 %v825_v30, %v167_v51  ;;  %vm316_vm2 = vcmp.ge.f32.partialorder %v252_v53, 0.0  ;;  %v380_v61 = vmul.f32 0.2, %v252_v53  ;;  %v168_v62 = vmul.f32 %v811_v23, %v82_v54 }
  0x3f   :  { %681 = vst [vmem:[%s1136_s3 + $0x78] sm:$0xff] %v749_v57  ;;  %v443_v63 = vsel %vm315_vm1, %v251_v49, %v379_v58  ;;  %v169_v0 = vmul.f32 %v813_v24, %v83_v55  ;;  %v84_v1 = vunpack.c.l.bf16 %v33_v56  ;;  %v85_v2 = vunpack.c.h.bf16 %v33_v56  ;;  %v38_v55 = vld [vmem:[%s1133_s0 + $0xc0] sm:$0xff] }
  0x40   :  { %v750_v5 = vpack.c.bf16 %v443_v63, %v442_v59  ;;  %vm317_vm3 = vcmp.ge.f32.partialorder %v253_v60, 0.0  ;;  %v381_v6 = vmul.f32 0.2, %v253_v60  ;;  %v444_v7 = vsel %vm316_vm2, %v252_v53, %v380_v61 }
  0x41   :  { %v254_v8 = vadd.f32 %v815_v25, %v168_v62  ;;  %v255_v9 = vadd.f32 %v817_v26, %v169_v0  ;;  %v170_v10 = vmul.f32 %v819_v27, %v84_v1  ;;  %v171_v11 = vmul.f32 %v821_v28, %v85_v2 }
  0x42   :  { %682 = vst [vmem:[%s1136_s3 + $0x80] sm:$0xff] %v750_v5  ;;  %v445_v12 = vsel %vm317_vm3, %v253_v60, %v381_v6  ;;  %v86_v13 = vunpack.c.l.bf16 %v34_v3  ;;  %v87_v14 = vunpack.c.h.bf16 %v34_v3  ;;  %v88_v15 = vunpack.c.l.bf16 %v35_v4  ;;  %v39_v3 = vld [vmem:[%s1133_s0 + $0xc8] sm:$0xff] }
  0x43   :  { %v751_v16 = vpack.c.bf16 %v445_v12, %v444_v7  ;;  %vm318_vm4 = vcmp.ge.f32.partialorder %v254_v8, 0.0  ;;  %vm319_vm5 = vcmp.ge.f32.partialorder %v255_v9, 0.0  ;;  %v382_v17 = vmul.f32 0.2, %v254_v8 }
  0x44   :  { %v383_v18 = vmul.f32 0.2, %v255_v9  ;;  %v256_v19 = vadd.f32 %v823_v29, %v170_v10  ;;  %v257_v20 = vadd.f32 %v825_v30, %v171_v11  ;;  %v172_v21 = vmul.f32 %v811_v23, %v86_v13 }
  0x45   :  { %683 = vst [vmem:[%s1136_s3 + $0x88] sm:$0xff] %v751_v16  ;;  %v446_v22 = vsel %vm318_vm4, %v254_v8, %v382_v17  ;;  %v173_v31 = vmul.f32 %v813_v24, %v87_v14  ;;  %v89_v32 = vunpack.c.h.bf16 %v35_v4  ;;  %v174_v33 = vmul.f32 %v819_v27, %v88_v15 }
  0x46   :  { %v447_v35 = vsel %vm319_vm5, %v255_v9, %v383_v18  ;;  %vm320_vm6 = vcmp.ge.f32.partialorder %v256_v19, 0.0  ;;  %vm321_vm7 = vcmp.ge.f32.partialorder %v257_v20, 0.0  ;;  %v384_v36 = vmul.f32 0.2, %v256_v19 }
  0x47   :  { %v752_v37 = vpack.c.bf16 %v447_v35, %v446_v22  ;;  %v385_v38 = vmul.f32 0.2, %v257_v20  ;;  %v258_v39 = vadd.f32 %v815_v25, %v172_v21  ;;  %v259_v40 = vadd.f32 %v817_v26, %v173_v31  ;;  %v40_v21 = vld [vmem:[%s1133_s0 + $0xd0] sm:$0xff] }
  0x48   :  { %v448_v41 = vsel %vm320_vm6, %v256_v19, %v384_v36  ;;  %v175_v42 = vmul.f32 %v821_v28, %v89_v32  ;;  %v260_v43 = vadd.f32 %v823_v29, %v174_v33  ;;  %v90_v44 = vunpack.c.l.bf16 %v36_v34 }
  0x49   :  { %684 = vst [vmem:[%s1136_s3 + $0x90] sm:$0xff] %v752_v37  ;;  %v449_v45 = vsel %vm321_vm7, %v257_v20, %v385_v38  ;;  %vm322_vm8 = vcmp.ge.f32.partialorder %v258_v39, 0.0  ;;  %vm323_vm9 = vcmp.ge.f32.partialorder %v259_v40, 0.0  ;;  %v386_v46 = vmul.f32 0.2, %v258_v39 }
  0x4a   :  { %v753_v48 = vpack.c.bf16 %v449_v45, %v448_v41  ;;  %v387_v49 = vmul.f32 0.2, %v259_v40  ;;  %v261_v50 = vadd.f32 %v825_v30, %v175_v42  ;;  %vm324_vm10 = vcmp.ge.f32.partialorder %v260_v43, 0.0 }
  0x4b   :  { %v450_v51 = vsel %vm322_vm8, %v258_v39, %v386_v46  ;;  %v388_v52 = vmul.f32 0.2, %v260_v43  ;;  %v91_v53 = vunpack.c.h.bf16 %v36_v34  ;;  %v176_v54 = vmul.f32 %v811_v23, %v90_v44 }
  0x4c   :  { %685 = vst [vmem:[%s1136_s3 + $0x98] sm:$0xff] %v753_v48  ;;  %v451_v56 = vsel %vm323_vm9, %v259_v40, %v387_v49  ;;  %vm325_vm11 = vcmp.ge.f32.partialorder %v261_v50, 0.0  ;;  %v389_v57 = vmul.f32 0.2, %v261_v50  ;;  %v92_v58 = vunpack.c.l.bf16 %v37_v47  ;;  %v41_v40 = vld [vmem:[%s1133_s0 + $0xd8] sm:$0xff] }
  0x4d   :  { %v754_v59 = vpack.c.bf16 %v451_v56, %v450_v51  ;;  %v452_v60 = vsel %vm324_vm10, %v260_v43, %v388_v52  ;;  %v177_v61 = vmul.f32 %v813_v24, %v91_v53  ;;  %v262_v62 = vadd.f32 %v815_v25, %v176_v54  ;;  %v42_v51 = vld [vmem:[%s1133_s0 + $0xe0] sm:$0xff]  ;;  %v43_v52 = vld [vmem:[%s1133_s0 + $0xe8] sm:$0xff] }
  0x4e   :  { %v453_v63 = vsel %vm325_vm11, %v261_v50, %v389_v57  ;;  %v93_v0 = vunpack.c.h.bf16 %v37_v47  ;;  %v178_v1 = vmul.f32 %v819_v27, %v92_v58  ;;  %v94_v2 = vunpack.c.l.bf16 %v38_v55 }
  0x4f   :  { %686 = vst [vmem:[%s1136_s3 + $0xa0] sm:$0xff] %v754_v59  ;;  %v755_v4 = vpack.c.bf16 %v453_v63, %v452_v60  ;;  %v263_v5 = vadd.f32 %v817_v26, %v177_v61  ;;  %vm326_vm12 = vcmp.ge.f32.partialorder %v262_v62, 0.0  ;;  %v390_v6 = vmul.f32 0.2, %v262_v62 }
  0x50   :  { %v179_v7 = vmul.f32 %v821_v28, %v93_v0  ;;  %v264_v8 = vadd.f32 %v823_v29, %v178_v1  ;;  %v95_v9 = vunpack.c.h.bf16 %v38_v55  ;;  %v180_v10 = vmul.f32 %v811_v23, %v94_v2 }
  0x51   :  { %687 = vst [vmem:[%s1136_s3 + $0xa8] sm:$0xff] %v755_v4  ;;  %vm327_vm13 = vcmp.ge.f32.partialorder %v263_v5, 0.0  ;;  %v391_v11 = vmul.f32 0.2, %v263_v5  ;;  %v454_v12 = vsel %vm326_vm12, %v262_v62, %v390_v6  ;;  %v96_v13 = vunpack.c.l.bf16 %v39_v3 }
  0x52   :  { %v265_v14 = vadd.f32 %v825_v30, %v179_v7  ;;  %vm328_vm14 = vcmp.ge.f32.partialorder %v264_v8, 0.0  ;;  %v392_v15 = vmul.f32 0.2, %v264_v8  ;;  %v181_v16 = vmul.f32 %v813_v24, %v95_v9 }
  0x53   :  { %v455_v17 = vsel %vm327_vm13, %v263_v5, %v391_v11  ;;  %v266_v18 = vadd.f32 %v815_v25, %v180_v10  ;;  %v97_v19 = vunpack.c.h.bf16 %v39_v3  ;;  %v182_v20 = vmul.f32 %v819_v27, %v96_v13  ;;  %v44_v10 = vld [vmem:[%s1133_s0 + $0xf0] sm:$0xff] }
  0x54   :  { %v756_v22 = vpack.c.bf16 %v455_v17, %v454_v12  ;;  %vm329_vm15 = vcmp.ge.f32.partialorder %v265_v14, 0.0  ;;  %v393_v31 = vmul.f32 0.2, %v265_v14  ;;  %v456_v32 = vsel %vm328_vm14, %v264_v8, %v392_v15 }
  0x55   :  { %v267_v33 = vadd.f32 %v817_v26, %v181_v16  ;;  %vm330_vm0 = vcmp.ge.f32.partialorder %v266_v18, 0.0  ;;  %v394_v34 = vmul.f32 0.2, %v266_v18  ;;  %v183_v35 = vmul.f32 %v821_v28, %v97_v19 }
  0x56   :  { %688 = vst [vmem:[%s1136_s3 + $0xb0] sm:$0xff] %v756_v22  ;;  %v457_v36 = vsel %vm329_vm15, %v265_v14, %v393_v31  ;;  %v268_v37 = vadd.f32 %v823_v29, %v182_v20  ;;  %v98_v38 = vunpack.c.l.bf16 %v40_v21  ;;  %v99_v39 = vunpack.c.h.bf16 %v40_v21  ;;  %v45_v31 = vld [vmem:[%s1133_s0 + $0xf8] sm:$0xff] }
  0x57   :  { %v757_v41 = vpack.c.bf16 %v457_v36, %v456_v32  ;;  %vm331_vm1 = vcmp.ge.f32.partialorder %v267_v33, 0.0  ;;  %v395_v42 = vmul.f32 0.2, %v267_v33  ;;  %v458_v43 = vsel %vm330_vm0, %v266_v18, %v394_v34 }
  0x58   :  { %v269_v44 = vadd.f32 %v825_v30, %v183_v35  ;;  %vm332_vm2 = vcmp.ge.f32.partialorder %v268_v37, 0.0  ;;  %v396_v45 = vmul.f32 0.2, %v268_v37  ;;  %v184_v46 = vmul.f32 %v811_v23, %v98_v38 }
  0x59   :  { %689 = vst [vmem:[%s1136_s3 + $0xb8] sm:$0xff] %v757_v41  ;;  %v459_v47 = vsel %vm331_vm1, %v267_v33, %v395_v42  ;;  %v185_v48 = vmul.f32 %v813_v24, %v99_v39  ;;  %v100_v49 = vunpack.c.l.bf16 %v41_v40  ;;  %v101_v50 = vunpack.c.h.bf16 %v41_v40 }
  0x5a   :  { %v758_v53 = vpack.c.bf16 %v459_v47, %v458_v43  ;;  %vm333_vm3 = vcmp.ge.f32.partialorder %v269_v44, 0.0  ;;  %v397_v54 = vmul.f32 0.2, %v269_v44  ;;  %v460_v55 = vsel %vm332_vm2, %v268_v37, %v396_v45 }
  0x5b   :  { %v270_v56 = vadd.f32 %v815_v25, %v184_v46  ;;  %v271_v57 = vadd.f32 %v817_v26, %v185_v48  ;;  %v186_v58 = vmul.f32 %v819_v27, %v100_v49  ;;  %v187_v59 = vmul.f32 %v821_v28, %v101_v50 }
  0x5c   :  { %690 = vst [vmem:[%s1136_s3 + $0xc0] sm:$0xff] %v758_v53  ;;  %v461_v60 = vsel %vm333_vm3, %v269_v44, %v397_v54  ;;  %v102_v61 = vunpack.c.l.bf16 %v42_v51  ;;  %v103_v62 = vunpack.c.h.bf16 %v42_v51  ;;  %v104_v63 = vunpack.c.l.bf16 %v43_v52 }
  0x5d   :  { %v759_v0 = vpack.c.bf16 %v461_v60, %v460_v55  ;;  %vm334_vm4 = vcmp.ge.f32.partialorder %v270_v56, 0.0  ;;  %vm335_vm5 = vcmp.ge.f32.partialorder %v271_v57, 0.0  ;;  %v398_v1 = vmul.f32 0.2, %v270_v56 }
  0x5e   :  { %v399_v2 = vmul.f32 0.2, %v271_v57  ;;  %v272_v3 = vadd.f32 %v823_v29, %v186_v58  ;;  %v273_v4 = vadd.f32 %v825_v30, %v187_v59  ;;  %v188_v5 = vmul.f32 %v811_v23, %v102_v61 }
  0x5f   :  { %691 = vst [vmem:[%s1136_s3 + $0xc8] sm:$0xff] %v759_v0  ;;  %v462_v6 = vsel %vm334_vm4, %v270_v56, %v398_v1  ;;  %v189_v7 = vmul.f32 %v813_v24, %v103_v62  ;;  %v105_v8 = vunpack.c.h.bf16 %v43_v52  ;;  %v190_v9 = vmul.f32 %v819_v27, %v104_v63 }
  0x60   :  { %v463_v11 = vsel %vm335_vm5, %v271_v57, %v399_v2  ;;  %vm336_vm6 = vcmp.ge.f32.partialorder %v272_v3, 0.0  ;;  %vm337_vm7 = vcmp.ge.f32.partialorder %v273_v4, 0.0  ;;  %v400_v12 = vmul.f32 0.2, %v272_v3 }
  0x61   :  { %v760_v13 = vpack.c.bf16 %v463_v11, %v462_v6  ;;  %v401_v14 = vmul.f32 0.2, %v273_v4  ;;  %v274_v15 = vadd.f32 %v815_v25, %v188_v5  ;;  %v275_v16 = vadd.f32 %v817_v26, %v189_v7 }
  0x62   :  { %v464_v17 = vsel %vm336_vm6, %v272_v3, %v400_v12  ;;  %v191_v18 = vmul.f32 %v821_v28, %v105_v8  ;;  %v276_v19 = vadd.f32 %v823_v29, %v190_v9  ;;  %v106_v20 = vunpack.c.l.bf16 %v44_v10 }
  0x63   :  { %692 = vst [vmem:[%s1136_s3 + $0xd0] sm:$0xff] %v760_v13  ;;  %v465_v21 = vsel %vm337_vm7, %v273_v4, %v401_v14  ;;  %vm338_vm8 = vcmp.ge.f32.partialorder %v274_v15, 0.0  ;;  %vm339_vm9 = vcmp.ge.f32.partialorder %v275_v16, 0.0  ;;  %v402_v22 = vmul.f32 0.2, %v274_v15 }
  0x64   :  { %v761_v32 = vpack.c.bf16 %v465_v21, %v464_v17  ;;  %v403_v33 = vmul.f32 0.2, %v275_v16  ;;  %v277_v34 = vadd.f32 %v825_v30, %v191_v18  ;;  %vm340_vm10 = vcmp.ge.f32.partialorder %v276_v19, 0.0 }
  0x65   :  { %v466_v35 = vsel %vm338_vm8, %v274_v15, %v402_v22  ;;  %v404_v36 = vmul.f32 0.2, %v276_v19  ;;  %v107_v37 = vunpack.c.h.bf16 %v44_v10  ;;  %v192_v38 = vmul.f32 %v811_v23, %v106_v20 }
  0x66   :  { %693 = vst [vmem:[%s1136_s3 + $0xd8] sm:$0xff] %v761_v32  ;;  %v467_v39 = vsel %vm339_vm9, %v275_v16, %v403_v33  ;;  %vm341_vm11 = vcmp.ge.f32.partialorder %v277_v34, 0.0  ;;  %v405_v40 = vmul.f32 0.2, %v277_v34  ;;  %v108_v41 = vunpack.c.l.bf16 %v45_v31 }
  0x67   :  { %v762_v42 = vpack.c.bf16 %v467_v39, %v466_v35  ;;  %v468_v43 = vsel %vm340_vm10, %v276_v19, %v404_v36  ;;  %v193_v44 = vmul.f32 %v813_v24, %v107_v37  ;;  %v278_v45 = vadd.f32 %v815_v25, %v192_v38 }
  0x68   :  { %v469_v46 = vsel %vm341_vm11, %v277_v34, %v405_v40  ;;  %v109_v47 = vunpack.c.h.bf16 %v45_v31  ;;  %v194_v48 = vmul.f32 %v819_v27, %v108_v41 }
  0x69   :  { %694 = vst [vmem:[%s1136_s3 + $0xe0] sm:$0xff] %v762_v42  ;;  %v763_v23 = vpack.c.bf16 %v469_v46, %v468_v43  ;;  %v279_v49 = vadd.f32 %v817_v26, %v193_v44  ;;  %vm342_vm12 = vcmp.ge.f32.partialorder %v278_v45, 0.0  ;;  %v406_v50 = vmul.f32 0.2, %v278_v45 }
  0x6a   :  { %v195_v51 = vmul.f32 %v821_v28, %v109_v47  ;;  %v280_v52 = vadd.f32 %v823_v29, %v194_v48 }
  0x6b   :  { %695 = vst [vmem:[%s1136_s3 + $0xe8] sm:$0xff] %v763_v23  ;;  %vm343_vm13 = vcmp.ge.f32.partialorder %v279_v49, 0.0  ;;  %v407_v24 = vmul.f32 0.2, %v279_v49  ;;  %v470_v25 = vsel %vm342_vm12, %v278_v45, %v406_v50 }
  0x6c   :  { %v281_v27 = vadd.f32 %v825_v30, %v195_v51  ;;  %vm344_vm14 = vcmp.ge.f32.partialorder %v280_v52, 0.0  ;;  %v408_v53 = vmul.f32 0.2, %v280_v52 }
  0x6d   :  { %v471_v54 = vsel %vm343_vm13, %v279_v49, %v407_v24 }
  0x6e   :  { %v764_v55 = vpack.c.bf16 %v471_v54, %v470_v25  ;;  %vm345_vm15 = vcmp.ge.f32.partialorder %v281_v27, 0.0  ;;  %v409_v26 = vmul.f32 0.2, %v281_v27  ;;  %v472_v56 = vsel %vm344_vm14, %v280_v52, %v408_v53 }
  0x70   :  { %696 = vst [vmem:[%s1136_s3 + $0xf0] sm:$0xff] %v764_v55  ;;  %v473_v28 = vsel %vm345_vm15, %v281_v27, %v409_v26 }
  0x71   :  { %v765_v29 = vpack.c.bf16 %v473_v28, %v472_v56 }
  0x73   :  { %697 = vst [vmem:[%s1136_s3 + $0xf8] sm:$0xff] %v765_v29 }

// kernel: _lambda_.14
= control target key start
LH: loop header
LB: loop body
LE: loop exit
PB: predicated region body
PF: predicated region fallthrough
CT: control target
= control target key end

     0   :  { %v28_v0 = vlaneseq  ;;  %s272_s0 = inlined_call_operand.vmem [shape: bf16[8,1024], index: 0, kind: input, shape index: {}]   ;;  %s273_s1 = inlined_call_operand.vmem [shape: f32[1,1024], index: 1, kind: input, shape index: {}]   ;;  %s274_s2 = inlined_call_operand.vmem [shape: f32[1,1024], index: 2, kind: input, shape index: {}]   ;;  %s275_s3 = inlined_call_operand.vmem [shape: bf16[8,1024], index: 3, kind: output, shape index: {}]  }
   0x1   :  { %v14_v1 = vld [vmem:[%s272_s0] sm:$0xff]  ;;  %v15_v5 = vld [vmem:[%s272_s0 + $0x8] sm:$0xff]  ;;  %v16_v6 = vld [vmem:[%s272_s0 + $0x10] sm:$0xff] }
   0x2   :  { %v18_v2 = vunpack.c.l.bf16 %v14_v1  ;;  %v19_v3 = vunpack.c.h.bf16 %v14_v1  ;;  %v221_v4 = vshrl.u32 %v28_v0, 7  ;;  %v232_v7 = vld [vmem:[%s272_s0 + $0x18] sm:$0xff]  ;;  %v26_v8 = vld [vmem:[%s273_s1] sm:$0xff]  ;;  %v20_v10 = vunpack.c.l.bf16 %v15_v5 }
   0x3   :  { %v240_v9 = vld [vmem:[%s274_s2] sm:$0xff]  ;;  %v21_v11 = vunpack.c.h.bf16 %v15_v5  ;;  %v22_v12 = vunpack.c.l.bf16 %v16_v6  ;;  %v23_v13 = vunpack.c.h.bf16 %v16_v6  ;;  %v24_v20 = vunpack.c.l.bf16 %v232_v7 }
   0x4   :  { %v30_v14 = vsub.s32 0, %v221_v4  ;;  %v34_v15 = vsub.s32 1, %v221_v4  ;;  %v38_v16 = vsub.s32 2, %v221_v4  ;;  %v42_v17 = vsub.s32 3, %v221_v4 }
   0x5   :  { %v46_v18 = vsub.s32 4, %v221_v4  ;;  %v50_v19 = vsub.s32 5, %v221_v4  ;;  %v25_v21 = vunpack.c.h.bf16 %v232_v7  ;;  %v54_v44 = vsub.s32 6, %v221_v4 }
   0x6   :  { %v31_v22 = vrot.slane %v26_v8, %v30_v14  ;;  %v35_v23 = vrot.slane %v26_v8, %v34_v15  ;;  %v81_v24 = vrot.slane %v240_v9, %v30_v14  ;;  %v85_v25 = vrot.slane %v240_v9, %v34_v15 }
   0x7   :  { %v39_v26 = vrot.slane %v26_v8, %v38_v16  ;;  %v43_v27 = vrot.slane %v26_v8, %v42_v17  ;;  %v89_v28 = vrot.slane %v240_v9, %v38_v16  ;;  %v93_v29 = vrot.slane %v240_v9, %v42_v17 }
   0x8   :  { %v68_v30 = vmul.f32 %v31_v22, %v18_v2  ;;  %v69_v31 = vmul.f32 %v35_v23, %v19_v3  ;;  %v47_v32 = vrot.slane %v26_v8, %v46_v18  ;;  %v51_v33 = vrot.slane %v26_v8, %v50_v19 }
   0x9   :  { %v70_v34 = vmul.f32 %v39_v26, %v20_v10  ;;  %v71_v35 = vmul.f32 %v43_v27, %v21_v11  ;;  %v97_v36 = vrot.slane %v240_v9, %v46_v18  ;;  %v101_v37 = vrot.slane %v240_v9, %v50_v19 }
   0xa   :  { %v118_v38 = vadd.f32 %v81_v24, %v68_v30  ;;  %v119_v39 = vadd.f32 %v85_v25, %v69_v31  ;;  %v72_v40 = vmul.f32 %v47_v32, %v22_v12  ;;  %v73_v41 = vmul.f32 %v51_v33, %v23_v13 }
   0xb   :  { %v120_v42 = vadd.f32 %v89_v28, %v70_v34  ;;  %v121_v43 = vadd.f32 %v93_v29, %v71_v35  ;;  %v58_v45 = vsub.s32 7, %v221_v4  ;;  %v55_v57 = vrot.slane %v26_v8, %v54_v44 }
   0xc   :  { %vm126_vm0 = vcmp.ge.f32.partialorder %v118_v38, 0.0  ;;  %vm127_vm1 = vcmp.ge.f32.partialorder %v119_v39, 0.0  ;;  %v134_v46 = vmul.f32 0.2, %v118_v38  ;;  %v135_v47 = vmul.f32 0.2, %v119_v39 }
   0xd   :  { %vm128_vm2 = vcmp.ge.f32.partialorder %v120_v42, 0.0  ;;  %vm129_vm3 = vcmp.ge.f32.partialorder %v121_v43, 0.0  ;;  %v136_v48 = vmul.f32 0.2, %v120_v42  ;;  %v137_v49 = vmul.f32 0.2, %v121_v43 }
   0xe   :  { %v142_v50 = vsel %vm126_vm0, %v118_v38, %v134_v46  ;;  %v143_v51 = vsel %vm127_vm1, %v119_v39, %v135_v47  ;;  %v122_v52 = vadd.f32 %v97_v36, %v72_v40  ;;  %v123_v53 = vadd.f32 %v101_v37, %v73_v41 }
   0xf   :  { %v194_v54 = vpack.c.bf16 %v143_v51, %v142_v50  ;;  %v144_v55 = vsel %vm128_vm2, %v120_v42, %v136_v48  ;;  %v145_v56 = vsel %vm129_vm3, %v121_v43, %v137_v49  ;;  %v59_v61 = vrot.slane %v26_v8, %v58_v45 }
  0x10   :  { %v195_v58 = vpack.c.bf16 %v145_v56, %v144_v55  ;;  %vm130_vm4 = vcmp.ge.f32.partialorder %v122_v52, 0.0  ;;  %vm131_vm5 = vcmp.ge.f32.partialorder %v123_v53, 0.0  ;;  %v138_v59 = vmul.f32 0.2, %v122_v52 }
  0x11   :  { %182 = vst [vmem:[%s275_s3] sm:$0xff] %v194_v54  ;;  %v139_v60 = vmul.f32 0.2, %v123_v53  ;;  %v74_v62 = vmul.f32 %v55_v57, %v24_v20  ;;  %v105_v63 = vrot.slane %v240_v9, %v54_v44  ;;  %v109_v1 = vrot.slane %v240_v9, %v58_v45 }
  0x12   :  { %183 = vst [vmem:[%s275_s3 + $0x8] sm:$0xff] %v195_v58  ;;  %v146_v0 = vsel %vm130_vm4, %v122_v52, %v138_v59  ;;  %v75_v3 = vmul.f32 %v59_v61, %v25_v21 }
  0x13   :  { %v147_v2 = vsel %vm131_vm5, %v123_v53, %v139_v60  ;;  %v124_v4 = vadd.f32 %v105_v63, %v74_v62 }
  0x14   :  { %v196_v5 = vpack.c.bf16 %v147_v2, %v146_v0  ;;  %v125_v6 = vadd.f32 %v109_v1, %v75_v3 }
  0x15   :  { %vm132_vm6 = vcmp.ge.f32.partialorder %v124_v4, 0.0  ;;  %v140_v7 = vmul.f32 0.2, %v124_v4 }
  0x16   :  { %184 = vst [vmem:[%s275_s3 + $0x10] sm:$0xff] %v196_v5  ;;  %vm133_vm7 = vcmp.ge.f32.partialorder %v125_v6, 0.0  ;;  %v141_v8 = vmul.f32 0.2, %v125_v6 }
  0x17   :  { %v148_v10 = vsel %vm132_vm6, %v124_v4, %v140_v7 }
  0x18   :  { %v149_v11 = vsel %vm133_vm7, %v125_v6, %v141_v8 }
  0x19   :  { %v197_v12 = vpack.c.bf16 %v149_v11, %v148_v10 }
  0x1b   :  { %185 = vst [vmem:[%s275_s3 + $0x18] sm:$0xff] %v197_v12 }

// kernel: _lambda_.13
= control target key start
LH: loop header
LB: loop body
LE: loop exit
PB: predicated region body
PF: predicated region fallthrough
CT: control target
= control target key end

     0   :  { %9 = vsyncpa [#allocation4], 0  ;;  %s3187_s0 = inlined_call_operand.hbm [shape: bf16[8,8192], index: 0, kind: input, shape index: {}]   ;;  %s3188_s1 = inlined_call_operand.vmem [shape: bf16[8192,1024], index: 1, kind: input, shape index: {}]   ;;  %s3189_s2 = inlined_call_operand.vmem [shape: bf16[8,1024], index: 2, kind: output, shape index: {0}]   ;;  %s3190_s3 = inlined_call_operand.vmem [shape: f32[1,2,1024], index: 3, kind: output, shape index: {1}]  }
   0x1   :  { %11 = vsyncpa [#allocation4 + $0x1], 0  ;;  %s2603_s12 = smov 0   ;;  %s2605_s13 = smov 0  }
   0x2   :  { %s2607_s14 = smov 0   ;;  %s2609_s15 = smov 0  }
   0x3   :  { %s2611_s16 = smov 0   ;;  %s2613_s17 = smov 0  }
   0x4   :  { %s2615_s18 = smov 0   ;;  %s2617_s19 = smov 0  }
   0x5   :  { %s2619_s20 = smov 0   ;;  %s2621_s21 = smov 0  }
   0x6 LB: > { %s2022_s22 = sadd.s32 4294967295, %s2579_s21   ;;  %s29_s23 = sadd.s32 1, %s2571_s19  ;;  %s2579_s21 = sphi %s2621_s21, %s17_s21   ;;  %s2575_s20 = sphi %s2619_s20, %s3211_s20   ;;  %s2571_s19 = sphi %s2617_s19, %s3210_s19   ;;  %s2567_s18 = sphi %s2615_s18, %s3209_s18   ;;  %s2563_s17 = sphi %s2613_s17, %s3208_s17   ;;  %s2559_s16 = sphi %s2611_s16, %s3207_s16   ;;  %s2555_s15 = sphi %s2609_s15, %s3206_s15   ;;  %s2551_s14 = sphi %s2607_s14, %s3205_s14   ;;  %s2547_s13 = sphi %s2605_s13, %s3204_s13   ;;  %s2543_s12 = sphi %s2603_s12, %s3203_s12  }
   0x7   : > { %p30_p0 = scmp.ge.s32.totalorder %s29_s23, 8  ;;  %s32_s24 = sadd.s32 1, %s2575_s20 }
   0x8   : > { %s45_s25 = sadd.s32 1, %s2559_s16  ;;  %p52_p1 = scmp.ne.s32.totalorder %s2559_s16, %s2555_s15 }
   0x9   : > { %s3213_s23 = smov (%p30_p0, %s29_s23), 0  ;;  %s3215_s24 = smov (!%p30_p0, %s32_s24), %s2575_s20 }
   0xa   : > { %3194 = sst [smem:[#allocation7_spill]] %s3213_s23  ;;  %s41_s26 = ssub.s32 %s2571_s19, %s3213_s23 }
   0xb   : > { %p53_p2 = scmp.eq.s32.totalorder %s2579_s21, 0  ;;  %p34_p3 = scmp.ge.s32.totalorder %s3215_s24, 4 }
   0xc   : > { %p43_p4 = scmp.eq.s32.totalorder %s41_s26, 0  ;;  %p58_p6 = scmp.ne.s32.totalorder %s2555_s15, %s2551_s14 }
   0xd   : > { %p2665_p5 = por %p53_p2, %p52_p1  ;;  %s3217_s24 = smov (%p34_p3, %s3215_s24), 0 }
   0xe   : > { %3196 = sst [smem:[#allocation8_spill]] %s3217_s24  ;;  %p59_p7 = scmp.eq.s32.totalorder %s2022_s22, 0 }
   0xf   : > { %s2673_s28 = scalar_select %p43_p4, %s2559_s16, %s45_s25  }
  0x10   : > { %s69_s29 = ssub.s32 %s2575_s20, %s3217_s24  ;;  %s73_s4 = sadd.s32 1, %s2547_s13 }
  0x11   : > { %s70_s30 = sor.u32 %s69_s29, %s41_s26  ;;  %p2678_p8 = por %p59_p7, %p58_p6 }
  0x12   : > { %p71_p9 = scmp.eq.s32.totalorder %s70_s30, 0  ;;  %p80_p10 = scmp.ne.s32.totalorder %s2547_s13, %s2543_s12 }
  0x13   : > { %s3197_s5 = scalar_select %p2678_p8, 1, 0 }
  0x14   : > { %s2685_s6 = scalar_select %p71_p9, %s2547_s13, %s73_s4  }
  0x15   : > { %p2689_p11 = por %p80_p10, %p53_p2  ;;  %p2025_p12 = scmp.ge.s32.totalorder %s2579_s21, 32 }
  0x16   : > { %s166_s8 = sand.u32 (!%p2025_p12), 1, %s2559_s16   ;;  %s2183_s9 = sshll.u32 (!%p2025_p12), %s2571_s19, 9 }
  0x17   : > { %s3198_s7 = scalar_select %p2689_p11, 1, 0 }
  0x18   : > { %162 = sbr.rel (%p2025_p12) target bundleno = 185 (0xb9), region = 16  ;;  %s2026_s10 = sshll.u32 (!%p2025_p12), %s166_s8, 5 }
  0x19   : > { %s2699_s22 = scalar_lea.hbm (!%p2025_p12), %s3187_s0, %s2183_s9  ;;  %s170_s25 = scalar_lea.vmem (!%p2025_p12), [#allocation3], %s2026_s10 }
  0x1a   : > { %s180_s26 = sshll.u32 (!%p2025_p12), %s170_s25, 4  ;;  %s167_s29 = scalar_lea.sflag (!%p2025_p12), [#allocation4], %s166_s8  ;;  %s181_s26 = int_to_ptr.vmem [resolvable:$true] %s180_s26 }
  0x1b   : > { %s2469_s30 = scalar_lea.hbm (!%p2025_p12), %s2699_s22, 512  ;;  %s2473_s23 = scalar_lea.hbm (!%p2025_p12), %s3187_s0, 4096 }
  0x1c   : > { %p2470_p13 = scmp.ne.s32.totalorder (!%p2025_p12), %s2699_s22, %s2469_s30  ;;  %p2474_p2 = scmp.lt.u32.totalorder (!%p2025_p12), %s2699_s22, %s3187_s0 }
  0x1d   : > { %p2475_p3 = scmp.lt.u32.totalorder (!%p2025_p12), %s2473_s23, %s2469_s30  ;;  %p2477_p6 = scmp.lt.u32.totalorder (!%p2025_p12), %s2469_s30, %s2699_s22 }
  0x1e   : > { %p2471_p0 = pnand (!%p2025_p12), %p2470_p13, %p2665_p5 }
  0x1f   : > { %p2476_p4 = por %p2475_p3, %p2474_p2 }
  0x20   : > { %p2472_p1 = pneg %p2471_p0 }
  0x21   : > { %p2478_p7 = por %p2477_p6, %p2476_p4 }
  0x23   : > { %p2479_p9 = pnand %p2478_p7, %p2472_p1 }
  0x25   : > { %2482 = shalt.err (!%p2479_p9)
}
  0x26   : > { %s2483_s8 = scalar_lea.vmem %s181_s26, 512  ;;  %s2581_s10 = smov [#allocation3]  }
  0x27   : > { %p2484_p10 = scmp.ne.s32.totalorder %s181_s26, %s2483_s8  ;;  %s2487_s14 = sshll.u32 %s2581_s10, 4  ;;  %s2488_s14 = int_to_ptr.vmem [resolvable:$false] %s2487_s14 }
  0x28   : > { %s2489_s24 = scalar_lea.vmem %s2488_s14, 1024  ;;  %p2490_p0 = scmp.lt.s32.totalorder %s181_s26, %s2488_s14 }
  0x29   : > { %p2485_p12 = pnand %p2484_p10, %p2665_p5  ;;  %p2491_p8 = scmp.lt.s32.totalorder %s2489_s24, %s2483_s8 }
  0x2b   : > { %p2486_p13 = pneg %p2485_p12  ;;  %p2492_p11 = por %p2491_p8, %p2490_p0 }
  0x2d   : > { %p2493_p2 = pnand %p2492_p11, %p2486_p13 }
  0x2f   : > { %2496 = shalt.err (!%p2493_p2)
}
  0x30   : > { %2186 = dma.hbm_to_vmem [thread:$0]  (%p2665_p5), %s2699_s22, 512, %s181_s26, %s167_s29  }
  0x31   : > { %p3199_p1 = scmp.ne.s32.totalorder %s3198_s7, 0 }
  0x32   : > { %s188_s23 = sand.u32 (%p3199_p1), 1, %s2547_s13   ;;  %s2031_s25 = sshll.u32 (%p3199_p1), %s2575_s20, 1 }
  0x33   : > { %186 = sbr.rel (!%p3199_p1) target bundleno = 185 (0xb9), region = 24  ;;  %s2029_s30 = sshll.u32 (%p3199_p1), %s188_s23, 10 }
  0x34   : > { %s2184_s4 = sshll.u32 (%p3199_p1), %s2571_s19, 10  ;;  %s2731_s27 = scalar_lea.vmem (%p3199_p1), [#allocation5], %s2029_s30 }
  0x35   : > { %s194_s11 = sadd.s32 (%p3199_p1), %s2184_s4, %s2031_s25 }
  0x36   : > { %s2033_s9 = sshll.u32 (%p3199_p1), %s194_s11, 2 }
  0x37   : > { %s2726_s14 = scalar_lea.vmem (%p3199_p1), %s3188_s1, %s2033_s9 }
  0x38   : > { %v478_v0 = vld [vmem:[%s2726_s14] sm:$0xff] (%p3199_p1) }
  0x39   : > { %v480_v1 = vld [vmem:[%s2726_s14 + $0x20] sm:$0xff] (%p3199_p1)  ;;  %479 = vst [vmem:[%s2731_s27] sm:$0xff] (%p3199_p1), %v478_v0 }
  0x3a   : > { %v482_v2 = vld [vmem:[%s2726_s14 + $0x40] sm:$0xff]  ;;  %481 = vst [vmem:[%s2731_s27 + $0x8] sm:$0xff] %v480_v1 }
  0x3b   : > { %483 = vst [vmem:[%s2731_s27 + $0x10] sm:$0xff] %v482_v2  ;;  %v484_v3 = vld [vmem:[%s2726_s14 + $0x60] sm:$0xff] }
  0x3c   : > { %v486_v4 = vld [vmem:[%s2726_s14 + $0x80] sm:$0xff]  ;;  %485 = vst [vmem:[%s2731_s27 + $0x18] sm:$0xff] %v484_v3 }
  0x3d   : > { %v488_v5 = vld [vmem:[%s2726_s14 + $0xa0] sm:$0xff]  ;;  %487 = vst [vmem:[%s2731_s27 + $0x20] sm:$0xff] %v486_v4 }
  0x3e   : > { %489 = vst [vmem:[%s2731_s27 + $0x28] sm:$0xff] %v488_v5  ;;  %v490_v6 = vld [vmem:[%s2726_s14 + $0xc0] sm:$0xff] }
  0x3f   : > { %v492_v7 = vld [vmem:[%s2726_s14 + $0xe0] sm:$0xff]  ;;  %491 = vst [vmem:[%s2731_s27 + $0x30] sm:$0xff] %v490_v6 }
  0x40   : > { %v494_v8 = vld [vmem:[%s2726_s14 + $0x100] sm:$0xff]  ;;  %493 = vst [vmem:[%s2731_s27 + $0x38] sm:$0xff] %v492_v7 }
  0x41   : > { %495 = vst [vmem:[%s2731_s27 + $0x40] sm:$0xff] %v494_v8  ;;  %v496_v9 = vld [vmem:[%s2726_s14 + $0x120] sm:$0xff] }
  0x42   : > { %v498_v10 = vld [vmem:[%s2726_s14 + $0x140] sm:$0xff]  ;;  %497 = vst [vmem:[%s2731_s27 + $0x48] sm:$0xff] %v496_v9 }
  0x43   : > { %v500_v11 = vld [vmem:[%s2726_s14 + $0x160] sm:$0xff]  ;;  %499 = vst [vmem:[%s2731_s27 + $0x50] sm:$0xff] %v498_v10 }
  0x44   : > { %501 = vst [vmem:[%s2731_s27 + $0x58] sm:$0xff] %v500_v11  ;;  %v502_v12 = vld [vmem:[%s2726_s14 + $0x180] sm:$0xff] }
  0x45   : > { %v504_v13 = vld [vmem:[%s2726_s14 + $0x1a0] sm:$0xff]  ;;  %503 = vst [vmem:[%s2731_s27 + $0x60] sm:$0xff] %v502_v12 }
  0x46   : > { %v506_v14 = vld [vmem:[%s2726_s14 + $0x1c0] sm:$0xff]  ;;  %505 = vst [vmem:[%s2731_s27 + $0x68] sm:$0xff] %v504_v13 }
  0x47   : > { %507 = vst [vmem:[%s2731_s27 + $0x70] sm:$0xff] %v506_v14  ;;  %v508_v15 = vld [vmem:[%s2726_s14 + $0x1e0] sm:$0xff] }
  0x48   : > { %v510_v16 = vld [vmem:[%s2726_s14 + $0x200] sm:$0xff]  ;;  %509 = vst [vmem:[%s2731_s27 + $0x78] sm:$0xff] %v508_v15 }
  0x49   : > { %v512_v17 = vld [vmem:[%s2726_s14 + $0x220] sm:$0xff]  ;;  %511 = vst [vmem:[%s2731_s27 + $0x80] sm:$0xff] %v510_v16 }
  0x4a   : > { %513 = vst [vmem:[%s2731_s27 + $0x88] sm:$0xff] %v512_v17  ;;  %v514_v18 = vld [vmem:[%s2726_s14 + $0x240] sm:$0xff] }
  0x4b   : > { %v516_v19 = vld [vmem:[%s2726_s14 + $0x260] sm:$0xff]  ;;  %515 = vst [vmem:[%s2731_s27 + $0x90] sm:$0xff] %v514_v18 }
  0x4c   : > { %v518_v20 = vld [vmem:[%s2726_s14 + $0x280] sm:$0xff]  ;;  %517 = vst [vmem:[%s2731_s27 + $0x98] sm:$0xff] %v516_v19 }
  0x4d   : > { %519 = vst [vmem:[%s2731_s27 + $0xa0] sm:$0xff] %v518_v20  ;;  %v520_v21 = vld [vmem:[%s2726_s14 + $0x2a0] sm:$0xff] }
  0x4e   : > { %v522_v22 = vld [vmem:[%s2726_s14 + $0x2c0] sm:$0xff]  ;;  %521 = vst [vmem:[%s2731_s27 + $0xa8] sm:$0xff] %v520_v21 }
  0x4f   : > { %v524_v23 = vld [vmem:[%s2726_s14 + $0x2e0] sm:$0xff]  ;;  %523 = vst [vmem:[%s2731_s27 + $0xb0] sm:$0xff] %v522_v22 }
  0x50   : > { %525 = vst [vmem:[%s2731_s27 + $0xb8] sm:$0xff] %v524_v23  ;;  %v526_v24 = vld [vmem:[%s2726_s14 + $0x300] sm:$0xff] }
  0x51   : > { %v528_v25 = vld [vmem:[%s2726_s14 + $0x320] sm:$0xff]  ;;  %527 = vst [vmem:[%s2731_s27 + $0xc0] sm:$0xff] %v526_v24 }
  0x52   : > { %v530_v26 = vld [vmem:[%s2726_s14 + $0x340] sm:$0xff]  ;;  %529 = vst [vmem:[%s2731_s27 + $0xc8] sm:$0xff] %v528_v25 }
  0x53   : > { %531 = vst [vmem:[%s2731_s27 + $0xd0] sm:$0xff] %v530_v26  ;;  %v532_v27 = vld [vmem:[%s2726_s14 + $0x360] sm:$0xff] }
  0x54   : > { %v534_v28 = vld [vmem:[%s2726_s14 + $0x380] sm:$0xff]  ;;  %533 = vst [vmem:[%s2731_s27 + $0xd8] sm:$0xff] %v532_v27 }
  0x55   : > { %v536_v29 = vld [vmem:[%s2726_s14 + $0x3a0] sm:$0xff]  ;;  %535 = vst [vmem:[%s2731_s27 + $0xe0] sm:$0xff] %v534_v28 }
  0x56   : > { %537 = vst [vmem:[%s2731_s27 + $0xe8] sm:$0xff] %v536_v29  ;;  %v538_v30 = vld [vmem:[%s2726_s14 + $0x3c0] sm:$0xff] }
  0x57   : > { %v540_v31 = vld [vmem:[%s2726_s14 + $0x3e0] sm:$0xff]  ;;  %539 = vst [vmem:[%s2731_s27 + $0xf0] sm:$0xff] %v538_v30 }
  0x58   : > { %v542_v32 = vld [vmem:[%s2726_s14 + $0x400] sm:$0xff]  ;;  %541 = vst [vmem:[%s2731_s27 + $0xf8] sm:$0xff] %v540_v31 }
  0x59   : > { %543 = vst [vmem:[%s2731_s27 + $0x100] sm:$0xff] %v542_v32  ;;  %v544_v33 = vld [vmem:[%s2726_s14 + $0x420] sm:$0xff] }
  0x5a   : > { %v546_v34 = vld [vmem:[%s2726_s14 + $0x440] sm:$0xff]  ;;  %545 = vst [vmem:[%s2731_s27 + $0x108] sm:$0xff] %v544_v33 }
  0x5b   : > { %v548_v35 = vld [vmem:[%s2726_s14 + $0x460] sm:$0xff]  ;;  %547 = vst [vmem:[%s2731_s27 + $0x110] sm:$0xff] %v546_v34 }
  0x5c   : > { %549 = vst [vmem:[%s2731_s27 + $0x118] sm:$0xff] %v548_v35  ;;  %v550_v36 = vld [vmem:[%s2726_s14 + $0x480] sm:$0xff] }
  0x5d   : > { %v552_v37 = vld [vmem:[%s2726_s14 + $0x4a0] sm:$0xff]  ;;  %551 = vst [vmem:[%s2731_s27 + $0x120] sm:$0xff] %v550_v36 }
  0x5e   : > { %v554_v38 = vld [vmem:[%s2726_s14 + $0x4c0] sm:$0xff]  ;;  %553 = vst [vmem:[%s2731_s27 + $0x128] sm:$0xff] %v552_v37 }
  0x5f   : > { %555 = vst [vmem:[%s2731_s27 + $0x130] sm:$0xff] %v554_v38  ;;  %v556_v39 = vld [vmem:[%s2726_s14 + $0x4e0] sm:$0xff] }
  0x60   : > { %v558_v40 = vld [vmem:[%s2726_s14 + $0x500] sm:$0xff]  ;;  %557 = vst [vmem:[%s2731_s27 + $0x138] sm:$0xff] %v556_v39 }
  0x61   : > { %v560_v41 = vld [vmem:[%s2726_s14 + $0x520] sm:$0xff]  ;;  %559 = vst [vmem:[%s2731_s27 + $0x140] sm:$0xff] %v558_v40 }
  0x62   : > { %561 = vst [vmem:[%s2731_s27 + $0x148] sm:$0xff] %v560_v41  ;;  %v562_v42 = vld [vmem:[%s2726_s14 + $0x540] sm:$0xff] }
  0x63   : > { %v564_v43 = vld [vmem:[%s2726_s14 + $0x560] sm:$0xff]  ;;  %563 = vst [vmem:[%s2731_s27 + $0x150] sm:$0xff] %v562_v42 }
  0x64   : > { %v566_v44 = vld [vmem:[%s2726_s14 + $0x580] sm:$0xff]  ;;  %565 = vst [vmem:[%s2731_s27 + $0x158] sm:$0xff] %v564_v43 }
  0x65   : > { %567 = vst [vmem:[%s2731_s27 + $0x160] sm:$0xff] %v566_v44  ;;  %v568_v45 = vld [vmem:[%s2726_s14 + $0x5a0] sm:$0xff] }
  0x66   : > { %v570_v46 = vld [vmem:[%s2726_s14 + $0x5c0] sm:$0xff]  ;;  %569 = vst [vmem:[%s2731_s27 + $0x168] sm:$0xff] %v568_v45 }
  0x67   : > { %v572_v47 = vld [vmem:[%s2726_s14 + $0x5e0] sm:$0xff]  ;;  %571 = vst [vmem:[%s2731_s27 + $0x170] sm:$0xff] %v570_v46 }
  0x68   : > { %573 = vst [vmem:[%s2731_s27 + $0x178] sm:$0xff] %v572_v47  ;;  %v574_v48 = vld [vmem:[%s2726_s14 + $0x600] sm:$0xff] }
  0x69   : > { %v576_v49 = vld [vmem:[%s2726_s14 + $0x620] sm:$0xff]  ;;  %575 = vst [vmem:[%s2731_s27 + $0x180] sm:$0xff] %v574_v48 }
  0x6a   : > { %v578_v50 = vld [vmem:[%s2726_s14 + $0x640] sm:$0xff]  ;;  %577 = vst [vmem:[%s2731_s27 + $0x188] sm:$0xff] %v576_v49 }
  0x6b   : > { %579 = vst [vmem:[%s2731_s27 + $0x190] sm:$0xff] %v578_v50  ;;  %v580_v51 = vld [vmem:[%s2726_s14 + $0x660] sm:$0xff] }
  0x6c   : > { %v582_v52 = vld [vmem:[%s2726_s14 + $0x680] sm:$0xff]  ;;  %581 = vst [vmem:[%s2731_s27 + $0x198] sm:$0xff] %v580_v51 }
  0x6d   : > { %v584_v53 = vld [vmem:[%s2726_s14 + $0x6a0] sm:$0xff]  ;;  %583 = vst [vmem:[%s2731_s27 + $0x1a0] sm:$0xff] %v582_v52 }
  0x6e   : > { %585 = vst [vmem:[%s2731_s27 + $0x1a8] sm:$0xff] %v584_v53  ;;  %v586_v54 = vld [vmem:[%s2726_s14 + $0x6c0] sm:$0xff] }
  0x6f   : > { %v588_v55 = vld [vmem:[%s2726_s14 + $0x6e0] sm:$0xff]  ;;  %587 = vst [vmem:[%s2731_s27 + $0x1b0] sm:$0xff] %v586_v54 }
  0x70   : > { %v590_v56 = vld [vmem:[%s2726_s14 + $0x700] sm:$0xff]  ;;  %589 = vst [vmem:[%s2731_s27 + $0x1b8] sm:$0xff] %v588_v55 }
  0x71   : > { %591 = vst [vmem:[%s2731_s27 + $0x1c0] sm:$0xff] %v590_v56  ;;  %v592_v57 = vld [vmem:[%s2726_s14 + $0x720] sm:$0xff] }
  0x72   : > { %v594_v58 = vld [vmem:[%s2726_s14 + $0x740] sm:$0xff]  ;;  %593 = vst [vmem:[%s2731_s27 + $0x1c8] sm:$0xff] %v592_v57 }
  0x73   : > { %v596_v59 = vld [vmem:[%s2726_s14 + $0x760] sm:$0xff]  ;;  %595 = vst [vmem:[%s2731_s27 + $0x1d0] sm:$0xff] %v594_v58 }
  0x74   : > { %597 = vst [vmem:[%s2731_s27 + $0x1d8] sm:$0xff] %v596_v59  ;;  %v598_v60 = vld [vmem:[%s2726_s14 + $0x780] sm:$0xff] }
  0x75   : > { %v600_v61 = vld [vmem:[%s2726_s14 + $0x7a0] sm:$0xff]  ;;  %599 = vst [vmem:[%s2731_s27 + $0x1e0] sm:$0xff] %v598_v60 }
  0x76   : > { %v602_v62 = vld [vmem:[%s2726_s14 + $0x7c0] sm:$0xff]  ;;  %601 = vst [vmem:[%s2731_s27 + $0x1e8] sm:$0xff] %v600_v61 }
  0x77   : > { %603 = vst [vmem:[%s2731_s27 + $0x1f0] sm:$0xff] %v602_v62  ;;  %v604_v63 = vld [vmem:[%s2726_s14 + $0x7e0] sm:$0xff] }
  0x78   : > { %v606_v0 = vld [vmem:[%s2726_s14 + $0x800] sm:$0xff]  ;;  %605 = vst [vmem:[%s2731_s27 + $0x1f8] sm:$0xff] %v604_v63 }
  0x79   : > { %v608_v1 = vld [vmem:[%s2726_s14 + $0x820] sm:$0xff]  ;;  %607 = vst [vmem:[%s2731_s27 + $0x200] sm:$0xff] %v606_v0 }
  0x7a   : > { %609 = vst [vmem:[%s2731_s27 + $0x208] sm:$0xff] %v608_v1  ;;  %v610_v2 = vld [vmem:[%s2726_s14 + $0x840] sm:$0xff] }
  0x7b   : > { %v612_v3 = vld [vmem:[%s2726_s14 + $0x860] sm:$0xff]  ;;  %611 = vst [vmem:[%s2731_s27 + $0x210] sm:$0xff] %v610_v2 }
  0x7c   : > { %v614_v4 = vld [vmem:[%s2726_s14 + $0x880] sm:$0xff]  ;;  %613 = vst [vmem:[%s2731_s27 + $0x218] sm:$0xff] %v612_v3 }
  0x7d   : > { %615 = vst [vmem:[%s2731_s27 + $0x220] sm:$0xff] %v614_v4  ;;  %v616_v5 = vld [vmem:[%s2726_s14 + $0x8a0] sm:$0xff] }
  0x7e   : > { %v618_v6 = vld [vmem:[%s2726_s14 + $0x8c0] sm:$0xff]  ;;  %617 = vst [vmem:[%s2731_s27 + $0x228] sm:$0xff] %v616_v5 }
  0x7f   : > { %v620_v7 = vld [vmem:[%s2726_s14 + $0x8e0] sm:$0xff]  ;;  %619 = vst [vmem:[%s2731_s27 + $0x230] sm:$0xff] %v618_v6 }
  0x80   : > { %621 = vst [vmem:[%s2731_s27 + $0x238] sm:$0xff] %v620_v7  ;;  %v622_v8 = vld [vmem:[%s2726_s14 + $0x900] sm:$0xff] }
  0x81   : > { %v624_v9 = vld [vmem:[%s2726_s14 + $0x920] sm:$0xff]  ;;  %623 = vst [vmem:[%s2731_s27 + $0x240] sm:$0xff] %v622_v8 }
  0x82   : > { %v626_v10 = vld [vmem:[%s2726_s14 + $0x940] sm:$0xff]  ;;  %625 = vst [vmem:[%s2731_s27 + $0x248] sm:$0xff] %v624_v9 }
  0x83   : > { %627 = vst [vmem:[%s2731_s27 + $0x250] sm:$0xff] %v626_v10  ;;  %v628_v11 = vld [vmem:[%s2726_s14 + $0x960] sm:$0xff] }
  0x84   : > { %v630_v12 = vld [vmem:[%s2726_s14 + $0x980] sm:$0xff]  ;;  %629 = vst [vmem:[%s2731_s27 + $0x258] sm:$0xff] %v628_v11 }
  0x85   : > { %v632_v13 = vld [vmem:[%s2726_s14 + $0x9a0] sm:$0xff]  ;;  %631 = vst [vmem:[%s2731_s27 + $0x260] sm:$0xff] %v630_v12 }
  0x86   : > { %633 = vst [vmem:[%s2731_s27 + $0x268] sm:$0xff] %v632_v13  ;;  %v634_v14 = vld [vmem:[%s2726_s14 + $0x9c0] sm:$0xff] }
  0x87   : > { %v636_v15 = vld [vmem:[%s2726_s14 + $0x9e0] sm:$0xff]  ;;  %635 = vst [vmem:[%s2731_s27 + $0x270] sm:$0xff] %v634_v14 }
  0x88   : > { %v638_v16 = vld [vmem:[%s2726_s14 + $0xa00] sm:$0xff]  ;;  %637 = vst [vmem:[%s2731_s27 + $0x278] sm:$0xff] %v636_v15 }
  0x89   : > { %639 = vst [vmem:[%s2731_s27 + $0x280] sm:$0xff] %v638_v16  ;;  %v640_v17 = vld [vmem:[%s2726_s14 + $0xa20] sm:$0xff] }
  0x8a   : > { %v642_v18 = vld [vmem:[%s2726_s14 + $0xa40] sm:$0xff]  ;;  %641 = vst [vmem:[%s2731_s27 + $0x288] sm:$0xff] %v640_v17 }
  0x8b   : > { %v644_v19 = vld [vmem:[%s2726_s14 + $0xa60] sm:$0xff]  ;;  %643 = vst [vmem:[%s2731_s27 + $0x290] sm:$0xff] %v642_v18 }
  0x8c   : > { %645 = vst [vmem:[%s2731_s27 + $0x298] sm:$0xff] %v644_v19  ;;  %v646_v20 = vld [vmem:[%s2726_s14 + $0xa80] sm:$0xff] }
  0x8d   : > { %v648_v21 = vld [vmem:[%s2726_s14 + $0xaa0] sm:$0xff]  ;;  %647 = vst [vmem:[%s2731_s27 + $0x2a0] sm:$0xff] %v646_v20 }
  0x8e   : > { %v650_v22 = vld [vmem:[%s2726_s14 + $0xac0] sm:$0xff]  ;;  %649 = vst [vmem:[%s2731_s27 + $0x2a8] sm:$0xff] %v648_v21 }
  0x8f   : > { %651 = vst [vmem:[%s2731_s27 + $0x2b0] sm:$0xff] %v650_v22  ;;  %v652_v23 = vld [vmem:[%s2726_s14 + $0xae0] sm:$0xff] }
  0x90   : > { %v654_v24 = vld [vmem:[%s2726_s14 + $0xb00] sm:$0xff]  ;;  %653 = vst [vmem:[%s2731_s27 + $0x2b8] sm:$0xff] %v652_v23 }
  0x91   : > { %v656_v25 = vld [vmem:[%s2726_s14 + $0xb20] sm:$0xff]  ;;  %655 = vst [vmem:[%s2731_s27 + $0x2c0] sm:$0xff] %v654_v24 }
  0x92   : > { %657 = vst [vmem:[%s2731_s27 + $0x2c8] sm:$0xff] %v656_v25  ;;  %v658_v26 = vld [vmem:[%s2726_s14 + $0xb40] sm:$0xff] }
  0x93   : > { %v660_v27 = vld [vmem:[%s2726_s14 + $0xb60] sm:$0xff]  ;;  %659 = vst [vmem:[%s2731_s27 + $0x2d0] sm:$0xff] %v658_v26 }
  0x94   : > { %v662_v28 = vld [vmem:[%s2726_s14 + $0xb80] sm:$0xff]  ;;  %661 = vst [vmem:[%s2731_s27 + $0x2d8] sm:$0xff] %v660_v27 }
  0x95   : > { %663 = vst [vmem:[%s2731_s27 + $0x2e0] sm:$0xff] %v662_v28  ;;  %v664_v29 = vld [vmem:[%s2726_s14 + $0xba0] sm:$0xff] }
  0x96   : > { %v666_v30 = vld [vmem:[%s2726_s14 + $0xbc0] sm:$0xff]  ;;  %665 = vst [vmem:[%s2731_s27 + $0x2e8] sm:$0xff] %v664_v29 }
  0x97   : > { %v668_v31 = vld [vmem:[%s2726_s14 + $0xbe0] sm:$0xff]  ;;  %667 = vst [vmem:[%s2731_s27 + $0x2f0] sm:$0xff] %v666_v30 }
  0x98   : > { %669 = vst [vmem:[%s2731_s27 + $0x2f8] sm:$0xff] %v668_v31  ;;  %v670_v32 = vld [vmem:[%s2726_s14 + $0xc00] sm:$0xff] }
  0x99   : > { %v672_v33 = vld [vmem:[%s2726_s14 + $0xc20] sm:$0xff]  ;;  %671 = vst [vmem:[%s2731_s27 + $0x300] sm:$0xff] %v670_v32 }
  0x9a   : > { %v674_v34 = vld [vmem:[%s2726_s14 + $0xc40] sm:$0xff]  ;;  %673 = vst [vmem:[%s2731_s27 + $0x308] sm:$0xff] %v672_v33 }
  0x9b   : > { %675 = vst [vmem:[%s2731_s27 + $0x310] sm:$0xff] %v674_v34  ;;  %v676_v35 = vld [vmem:[%s2726_s14 + $0xc60] sm:$0xff] }
  0x9c   : > { %v678_v36 = vld [vmem:[%s2726_s14 + $0xc80] sm:$0xff]  ;;  %677 = vst [vmem:[%s2731_s27 + $0x318] sm:$0xff] %v676_v35 }
  0x9d   : > { %v680_v37 = vld [vmem:[%s2726_s14 + $0xca0] sm:$0xff]  ;;  %679 = vst [vmem:[%s2731_s27 + $0x320] sm:$0xff] %v678_v36 }
  0x9e   : > { %681 = vst [vmem:[%s2731_s27 + $0x328] sm:$0xff] %v680_v37  ;;  %v682_v38 = vld [vmem:[%s2726_s14 + $0xcc0] sm:$0xff] }
  0x9f   : > { %v684_v39 = vld [vmem:[%s2726_s14 + $0xce0] sm:$0xff]  ;;  %683 = vst [vmem:[%s2731_s27 + $0x330] sm:$0xff] %v682_v38 }
  0xa0   : > { %v686_v40 = vld [vmem:[%s2726_s14 + $0xd00] sm:$0xff]  ;;  %685 = vst [vmem:[%s2731_s27 + $0x338] sm:$0xff] %v684_v39 }
  0xa1   : > { %687 = vst [vmem:[%s2731_s27 + $0x340] sm:$0xff] %v686_v40  ;;  %v688_v41 = vld [vmem:[%s2726_s14 + $0xd20] sm:$0xff] }
  0xa2   : > { %v690_v42 = vld [vmem:[%s2726_s14 + $0xd40] sm:$0xff]  ;;  %689 = vst [vmem:[%s2731_s27 + $0x348] sm:$0xff] %v688_v41 }
  0xa3   : > { %v692_v43 = vld [vmem:[%s2726_s14 + $0xd60] sm:$0xff]  ;;  %691 = vst [vmem:[%s2731_s27 + $0x350] sm:$0xff] %v690_v42 }
  0xa4   : > { %693 = vst [vmem:[%s2731_s27 + $0x358] sm:$0xff] %v692_v43  ;;  %v694_v44 = vld [vmem:[%s2726_s14 + $0xd80] sm:$0xff] }
  0xa5   : > { %v696_v45 = vld [vmem:[%s2726_s14 + $0xda0] sm:$0xff]  ;;  %695 = vst [vmem:[%s2731_s27 + $0x360] sm:$0xff] %v694_v44 }
  0xa6   : > { %v698_v46 = vld [vmem:[%s2726_s14 + $0xdc0] sm:$0xff]  ;;  %697 = vst [vmem:[%s2731_s27 + $0x368] sm:$0xff] %v696_v45 }
  0xa7   : > { %699 = vst [vmem:[%s2731_s27 + $0x370] sm:$0xff] %v698_v46  ;;  %v700_v47 = vld [vmem:[%s2726_s14 + $0xde0] sm:$0xff] }
  0xa8   : > { %v702_v48 = vld [vmem:[%s2726_s14 + $0xe00] sm:$0xff]  ;;  %701 = vst [vmem:[%s2731_s27 + $0x378] sm:$0xff] %v700_v47 }
  0xa9   : > { %v704_v49 = vld [vmem:[%s2726_s14 + $0xe20] sm:$0xff]  ;;  %703 = vst [vmem:[%s2731_s27 + $0x380] sm:$0xff] %v702_v48 }
  0xaa   : > { %705 = vst [vmem:[%s2731_s27 + $0x388] sm:$0xff] %v704_v49  ;;  %v706_v50 = vld [vmem:[%s2726_s14 + $0xe40] sm:$0xff] }
  0xab   : > { %v708_v51 = vld [vmem:[%s2726_s14 + $0xe60] sm:$0xff]  ;;  %707 = vst [vmem:[%s2731_s27 + $0x390] sm:$0xff] %v706_v50 }
  0xac   : > { %v710_v52 = vld [vmem:[%s2726_s14 + $0xe80] sm:$0xff]  ;;  %709 = vst [vmem:[%s2731_s27 + $0x398] sm:$0xff] %v708_v51 }
  0xad   : > { %711 = vst [vmem:[%s2731_s27 + $0x3a0] sm:$0xff] %v710_v52  ;;  %v712_v53 = vld [vmem:[%s2726_s14 + $0xea0] sm:$0xff] }
  0xae   : > { %v714_v54 = vld [vmem:[%s2726_s14 + $0xec0] sm:$0xff]  ;;  %713 = vst [vmem:[%s2731_s27 + $0x3a8] sm:$0xff] %v712_v53 }
  0xaf   : > { %v716_v55 = vld [vmem:[%s2726_s14 + $0xee0] sm:$0xff]  ;;  %715 = vst [vmem:[%s2731_s27 + $0x3b0] sm:$0xff] %v714_v54 }
  0xb0   : > { %717 = vst [vmem:[%s2731_s27 + $0x3b8] sm:$0xff] %v716_v55  ;;  %v718_v56 = vld [vmem:[%s2726_s14 + $0xf00] sm:$0xff] }
  0xb1   : > { %v720_v57 = vld [vmem:[%s2726_s14 + $0xf20] sm:$0xff]  ;;  %719 = vst [vmem:[%s2731_s27 + $0x3c0] sm:$0xff] %v718_v56 }
  0xb2   : > { %v722_v58 = vld [vmem:[%s2726_s14 + $0xf40] sm:$0xff]  ;;  %721 = vst [vmem:[%s2731_s27 + $0x3c8] sm:$0xff] %v720_v57 }
  0xb3   : > { %723 = vst [vmem:[%s2731_s27 + $0x3d0] sm:$0xff] %v722_v58  ;;  %v724_v59 = vld [vmem:[%s2726_s14 + $0xf60] sm:$0xff] }
  0xb4   : > { %v726_v60 = vld [vmem:[%s2726_s14 + $0xf80] sm:$0xff]  ;;  %725 = vst [vmem:[%s2731_s27 + $0x3d8] sm:$0xff] %v724_v59 }
  0xb5   : > { %v728_v61 = vld [vmem:[%s2726_s14 + $0xfa0] sm:$0xff]  ;;  %727 = vst [vmem:[%s2731_s27 + $0x3e0] sm:$0xff] %v726_v60 }
  0xb6   : > { %729 = vst [vmem:[%s2731_s27 + $0x3e8] sm:$0xff] %v728_v61  ;;  %v730_v62 = vld [vmem:[%s2726_s14 + $0xfc0] sm:$0xff] }
  0xb7   : > { %v732_v63 = vld [vmem:[%s2726_s14 + $0xfe0] sm:$0xff]  ;;  %731 = vst [vmem:[%s2731_s27 + $0x3f0] sm:$0xff] %v730_v62 }
  0xb8   : > { %733 = vst [vmem:[%s2731_s27 + $0x3f8] sm:$0xff] %v732_v63 }
  0xb9 PF: > { %p2034_p5 = scmp.ge.s32.totalorder %s2579_s21, 1  ;;  %p738_p8 = scmp.lt.s32.totalorder %s2579_s21, 33 }
  0xbb   : > { %p739_p11 = pnand %p2034_p5, %p738_p8 }
  0xbc   : > { %s744_s7 = sand.u32 (!%p739_p11), 1, %s2555_s15   ;;  %p3200_p3 = scmp.ne.s32.totalorder (!%p739_p11), %s3197_s5, 0 }
  0xbd   : > { %742 = sbr.rel (%p739_p11) target bundleno = 584 (0x248), region = 62  ;;  %s2035_s22 = sshll.u32 (!%p739_p11), %s744_s7, 5 }
  0xbe   : > { %s745_s26 = scalar_lea.sflag (!%p739_p11), [#allocation4], %s744_s7  ;;  %s2989_s29 = scalar_lea.vmem (!%p739_p11), [#allocation3], %s2035_s22 }
  0xc4   : > { %2538 = dma.done.wait (%p3200_p3), %s745_s26, 512  }
  0xc5   : > { %2540 = vsyncadd (%p3200_p3), %s745_s26, 4294966784  ;;  %s754_s24 = sand.u32 1, %s2543_s12   ;;  %s2037_s23 = sshll.u32 %s2567_s18, 1 }
  0xc6   : > { %s2036_s25 = sshll.u32 %s754_s24, 10  ;;  %p801_p4 = scmp.lt.s32.totalorder %s2037_s23, 7 }
  0xc7   : > { %s3007_s5 = scalar_lea.vmem [#allocation5], %s2036_s25  ;;  %p2041_p6 = scmp.ne.s32.totalorder %s2563_s17, 0 }
  0xc8   : > { %s3219_s23 = smov (!%p801_p4, %s2037_s23), 7  ;;  %v2582_v0 = vmov (!%p2041_p6), 0.0  }
  0xc9   : > { %s2038_s30 = sshll.u32 %s3219_s23, 2  ;;  %s2040_s4 = sshll.u32 %s3219_s23, 1  ;;  %822 = vst [vmem:[#allocation2] sm:$0xff] (!%p2041_p6), %v2582_v0  ;;  %823 = vst [vmem:[#allocation2 + $0x8] sm:$0xff] (!%p2041_p6), %v2582_v0 }
  0xca   : > { %s3000_s8 = scalar_lea.vmem %s3189_s2, %s2038_s30  ;;  %s3005_s27 = scalar_lea.vmem %s3190_s3, %s2040_s4 }
  0xcb   : > { %821 = sbr.rel (%p2041_p6) target bundleno = 210 (0xd2), region = 74 }
  0xd2 PF: > { %v2269_v1 = vld [vmem:[%s3007_s5 + $0x4] ss:$8 sps:$4 sm:$0xff]   ;;  %v2273_v3 = vld [vmem:[%s3007_s5] ss:$8 sps:$4 sm:$0xff]   ;;  %v2275_v5 = vld [vmem:[%s3007_s5 + $0x14] ss:$8 sps:$4 sm:$0xff]  }
  0xd3   : > { %v2271_v2 = vld [vmem:[%s3007_s5 + $0x104] ss:$8 sps:$4 sm:$0xff]   ;;  %1626 = vmatprep.subr.bf16.mxu0 %v2269_v1  ;;  %v2274_v4 = vld [vmem:[%s3007_s5 + $0x100] ss:$8 sps:$4 sm:$0xff]   ;;  %v2277_v6 = vld [vmem:[%s3007_s5 + $0x114] ss:$8 sps:$4 sm:$0xff]  }
  0xd4   : > { %1667 = vmatprep.subr.bf16.mxu1 %v2271_v2  ;;  %1627 = vmatpush1.bf16.msra.mxu0 %v2273_v3  ;;  %v2279_v7 = vld [vmem:[%s3007_s5 + $0x10] ss:$8 sps:$4 sm:$0xff]   ;;  %v2281_v9 = vld [vmem:[%s3007_s5 + $0x24] ss:$8 sps:$4 sm:$0xff]   ;;  %v2285_v11 = vld [vmem:[%s3007_s5 + $0x20] ss:$8 sps:$4 sm:$0xff]  }
  0xd5   : > { %1668 = vmatpush1.bf16.msra.mxu1 %v2274_v4  ;;  %1628 = vmatprep.subr.bf16.mxu0 %v2275_v5  ;;  %v2280_v8 = vld [vmem:[%s3007_s5 + $0x110] ss:$8 sps:$4 sm:$0xff]   ;;  %v2283_v10 = vld [vmem:[%s3007_s5 + $0x124] ss:$8 sps:$4 sm:$0xff]   ;;  %v2286_v12 = vld [vmem:[%s3007_s5 + $0x120] ss:$8 sps:$4 sm:$0xff]  }
  0xd6   : > { %1669 = vmatprep.subr.bf16.mxu1 %v2277_v6  ;;  %v2287_v13 = vld [vmem:[%s3007_s5 + $0x34] ss:$8 sps:$4 sm:$0xff]   ;;  %v2291_v15 = vld [vmem:[%s3007_s5 + $0x30] ss:$8 sps:$4 sm:$0xff]   ;;  %v2293_v17 = vld [vmem:[%s3007_s5 + $0x44] ss:$8 sps:$4 sm:$0xff]  }
  0xd7   : > { %v2289_v14 = vld [vmem:[%s3007_s5 + $0x134] ss:$8 sps:$4 sm:$0xff]   ;;  %v2292_v16 = vld [vmem:[%s3007_s5 + $0x130] ss:$8 sps:$4 sm:$0xff]   ;;  %v2295_v18 = vld [vmem:[%s3007_s5 + $0x144] ss:$8 sps:$4 sm:$0xff]  }
  0xd8   : > { %1629 = vmatpush1.bf16.msra.mxu0 %v2279_v7  ;;  %v2297_v19 = vld [vmem:[%s3007_s5 + $0x40] ss:$8 sps:$4 sm:$0xff]   ;;  %v2299_v21 = vld [vmem:[%s3007_s5 + $0x54] ss:$8 sps:$4 sm:$0xff]   ;;  %v2303_v23 = vld [vmem:[%s3007_s5 + $0x50] ss:$8 sps:$4 sm:$0xff]  }
  0xd9   : > { %1670 = vmatpush1.bf16.msra.mxu1 %v2280_v8  ;;  %1630 = vmatprep.subr.bf16.mxu0 %v2281_v9  ;;  %v2298_v20 = vld [vmem:[%s3007_s5 + $0x140] ss:$8 sps:$4 sm:$0xff]   ;;  %v2301_v22 = vld [vmem:[%s3007_s5 + $0x154] ss:$8 sps:$4 sm:$0xff]   ;;  %v2304_v24 = vld [vmem:[%s3007_s5 + $0x150] ss:$8 sps:$4 sm:$0xff]  }
  0xda   : > { %1671 = vmatprep.subr.bf16.mxu1 %v2283_v10  ;;  %v2305_v25 = vld [vmem:[%s3007_s5 + $0x64] ss:$8 sps:$4 sm:$0xff]   ;;  %v2309_v27 = vld [vmem:[%s3007_s5 + $0x60] ss:$8 sps:$4 sm:$0xff]   ;;  %v2311_v29 = vld [vmem:[%s3007_s5 + $0x74] ss:$8 sps:$4 sm:$0xff]  }
  0xdb   : > { %v2307_v26 = vld [vmem:[%s3007_s5 + $0x164] ss:$8 sps:$4 sm:$0xff]   ;;  %v2310_v28 = vld [vmem:[%s3007_s5 + $0x160] ss:$8 sps:$4 sm:$0xff]   ;;  %v2313_v30 = vld [vmem:[%s3007_s5 + $0x174] ss:$8 sps:$4 sm:$0xff]  }
  0xdc   : > { %1631 = vmatpush1.bf16.msra.mxu0 %v2285_v11  ;;  %v2315_v31 = vld [vmem:[%s3007_s5 + $0x70] ss:$8 sps:$4 sm:$0xff]   ;;  %v2317_v33 = vld [vmem:[%s3007_s5 + $0x84] ss:$8 sps:$4 sm:$0xff]   ;;  %v2321_v35 = vld [vmem:[%s3007_s5 + $0x80] ss:$8 sps:$4 sm:$0xff]  }
  0xdd   : > { %1672 = vmatpush1.bf16.msra.mxu1 %v2286_v12  ;;  %1632 = vmatprep.subr.bf16.mxu0 %v2287_v13  ;;  %v2316_v32 = vld [vmem:[%s3007_s5 + $0x170] ss:$8 sps:$4 sm:$0xff]   ;;  %v2319_v34 = vld [vmem:[%s3007_s5 + $0x184] ss:$8 sps:$4 sm:$0xff]   ;;  %v2322_v36 = vld [vmem:[%s3007_s5 + $0x180] ss:$8 sps:$4 sm:$0xff]  }
  0xde   : > { %1673 = vmatprep.subr.bf16.mxu1 %v2289_v14  ;;  %v2323_v37 = vld [vmem:[%s3007_s5 + $0x94] ss:$8 sps:$4 sm:$0xff]   ;;  %v2327_v39 = vld [vmem:[%s3007_s5 + $0x90] ss:$8 sps:$4 sm:$0xff]   ;;  %v2329_v41 = vld [vmem:[%s3007_s5 + $0xa4] ss:$8 sps:$4 sm:$0xff]  }
  0xdf   : > { %v2325_v38 = vld [vmem:[%s3007_s5 + $0x194] ss:$8 sps:$4 sm:$0xff]   ;;  %v2328_v40 = vld [vmem:[%s3007_s5 + $0x190] ss:$8 sps:$4 sm:$0xff]   ;;  %v2331_v42 = vld [vmem:[%s3007_s5 + $0x1a4] ss:$8 sps:$4 sm:$0xff]  }
  0xe0   : > { %1633 = vmatpush1.bf16.msra.mxu0 %v2291_v15  ;;  %v2333_v43 = vld [vmem:[%s3007_s5 + $0xa0] ss:$8 sps:$4 sm:$0xff]   ;;  %v2335_v45 = vld [vmem:[%s3007_s5 + $0xb4] ss:$8 sps:$4 sm:$0xff]   ;;  %v2339_v50 = vld [vmem:[%s3007_s5 + $0xb0] ss:$8 sps:$4 sm:$0xff]  }
  0xe1   : > { %1674 = vmatpush1.bf16.msra.mxu1 %v2292_v16  ;;  %1634 = vmatprep.subr.bf16.mxu0 %v2293_v17  ;;  %v2334_v44 = vld [vmem:[%s3007_s5 + $0x1a0] ss:$8 sps:$4 sm:$0xff]   ;;  %v2337_v46 = vld [vmem:[%s3007_s5 + $0x1b4] ss:$8 sps:$4 sm:$0xff]   ;;  %v2340_v51 = vld [vmem:[%s3007_s5 + $0x1b0] ss:$8 sps:$4 sm:$0xff]  }
  0xe2   : > { %1675 = vmatprep.subr.bf16.mxu1 %v2295_v18  ;;  %v826_v47 = vld [vmem:[%s2989_s29] sm:$0xff]  ;;  %v827_v49 = vld [vmem:[%s2989_s29 + $0x8] sm:$0xff]  ;;  %v2347_v57 = vld [vmem:[%s3007_s5 + $0xd4] ss:$8 sps:$4 sm:$0xff]   ;;  %p2178_p7 = scmp.ne.s32.totalorder %s2563_s17, 7 }
  0xe3   : > { %v2043_v48 = vcombine.high %v826_v47, %v826_v47  ;;  %v2045_v52 = vcombine.high %v827_v49, %v827_v49  ;;  %v2341_v53 = vld [vmem:[%s3007_s5 + $0xc4] ss:$8 sps:$4 sm:$0xff]   ;;  %v2345_v55 = vld [vmem:[%s3007_s5 + $0xc0] ss:$8 sps:$4 sm:$0xff]   ;;  %v2349_v58 = vld [vmem:[%s3007_s5 + $0x1d4] ss:$8 sps:$4 sm:$0xff]   ;;  %v2042_v7 = vcombine.low %v826_v47, %v826_v47  ;;  %v2044_v8 = vcombine.low %v827_v49, %v827_v49 }
  0xe4   : > { %1635 = vmatpush1.bf16.msra.mxu0 %v2297_v19  ;;  %v2343_v54 = vld [vmem:[%s3007_s5 + $0x1c4] ss:$8 sps:$4 sm:$0xff]   ;;  %v2346_v56 = vld [vmem:[%s3007_s5 + $0x1c0] ss:$8 sps:$4 sm:$0xff]   ;;  %v2351_v59 = vld [vmem:[%s3007_s5 + $0xd0] ss:$8 sps:$4 sm:$0xff]  }
  0xe5   : > { %1676 = vmatpush1.bf16.msra.mxu1 %v2298_v20  ;;  %1636 = vmatprep.subr.bf16.mxu0 %v2299_v21  ;;  %v2352_v60 = vld [vmem:[%s3007_s5 + $0x1d0] ss:$8 sps:$4 sm:$0xff]   ;;  %v2353_v61 = vld [vmem:[%s3007_s5 + $0xe4] ss:$8 sps:$4 sm:$0xff]   ;;  %v2357_v63 = vld [vmem:[%s3007_s5 + $0xe0] ss:$8 sps:$4 sm:$0xff]  }
  0xe6   : > { %1677 = vmatprep.subr.bf16.mxu1 %v2301_v22  ;;  %1658 = vmatprep.mubr.bf16.mxu0 %v2043_v48  ;;  %v2355_v62 = vld [vmem:[%s3007_s5 + $0x1e4] ss:$8 sps:$4 sm:$0xff]   ;;  %v2358_v0 = vld [vmem:[%s3007_s5 + $0x1e0] ss:$8 sps:$4 sm:$0xff]   ;;  %v2359_v1 = vld [vmem:[%s3007_s5 + $0xf4] ss:$8 sps:$4 sm:$0xff]  }
  0xe7   : > { %1699 = vmatprep.mubr.bf16.mxu1 %v2045_v52  ;;  %v2361_v2 = vld [vmem:[%s3007_s5 + $0x1f4] ss:$8 sps:$4 sm:$0xff]   ;;  %v2363_v3 = vld [vmem:[%s3007_s5 + $0xf0] ss:$8 sps:$4 sm:$0xff]   ;;  %v2371_v5 = vld [vmem:[%s3007_s5 + $0x204] ss:$8 sps:$4 sm:$0xff]  }
  0xe8   : > { %1637 = vmatpush1.bf16.msra.mxu0 %v2303_v23  ;;  %v2364_v4 = vld [vmem:[%s3007_s5 + $0x1f0] ss:$8 sps:$4 sm:$0xff]   ;;  %v2374_v6 = vld [vmem:[%s3007_s5 + $0x304] ss:$8 sps:$4 sm:$0xff]   ;;  %v2369_v9 = vld [vmem:[%s3007_s5 + $0x200] ss:$8 sps:$4 sm:$0xff]  }
  0xe9   : > { %1678 = vmatpush1.bf16.msra.mxu1 %v2304_v24  ;;  %1638 = vmatprep.subr.bf16.mxu0 %v2305_v25  ;;  %v2372_v10 = vld [vmem:[%s3007_s5 + $0x300] ss:$8 sps:$4 sm:$0xff]   ;;  %v2377_v11 = vld [vmem:[%s3007_s5 + $0x214] ss:$8 sps:$4 sm:$0xff]   ;;  %v2375_v13 = vld [vmem:[%s3007_s5 + $0x210] ss:$8 sps:$4 sm:$0xff]  }
  0xea   : > { %1679 = vmatprep.subr.bf16.mxu1 %v2307_v26  ;;  %v2380_v12 = vld [vmem:[%s3007_s5 + $0x314] ss:$8 sps:$4 sm:$0xff]   ;;  %v2378_v14 = vld [vmem:[%s3007_s5 + $0x310] ss:$8 sps:$4 sm:$0xff]   ;;  %v2383_v15 = vld [vmem:[%s3007_s5 + $0x224] ss:$8 sps:$4 sm:$0xff]  }
  0xeb   : > { %v2386_v16 = vld [vmem:[%s3007_s5 + $0x324] ss:$8 sps:$4 sm:$0xff]   ;;  %v2381_v17 = vld [vmem:[%s3007_s5 + $0x220] ss:$8 sps:$4 sm:$0xff]   ;;  %v2389_v19 = vld [vmem:[%s3007_s5 + $0x234] ss:$8 sps:$4 sm:$0xff]  }
  0xec   : > { %1639 = vmatpush1.bf16.msra.mxu0 %v2309_v27  ;;  %v2384_v18 = vld [vmem:[%s3007_s5 + $0x320] ss:$8 sps:$4 sm:$0xff]   ;;  %v2392_v20 = vld [vmem:[%s3007_s5 + $0x334] ss:$8 sps:$4 sm:$0xff]   ;;  %v2387_v21 = vld [vmem:[%s3007_s5 + $0x230] ss:$8 sps:$4 sm:$0xff]  }
  0xed   : > { %1680 = vmatpush1.bf16.msra.mxu1 %v2310_v28  ;;  %1640 = vmatprep.subr.bf16.mxu0 %v2311_v29  ;;  %v2390_v22 = vld [vmem:[%s3007_s5 + $0x330] ss:$8 sps:$4 sm:$0xff]   ;;  %v2395_v23 = vld [vmem:[%s3007_s5 + $0x244] ss:$8 sps:$4 sm:$0xff]   ;;  %v2393_v25 = vld [vmem:[%s3007_s5 + $0x240] ss:$8 sps:$4 sm:$0xff]  }
  0xee   : > { %1681 = vmatprep.subr.bf16.mxu1 %v2313_v30  ;;  %v2398_v24 = vld [vmem:[%s3007_s5 + $0x344] ss:$8 sps:$4 sm:$0xff]   ;;  %v2396_v26 = vld [vmem:[%s3007_s5 + $0x340] ss:$8 sps:$4 sm:$0xff]   ;;  %v2401_v27 = vld [vmem:[%s3007_s5 + $0x254] ss:$8 sps:$4 sm:$0xff]  }
  0xef   : > { %v2404_v28 = vld [vmem:[%s3007_s5 + $0x354] ss:$8 sps:$4 sm:$0xff]   ;;  %v2399_v29 = vld [vmem:[%s3007_s5 + $0x250] ss:$8 sps:$4 sm:$0xff]   ;;  %v2434_v52 = vld [vmem:[%s3007_s5 + $0x3a4] ss:$8 sps:$4 sm:$0xff]  }
  0xf0   : > { %1641 = vmatpush1.bf16.msra.mxu0 %v2315_v31  ;;  %v2402_v30 = vld [vmem:[%s3007_s5 + $0x350] ss:$8 sps:$4 sm:$0xff]   ;;  %v2407_v31 = vld [vmem:[%s3007_s5 + $0x264] ss:$8 sps:$4 sm:$0xff]   ;;  %v2425_v47 = vld [vmem:[%s3007_s5 + $0x294] ss:$8 sps:$4 sm:$0xff]  }
  0xf1   : > { %1682 = vmatpush1.bf16.msra.mxu1 %v2316_v32  ;;  %1642 = vmatprep.subr.bf16.mxu0 %v2317_v33  ;;  %v2410_v32 = vld [vmem:[%s3007_s5 + $0x364] ss:$8 sps:$4 sm:$0xff]   ;;  %v3103_v33 = vld [vmem:[%s2989_s29 + $0x10] sm:$0xff]  ;;  %vm1826_vm0 = vcmask (!%p2178_p7), 1040384  }
  0xf2   : > { %1683 = vmatprep.subr.bf16.mxu1 %v2319_v34  ;;  %v3106_v34 = vld [vmem:[%s2989_s29 + $0x18] sm:$0xff] }
  0xf3   : > { %v2428_v48 = vld [vmem:[%s3007_s5 + $0x394] ss:$8 sps:$4 sm:$0xff]   ;;  %v2423_v49 = vld [vmem:[%s3007_s5 + $0x290] ss:$8 sps:$4 sm:$0xff]  }
  0xf4   : > { %1643 = vmatpush1.bf16.msra.mxu0 %v2321_v35  ;;  %v2047_v35 = vcombine.high %v3103_v33, %v3103_v33 }
  0xf5   : > { %1684 = vmatpush1.bf16.msra.mxu1 %v2322_v36  ;;  %1644 = vmatprep.subr.bf16.mxu0 %v2323_v37  ;;  %v2049_v36 = vcombine.high %v3106_v34, %v3106_v34  ;;  %v2405_v37 = vld [vmem:[%s3007_s5 + $0x260] ss:$8 sps:$4 sm:$0xff]  }
  0xf6   : > { %1685 = vmatprep.subr.bf16.mxu1 %v2325_v38  ;;  %v2408_v38 = vld [vmem:[%s3007_s5 + $0x360] ss:$8 sps:$4 sm:$0xff]  }
  0xf8   : > { %1645 = vmatpush1.bf16.msra.mxu0 %v2327_v39  ;;  %v2413_v39 = vld [vmem:[%s3007_s5 + $0x274] ss:$8 sps:$4 sm:$0xff]  }
  0xf9   : > { %1686 = vmatpush1.bf16.msra.mxu1 %v2328_v40  ;;  %1646 = vmatprep.subr.bf16.mxu0 %v2329_v41  ;;  %v2416_v40 = vld [vmem:[%s3007_s5 + $0x374] ss:$8 sps:$4 sm:$0xff]   ;;  %v2411_v41 = vld [vmem:[%s3007_s5 + $0x270] ss:$8 sps:$4 sm:$0xff]  }
  0xfa   : > { %1687 = vmatprep.subr.bf16.mxu1 %v2331_v42  ;;  %v2414_v42 = vld [vmem:[%s3007_s5 + $0x370] ss:$8 sps:$4 sm:$0xff]  }
  0xfc   : > { %1647 = vmatpush1.bf16.msra.mxu0 %v2333_v43  ;;  %v2419_v43 = vld [vmem:[%s3007_s5 + $0x284] ss:$8 sps:$4 sm:$0xff]  }
  0xfd   : > { %1688 = vmatpush1.bf16.msra.mxu1 %v2334_v44  ;;  %1648 = vmatprep.subr.bf16.mxu0 %v2335_v45  ;;  %v2422_v44 = vld [vmem:[%s3007_s5 + $0x384] ss:$8 sps:$4 sm:$0xff]   ;;  %v2417_v45 = vld [vmem:[%s3007_s5 + $0x280] ss:$8 sps:$4 sm:$0xff]  }
  0xfe   : > { %1689 = vmatprep.subr.bf16.mxu1 %v2337_v46  ;;  %v2420_v46 = vld [vmem:[%s3007_s5 + $0x380] ss:$8 sps:$4 sm:$0xff]  }
 0x100   : > { %1649 = vmatpush1.bf16.msra.mxu0 %v2339_v50  ;;  %v2426_v50 = vld [vmem:[%s3007_s5 + $0x390] ss:$8 sps:$4 sm:$0xff]  }
 0x101   : > { %1690 = vmatpush1.bf16.msra.mxu1 %v2340_v51  ;;  %1650 = vmatprep.subr.bf16.mxu0 %v2341_v53  ;;  %v2431_v51 = vld [vmem:[%s3007_s5 + $0x2a4] ss:$8 sps:$4 sm:$0xff]   ;;  %v2429_v53 = vld [vmem:[%s3007_s5 + $0x2a0] ss:$8 sps:$4 sm:$0xff]  }
 0x102   : > { %1691 = vmatprep.subr.bf16.mxu1 %v2343_v54  ;;  %v2432_v54 = vld [vmem:[%s3007_s5 + $0x3a0] ss:$8 sps:$4 sm:$0xff]  }
 0x104   : > { %1651 = vmatpush1.bf16.msra.mxu0 %v2345_v55  ;;  %v2437_v55 = vld [vmem:[%s3007_s5 + $0x2b4] ss:$8 sps:$4 sm:$0xff]  }
 0x105   : > { %1692 = vmatpush1.bf16.msra.mxu1 %v2346_v56  ;;  %1652 = vmatprep.subr.bf16.mxu0 %v2347_v57  ;;  %v2440_v56 = vld [vmem:[%s3007_s5 + $0x3b4] ss:$8 sps:$4 sm:$0xff]   ;;  %v2435_v57 = vld [vmem:[%s3007_s5 + $0x2b0] ss:$8 sps:$4 sm:$0xff]  }
 0x106   : > { %1693 = vmatprep.subr.bf16.mxu1 %v2349_v58  ;;  %v2438_v58 = vld [vmem:[%s3007_s5 + $0x3b0] ss:$8 sps:$4 sm:$0xff]  }
 0x108   : > { %1653 = vmatpush1.bf16.msra.mxu0 %v2351_v59  ;;  %v2443_v59 = vld [vmem:[%s3007_s5 + $0x2c4] ss:$8 sps:$4 sm:$0xff]  }
 0x109   : > { %1694 = vmatpush1.bf16.msra.mxu1 %v2352_v60  ;;  %1654 = vmatprep.subr.bf16.mxu0 %v2353_v61  ;;  %v2446_v60 = vld [vmem:[%s3007_s5 + $0x3c4] ss:$8 sps:$4 sm:$0xff]   ;;  %v2441_v61 = vld [vmem:[%s3007_s5 + $0x2c0] ss:$8 sps:$4 sm:$0xff]  }
 0x10a   : > { %1695 = vmatprep.subr.bf16.mxu1 %v2355_v62  ;;  %v2444_v62 = vld [vmem:[%s3007_s5 + $0x3c0] ss:$8 sps:$4 sm:$0xff]  }
 0x10c   : > { %1655 = vmatpush1.bf16.msra.mxu0 %v2357_v63  ;;  %v2449_v63 = vld [vmem:[%s3007_s5 + $0x2d4] ss:$8 sps:$4 sm:$0xff]  }
 0x10d   : > { %1696 = vmatpush1.bf16.msra.mxu1 %v2358_v0  ;;  %1656 = vmatprep.subr.bf16.mxu0 %v2359_v1  ;;  %v2452_v0 = vld [vmem:[%s3007_s5 + $0x3d4] ss:$8 sps:$4 sm:$0xff]   ;;  %v2447_v1 = vld [vmem:[%s3007_s5 + $0x2d0] ss:$8 sps:$4 sm:$0xff]  }
 0x10e   : > { %1697 = vmatprep.subr.bf16.mxu1 %v2361_v2  ;;  %v2450_v2 = vld [vmem:[%s3007_s5 + $0x3d0] ss:$8 sps:$4 sm:$0xff]  }
 0x110   : > { %1657 = vmatpush1.bf16.msra.mxu0 %v2363_v3  ;;  %v2455_v3 = vld [vmem:[%s3007_s5 + $0x2e4] ss:$8 sps:$4 sm:$0xff]  }
 0x111   : > { %1698 = vmatpush1.bf16.msra.mxu1 %v2364_v4  ;;  %1708 = vmatprep.subr.bf16.mxu0 %v2371_v5  ;;  %v2458_v4 = vld [vmem:[%s3007_s5 + $0x3e4] ss:$8 sps:$4 sm:$0xff]   ;;  %v2453_v5 = vld [vmem:[%s3007_s5 + $0x2e0] ss:$8 sps:$4 sm:$0xff]  }
 0x112   : > { %1749 = vmatprep.subr.bf16.mxu1 %v2374_v6  ;;  %v2456_v6 = vld [vmem:[%s3007_s5 + $0x3e0] ss:$8 sps:$4 sm:$0xff]  }
 0x113   : > { %1659 = vmatmul.mubr.bf16.vlgmr.msra.gmra.mrb[0].mxu0 %v2042_v7  ;;  %v2461_v7 = vld [vmem:[%s3007_s5 + $0x2f4] ss:$8 sps:$4 sm:$0xff]  }
 0x114   : > { %1700 = vmatmul.mubr.bf16.vlgmr.msra.gmra.mrb[0].mxu1 %v2044_v8  ;;  %1709 = vmatpush1.bf16.msra.mxu0 %v2369_v9  ;;  %v2464_v8 = vld [vmem:[%s3007_s5 + $0x3f4] ss:$8 sps:$4 sm:$0xff]   ;;  %v2459_v9 = vld [vmem:[%s3007_s5 + $0x2f0] ss:$8 sps:$4 sm:$0xff]  }
 0x115   : > { %1750 = vmatpush1.bf16.msra.mxu1 %v2372_v10  ;;  %1710 = vmatprep.subr.bf16.mxu0 %v2377_v11  ;;  %v2462_v10 = vld [vmem:[%s3007_s5 + $0x3f0] ss:$8 sps:$4 sm:$0xff]   ;;  %v2046_v11 = vcombine.low %v3103_v33, %v3103_v33 }
 0x116   : > { %1751 = vmatprep.subr.bf16.mxu1 %v2380_v12  ;;  %1740 = vmatprep.mubr.bf16.mxu0 %v2047_v35  ;;  %v2048_v12 = vcombine.low %v3106_v34, %v3106_v34  ;;  %v825_v33 = vld [vmem:[#allocation2 + $0x8] sm:$0xff] }
 0x117   : > { %1781 = vmatprep.mubr.bf16.mxu1 %v2049_v36 }
 0x118   : > { %1711 = vmatpush1.bf16.msra.mxu0 %v2375_v13 }
 0x119   : > { %1752 = vmatpush1.bf16.msra.mxu1 %v2378_v14  ;;  %1712 = vmatprep.subr.bf16.mxu0 %v2383_v15 }
 0x11a   : > { %1753 = vmatprep.subr.bf16.mxu1 %v2386_v16 }
 0x11c   : > { %1713 = vmatpush1.bf16.msra.mxu0 %v2381_v17 }
 0x11d   : > { %1754 = vmatpush1.bf16.msra.mxu1 %v2384_v18  ;;  %1714 = vmatprep.subr.bf16.mxu0 %v2389_v19 }
 0x11e   : > { %1755 = vmatprep.subr.bf16.mxu1 %v2392_v20 }
 0x120   : > { %1715 = vmatpush1.bf16.msra.mxu0 %v2387_v21 }
 0x121   : > { %1756 = vmatpush1.bf16.msra.mxu1 %v2390_v22  ;;  %1716 = vmatprep.subr.bf16.mxu0 %v2395_v23 }
 0x122   : > { %1757 = vmatprep.subr.bf16.mxu1 %v2398_v24 }
 0x124   : > { %1717 = vmatpush1.bf16.msra.mxu0 %v2393_v25 }
 0x125   : > { %1758 = vmatpush1.bf16.msra.mxu1 %v2396_v26  ;;  %1718 = vmatprep.subr.bf16.mxu0 %v2401_v27 }
 0x126   : > { %1759 = vmatprep.subr.bf16.mxu1 %v2404_v28  ;;  %v824_v28 = vld [vmem:[#allocation2] sm:$0xff] }
 0x128   : > { %1719 = vmatpush1.bf16.msra.mxu0 %v2399_v29 }
 0x129   : > { %1760 = vmatpush1.bf16.msra.mxu1 %v2402_v30  ;;  %1720 = vmatprep.subr.bf16.mxu0 %v2407_v31 }
 0x12a   : > { %1761 = vmatprep.subr.bf16.mxu1 %v2410_v32 }
 0x12c   : > { %1721 = vmatpush1.bf16.msra.mxu0 %v2405_v37 }
 0x12d   : > { %1762 = vmatpush1.bf16.msra.mxu1 %v2408_v38  ;;  %1722 = vmatprep.subr.bf16.mxu0 %v2413_v39 }
 0x12e   : > { %1763 = vmatprep.subr.bf16.mxu1 %v2416_v40 }
 0x130   : > { %1723 = vmatpush1.bf16.msra.mxu0 %v2411_v41 }
 0x131   : > { %1764 = vmatpush1.bf16.msra.mxu1 %v2414_v42  ;;  %1724 = vmatprep.subr.bf16.mxu0 %v2419_v43 }
 0x132   : > { %1765 = vmatprep.subr.bf16.mxu1 %v2422_v44 }
 0x134   : > { %1725 = vmatpush1.bf16.msra.mxu0 %v2417_v45 }
 0x135   : > { %1766 = vmatpush1.bf16.msra.mxu1 %v2420_v46  ;;  %1726 = vmatprep.subr.bf16.mxu0 %v2425_v47 }
 0x136   : > { %1767 = vmatprep.subr.bf16.mxu1 %v2428_v48 }
 0x138   : > { %1727 = vmatpush1.bf16.msra.mxu0 %v2423_v49 }
 0x139   : > { %1768 = vmatpush1.bf16.msra.mxu1 %v2426_v50  ;;  %1728 = vmatprep.subr.bf16.mxu0 %v2431_v51 }
 0x13a   : > { %1769 = vmatprep.subr.bf16.mxu1 %v2434_v52 }
 0x13c   : > { %1729 = vmatpush1.bf16.msra.mxu0 %v2429_v53 }
 0x13d   : > { %1770 = vmatpush1.bf16.msra.mxu1 %v2432_v54  ;;  %1730 = vmatprep.subr.bf16.mxu0 %v2437_v55 }
 0x13e   : > { %1771 = vmatprep.subr.bf16.mxu1 %v2440_v56 }
 0x140   : > { %1731 = vmatpush1.bf16.msra.mxu0 %v2435_v57 }
 0x141   : > { %1772 = vmatpush1.bf16.msra.mxu1 %v2438_v58  ;;  %1732 = vmatprep.subr.bf16.mxu0 %v2443_v59 }
 0x142   : > { %1773 = vmatprep.subr.bf16.mxu1 %v2446_v60 }
 0x144   : > { %1733 = vmatpush1.bf16.msra.mxu0 %v2441_v61 }
 0x145   : > { %1774 = vmatpush1.bf16.msra.mxu1 %v2444_v62  ;;  %1734 = vmatprep.subr.bf16.mxu0 %v2449_v63 }
 0x146   : > { %1775 = vmatprep.subr.bf16.mxu1 %v2452_v0 }
 0x148   : > { %1735 = vmatpush1.bf16.msra.mxu0 %v2447_v1 }
 0x149   : > { %1776 = vmatpush1.bf16.msra.mxu1 %v2450_v2  ;;  %1736 = vmatprep.subr.bf16.mxu0 %v2455_v3 }
 0x14a   : > { %1777 = vmatprep.subr.bf16.mxu1 %v2458_v4 }
 0x14c   : > { %1737 = vmatpush1.bf16.msra.mxu0 %v2453_v5 }
 0x14d   : > { %1778 = vmatpush1.bf16.msra.mxu1 %v2456_v6  ;;  %1738 = vmatprep.subr.bf16.mxu0 %v2461_v7 }
 0x14e   : > { %1779 = vmatprep.subr.bf16.mxu1 %v2464_v8 }
 0x150   : > { %1739 = vmatpush1.bf16.msra.mxu0 %v2459_v9 }
 0x151   : > { %1780 = vmatpush1.bf16.msra.mxu1 %v2462_v10 }
 0x153   : > { %1741 = vmatmul.mubr.bf16.vlgmr.msra.gmra.mrb[4].mxu0 %v2046_v11 }
 0x154   : > { %1782 = vmatmul.mubr.bf16.vlgmr.msra.gmra.mrb[4].mxu1 %v2048_v12 }
 0x1e6   : > { %v1660_v13 = vpop.f32.mrb[0].mxu0 }
 0x1e7   : > { %v1701_v14 = vpop.f32.mrb[0].mxu1  ;;  %v1662_v16 = vpop.f32.mrb[1].mxu0 }
 0x1e8   : > { %v1702_v15 = vadd.f32 %v1701_v14, %v1660_v13  ;;  %v1703_v17 = vpop.f32.mrb[1].mxu1  ;;  %v1664_v19 = vpop.f32.mrb[2].mxu0 }
 0x1e9   : > { %v1704_v18 = vadd.f32 %v1703_v17, %v1662_v16  ;;  %v1705_v20 = vpop.f32.mrb[2].mxu1  ;;  %v1665_v21 = vpop.f32.mrb[3].mxu0 }
 0x1ea   : > { %v1706_v22 = vpop.f32.mrb[3].mxu1 }
 0x226   : > { %v1742_v23 = vpop.f32.mrb[4].mxu0 }
 0x227   : > { %v1783_v24 = vpop.f32.mrb[4].mxu1  ;;  %v1743_v25 = vadd.f32 %v1742_v23, %v1702_v15  ;;  %v1744_v26 = vpop.f32.mrb[5].mxu0 }
 0x228   : > { %v1785_v27 = vpop.f32.mrb[5].mxu1  ;;  %v1745_v29 = vadd.f32 %v1744_v26, %v1704_v18  ;;  %v1746_v30 = vpop.f32.mrb[6].mxu0  ;;  %1797 = sbr.rel (%p2178_p7) target bundleno = 584 (0x248), region = 78 }
 0x229   : > { %v1787_v31 = vpop.f32.mrb[6].mxu1  ;;  %v1784_v32 = vadd.f32 %v1783_v24, %v1743_v25  ;;  %v1747_v34 = vpop.f32.mrb[7].mxu0 }
 0x22a   : > { %v1788_v35 = vpop.f32.mrb[7].mxu1  ;;  %v1786_v36 = vadd.f32 %v1785_v27, %v1745_v29 }
 0x22b   : > { %v1790_v37 = vadd.f32 %v1784_v32, %v824_v28 }
 0x22c   : > { %v1791_v38 = vadd.f32 %v1786_v36, %v825_v33 }
 0x22d   : > { %1792 = vst [vmem:[#allocation2] sm:$0xff] %v1790_v37 }
 0x22e   : > { %1793 = vst [vmem:[#allocation2 + $0x8] sm:$0xff] %v1791_v38 }
 0x234   : > { %v1798_v39 = vld [vmem:[#allocation2] sm:$0xff] }
 0x235   : > { %v1799_v40 = vld [vmem:[#allocation2 + $0x8] sm:$0xff]  ;;  %v1800_v41 = vrot.slane %v1798_v39, 4  ;;  %v1812_v43 = vmul.f32 %v1798_v39, %v1798_v39 }
 0x236   : > { %v1806_v42 = vrot.slane %v1799_v40, 4  ;;  %v1813_v44 = vmul.f32 %v1799_v40, %v1799_v40  ;;  %v2185_v45 = vpack.c.bf16 %v1799_v40, %v1798_v39 }
 0x237   : > { %v1801_v46 = vadd.f32 %v1800_v41, %v1798_v39  ;;  %v1814_v48 = vrot.slane %v1812_v43, 4 }
 0x238   : > { %v1807_v47 = vadd.f32 %v1806_v42, %v1799_v40  ;;  %v1820_v49 = vrot.slane %v1813_v44, 4  ;;  %1849 = vst [vmem:[%s3000_s8] sm:$0xff] %v2185_v45 }
 0x239   : > { %v1802_v50 = vrot.slane %v1801_v46, 2  ;;  %v1815_v52 = vadd.f32 %v1814_v48, %v1812_v43 }
 0x23a   : > { %v1808_v51 = vrot.slane %v1807_v47, 2  ;;  %v1821_v53 = vadd.f32 %v1820_v49, %v1813_v44 }
 0x23b   : > { %v1803_v54 = vadd.f32 %v1802_v50, %v1801_v46  ;;  %v1816_v56 = vrot.slane %v1815_v52, 2 }
 0x23c   : > { %v1809_v55 = vadd.f32 %v1808_v51, %v1807_v47  ;;  %v1822_v57 = vrot.slane %v1821_v53, 2 }
 0x23d   : > { %v1804_v58 = vrot.slane %v1803_v54, 1  ;;  %v1817_v60 = vadd.f32 %v1816_v56, %v1815_v52 }
 0x23e   : > { %v1810_v59 = vrot.slane %v1809_v55, 1  ;;  %v1823_v61 = vadd.f32 %v1822_v57, %v1821_v53 }
 0x23f   : > { %v1805_v62 = vadd.f32 %v1804_v58, %v1803_v54  ;;  %v1818_v0 = vrot.slane %v1817_v60, 1 }
 0x240   : > { %v1811_v63 = vadd.f32 %v1810_v59, %v1809_v55  ;;  %v1824_v1 = vrot.slane %v1823_v61, 1 }
 0x241   : > { %v1819_v2 = vadd.f32 %v1818_v0, %v1817_v60 }
 0x242   : > { %v1825_v3 = vadd.f32 %v1824_v1, %v1823_v61 }
 0x243   : > { %v1827_v4 = vsel %vm1826_vm0, %v1805_v62, %v1819_v2 }
 0x244   : > { %v1828_v5 = vsel %vm1826_vm0, %v1811_v63, %v1825_v3 }
 0x245   : > { %v1831_v6 = vcombine.low %v1827_v4, %v1828_v5 }
 0x247   : > { %2179 = vst.sshfl [vmem:[%s3005_s27] sm:$0x33 pattern:$0x76325410] %v1831_v6 }
 0x248 PF: > { %s17_s21 = sadd.s32 1, %s2579_s21   ;;  %s3201_s7 = sld [smem:[#allocation7_spill]] }
 0x249   : > { %p14_p9 = scmp.ge.s32.totalorder %s17_s21, 34   ;;  %s3202_s22 = sld [smem:[#allocation8_spill]] }
 0x24a   : > { %s3203_s12 = smov %s2547_s13  ;;  %s3204_s13 = smov %s2685_s6 }
 0x24b   : > { %s3205_s14 = smov %s2555_s15  ;;  %s3206_s15 = smov %s2559_s16 }
 0x24c   : > { %s3207_s16 = smov %s2673_s28  ;;  %s3208_s17 = smov %s2571_s19 }
 0x24d   : > { %s3209_s18 = smov %s2575_s20  ;;  %16 = sbr.rel (!%p14_p9) target bundleno = 6 (0x6), region = 134 }
 0x24e   : > { %s3210_s19 = smov %s3201_s7 }
 0x24f   : > { %s3211_s20 = smov %s3202_s22 }
 0x254   :  { %1905 = vsyncpa [#allocation4], 1 }
 0x255   :  { %1907 = vsyncpa [#allocation4 + $0x1], 1 }

// kernel: _lambda_.15
= control target key start
LH: loop header
LB: loop body
LE: loop exit
PB: predicated region body
PF: predicated region fallthrough
CT: control target
= control target key end

     0   :  { %s1350_s9 = smov 0   ;;  %s1352_s10 = smov 0   ;;  %s1464_s0 = inlined_call_operand.vmem [shape: bf16[8,4096], index: 0, kind: input, shape index: {}]   ;;  %s1465_s1 = inlined_call_operand.vmem [shape: bf16[4096,128], index: 1, kind: input, shape index: {}]   ;;  %s1466_s2 = inlined_call_operand.vmem [shape: f32[8,128], index: 2, kind: output, shape index: {}]  }
   0x1   :  { %s1354_s11 = smov 0  }
   0x2 LB: > { %s24_s12 = sadd.s32 1, %s1328_s10  ;;  %p1039_p0 = scmp.ge.s32.totalorder %s1332_s11, 1  ;;  %s1332_s11 = sphi %s1354_s11, %s12_s11   ;;  %s1328_s10 = sphi %s1352_s10, %s1468_s10   ;;  %s1324_s9 = sphi %s1350_s9, %s1467_s9  }
   0x3   : > { %p25_p1 = scmp.ge.s32.totalorder %s24_s12, 4  ;;  %p156_p2 = scmp.lt.s32.totalorder %s1332_s11, 5 }
   0x5   : > { %s1470_s12 = smov (%p25_p1, %s24_s12), 0  ;;  %p157_p3 = pnand %p1039_p0, %p156_p2 }
   0x6   : > { %s1040_s13 = sshll.u32 (!%p157_p3), %s1324_s9, 3  ;;  %s1042_s14 = sshll.u32 (!%p157_p3), %s1324_s9, 7 }
   0x7   : > { %160 = sbr.rel (%p157_p3) target bundleno = 348 (0x15c), region = 28  ;;  %p195_p4 = scmp.lt.s32.totalorder (!%p157_p3), %s1040_s13, 31 }
   0x8   : > { %p203_p5 = scmp.lt.s32.totalorder (!%p157_p3), %s1042_s14, 511  ;;  %p1044_p6 = scmp.ne.s32.totalorder (!%p157_p3), %s1324_s9, 0 }
   0xe   : > { %s1472_s13 = smov (!%p195_p4, %s1040_s13), 31  ;;  %s1474_s14 = smov (!%p203_p5, %s1042_s14), 511 }
   0xf   : > { %s1041_s15 = sshll.u32 %s1472_s13, 2  ;;  %s1043_s19 = sshll.u32 %s1474_s14, 2  ;;  %v1334_v0 = vmov (!%p1044_p6), 0.0  }
  0x10   : > { %s1375_s18 = scalar_lea.vmem %s1464_s0, %s1041_s15  ;;  %s1380_s22 = scalar_lea.vmem %s1465_s1, %s1043_s19  ;;  %223 = vst [vmem:[#allocation2] sm:$0xff] (!%p1044_p6), %v1334_v0 }
  0x11   : > { %222 = sbr.rel (%p1044_p6) target bundleno = 24 (0x18), region = 32 }
  0x18 PF: > { %v1234_v1 = vld [vmem:[%s1380_s22 + $0x40] sm:$0xff]   ;;  %v1238_v5 = vld [vmem:[%s1380_s22 + $0x48] sm:$0xff]   ;;  %v1242_v9 = vld [vmem:[%s1380_s22 + $0x50] sm:$0xff]   ;;  %p1117_p7 = scmp.ne.s32.totalorder %s1324_s9, 3 }
  0x19   : > { %v1235_v2 = vld [vmem:[%s1380_s22 + $0xc0] sm:$0xff]   ;;  %1121 = vmatprep.subr.bf16.mxu0 %v1234_v1  ;;  %v1239_v6 = vld [vmem:[%s1380_s22 + $0xc8] sm:$0xff]   ;;  %v1243_v10 = vld [vmem:[%s1380_s22 + $0xd0] sm:$0xff]  }
  0x1a   : > { %v1236_v3 = vld [vmem:[%s1380_s22] sm:$0xff]   ;;  %1143 = vmatprep.subr.bf16.mxu1 %v1235_v2  ;;  %v1240_v7 = vld [vmem:[%s1380_s22 + $0x8] sm:$0xff]   ;;  %v1244_v11 = vld [vmem:[%s1380_s22 + $0x10] sm:$0xff]  }
  0x1b   : > { %v1237_v4 = vld [vmem:[%s1380_s22 + $0x80] sm:$0xff]   ;;  %1122 = vmatpush3.bf16.msra.mxu0 %v1236_v3  ;;  %v1241_v8 = vld [vmem:[%s1380_s22 + $0x88] sm:$0xff]   ;;  %v1245_v12 = vld [vmem:[%s1380_s22 + $0x90] sm:$0xff]  }
  0x1c   : > { %1144 = vmatpush3.bf16.msra.mxu1 %v1237_v4  ;;  %1123 = vmatprep.subr.bf16.mxu0 %v1238_v5  ;;  %v1246_v13 = vld [vmem:[%s1380_s22 + $0x58] sm:$0xff]   ;;  %v1250_v17 = vld [vmem:[%s1380_s22 + $0x60] sm:$0xff]   ;;  %v1254_v21 = vld [vmem:[%s1380_s22 + $0x68] sm:$0xff]  }
  0x1d   : > { %1145 = vmatprep.subr.bf16.mxu1 %v1239_v6  ;;  %v1247_v14 = vld [vmem:[%s1380_s22 + $0xd8] sm:$0xff]   ;;  %v1251_v18 = vld [vmem:[%s1380_s22 + $0xe0] sm:$0xff]   ;;  %v1255_v22 = vld [vmem:[%s1380_s22 + $0xe8] sm:$0xff]  }
  0x1e   : > { %v1248_v15 = vld [vmem:[%s1380_s22 + $0x18] sm:$0xff]   ;;  %v1252_v19 = vld [vmem:[%s1380_s22 + $0x20] sm:$0xff]   ;;  %v1256_v23 = vld [vmem:[%s1380_s22 + $0x28] sm:$0xff]  }
  0x1f   : > { %1124 = vmatpush3.bf16.msra.mxu0 %v1240_v7  ;;  %v1249_v16 = vld [vmem:[%s1380_s22 + $0x98] sm:$0xff]   ;;  %v1253_v20 = vld [vmem:[%s1380_s22 + $0xa0] sm:$0xff]   ;;  %v1257_v24 = vld [vmem:[%s1380_s22 + $0xa8] sm:$0xff]  }
  0x20   : > { %1146 = vmatpush3.bf16.msra.mxu1 %v1241_v8  ;;  %1125 = vmatprep.subr.bf16.mxu0 %v1242_v9  ;;  %v1258_v25 = vld [vmem:[%s1380_s22 + $0x70] sm:$0xff]   ;;  %v1262_v29 = vld [vmem:[%s1380_s22 + $0x78] sm:$0xff]   ;;  %v225_v33 = vld [vmem:[%s1375_s18] sm:$0xff] }
  0x21   : > { %1147 = vmatprep.subr.bf16.mxu1 %v1243_v10  ;;  %v1259_v26 = vld [vmem:[%s1380_s22 + $0xf0] sm:$0xff]   ;;  %v1263_v30 = vld [vmem:[%s1380_s22 + $0xf8] sm:$0xff]   ;;  %v226_v34 = vld [vmem:[%s1375_s18 + $0x8] sm:$0xff]  ;;  %v1045_v35 = vcombine.low %v225_v33, %v225_v33  ;;  %v1046_v36 = vcombine.high %v225_v33, %v225_v33 }
  0x22   : > { %v1260_v27 = vld [vmem:[%s1380_s22 + $0x30] sm:$0xff]   ;;  %v1264_v31 = vld [vmem:[%s1380_s22 + $0x38] sm:$0xff]   ;;  %v1047_v37 = vcombine.low %v226_v34, %v226_v34  ;;  %v1048_v38 = vcombine.high %v226_v34, %v226_v34  ;;  %v1270_v39 = vld [vmem:[%s1380_s22 + $0x140] sm:$0xff]  }
  0x23   : > { %1126 = vmatpush3.bf16.msra.mxu0 %v1244_v11  ;;  %v1261_v28 = vld [vmem:[%s1380_s22 + $0xb0] sm:$0xff]   ;;  %v1265_v32 = vld [vmem:[%s1380_s22 + $0xb8] sm:$0xff]   ;;  %v1271_v40 = vld [vmem:[%s1380_s22 + $0x1c0] sm:$0xff]   ;;  %801 = vmatprep.mubr.bf16.mxu0 %v1046_v36 }
  0x24   : > { %1148 = vmatpush3.bf16.msra.mxu1 %v1245_v12  ;;  %1127 = vmatprep.subr.bf16.mxu0 %v1246_v13  ;;  %v1272_v41 = vld [vmem:[%s1380_s22 + $0x100] sm:$0xff]   ;;  %v1274_v43 = vld [vmem:[%s1380_s22 + $0x148] sm:$0xff]   ;;  %v1278_v47 = vld [vmem:[%s1380_s22 + $0x150] sm:$0xff]  }
  0x25   : > { %1149 = vmatprep.subr.bf16.mxu1 %v1247_v14  ;;  %841 = vmatprep.mubr.bf16.mxu1 %v1048_v38  ;;  %v1273_v42 = vld [vmem:[%s1380_s22 + $0x180] sm:$0xff]   ;;  %v1275_v44 = vld [vmem:[%s1380_s22 + $0x1c8] sm:$0xff]   ;;  %v1279_v48 = vld [vmem:[%s1380_s22 + $0x1d0] sm:$0xff]  }
  0x26   : > { %v1276_v45 = vld [vmem:[%s1380_s22 + $0x108] sm:$0xff]   ;;  %v1280_v49 = vld [vmem:[%s1380_s22 + $0x110] sm:$0xff]   ;;  %v1282_v51 = vld [vmem:[%s1380_s22 + $0x158] sm:$0xff]  }
  0x27   : > { %1128 = vmatpush3.bf16.msra.mxu0 %v1248_v15  ;;  %v1277_v46 = vld [vmem:[%s1380_s22 + $0x188] sm:$0xff]   ;;  %v1281_v50 = vld [vmem:[%s1380_s22 + $0x190] sm:$0xff]   ;;  %v1283_v52 = vld [vmem:[%s1380_s22 + $0x1d8] sm:$0xff]  }
  0x28   : > { %1150 = vmatpush3.bf16.msra.mxu1 %v1249_v16  ;;  %1129 = vmatprep.subr.bf16.mxu0 %v1250_v17  ;;  %v1284_v53 = vld [vmem:[%s1380_s22 + $0x118] sm:$0xff]   ;;  %v1286_v55 = vld [vmem:[%s1380_s22 + $0x160] sm:$0xff]   ;;  %v1290_v59 = vld [vmem:[%s1380_s22 + $0x168] sm:$0xff]  }
  0x29   : > { %1151 = vmatprep.subr.bf16.mxu1 %v1251_v18  ;;  %v1285_v54 = vld [vmem:[%s1380_s22 + $0x198] sm:$0xff]   ;;  %v1287_v56 = vld [vmem:[%s1380_s22 + $0x1e0] sm:$0xff]   ;;  %v1291_v60 = vld [vmem:[%s1380_s22 + $0x1e8] sm:$0xff]  }
  0x2a   : > { %v1288_v57 = vld [vmem:[%s1380_s22 + $0x120] sm:$0xff]   ;;  %v1292_v61 = vld [vmem:[%s1380_s22 + $0x128] sm:$0xff]   ;;  %v1294_v63 = vld [vmem:[%s1380_s22 + $0x170] sm:$0xff]  }
  0x2b   : > { %1130 = vmatpush3.bf16.msra.mxu0 %v1252_v19  ;;  %v1289_v58 = vld [vmem:[%s1380_s22 + $0x1a0] sm:$0xff]   ;;  %v1293_v62 = vld [vmem:[%s1380_s22 + $0x1a8] sm:$0xff]   ;;  %v1295_v0 = vld [vmem:[%s1380_s22 + $0x1f0] sm:$0xff]  }
  0x2c   : > { %1152 = vmatpush3.bf16.msra.mxu1 %v1253_v20  ;;  %1131 = vmatprep.subr.bf16.mxu0 %v1254_v21  ;;  %v1296_v1 = vld [vmem:[%s1380_s22 + $0x130] sm:$0xff]   ;;  %v1298_v3 = vld [vmem:[%s1380_s22 + $0x178] sm:$0xff]  }
  0x2d   : > { %1153 = vmatprep.subr.bf16.mxu1 %v1255_v22  ;;  %v1297_v2 = vld [vmem:[%s1380_s22 + $0x1b0] sm:$0xff]   ;;  %v1299_v4 = vld [vmem:[%s1380_s22 + $0x1f8] sm:$0xff]  }
  0x2e   : > { %v1300_v5 = vld [vmem:[%s1380_s22 + $0x138] sm:$0xff]   ;;  %v227_v7 = vld [vmem:[%s1375_s18 + $0x10] sm:$0xff] }
  0x2f   : > { %1132 = vmatpush3.bf16.msra.mxu0 %v1256_v23  ;;  %v1301_v6 = vld [vmem:[%s1380_s22 + $0x1b8] sm:$0xff]   ;;  %v1049_v8 = vcombine.low %v227_v7, %v227_v7  ;;  %v1050_v9 = vcombine.high %v227_v7, %v227_v7 }
  0x30   : > { %1154 = vmatpush3.bf16.msra.mxu1 %v1257_v24  ;;  %1133 = vmatprep.subr.bf16.mxu0 %v1258_v25  ;;  %v228_v10 = vld [vmem:[%s1375_s18 + $0x18] sm:$0xff] }
  0x31   : > { %1155 = vmatprep.subr.bf16.mxu1 %v1259_v26  ;;  %v1051_v11 = vcombine.low %v228_v10, %v228_v10  ;;  %v1052_v12 = vcombine.high %v228_v10, %v228_v10 }
  0x33   : > { %1134 = vmatpush3.bf16.msra.mxu0 %v1260_v27 }
  0x34   : > { %1156 = vmatpush3.bf16.msra.mxu1 %v1261_v28  ;;  %1135 = vmatprep.subr.bf16.mxu0 %v1262_v29 }
  0x35   : > { %1157 = vmatprep.subr.bf16.mxu1 %v1263_v30 }
  0x37   : > { %1136 = vmatpush3.bf16.msra.mxu0 %v1264_v31 }
  0x38   : > { %1158 = vmatpush3.bf16.msra.mxu1 %v1265_v32  ;;  %1165 = vmatprep.subr.bf16.mxu0 %v1270_v39 }
  0x39   : > { %1187 = vmatprep.subr.bf16.mxu1 %v1271_v40 }
  0x3a   : > { %802 = vmatmul.mubr.bf16.vlgmr.msra.gmra.mrb[0].mxu0 %v1045_v35  ;;  %v224_v35 = vld [vmem:[#allocation2] sm:$0xff] }
  0x3b   : > { %842 = vmatmul.mubr.bf16.vlgmr.msra.gmra.mrb[0].mxu1 %v1047_v37  ;;  %1166 = vmatpush3.bf16.msra.mxu0 %v1272_v41 }
  0x3c   : > { %1188 = vmatpush3.bf16.msra.mxu1 %v1273_v42  ;;  %1167 = vmatprep.subr.bf16.mxu0 %v1274_v43 }
  0x3d   : > { %1189 = vmatprep.subr.bf16.mxu1 %v1275_v44  ;;  %881 = vmatprep.mubr.bf16.mxu0 %v1050_v9 }
  0x3e   : > { %921 = vmatprep.mubr.bf16.mxu1 %v1052_v12 }
  0x3f   : > { %1168 = vmatpush3.bf16.msra.mxu0 %v1276_v45 }
  0x40   : > { %1190 = vmatpush3.bf16.msra.mxu1 %v1277_v46  ;;  %1169 = vmatprep.subr.bf16.mxu0 %v1278_v47 }
  0x41   : > { %1191 = vmatprep.subr.bf16.mxu1 %v1279_v48 }
  0x43   : > { %1170 = vmatpush3.bf16.msra.mxu0 %v1280_v49 }
  0x44   : > { %1192 = vmatpush3.bf16.msra.mxu1 %v1281_v50  ;;  %1171 = vmatprep.subr.bf16.mxu0 %v1282_v51 }
  0x45   : > { %1193 = vmatprep.subr.bf16.mxu1 %v1283_v52 }
  0x47   : > { %1172 = vmatpush3.bf16.msra.mxu0 %v1284_v53 }
  0x48   : > { %1194 = vmatpush3.bf16.msra.mxu1 %v1285_v54  ;;  %1173 = vmatprep.subr.bf16.mxu0 %v1286_v55 }
  0x49   : > { %1195 = vmatprep.subr.bf16.mxu1 %v1287_v56 }
  0x4b   : > { %1174 = vmatpush3.bf16.msra.mxu0 %v1288_v57 }
  0x4c   : > { %1196 = vmatpush3.bf16.msra.mxu1 %v1289_v58  ;;  %1175 = vmatprep.subr.bf16.mxu0 %v1290_v59 }
  0x4d   : > { %1197 = vmatprep.subr.bf16.mxu1 %v1291_v60 }
  0x4f   : > { %1176 = vmatpush3.bf16.msra.mxu0 %v1292_v61 }
  0x50   : > { %1198 = vmatpush3.bf16.msra.mxu1 %v1293_v62  ;;  %1177 = vmatprep.subr.bf16.mxu0 %v1294_v63 }
  0x51   : > { %1199 = vmatprep.subr.bf16.mxu1 %v1295_v0 }
  0x53   : > { %1178 = vmatpush3.bf16.msra.mxu0 %v1296_v1 }
  0x54   : > { %1200 = vmatpush3.bf16.msra.mxu1 %v1297_v2  ;;  %1179 = vmatprep.subr.bf16.mxu0 %v1298_v3 }
  0x55   : > { %1201 = vmatprep.subr.bf16.mxu1 %v1299_v4 }
  0x57   : > { %1180 = vmatpush3.bf16.msra.mxu0 %v1300_v5 }
  0x58   : > { %1202 = vmatpush3.bf16.msra.mxu1 %v1301_v6 }
  0x5a   : > { %882 = vmatmul.mubr.bf16.vlgmr.msra.gmra.mrb[4].mxu0 %v1049_v8 }
  0x5b   : > { %922 = vmatmul.mubr.bf16.vlgmr.msra.gmra.mrb[4].mxu1 %v1051_v11 }
 0x10d   : > { %v1137_v13 = vpop.f32.mrb[0].mxu0 }
 0x10e   : > { %v1159_v14 = vpop.f32.mrb[0].mxu1  ;;  %v1138_v15 = vpop.f32.mrb[1].mxu0 }
 0x10f   : > { %v1160_v16 = vpop.f32.mrb[1].mxu1  ;;  %v1139_v17 = vadd.f32 %v1138_v15, %v1137_v13  ;;  %v1140_v19 = vpop.f32.mrb[2].mxu0 }
 0x110   : > { %v1161_v18 = vadd.f32 %v1160_v16, %v1159_v14  ;;  %v1162_v20 = vpop.f32.mrb[2].mxu1  ;;  %v1141_v21 = vpop.f32.mrb[3].mxu0 }
 0x111   : > { %v1163_v22 = vpop.f32.mrb[3].mxu1 }
 0x112   : > { %v844_v23 = vadd.f32 %v1161_v18, %v1139_v17 }
 0x12d   : > { %v1181_v24 = vpop.f32.mrb[4].mxu0 }
 0x12e   : > { %v1203_v25 = vpop.f32.mrb[4].mxu1  ;;  %v1182_v26 = vpop.f32.mrb[5].mxu0 }
 0x12f   : > { %v1204_v27 = vpop.f32.mrb[5].mxu1  ;;  %v1183_v28 = vadd.f32 %v1182_v26, %v1181_v24  ;;  %v1184_v30 = vpop.f32.mrb[6].mxu0 }
 0x130   : > { %v1205_v29 = vadd.f32 %v1204_v27, %v1203_v25  ;;  %v1206_v31 = vpop.f32.mrb[6].mxu1  ;;  %v1185_v32 = vpop.f32.mrb[7].mxu0 }
 0x131   : > { %v1207_v33 = vpop.f32.mrb[7].mxu1  ;;  %v884_v34 = vadd.f32 %v1183_v28, %v844_v23  ;;  %934 = sbr.rel (%p1117_p7) target bundleno = 348 (0x15c), region = 36 }
 0x133   : > { %v924_v36 = vadd.f32 %v1205_v29, %v884_v34 }
 0x135   : > { %v929_v37 = vadd.f32 %v924_v36, %v224_v35 }
 0x137   : > { %930 = vst [vmem:[#allocation2] sm:$0xff] %v929_v37 }
 0x13e   : > { %v935_v38 = vld [vmem:[#allocation2] sm:$0xff] }
 0x13f   : > { %v936_v39 = vsub.f32 0.0, %v935_v38 }
 0x141   : > { %v937_v40 = vmul.f32 1.442695, %v936_v39 }
 0x143   : > { %1306 = vpow2.f32 %v937_v40 }
 0x14d   : > { %v1307_v41 = vpop.eup %1306 }
 0x14e   : > { %v939_v42 = vadd.f32 1.0, %v1307_v41 }
 0x150   : > { %1308 = vrcp.f32 %v939_v42 }
 0x15a   : > { %v1309_v43 = vpop.eup %1308 }
 0x15b   : > { %942 = vst [vmem:[%s1466_s2] sm:$0xff] %v1309_v43 }
 0x15c PF: > { %s12_s11 = sadd.s32 1, %s1332_s11   ;;  %s1467_s9 = smov %s1328_s10 }
 0x15d   : > { %p9_p8 = scmp.ge.s32.totalorder %s12_s11, 6   ;;  %s1468_s10 = smov %s1470_s12 }
 0x15f   :  { %11 = sbr.rel (!%p9_p8) target bundleno = 2 (0x2), region = 69 }

</bundles_post_ra>
